<compile_context>
chip_gen: v6e
topology: v6e:2x2x1
jax: 0.10.0
libtpu: 0.0.40
codegen_flags: <defaults>
</compile_context>

<pallas_src>
import math
import functools
from operator import itemgetter

import numpy as np
import jax
import jax.numpy as jnp
from jax import lax
from jax.experimental import pallas as pl
from jax.experimental.pallas import tpu as pltpu


# ---------------------------------------------------------------------------
# Pallas kernel: dense block-diagonal-masked self-attention over one slab of
# lane-packed rows.  x_ref is (r, pack*d) bf16 where packed row i holds the
# `pack` original rows pack*i .. pack*i+pack-1 side by side along lanes.
# ---------------------------------------------------------------------------
def _attn_kernel(x_ref, wqkv_ref, wo_ref, rid_ref, cid_ref, o_ref, *, d, pack):
    pd = pack * d
    r = x_ref.shape[0]          # packed rows in this block
    m = r * pack                # attention rows in this block

    x_pack = x_ref[...]                                   # (r, pack*d) bf16

    # Fused block-diagonal QKV projection: one MXU matmul with K = pack*d (=128).
    qkv = jnp.dot(x_pack, wqkv_ref[...],
                  preferred_element_type=jnp.float32)     # (r, 3*pack*d) f32

    # Un-pack the lane-packed rows into "p-grouped" row order:
    #   grouped row (p*r + i)  <->  original row (pack*i + p).
    # Only 128-safe ops: static lane slices + sublane-aligned concatenation.
    def unpack(base):
        parts = [qkv[:, base + p * d: base + (p + 1) * d].astype(jnp.bfloat16)
                 for p in range(pack)]
        return parts[0] if pack == 1 else jnp.concatenate(parts, axis=0)

    q = unpack(0)        # (m, d) bf16; 1/sqrt(d) already folded into the weights
    k = unpack(pd)
    v = unpack(2 * pd)

    # Dense (m, m) scores + block-diagonal sequence mask: one big MXU op instead
    # of bn tiny batched matmuls.  Mask uses a finite -1e30 (no -inf / NaN risk).
    s = lax.dot_general(q, k, (((1,), (1,)), ((), ())),
                        preferred_element_type=jnp.float32)   # (m, m) f32
    same_seq = rid_ref[...] == cid_ref[...]                   # (m, m) bool
    s = jnp.where(same_seq, s, jnp.float32(-1e30))

    # f32 softmax; reciprocal runs on the otherwise-idle EUP (approx ~1e-3 rel).
    mx = jnp.max(s, axis=-1, keepdims=True)
    e = jnp.exp(s - mx)
    p_att = e * pl.reciprocal(jnp.sum(e, axis=-1, keepdims=True), approx=True)

    att = jnp.dot(p_att.astype(jnp.bfloat16), v,
                  preferred_element_type=jnp.float32)         # (m, d) f32

    # Re-pack grouped rows back to the lane-dense (r, pack*d) layout and apply
    # the block-diagonal output projection -> full-width (128-lane) stores.
    parts = [att[p * r:(p + 1) * r, :].astype(jnp.bfloat16) for p in range(pack)]
    att_pack = parts[0] if pack == 1 else jnp.concatenate(parts, axis=1)
    out = jnp.dot(att_pack, wo_ref[...], preferred_element_type=jnp.float32)
    o_ref[...] = out.astype(o_ref.dtype)


# ---------------------------------------------------------------------------
# Host-side helpers.
# ---------------------------------------------------------------------------
def _block_diag(w, k):
    """k copies of w along the diagonal (zeros elsewhere)."""
    if k == 1:
        return w
    d1, d2 = w.shape
    out = jnp.zeros((k * d1, k * d2), w.dtype)
    for p in range(k):
        out = out.at[p * d1:(p + 1) * d1, p * d2:(p + 1) * d2].set(w)
    return out


def _on_v7x():
    try:
        kind = jax.devices()[0].device_kind.lower()
    except Exception:
        return False
    return ("v7" in kind) or ("7x" in kind)


def _pick_num_blocks(n, t, pack):
    """Grid steps: 1 on v5e/v6e (single TensorCore, extra steps only add ~0.35us
    overhead), >=2 'parallel' steps on v7x (2 TCs); always small enough that the
    dense (bn*t)^2 f32 score tile stays <= 4 MiB (re-derived for v7x's 64 MiB)."""
    base = 2 if _on_v7x() else 1
    max_rows = 1024                       # (bn*t) cap -> <= 4 MiB f32 score tile
    candidates = [g for g in range(1, n + 1)
                  if n % g == 0
                  and (n // g) * t <= max_rows
                  and (g == 1 or ((n // g) * t) % (pack * 16) == 0)]
    if not candidates:
        return n
    for g in candidates:
        if g >= base:
            return g
    return candidates[-1]


def attention_pallas(axial, wq, wk, wv, wo):
    """(N, T, D) -> (N, T, D) bf16 single-head self-attention along T."""
    n, t, d = axial.shape

    # Lane-packing factor: `pack` consecutive rows share one 128-lane row so all
    # HBM blocks / projection matmuls are lane-dense (biggest measured lever).
    pack = 128 // d if (128 % d == 0 and t % max(1, 128 // d) == 0) else 1
    pd = pack * d

    g = _pick_num_blocks(n, t, pack)
    bn = n // g                  # sequences per grid step
    m = bn * t                   # attention rows per grid step
    r = m // pack                # packed rows per grid step
    r_tot = (n * t) // pack

    # Weight prep: fold 1/sqrt(d) into wq, build bf16 block-diagonal fused QKV
    # (pd, 3*pd) and output-projection (pd, pd) weights.
    wq_s = wq * jnp.float32(1.0 / math.sqrt(d))
    wqkv_blk = jnp.concatenate(
        [_block_diag(wq_s, pack), _block_diag(wk, pack), _block_diag(wv, pack)],
        axis=1).astype(jnp.bfloat16)
    wo_blk = _block_diag(wo, pack).astype(jnp.bfloat16)

    # Host-precomputed sequence ids for the block-diagonal mask, in the kernel's
    # "p-grouped" row order (avoids in-kernel integer div/mod and relayouts).
    seq = np.tile(np.repeat(np.arange(bn, dtype=np.int32), t // pack), pack)
    row_ids = jnp.asarray(seq.reshape(m, 1))
    col_ids = jnp.asarray(seq.reshape(1, m))

    # bf16 across the pallas boundary; the packed reshape is contiguous -> free.
    x_pack = axial.astype(jnp.bfloat16).reshape(r_tot, pd)

    cost = pl.CostEstimate(
        flops=g * (2 * r * pd * 3 * pd          # fused block-diag QKV
                   + 4 * m * m * d              # dense masked scores + p @ v
                   + 2 * r * pd * pd),          # block-diag output projection
        transcendentals=g * (m * m + m),        # exp + approx reciprocal
        bytes_accessed=2 * n * t * d * 2 + 4 * pd * pd * 2 + 8 * m,
    )

    out_pack = pl.pallas_call(
        functools.partial(_attn_kernel, d=d, pack=pack),
        out_shape=jax.ShapeDtypeStruct((r_tot, pd), jnp.bfloat16),
        grid_spec=pltpu.PrefetchScalarGridSpec(
            num_scalar_prefetch=0,
            grid=(g,),
            in_specs=[
                pl.BlockSpec((r, pd), lambda i: (i, 0)),        # packed x
                pl.BlockSpec((pd, 3 * pd), lambda i: (0, 0)),   # fused QKV weight
                pl.BlockSpec((pd, pd), lambda i: (0, 0)),       # output weight
                pl.BlockSpec((m, 1), lambda i: (0, 0)),         # row seq ids
                pl.BlockSpec((1, m), lambda i: (0, 0)),         # col seq ids
            ],
            out_specs=pl.BlockSpec((r, pd), lambda i: (i, 0)),
        ),
        compiler_params=pltpu.CompilerParams(
            dimension_semantics=("parallel",),
            vmem_limit_bytes=32 * 1024 * 1024),
        cost_estimate=cost,
    )(x_pack, wqkv_blk, wo_blk, row_ids, col_ids)

    return out_pack.reshape(n, t, d)


# ---------------------------------------------------------------------------
# PermuteToFrom: same semantics as the PyTorch module.
# ---------------------------------------------------------------------------
def _map_el_ind(arr, ind):
    return list(map(itemgetter(ind), arr))


def _sort_and_return_indices(arr):
    indices = list(range(len(arr)))
    z = sorted(zip(arr, indices))
    return _map_el_ind(z, 0), _map_el_ind(z, 1)


class PermuteToFrom:
    def __init__(self, permutation, fn):
        self.fn = fn
        _, inv_permutation = _sort_and_return_indices(permutation)
        self.permutation = tuple(permutation)
        self.inv_permutation = tuple(inv_permutation)

    def __call__(self, x, **kwargs):
        # TODO(synk): fuse these NCHW<->axial permutes into the pallas_call's
        # BlockSpec index_maps (block over (b, w-tile), do the (C,H)->(H,C) swap
        # in-kernel) to remove ~2/3 of the wrapper's HBM traffic at scale.
        axial = jnp.transpose(x, self.permutation)
        shape = axial.shape
        *_, t, d = shape
        axial = axial.reshape(-1, t, d)
        axial = self.fn(axial, **kwargs)
        axial = axial.reshape(shape)
        axial = jnp.transpose(axial, self.inv_permutation)
        return axial.astype(x.dtype)   # inner fn may run in bf16; restore dtype


# ---------------------------------------------------------------------------
# Pure-JAX f32 reference for the inner fn (verification).
# ---------------------------------------------------------------------------
def attention_ref(axial, wq, wk, wv, wo):
    q = jnp.einsum("ntd,de->nte", axial, wq)
    k = jnp.einsum("ntd,de->nte", axial, wk)
    v = jnp.einsum("ntd,de->nte", axial, wv)
    s = jnp.einsum("nqd,nkd->nqk", q, k) / math.sqrt(q.shape[-1])
    p = jax.nn.softmax(s, axis=-1)
    att = jnp.einsum("nqk,nkd->nqd", p, v)
    return jnp.einsum("ntd,de->nte", att, wo)


if __name__ == "__main__":
    B, C, H, W = 2, 32, 16, 16          # NCHW input; after the permute: T=H, D=C

    key = jax.random.PRNGKey(0)
    kx, kq, kk, kv, ko = jax.random.split(key, 5)
    x = jax.random.normal(kx, (B, C, H, W), dtype=jnp.float32)

    scale = 1.0 / math.sqrt(C)
    wq = jax.random.normal(kq, (C, C), dtype=jnp.float32) * scale
    wk = jax.random.normal(kk, (C, C), dtype=jnp.float32) * scale
    wv = jax.random.normal(kv, (C, C), dtype=jnp.float32) * scale
    wo = jax.random.normal(ko, (C, C), dtype=jnp.float32) * scale

    fn_pallas = lambda a: attention_pallas(a, wq, wk, wv, wo)
    fn_ref = lambda a: attention_ref(a, wq, wk, wv, wo)

    # axial attention along H: permute (B,C,H,W) -> (B,W,H,C)
    permutation = (0, 3, 2, 1)
    module = PermuteToFrom(permutation, fn_pallas)
    module_ref = PermuteToFrom(permutation, fn_ref)

    out = jax.block_until_ready(jax.jit(module.__call__)(x))
    out_ref = jax.block_until_ready(module_ref(x))

    assert out.shape == x.shape, (out.shape, x.shape)
    assert out.dtype == x.dtype, (out.dtype, x.dtype)
    # bf16 activations + bf16 MXU operands + approx softmax reciprocal vs a pure
    # f32 reference => relaxed tolerance.
    max_err = float(jnp.max(jnp.abs(out - out_ref)))
    assert jnp.allclose(out, out_ref, atol=5e-2, rtol=5e-2), (
        f"mismatch vs reference; max abs err = {max_err}")

    print("KERNEL_OK")
</pallas_src>

<mosaic_0001>
module attributes {stable_mosaic.version = 11 : i64} {
  func.func @_attn_kernel(%arg0: i32, %arg1: memref<128x128xbf16, #tpu.memory_space<vmem>>, %arg2: memref<128x384xbf16, #tpu.memory_space<vmem>>, %arg3: memref<128x128xbf16, #tpu.memory_space<vmem>>, %arg4: memref<512x1xi32, #tpu.memory_space<vmem>>, %arg5: memref<1x512xi32, #tpu.memory_space<vmem>>, %arg6: memref<128x128xbf16, #tpu.memory_space<vmem>>) attributes {dimension_semantics = [#tpu.dimension_semantics<parallel>], iteration_bounds = array<i64: 1>, scalar_prefetch = 0 : i64, scratch_operands = 0 : i64, tpu.core_type = #tpu.core_type<tc>, window_params = [{transform_indices = @transform_0, window_bounds = array<i64: 128, 128>}, {pipeline_mode = #tpu.pipeline_mode<synchronous>, transform_indices = @transform_1, window_bounds = array<i64: 128, 384>}, {pipeline_mode = #tpu.pipeline_mode<synchronous>, transform_indices = @transform_2, window_bounds = array<i64: 128, 128>}, {pipeline_mode = #tpu.pipeline_mode<synchronous>, transform_indices = @transform_3, window_bounds = array<i64: 512, 1>}, {pipeline_mode = #tpu.pipeline_mode<synchronous>, transform_indices = @transform_4, window_bounds = array<i64: 1, 512>}, {transform_indices = @transform_5, window_bounds = array<i64: 128, 128>}]} {
    %c0 = arith.constant 0 : index
    %c0_0 = arith.constant 0 : index
    %0 = vector.load %arg1[%c0, %c0_0] : memref<128x128xbf16, #tpu.memory_space<vmem>>, vector<128x128xbf16>
    %c0_1 = arith.constant 0 : index
    %c0_2 = arith.constant 0 : index
    %1 = vector.load %arg2[%c0_1, %c0_2] : memref<128x384xbf16, #tpu.memory_space<vmem>>, vector<128x384xbf16>
    %cst = arith.constant dense<0.000000e+00> : vector<128x384xf32>
    %2 = tpu.matmul %0, %1, %cst {dimension_numbers = #tpu.dot_dimension_numbers<[1], [0], [0], [1], [0, 0, 1, 1], [], []>} : vector<128x128xbf16>, vector<128x384xbf16>, vector<128x384xf32> -> vector<128x384xf32>
    %3 = vector.extract_strided_slice %2 {offsets = [0, 0], sizes = [128, 32], strides = [1, 1]} : vector<128x384xf32> to vector<128x32xf32>
    %4 = arith.truncf %3 : vector<128x32xf32> to vector<128x32xbf16>
    %5 = vector.extract_strided_slice %2 {offsets = [0, 32], sizes = [128, 32], strides = [1, 1]} : vector<128x384xf32> to vector<128x32xf32>
    %6 = arith.truncf %5 : vector<128x32xf32> to vector<128x32xbf16>
    %7 = vector.extract_strided_slice %2 {offsets = [0, 64], sizes = [128, 32], strides = [1, 1]} : vector<128x384xf32> to vector<128x32xf32>
    %8 = arith.truncf %7 : vector<128x32xf32> to vector<128x32xbf16>
    %9 = vector.extract_strided_slice %2 {offsets = [0, 96], sizes = [128, 32], strides = [1, 1]} : vector<128x384xf32> to vector<128x32xf32>
    %10 = arith.truncf %9 : vector<128x32xf32> to vector<128x32xbf16>
    %11 = tpu.concatenate %4, %6, %8, %10 in 0 : vector<128x32xbf16>, vector<128x32xbf16>, vector<128x32xbf16>, vector<128x32xbf16> -> vector<512x32xbf16>
    %12 = vector.extract_strided_slice %2 {offsets = [0, 128], sizes = [128, 32], strides = [1, 1]} : vector<128x384xf32> to vector<128x32xf32>
    %13 = arith.truncf %12 : vector<128x32xf32> to vector<128x32xbf16>
    %14 = vector.extract_strided_slice %2 {offsets = [0, 160], sizes = [128, 32], strides = [1, 1]} : vector<128x384xf32> to vector<128x32xf32>
    %15 = arith.truncf %14 : vector<128x32xf32> to vector<128x32xbf16>
    %16 = vector.extract_strided_slice %2 {offsets = [0, 192], sizes = [128, 32], strides = [1, 1]} : vector<128x384xf32> to vector<128x32xf32>
    %17 = arith.truncf %16 : vector<128x32xf32> to vector<128x32xbf16>
    %18 = vector.extract_strided_slice %2 {offsets = [0, 224], sizes = [128, 32], strides = [1, 1]} : vector<128x384xf32> to vector<128x32xf32>
    %19 = arith.truncf %18 : vector<128x32xf32> to vector<128x32xbf16>
    %20 = tpu.concatenate %13, %15, %17, %19 in 0 : vector<128x32xbf16>, vector<128x32xbf16>, vector<128x32xbf16>, vector<128x32xbf16> -> vector<512x32xbf16>
    %21 = vector.extract_strided_slice %2 {offsets = [0, 256], sizes = [128, 32], strides = [1, 1]} : vector<128x384xf32> to vector<128x32xf32>
    %22 = arith.truncf %21 : vector<128x32xf32> to vector<128x32xbf16>
    %23 = vector.extract_strided_slice %2 {offsets = [0, 288], sizes = [128, 32], strides = [1, 1]} : vector<128x384xf32> to vector<128x32xf32>
    %24 = arith.truncf %23 : vector<128x32xf32> to vector<128x32xbf16>
    %25 = vector.extract_strided_slice %2 {offsets = [0, 320], sizes = [128, 32], strides = [1, 1]} : vector<128x384xf32> to vector<128x32xf32>
    %26 = arith.truncf %25 : vector<128x32xf32> to vector<128x32xbf16>
    %27 = vector.extract_strided_slice %2 {offsets = [0, 352], sizes = [128, 32], strides = [1, 1]} : vector<128x384xf32> to vector<128x32xf32>
    %28 = arith.truncf %27 : vector<128x32xf32> to vector<128x32xbf16>
    %29 = tpu.concatenate %22, %24, %26, %28 in 0 : vector<128x32xbf16>, vector<128x32xbf16>, vector<128x32xbf16>, vector<128x32xbf16> -> vector<512x32xbf16>
    %cst_3 = arith.constant dense<0.000000e+00> : vector<512x512xf32>
    %30 = tpu.matmul %11, %20, %cst_3 {dimension_numbers = #tpu.dot_dimension_numbers<[1], [1], [0], [0], [0, 0, 1, 0], [], []>} : vector<512x32xbf16>, vector<512x32xbf16>, vector<512x512xf32> -> vector<512x512xf32>
    %c0_4 = arith.constant 0 : index
    %c0_5 = arith.constant 0 : index
    %31 = vector.load %arg4[%c0_4, %c0_5] : memref<512x1xi32, #tpu.memory_space<vmem>>, vector<512x1xi32>
    %c0_6 = arith.constant 0 : index
    %c0_7 = arith.constant 0 : index
    %32 = vector.load %arg5[%c0_6, %c0_7] : memref<1x512xi32, #tpu.memory_space<vmem>>, vector<1x512xi32>
    %33 = vector.broadcast %31 : vector<512x1xi32> to vector<512x512xi32>
    %34 = vector.broadcast %32 : vector<1x512xi32> to vector<512x512xi32>
    %35 = arith.cmpi eq, %33, %34 : vector<512x512xi32>
    %cst_8 = arith.constant -1.000000e+30 : f32
    %36 = vector.broadcast %cst_8 : f32 to vector<512x512xf32>
    %37 = arith.select %35, %30, %36 : vector<512x512xi1>, vector<512x512xf32>
    %cst_9 = arith.constant dense<0xFF800000> : vector<512xf32>
    %38 = vector.multi_reduction <maximumf>, %37, %cst_9 [1] : vector<512x512xf32> to vector<512xf32>
    %39 = vector.shape_cast %38 : vector<512xf32> to vector<512x1xf32>
    %40 = vector.broadcast %39 : vector<512x1xf32> to vector<512x512xf32>
    %41 = arith.subf %37, %40 : vector<512x512xf32>
    %42 = math.exp %41 : vector<512x512xf32>
    %cst_10 = arith.constant dense<0.000000e+00> : vector<512xf32>
    %43 = vector.multi_reduction <add>, %42, %cst_10 [1] : vector<512x512xf32> to vector<512xf32>
    %44 = vector.shape_cast %43 : vector<512xf32> to vector<512x1xf32>
    %45 = tpu.reciprocal %44 {approx = true} : vector<512x1xf32> -> vector<512x1xf32>
    %46 = vector.broadcast %45 : vector<512x1xf32> to vector<512x512xf32>
    %47 = arith.mulf %42, %46 : vector<512x512xf32>
    %48 = arith.truncf %47 : vector<512x512xf32> to vector<512x512xbf16>
    %cst_11 = arith.constant dense<0.000000e+00> : vector<512x32xf32>
    %49 = tpu.matmul %48, %29, %cst_11 {dimension_numbers = #tpu.dot_dimension_numbers<[1], [0], [0], [1], [0, 0, 1, 1], [], []>} : vector<512x512xbf16>, vector<512x32xbf16>, vector<512x32xf32> -> vector<512x32xf32>
    %50 = vector.extract_strided_slice %49 {offsets = [0, 0], sizes = [128, 32], strides = [1, 1]} : vector<512x32xf32> to vector<128x32xf32>
    %51 = arith.truncf %50 : vector<128x32xf32> to vector<128x32xbf16>
    %52 = vector.extract_strided_slice %49 {offsets = [128, 0], sizes = [128, 32], strides = [1, 1]} : vector<512x32xf32> to vector<128x32xf32>
    %53 = arith.truncf %52 : vector<128x32xf32> to vector<128x32xbf16>
    %54 = vector.extract_strided_slice %49 {offsets = [256, 0], sizes = [128, 32], strides = [1, 1]} : vector<512x32xf32> to vector<128x32xf32>
    %55 = arith.truncf %54 : vector<128x32xf32> to vector<128x32xbf16>
    %56 = vector.extract_strided_slice %49 {offsets = [384, 0], sizes = [128, 32], strides = [1, 1]} : vector<512x32xf32> to vector<128x32xf32>
    %57 = arith.truncf %56 : vector<128x32xf32> to vector<128x32xbf16>
    %58 = tpu.concatenate %51, %53, %55, %57 in 1 : vector<128x32xbf16>, vector<128x32xbf16>, vector<128x32xbf16>, vector<128x32xbf16> -> vector<128x128xbf16>
    %c0_12 = arith.constant 0 : index
    %c0_13 = arith.constant 0 : index
    %59 = vector.load %arg3[%c0_12, %c0_13] : memref<128x128xbf16, #tpu.memory_space<vmem>>, vector<128x128xbf16>
    %cst_14 = arith.constant dense<0.000000e+00> : vector<128x128xf32>
    %60 = tpu.matmul %58, %59, %cst_14 {dimension_numbers = #tpu.dot_dimension_numbers<[1], [0], [0], [1], [0, 0, 1, 1], [], []>} : vector<128x128xbf16>, vector<128x128xbf16>, vector<128x128xf32> -> vector<128x128xf32>
    %61 = arith.truncf %60 : vector<128x128xf32> to vector<128x128xbf16>
    %c0_15 = arith.constant 0 : index
    %c0_16 = arith.constant 0 : index
    %62 = vector.load %arg6[%c0_15, %c0_16] : memref<128x128xbf16, #tpu.memory_space<vmem>>, vector<128x128xbf16>
    tpu.vector_store %arg6[%c0_15, %c0_16], %61 {strides = array<i32>} : memref<128x128xbf16, #tpu.memory_space<vmem>>, vector<128x128xbf16>,
    return
  }
  func.func @transform_0(%arg0: i32) -> (i32, i32) {
    %c0_i32 = arith.constant 0 : i32
    %c0_i32_0 = arith.constant 0 : i32
    return %arg0, %c0_i32 : i32, i32
  }
  func.func @transform_1(%arg0: i32) -> (i32, i32) {
    %c0_i32 = arith.constant 0 : i32
    %c0_i32_0 = arith.constant 0 : i32
    %c0_i32_1 = arith.constant 0 : i32
    return %c0_i32, %c0_i32_0 : i32, i32
  }
  func.func @transform_2(%arg0: i32) -> (i32, i32) {
    %c0_i32 = arith.constant 0 : i32
    %c0_i32_0 = arith.constant 0 : i32
    %c0_i32_1 = arith.constant 0 : i32
    return %c0_i32, %c0_i32_0 : i32, i32
  }
  func.func @transform_3(%arg0: i32) -> (i32, i32) {
    %c0_i32 = arith.constant 0 : i32
    %c0_i32_0 = arith.constant 0 : i32
    %c0_i32_1 = arith.constant 0 : i32
    return %c0_i32, %c0_i32_0 : i32, i32
  }
  func.func @transform_4(%arg0: i32) -> (i32, i32) {
    %c0_i32 = arith.constant 0 : i32
    %c0_i32_0 = arith.constant 0 : i32
    %c0_i32_1 = arith.constant 0 : i32
    return %c0_i32, %c0_i32_0 : i32, i32
  }
  func.func @transform_5(%arg0: i32) -> (i32, i32) {
    %c0_i32 = arith.constant 0 : i32
    %c0_i32_0 = arith.constant 0 : i32
    return %arg0, %c0_i32 : i32, i32
  }
}

</mosaic_0001>

<bundles_post_ra>
// kernel: a_call__.1
= control target key start
LH: loop header
LB: loop body
LE: loop exit
PB: predicated region body
PF: predicated region fallthrough
CT: control target
= control target key end

     0   :  { %v6369_v1 = vmov 0   ;;  %vm671_vm0 = vcmask 261120   ;;  %s6371_s6 = smov 96   ;;  %s6372_s7 = smov 32   ;;  %s11429_s1 = inlined_call_operand.vmem [shape: bf16[128,384], index: 1, kind: input, shape index: {}]   ;;  %s11430_s0 = inlined_call_operand.vmem [shape: bf16[128,128], index: 0, kind: input, shape index: {}]   ;;  %s11431_s3 = inlined_call_operand.vmem [shape: s32[512,1], index: 3, kind: input, shape index: {}]   ;;  %s11432_s4 = inlined_call_operand.vmem [shape: s32[1,512], index: 4, kind: input, shape index: {}]   ;;  %s11433_s2 = inlined_call_operand.vmem [shape: bf16[128,128], index: 2, kind: input, shape index: {}]   ;;  %s11434_s5 = inlined_call_operand.vmem [shape: bf16[128,128], index: 5, kind: output, shape index: {}]  }
   0x1   :  { %v5681_v0 = vld [vmem:[%s11429_s1 + $0xac] ss:$12 sps:$4 sm:$0xff]   ;;  %277 = vmatprep.mubr.bf16.mxu0 %v6369_v1  ;;  %5679 = vset.pattern.permute.xlu1 %v6369_v1  ;;  %v5683_v2 = vld [vmem:[%s11429_s1 + $0xa8] ss:$12 sps:$4 sm:$0xff]   ;;  %v5686_v4 = vld [vmem:[%s11429_s1 + $0x90] ss:$12 sps:$4 sm:$0xff]  }
   0x2   :  { %5680 = vset.pattern.permute.xlu0 %v6369_v1  ;;  %245 = vmatprep.subr.bf16.mxu0 %v5681_v0  ;;  %v5684_v3 = vld [vmem:[%s11429_s1 + $0x94] ss:$12 sps:$4 sm:$0xff]   ;;  %v5687_v5 = vld [vmem:[%s11429_s1 + $0x7c] ss:$12 sps:$4 sm:$0xff]   ;;  %v5689_v6 = vld [vmem:[%s11429_s1 + $0x78] ss:$12 sps:$4 sm:$0xff]  }
   0x3   :  { %246 = vmatpush1.bf16.msra.mxu0 %v5683_v2  ;;  %v5690_v7 = vld [vmem:[%s11429_s1 + $0x64] ss:$12 sps:$4 sm:$0xff]   ;;  %v5692_v8 = vld [vmem:[%s11429_s1 + $0x60] ss:$12 sps:$4 sm:$0xff]   ;;  %v5695_v11 = vld [vmem:[%s11429_s1 + $0x48] ss:$12 sps:$4 sm:$0xff]  }
   0x4   :  { %247 = vmatprep.subr.bf16.mxu0 %v5684_v3  ;;  %v5705_v9 = vld [vmem:[%s11430_s0] sm:$0xff]   ;;  %v5693_v10 = vld [vmem:[%s11429_s1 + $0x4c] ss:$12 sps:$4 sm:$0xff]   ;;  %v5698_v13 = vld [vmem:[%s11429_s1 + $0x30] ss:$12 sps:$4 sm:$0xff]  }
   0x5   :  { %5595 = vmatprep.mubr.bf16.mxu1 %v5705_v9  ;;  %v5696_v12 = vld [vmem:[%s11429_s1 + $0x34] ss:$12 sps:$4 sm:$0xff]   ;;  %v5699_v14 = vld [vmem:[%s11429_s1 + $0x1c] ss:$12 sps:$4 sm:$0xff]   ;;  %v5714_v16 = vld [vmem:[%s11429_s1 + $0x98] ss:$12 sps:$4 sm:$0xff]  }
   0x6   :  { %v5713_v15 = vld [vmem:[%s11429_s1 + $0xb0] ss:$12 sps:$4 sm:$0xff]   ;;  %v5701_v17 = vld [vmem:[%s11429_s1 + $0x18] ss:$12 sps:$4 sm:$0xff]   ;;  %v5715_v18 = vld [vmem:[%s11429_s1 + $0x80] ss:$12 sps:$4 sm:$0xff]  }
   0x7   :  { %248 = vmatpush1.bf16.msra.mxu0 %v5686_v4  ;;  %5579 = vmatprep.subr.bf16.mxu1 %v5713_v15  ;;  %v5702_v19 = vld [vmem:[%s11429_s1 + $0x4] ss:$12 sps:$4 sm:$0xff]   ;;  %v5704_v20 = vld [vmem:[%s11429_s1] ss:$12 sps:$4 sm:$0xff]   ;;  %v5716_v21 = vld [vmem:[%s11429_s1 + $0x68] ss:$12 sps:$4 sm:$0xff]  }
   0x8   :  { %249 = vmatprep.subr.bf16.mxu0 %v5687_v5  ;;  %5580 = vmatpush3.bf16.msra.mxu1 %v5713_v15  ;;  %v5717_v22 = vld [vmem:[%s11429_s1 + $0x50] ss:$12 sps:$4 sm:$0xff]   ;;  %v5718_v23 = vld [vmem:[%s11429_s1 + $0x38] ss:$12 sps:$4 sm:$0xff]   ;;  %v5706_v24 = vld [vmem:[%s11430_s0 + $0x8] sm:$0xff]  }
   0x9   :  { %5581 = vmatprep.subr.bf16.mxu1 %v5714_v16  ;;  %v5719_v25 = vld [vmem:[%s11429_s1 + $0x20] ss:$12 sps:$4 sm:$0xff]   ;;  %v5720_v26 = vld [vmem:[%s11429_s1 + $0x8] ss:$12 sps:$4 sm:$0xff]   ;;  %v5708_v28 = vld [vmem:[%s11430_s0 + $0x18] sm:$0xff]  }
   0xa   :  { %v5707_v27 = vld [vmem:[%s11430_s0 + $0x10] sm:$0xff]   ;;  %v5709_v29 = vld [vmem:[%s11430_s0 + $0x20] sm:$0xff]   ;;  %v5710_v30 = vld [vmem:[%s11430_s0 + $0x28] sm:$0xff]  }
   0xb   :  { %250 = vmatpush1.bf16.msra.mxu0 %v5689_v6  ;;  %v5711_v31 = vld [vmem:[%s11430_s0 + $0x30] sm:$0xff]   ;;  %v5712_v32 = vld [vmem:[%s11430_s0 + $0x38] sm:$0xff]   ;;  %s6370_s0 = smov 64  }
   0xc   :  { %251 = vmatprep.subr.bf16.mxu0 %v5690_v7  ;;  %5582 = vmatpush3.bf16.msra.mxu1 %v5714_v16 }
   0xd   :  { %5583 = vmatprep.subr.bf16.mxu1 %v5715_v18 }
   0xf   :  { %252 = vmatpush1.bf16.msra.mxu0 %v5692_v8 }
  0x10   :  { %253 = vmatprep.subr.bf16.mxu0 %v5693_v10  ;;  %5584 = vmatpush3.bf16.msra.mxu1 %v5715_v18  ;;  %v1570_v18 = vld [vmem:[%s11431_s3] sm:$0xff] }
  0x11   :  { %5585 = vmatprep.subr.bf16.mxu1 %v5716_v21 }
  0x13   :  { %254 = vmatpush1.bf16.msra.mxu0 %v5695_v11 }
  0x14   :  { %255 = vmatprep.subr.bf16.mxu0 %v5696_v12  ;;  %5586 = vmatpush3.bf16.msra.mxu1 %v5716_v21  ;;  %v1573_v21 = vld [vmem:[%s11431_s3 + $0x18] sm:$0xff] }
  0x15   :  { %5587 = vmatprep.subr.bf16.mxu1 %v5717_v22 }
  0x17   :  { %256 = vmatpush1.bf16.msra.mxu0 %v5698_v13 }
  0x18   :  { %257 = vmatprep.subr.bf16.mxu0 %v5699_v14  ;;  %5588 = vmatpush3.bf16.msra.mxu1 %v5717_v22  ;;  %v1575_v22 = vld [vmem:[%s11431_s3 + $0x28] sm:$0xff] }
  0x19   :  { %5589 = vmatprep.subr.bf16.mxu1 %v5718_v23 }
  0x1b   :  { %258 = vmatpush1.bf16.msra.mxu0 %v5701_v17 }
  0x1c   :  { %259 = vmatprep.subr.bf16.mxu0 %v5702_v19  ;;  %5590 = vmatpush3.bf16.msra.mxu1 %v5718_v23  ;;  %v1572_v19 = vld [vmem:[%s11431_s3 + $0x10] sm:$0xff]  ;;  %v1574_v23 = vld [vmem:[%s11431_s3 + $0x20] sm:$0xff] }
  0x1d   :  { %5591 = vmatprep.subr.bf16.mxu1 %v5719_v25 }
  0x1f   :  { %260 = vmatpush1.bf16.msra.mxu0 %v5704_v20  ;;  %v1571_v20 = vld [vmem:[%s11431_s3 + $0x8] sm:$0xff] }
  0x20   :  { %5592 = vmatpush3.bf16.msra.mxu1 %v5719_v25  ;;  %v1577_v25 = vld [vmem:[%s11431_s3 + $0x38] sm:$0xff] }
  0x21   :  { %5593 = vmatprep.subr.bf16.mxu1 %v5720_v26 }
  0x22   :  { %278 = vmatmul.mubr.bf16.vlgmr.msra.gmra.mxu0 %v5705_v9 }
  0x23   :  { %287 = vmatprep.mubr.bf16.mxu0 %v6369_v1 }
  0x24   :  { %5594 = vmatpush3.bf16.msra.mxu1 %v5720_v26  ;;  %v1579_v26 = vld [vmem:[%s11431_s3 + $0x48] sm:$0xff] }
  0x27   :  { %5596 = vmatmul.mubr.bf16.vlgmr.msra.gmra.mxu1 %v5706_v24 }
  0x28   :  { %5599 = vmatprep.mubr.bf16.mxu1 %v5707_v27 }
  0x2a   :  { %288 = vmatmul.mubr.bf16.gmra.mxu0 %v5706_v24  ;;  %v1576_v24 = vld [vmem:[%s11431_s3 + $0x30] sm:$0xff] }
  0x2b   :  { %297 = vmatprep.mubr.bf16.mxu0 %v6369_v1 }
  0x2f   :  { %5600 = vmatmul.mubr.bf16.gmra.mxu1 %v5708_v28 }
  0x30   :  { %5603 = vmatprep.mubr.bf16.mxu1 %v5709_v29 }
  0x32   :  { %298 = vmatmul.mubr.bf16.gmra.mxu0 %v5707_v27  ;;  %v1578_v27 = vld [vmem:[%s11431_s3 + $0x40] sm:$0xff] }
  0x33   :  { %307 = vmatprep.mubr.bf16.mxu0 %v6369_v1 }
  0x37   :  { %5604 = vmatmul.mubr.bf16.gmra.mxu1 %v5710_v30 }
  0x38   :  { %5607 = vmatprep.mubr.bf16.mxu1 %v5711_v31 }
  0x3a   :  { %308 = vmatmul.mubr.bf16.gmra.mxu0 %v5708_v28 }
  0x3b   :  { %317 = vmatprep.mubr.bf16.mxu0 %v6369_v1 }
  0x3f   :  { %5608 = vmatmul.mubr.bf16.gmra.mxu1 %v5712_v32 }
  0x42   :  { %318 = vmatmul.mubr.bf16.gmra.mxu0 %v5709_v29  ;;  %v1580_v29 = vld [vmem:[%s11431_s3 + $0x50] sm:$0xff] }
  0x43   :  { %327 = vmatprep.mubr.bf16.mxu0 %v6369_v1 }
  0x4a   :  { %328 = vmatmul.mubr.bf16.gmra.mxu0 %v5710_v30 }
  0x4b   :  { %337 = vmatprep.mubr.bf16.mxu0 %v6369_v1 }
  0x52   :  { %338 = vmatmul.mubr.bf16.gmra.mxu0 %v5711_v31 }
  0x53   :  { %347 = vmatprep.mubr.bf16.mxu0 %v6369_v1 }
  0x5a   :  { %348 = vmatmul.mubr.bf16.gmra.mxu0 %v5712_v32  ;;  %v1581_v32 = vld [vmem:[%s11431_s3 + $0x58] sm:$0xff] }
  0xe2   :  { %v279_v33 = vpop.f32.mrf.mxu0 }
  0xe4   :  { %v6509_v34 = vpop.f32.mrf.mxu0 }
  0xe6   :  { %v283_v35 = vpop.f32.mrf.mxu0 }
  0xe7   :  { %v6511_v36 = vpack.c.bf16 %v283_v35, %v279_v33  ;;  %v1583_v35 = vld [vmem:[%s11431_s3 + $0x68] sm:$0xff] }
  0xe8   :  { %v285_v37 = vpop.f32.mrf.mxu0 }
  0xe9   :  { %5419 = vmatprep.mubr.msk.bf16.mxu0 %vm671_vm0, %v6511_v36  ;;  %5499 = vmatprep.mubr.msk.bf16.mxu1 %vm671_vm0, %v6511_v36  ;;  %v6568_v11 = vpack.c.bf16 %v285_v37, %v6509_v34  ;;  %v1582_v34 = vld [vmem:[%s11431_s3 + $0x60] sm:$0xff] }
  0xea   :  { %v289_v38 = vpop.f32.mrf.mxu0 }
  0xec   :  { %v291_v39 = vpop.f32.mrf.mxu0 }
  0xee   :  { %v293_v40 = vpop.f32.mrf.mxu0 }
  0xef   :  { %v6578_v12 = vpack.c.bf16 %v293_v40, %v289_v38  ;;  %v1584_v40 = vld [vmem:[%s11431_s3 + $0x70] sm:$0xff] }
  0xf0   :  { %v295_v41 = vpop.f32.mrf.mxu0 }
  0xf1   :  { %v6559_v9 = vpack.c.bf16 %v295_v41, %v291_v39  ;;  %v6696_v39 = vpop.f32.mrf.mxu1 }
  0xf2   :  { %v299_v42 = vpop.f32.mrf.mxu0 }
  0xf4   :  { %v301_v43 = vpop.f32.mrf.mxu0 }
  0xf6   :  { %v303_v44 = vpop.f32.mrf.mxu0 }
  0xf7   :  { %v6517_v45 = vpack.c.bf16 %v303_v44, %v299_v42  ;;  %v6703_v42 = vpop.f32.mrf.mxu1  ;;  %v1586_v44 = vld [vmem:[%s11431_s3 + $0x80] sm:$0xff] }
  0xf8   :  { %v305_v46 = vpop.f32.mrf.mxu0 }
  0xf9   :  { %v6519_v47 = vpack.c.bf16 %v305_v46, %v301_v43  ;;  %v1585_v43 = vld [vmem:[%s11431_s3 + $0x78] sm:$0xff]  ;;  %v6713_v46 = vpop.f32.mrf.mxu1 }
  0xfa   :  { %v309_v48 = vpop.f32.mrf.mxu0 }
  0xfb   :  { %555 = vrot.lane.b32.xlu0 %v6519_v47, %s6370_s0  ;;  %539 = vrot.lane.b32.xlu1 %v6519_v47, %s6371_s6 }
  0xfc   :  { %v311_v49 = vpop.f32.mrf.mxu0 }
  0xfe   :  { %v313_v50 = vpop.f32.mrf.mxu0 }
  0xff   :  { %571 = vrot.lane.b32.xlu1 %v6519_v47, %s6372_s7  ;;  %v6584_v13 = vpack.c.bf16 %v313_v50, %v309_v48 }
 0x100   :  { %v315_v51 = vpop.f32.mrf.mxu0 }
 0x101   :  { %v6527_v52 = vpack.c.bf16 %v315_v51, %v311_v49  ;;  %v6717_v49 = vpop.f32.mrf.mxu1  ;;  %v1587_v51 = vld [vmem:[%s11431_s3 + $0x88] sm:$0xff] }
 0x102   :  { %v319_v53 = vpop.f32.mrf.mxu0 }
 0x103   :  { %557 = vrot.lane.b32.xlu1 %v6527_v52, %s6370_s0  ;;  %541 = vrot.lane.b32.xlu0 %v6527_v52, %s6371_s6 }
 0x104   :  { %v321_v54 = vpop.f32.mrf.mxu0 }
 0x106   :  { %v323_v55 = vpop.f32.mrf.mxu0 }
 0x107   :  { %573 = vrot.lane.b32.xlu0 %v6527_v52, %s6372_s7  ;;  %v6600_v15 = vpack.c.bf16 %v323_v55, %v319_v53  ;;  %v1589_v53 = vld [vmem:[%s11431_s3 + $0x98] sm:$0xff] }
 0x108   :  { %v325_v56 = vpop.f32.mrf.mxu0 }
 0x109   :  { %v6535_v57 = vpack.c.bf16 %v325_v56, %v321_v54  ;;  %v6727_v54 = vpop.f32.mrf.mxu1 }
 0x10a   :  { %v329_v58 = vpop.f32.mrf.mxu0 }
 0x10b   :  { %559 = vrot.lane.b32.xlu0 %v6535_v57, %s6370_s0  ;;  %543 = vrot.lane.b32.xlu1 %v6535_v57, %s6371_s6  ;;  %v6729_v56 = vpop.f32.mrf.mxu1 }
 0x10c   :  { %v331_v59 = vpop.f32.mrf.mxu0 }
 0x10e   :  { %v333_v60 = vpop.f32.mrf.mxu0 }
 0x10f   :  { %575 = vrot.lane.b32.xlu1 %v6535_v57, %s6372_s7  ;;  %v6594_v14 = vpack.c.bf16 %v333_v60, %v329_v58  ;;  %v1588_v58 = vld [vmem:[%s11431_s3 + $0x90] sm:$0xff]  ;;  %v6737_v60 = vpop.f32.mrf.mxu1 }
 0x110   :  { %v335_v61 = vpop.f32.mrf.mxu0 }
 0x111   :  { %v6543_v62 = vpack.c.bf16 %v335_v61, %v331_v59  ;;  %v1591_v59 = vld [vmem:[%s11431_s3 + $0xa8] sm:$0xff] }
 0x112   :  { %v339_v63 = vpop.f32.mrf.mxu0 }
 0x113   :  { %561 = vrot.lane.b32.xlu1 %v6543_v62, %s6370_s0  ;;  %545 = vrot.lane.b32.xlu0 %v6543_v62, %s6371_s6 }
 0x114   :  { %v341_v0 = vpop.f32.mrf.mxu0 }
 0x116   :  { %v343_v2 = vpop.f32.mrf.mxu0 }
 0x117   :  { %577 = vrot.lane.b32.xlu0 %v6543_v62, %s6372_s7  ;;  %v6608_v17 = vpack.c.bf16 %v343_v2, %v339_v63  ;;  %v6741_v63 = vpop.f32.mrf.mxu1  ;;  %v1590_v2 = vld [vmem:[%s11431_s3 + $0xa0] sm:$0xff] }
 0x118   :  { %v345_v3 = vpop.f32.mrf.mxu0 }
 0x119   :  { %v6551_v4 = vpack.c.bf16 %v345_v3, %v341_v0  ;;  %v1593_v3 = vld [vmem:[%s11431_s3 + $0xb8] sm:$0xff] }
 0x11a   :  { %v349_v5 = vpop.f32.mrf.mxu0 }
 0x11b   :  { %563 = vrot.lane.b32.xlu0 %v6551_v4, %s6370_s0  ;;  %547 = vrot.lane.b32.xlu1 %v6551_v4, %s6371_s6 }
 0x11c   :  { %v351_v6 = vpop.f32.mrf.mxu0 }
 0x11e   :  { %v353_v7 = vpop.f32.mrf.mxu0 }
 0x11f   :  { %579 = vrot.lane.b32.xlu1 %v6551_v4, %s6372_s7  ;;  %v6602_v16 = vpack.c.bf16 %v353_v7, %v349_v5  ;;  %v5605_v5 = vpop.f32.mrf.mxu1 }
 0x120   :  { %v355_v8 = vpop.f32.mrf.mxu0 }
 0x121   :  { %v6561_v10 = vpack.c.bf16 %v355_v8, %v351_v6  ;;  %v424_v7 = vpop.f32.mrf.mxu1  ;;  %v1592_v8 = vld [vmem:[%s11431_s3 + $0xb0] sm:$0xff] }
 0x123   :  { %553 = vrot.lane.b32.xlu1 %v6559_v9, %s6370_s0  ;;  %549 = vrot.lane.b32.xlu0 %v6561_v10, %s6371_s6 }
 0x127   :  { %535 = vrot.lane.b32.xlu1 %v6568_v11, %s6371_s6  ;;  %565 = vrot.lane.b32.xlu0 %v6561_v10, %s6370_s0 }
 0x12b   :  { %567 = vrot.lane.b32.xlu1 %v6568_v11, %s6372_s7  ;;  %537 = vrot.lane.b32.xlu0 %v6559_v9, %s6371_s6 }
 0x12f   :  { %473 = vrot.lane.b32.xlu1 %v6578_v12, %s6371_s6  ;;  %569 = vrot.lane.b32.xlu0 %v6559_v9, %s6372_s7 }
 0x133   :  { %477 = vrot.lane.b32.xlu1 %v6584_v13, %s6371_s6  ;;  %551 = vrot.lane.b32.xlu0 %v6568_v11, %s6370_s0 }
 0x137   :  { %581 = vrot.lane.b32.xlu1 %v6561_v10, %s6372_s7  ;;  %471 = vrot.lane.b32.xlu0 %v6511_v36, %s6371_s6 }
 0x13b   :  { %481 = vrot.lane.b32.xlu1 %v6594_v14, %s6371_s6  ;;  %475 = vrot.lane.b32.xlu0 %v6517_v45, %s6371_s6 }
 0x13f   :  { %485 = vrot.lane.b32.xlu1 %v6602_v16, %s6371_s6  ;;  %479 = vrot.lane.b32.xlu0 %v6600_v15, %s6371_s6 }
 0x143   :  { %489 = vrot.lane.b32.xlu1 %v6578_v12, %s6370_s0  ;;  %483 = vrot.lane.b32.xlu0 %v6608_v17, %s6371_s6 }
 0x147   :  { %493 = vrot.lane.b32.xlu1 %v6584_v13, %s6370_s0  ;;  %487 = vrot.lane.b32.xlu0 %v6511_v36, %s6370_s0 }
 0x14b   :  { %497 = vrot.lane.b32.xlu1 %v6594_v14, %s6370_s0  ;;  %491 = vrot.lane.b32.xlu0 %v6517_v45, %s6370_s0 }
 0x14f   :  { %501 = vrot.lane.b32.xlu1 %v6602_v16, %s6370_s0  ;;  %495 = vrot.lane.b32.xlu0 %v6600_v15, %s6370_s0 }
 0x153   :  { %1636 = vperm.xlu1 %5679, %v1570_v18   ;;  %499 = vrot.lane.b32.xlu0 %v6608_v17, %s6370_s0  ;;  %v1595_v18 = vld [vmem:[%s11431_s3 + $0xc8] sm:$0xff] }
 0x157   :  { %505 = vrot.lane.b32.xlu1 %v6578_v12, %s6372_s7  ;;  %503 = vrot.lane.b32.xlu0 %v6511_v36, %s6372_s7 }
 0x15b   :  { %1642 = vperm.xlu1 %5679, %v1572_v19   ;;  %1639 = vperm.xlu0 %5680, %v1571_v20   ;;  %v5606_v19 = vpop.f32.mrf.mxu1 }
 0x15f   :  { %507 = vrot.lane.b32.xlu1 %v6517_v45, %s6372_s7  ;;  %1645 = vperm.xlu0 %5680, %v1573_v21  }
 0x163   :  { %1651 = vperm.xlu1 %5679, %v1575_v22   ;;  %1648 = vperm.xlu0 %5680, %v1574_v23   ;;  %v427_v22 = vpop.f32.mrf.mxu1  ;;  %v1594_v23 = vld [vmem:[%s11431_s3 + $0xc0] sm:$0xff] }
 0x167   :  { %1654 = vperm.xlu1 %5679, %v1576_v24   ;;  %509 = vrot.lane.b32.xlu0 %v6584_v13, %s6372_s7  ;;  %v5609_v24 = vpop.f32.mrf.mxu1 }
 0x16b   :  { %511 = vrot.lane.b32.xlu1 %v6600_v15, %s6372_s7  ;;  %1657 = vperm.xlu0 %5680, %v1577_v25  }
 0x16d   :  { %v6668_v28 = vpop.permute.xlu1 %539  ;;  %v6673_v30 = vpop.permute.xlu0 %555 }
 0x16f   :  { %1663 = vperm.xlu1 %5679, %v1579_v26   ;;  %1660 = vperm.xlu0 %5680, %v1578_v27   ;;  %v1597_v27 = vld [vmem:[%s11431_s3 + $0xd8] sm:$0xff] }
 0x171   :  { %v6675_v31 = vpop.permute.xlu1 %571 }
 0x173   :  { %1666 = vperm.xlu1 %5679, %v1580_v29   ;;  %513 = vrot.lane.b32.xlu0 %v6594_v14, %s6372_s7  ;;  %v790_v29 = vsel %vm671_vm0, %v6561_v10, 0  ;;  %v1598_v10 = vld [vmem:[%s11431_s3 + $0xe0] sm:$0xff] }
 0x175   :  { %v6682_v33 = vpop.permute.xlu0 %541  ;;  %v6692_v37 = vpop.permute.xlu1 %557 }
 0x177   :  { %515 = vrot.lane.b32.xlu1 %v6608_v17, %s6372_s7  ;;  %1669 = vperm.xlu0 %5680, %v1581_v32   ;;  %v1596_v32 = vld [vmem:[%s11431_s3 + $0xd0] sm:$0xff] }
 0x179   :  { %v6694_v38 = vpop.permute.xlu0 %573 }
 0x17b   :  { %1672 = vperm.xlu0 %5680, %v1582_v34   ;;  %1675 = vperm.xlu1 %5679, %v1583_v35   ;;  %v440_v34 = vpop.f32.mrf.mxu1 }
 0x17d   :  { %v6701_v41 = vpop.permute.xlu1 %543  ;;  %v6715_v48 = vpop.permute.xlu0 %559 }
 0x17f   :  { %517 = vrot.lane.b32.xlu0 %v6602_v16, %s6372_s7  ;;  %1678 = vperm.xlu1 %5679, %v1584_v40  }
 0x181   :  { %v6719_v50 = vpop.permute.xlu1 %575 }
 0x183   :  { %1681 = vperm.xlu0 %5680, %v1585_v43   ;;  %1684 = vperm.xlu1 %5679, %v1586_v44   ;;  %v1599_v43 = vld [vmem:[%s11431_s3 + $0xe8] sm:$0xff]  ;;  %v5610_v44 = vpop.f32.mrf.mxu1 }
 0x185   :  { %v546_v55 = vpop.permute.xlu0 %545  ;;  %v6739_v61 = vpop.permute.xlu1 %561 }
 0x187   :  { %1687 = vperm.xlu0 %5680, %v1587_v51   ;;  %1693 = vperm.xlu1 %5679, %v1589_v53  }
 0x189   :  { %v6743_v0 = vpop.permute.xlu0 %577 }
 0x18b   :  { %1690 = vperm.xlu0 %5680, %v1588_v58   ;;  %1699 = vperm.xlu1 %5679, %v1591_v59   ;;  %v1601_v58 = vld [vmem:[%s11431_s3 + $0xf8] sm:$0xff]  ;;  %v787_v59 = vsel %vm671_vm0, %v6551_v4, 0  ;;  %v1602_v4 = vld [vmem:[%s11431_s3 + $0x100] sm:$0xff] }
 0x18d   :  { %v548_v6 = vpop.permute.xlu1 %547  ;;  %v6757_v20 = vpop.permute.xlu0 %563 }
 0x18f   :  { %1696 = vperm.xlu0 %5680, %v1590_v2   ;;  %1705 = vperm.xlu1 %5679, %v1593_v3   ;;  %v1600_v2 = vld [vmem:[%s11431_s3 + $0xf0] sm:$0xff]  ;;  %v6795_v3 = vpack.c.bf16 %v5610_v44, %v5609_v24  ;;  %v784_v24 = vsel %vm671_vm0, %v6543_v62, 0  ;;  %v6828_v62 = vpack.c.bf16 %v427_v22, %v424_v7  ;;  %v781_v7 = vsel %vm671_vm0, %v6535_v57, 0 }
 0x190   :  { %v6847_v22 = vpack.c.bf16 %v6741_v63, %v6729_v56  ;;  %v6863_v56 = vpack.c.bf16 %v6717_v49, %v6703_v42  ;;  %v778_v63 = vsel %vm671_vm0, %v6527_v52, 0  ;;  %v832_v49 = vsel %vm671_vm0, %v6739_v61, 0 }
 0x191   :  { %v580_v21 = vpop.permute.xlu1 %579 }
 0x192   :  { %11882 = vst [vmem:[#allocation2_spill] sm:$0xff] %v6863_v56 }
 0x193   :  { %1702 = vperm.xlu0 %5680, %v1592_v8   ;;  %1711 = vperm.xlu1 %5679, %v1595_v18   ;;  %v6801_v18 = vpack.c.bf16 %v5606_v19, %v5605_v5  ;;  %v6820_v5 = vpack.c.bf16 %v6737_v60, %v6727_v54 }
 0x195   :  { %v6762_v25 = vpop.permute.xlu1 %553  ;;  %v550_v26 = vpop.permute.xlu0 %549 }
 0x196   :  { %5659 = vmatprep.subr.msk.bf16.mxu0 %vm671_vm0, %v550_v26 }
 0x197   :  { %5404 = vmatpush3.bf16.xpose.msra.mxu0 %v790_v29  ;;  %1708 = vperm.xlu0 %5680, %v1594_v23  }
 0x198   :  { %5660 = vmatprep.subr.msk.bf16.mxu0 %vm671_vm0, %v548_v6  ;;  %1717 = vperm.xlu1 %5679, %v1597_v27  }
 0x199   :  { %v6774_v35 = vpop.permute.xlu1 %535  ;;  %v566_v40 = vpop.permute.xlu0 %565 }
 0x19b   :  { %1714 = vperm.xlu0 %5680, %v1596_v32   ;;  %v838_v32 = vsel %vm671_vm0, %v566_v40, 0 }
 0x19c   :  { %1723 = vperm.xlu1 %5679, %v1599_v43  }
 0x19d   :  { %v6782_v51 = vpop.permute.xlu1 %567  ;;  %v6784_v53 = vpop.permute.xlu0 %537 }
 0x19f   :  { %5406 = vmatpush3.bf16.xpose.msra.mxu0 %v787_v59  ;;  %1720 = vperm.xlu0 %5680, %v1598_v10  }
 0x1a0   :  { %5661 = vmatprep.subr.msk.bf16.mxu0 %vm671_vm0, %v546_v55  ;;  %1729 = vperm.xlu1 %5679, %v1601_v58   ;;  %v443_v55 = vpop.f32.mrf.mxu1 }
 0x1a1   :  { %v6797_v6 = vpop.permute.xlu1 %473  ;;  %v6799_v8 = vpop.permute.xlu0 %569  ;;  %v6814_v27 = vpack.c.bf16 %v443_v55, %v440_v34 }
 0x1a3   :  { %1726 = vperm.xlu0 %5680, %v1600_v2  }
 0x1a4   :  { %637 = vrot.lane.b32.xlu1 %v6795_v3, %s6370_s0 }
 0x1a5   :  { %v6808_v23 = vpop.permute.xlu1 %477  ;;  %v6810_v26 = vpop.permute.xlu0 %551 }
 0x1a7   :  { %5408 = vmatpush3.bf16.xpose.msra.mxu0 %v784_v24  ;;  %1732 = vperm.xlu0 %5680, %v1602_v4  }
 0x1a8   :  { %5662 = vmatprep.subr.msk.bf16.mxu0 %vm671_vm0, %v6701_v41  ;;  %633 = vrot.lane.b32.xlu1 %v6801_v18, %s6370_s0  ;;  %v6835_v41 = vpack.c.bf16 %v6713_v46, %v6696_v39  ;;  %v835_v46 = vsel %vm671_vm0, %v6757_v20, 0 }
 0x1a9   :  { %v582_v19 = vpop.permute.xlu1 %581  ;;  %v6824_v29 = vpop.permute.xlu0 %471 }
 0x1aa   :  { %5667 = vmatprep.subr.msk.bf16.mxu1 %vm671_vm0, %v582_v19 }
 0x1ab   :  { %5484 = vmatpush3.bf16.xpose.msra.mxu1 %v838_v32  ;;  %635 = vrot.lane.b32.xlu0 %v6814_v27, %s6370_s0 }
 0x1ac   :  { %5668 = vmatprep.subr.msk.bf16.mxu1 %vm671_vm0, %v580_v21  ;;  %629 = vrot.lane.b32.xlu1 %v6820_v5, %s6370_s0  ;;  %v772_v21 = vsel %vm671_vm0, %v6559_v9, 0 }
 0x1ad   :  { %v6839_v54 = vpop.permute.xlu1 %481  ;;  %v6841_v60 = vpop.permute.xlu0 %475 }
 0x1af   :  { %5410 = vmatpush3.bf16.xpose.msra.mxu0 %v781_v7  ;;  %631 = vrot.lane.b32.xlu0 %v6828_v62, %s6370_s0 }
 0x1b0   :  { %5663 = vmatprep.subr.msk.bf16.mxu0 %vm671_vm0, %v6682_v33  ;;  %625 = vrot.lane.b32.xlu1 %v6835_v41, %s6370_s0 }
 0x1b1   :  { %v6855_v39 = vpop.permute.xlu0 %479  ;;  %v6859_v57 = vpop.permute.xlu1 %485 }
 0x1b3   :  { %5486 = vmatpush3.bf16.xpose.msra.mxu1 %v835_v46  ;;  %627 = vrot.lane.b32.xlu0 %v6847_v22, %s6370_s0 }
 0x1b4   :  { %5669 = vmatprep.subr.msk.bf16.mxu1 %vm671_vm0, %v6743_v0  ;;  %613 = vrot.lane.b32.xlu1 %v6795_v3, %s6371_s6 }
 0x1b5   :  { %v6871_v33 = vpop.permute.xlu0 %483  ;;  %v6877_v42 = vpop.permute.xlu1 %489 }
 0x1b7   :  { %5412 = vmatpush3.bf16.xpose.msra.mxu0 %v778_v63  ;;  %623 = vrot.lane.b32.xlu0 %v6863_v56, %s6370_s0 }
 0x1b8   :  { %5664 = vmatprep.subr.msk.bf16.mxu0 %vm671_vm0, %v6668_v28  ;;  %611 = vrot.lane.b32.xlu1 %v6814_v27, %s6371_s6  ;;  %v775_v28 = vsel %vm671_vm0, %v6519_v47, 0 }
 0x1b9   :  { %v6885_v0 = vpop.permute.xlu0 %487  ;;  %v6893_v52 = vpop.permute.xlu1 %493 }
 0x1bb   :  { %5488 = vmatpush3.bf16.xpose.msra.mxu1 %v832_v49  ;;  %661 = vrot.lane.b32.xlu0 %v6795_v3, %s6372_s7 }
 0x1bc   :  { %5670 = vmatprep.subr.msk.bf16.mxu1 %vm671_vm0, %v6719_v50  ;;  %609 = vrot.lane.b32.xlu1 %v6801_v18, %s6371_s6  ;;  %v829_v50 = vsel %vm671_vm0, %v6715_v48, 0 }
 0x1bd   :  { %v6899_v61 = vpop.permute.xlu0 %491  ;;  %v6909_v47 = vpop.permute.xlu1 %497 }
 0x1bf   :  { %5414 = vmatpush3.bf16.xpose.msra.mxu0 %v775_v28  ;;  %659 = vrot.lane.b32.xlu0 %v6814_v27, %s6372_s7 }
 0x1c0   :  { %5665 = vmatprep.subr.msk.bf16.mxu0 %vm671_vm0, %v6784_v53  ;;  %607 = vrot.lane.b32.xlu1 %v6828_v62, %s6371_s6 }
 0x1c1   :  { %v6915_v20 = vpop.permute.xlu0 %495  ;;  %v6927_v48 = vpop.permute.xlu1 %501 }
 0x1c3   :  { %5490 = vmatpush3.bf16.xpose.msra.mxu1 %v829_v50  ;;  %657 = vrot.lane.b32.xlu0 %v6801_v18, %s6372_s7 }
 0x1c4   :  { %5671 = vmatprep.subr.msk.bf16.mxu1 %vm671_vm0, %v6694_v38  ;;  %605 = vrot.lane.b32.xlu1 %v6820_v5, %s6371_s6  ;;  %v826_v38 = vsel %vm671_vm0, %v6692_v37, 0  ;;  %v823_v37 = vsel %vm671_vm0, %v6673_v30, 0  ;;  %v820_v30 = vsel %vm671_vm0, %v6762_v25, 0  ;;  %v817_v25 = vsel %vm671_vm0, %v6810_v26, 0 }
 0x1c5   :  { %v6931_v9 = vpop.permute.xlu0 %499 }
 0x1c7   :  { %5416 = vmatpush3.bf16.xpose.msra.mxu0 %v772_v21  ;;  %655 = vrot.lane.b32.xlu0 %v6828_v62, %s6372_s7 }
 0x1c8   :  { %5666 = vmatprep.subr.msk.bf16.mxu0 %vm671_vm0, %v6774_v35  ;;  %603 = vrot.lane.b32.xlu1 %v6847_v22, %s6371_s6  ;;  %v769_v35 = vsel %vm671_vm0, %v6568_v11, 0 }
 0x1c9   :  { %v6946_v40 = vpop.permute.xlu0 %503 }
 0x1cb   :  { %5492 = vmatpush3.bf16.xpose.msra.mxu1 %v826_v38  ;;  %653 = vrot.lane.b32.xlu0 %v6820_v5, %s6372_s7 }
 0x1cc   :  { %5672 = vmatprep.subr.msk.bf16.mxu1 %vm671_vm0, %v6675_v31  ;;  %601 = vrot.lane.b32.xlu1 %v6835_v41, %s6371_s6 }
 0x1ce   :  { %v6937_v34 = vpop.permute.xlu1 %1636 }
 0x1cf   :  { %5418 = vmatpush3.bf16.xpose.msra.mxu0 %v769_v35  ;;  %651 = vrot.lane.b32.xlu0 %v6847_v22, %s6372_s7 }
 0x1d0   :  { %4211 = vmatprep.subr.bf16.mxu0 %v6369_v1 }
 0x1d2   :  { %v6948_v31 = vpop.permute.xlu1 %505 }
 0x1d3   :  { %5494 = vmatpush3.bf16.xpose.msra.mxu1 %v823_v37  ;;  %649 = vrot.lane.b32.xlu0 %v6835_v41, %s6372_s7 }
 0x1d4   :  { %5673 = vmatprep.subr.msk.bf16.mxu1 %vm671_vm0, %v6799_v8 }
 0x1d6   :  { %v6954_v11 = vpop.permute.xlu1 %1642  ;;  %v6956_v43 = vpop.permute.xlu0 %1639  ;;  %5420 = vmatmul.mubr.msk.bf16.vlgmr.msra.gmra.mxu0 %vm671_vm0, %v6511_v36 }
 0x1d7   :  { %5421 = vmatprep.mubr.msk.bf16.mxu0 %vm671_vm0, %v6578_v12  ;;  %4212 = vmatpush1.bf16.msra.mxu0 %v6795_v3 }
 0x1d8   :  { %4213 = vmatprep.subr.bf16.mxu0 %v6369_v1 }
 0x1da   :  { %v6966_v10 = vpop.permute.xlu1 %507  ;;  %v6968_v44 = vpop.permute.xlu0 %1645 }
 0x1db   :  { %5496 = vmatpush3.bf16.xpose.msra.mxu1 %v820_v30  ;;  %4214 = vmatpush1.bf16.msra.mxu0 %v6814_v27 }
 0x1dc   :  { %5674 = vmatprep.subr.msk.bf16.mxu1 %vm671_vm0, %v6782_v51  ;;  %4215 = vmatprep.subr.bf16.mxu0 %v6369_v1 }
 0x1de   :  { %v6974_v53 = vpop.permute.xlu1 %1651  ;;  %v6976_v58 = vpop.permute.xlu0 %1648  ;;  %5422 = vmatmul.mubr.msk.bf16.gmra.mxu0 %vm671_vm0, %v6578_v12 }
 0x1df   :  { %5423 = vmatprep.mubr.msk.bf16.mxu0 %vm671_vm0, %v6517_v45  ;;  %4216 = vmatpush1.bf16.msra.mxu0 %v6801_v18 }
 0x1e0   :  { %4217 = vmatprep.subr.bf16.mxu0 %v6369_v1 }
 0x1e2   :  { %v6986_v51 = vpop.permute.xlu1 %1654  ;;  %v6988_v59 = vpop.permute.xlu0 %509 }
 0x1e3   :  { %5498 = vmatpush3.bf16.xpose.msra.mxu1 %v817_v25  ;;  %4218 = vmatpush1.bf16.msra.mxu0 %v6828_v62 }
 0x1e4   :  { %4219 = vmatprep.subr.bf16.mxu0 %v6369_v1  ;;  %4500 = vmatprep.subr.bf16.mxu1 %v6369_v1 }
 0x1e6   :  { %v6993_v2 = vpop.permute.xlu1 %511  ;;  %v6995_v3 = vpop.permute.xlu0 %1657  ;;  %5424 = vmatmul.mubr.msk.bf16.gmra.mxu0 %vm671_vm0, %v6517_v45 }
 0x1e7   :  { %5425 = vmatprep.mubr.msk.bf16.mxu0 %vm671_vm0, %v6584_v13  ;;  %4220 = vmatpush1.bf16.msra.mxu0 %v6820_v5 }
 0x1e8   :  { %4221 = vmatprep.subr.bf16.mxu0 %v6369_v1 }
 0x1ea   :  { %v7003_v8 = vpop.permute.xlu1 %1663  ;;  %5500 = vmatmul.mubr.msk.bf16.vlgmr.msra.gmra.mxu1 %vm671_vm0, %v6511_v36  ;;  %v7007_v18 = vpop.permute.xlu0 %1660 }
 0x1eb   :  { %5501 = vmatprep.mubr.msk.bf16.mxu1 %vm671_vm0, %v6578_v12  ;;  %4222 = vmatpush1.bf16.msra.mxu0 %v6847_v22 }
 0x1ec   :  { %4223 = vmatprep.subr.bf16.mxu0 %v6369_v1 }
 0x1ee   :  { %v7013_v4 = vpop.permute.xlu1 %1666  ;;  %v7015_v55 = vpop.permute.xlu0 %513  ;;  %5426 = vmatmul.mubr.msk.bf16.gmra.mxu0 %vm671_vm0, %v6584_v13 }
 0x1ef   :  { %5427 = vmatprep.mubr.msk.bf16.mxu0 %vm671_vm0, %v6600_v15  ;;  %4224 = vmatpush1.bf16.msra.mxu0 %v6835_v41 }
 0x1f0   :  { %4225 = vmatprep.subr.bf16.mxu0 %v6369_v1 }
 0x1f2   :  { %v7023_v36 = vpop.permute.xlu1 %515  ;;  %5502 = vmatmul.mubr.msk.bf16.gmra.mxu1 %vm671_vm0, %v6578_v12  ;;  %v7027_v26 = vpop.permute.xlu0 %1669 }
 0x1f3   :  { %5503 = vmatprep.mubr.msk.bf16.mxu1 %vm671_vm0, %v6517_v45  ;;  %4226 = vmatpush1.bf16.msra.mxu0 %v6863_v56 }
 0x1f4   :  { %4227 = vmatprep.subr.bf16.mxu0 %v6369_v1 }
 0x1f6   :  { %v7033_v24 = vpop.permute.xlu0 %1672  ;;  %5428 = vmatmul.mubr.msk.bf16.gmra.mxu0 %vm671_vm0, %v6600_v15  ;;  %v7037_v27 = vpop.permute.xlu1 %1675 }
 0x1f7   :  { %5429 = vmatprep.mubr.msk.bf16.mxu0 %vm671_vm0, %v6594_v14 }
 0x1fa   :  { %5504 = vmatmul.mubr.msk.bf16.gmra.mxu1 %vm671_vm0, %v6517_v45  ;;  %v7043_v12 = vpop.permute.xlu0 %517  ;;  %v7045_v5 = vpop.permute.xlu1 %1678 }
 0x1fb   :  { %5505 = vmatprep.mubr.msk.bf16.mxu1 %vm671_vm0, %v6584_v13 }
 0x1fe   :  { %5430 = vmatmul.mubr.msk.bf16.gmra.mxu0 %vm671_vm0, %v6594_v14  ;;  %v7051_v19 = vpop.permute.xlu0 %1681  ;;  %v7053_v32 = vpop.permute.xlu1 %1684 }
 0x1ff   :  { %5431 = vmatprep.mubr.msk.bf16.mxu0 %vm671_vm0, %v6608_v17 }
 0x202   :  { %5506 = vmatmul.mubr.msk.bf16.gmra.mxu1 %vm671_vm0, %v6584_v13  ;;  %v7059_v45 = vpop.permute.xlu0 %1687  ;;  %v7061_v62 = vpop.permute.xlu1 %1693 }
 0x203   :  { %5507 = vmatprep.mubr.msk.bf16.mxu1 %vm671_vm0, %v6600_v15 }
 0x206   :  { %5432 = vmatmul.mubr.msk.bf16.gmra.mxu0 %vm671_vm0, %v6608_v17  ;;  %v7067_v41 = vpop.permute.xlu0 %1690  ;;  %v7069_v7 = vpop.permute.xlu1 %1699 }
 0x207   :  { %5433 = vmatprep.mubr.msk.bf16.mxu0 %vm671_vm0, %v6602_v16 }
 0x20a   :  { %5508 = vmatmul.mubr.msk.bf16.gmra.mxu1 %vm671_vm0, %v6600_v15  ;;  %v7075_v13 = vpop.permute.xlu0 %1696  ;;  %v7077_v22 = vpop.permute.xlu1 %1705 }
 0x20b   :  { %5509 = vmatprep.mubr.msk.bf16.mxu1 %vm671_vm0, %v6594_v14 }
 0x20e   :  { %5434 = vmatmul.mubr.msk.bf16.gmra.mxu0 %vm671_vm0, %v6602_v16  ;;  %v7083_v46 = vpop.permute.xlu0 %1702  ;;  %v7085_v63 = vpop.permute.xlu1 %1711 }
 0x20f   :  { %5435 = vmatprep.mubr.msk.bf16.mxu0 %vm671_vm0, %v6824_v29 }
 0x212   :  { %5510 = vmatmul.mubr.msk.bf16.gmra.mxu1 %vm671_vm0, %v6594_v14  ;;  %v7091_v15 = vpop.permute.xlu0 %1708 }
 0x213   :  { %5511 = vmatprep.mubr.msk.bf16.mxu1 %vm671_vm0, %v6608_v17  ;;  %v7095_v49 = vpop.permute.xlu1 %1717 }
 0x216   :  { %5436 = vmatmul.mubr.msk.bf16.gmra.mxu0 %vm671_vm0, %v6824_v29  ;;  %v7099_v28 = vpop.permute.xlu0 %1714 }
 0x217   :  { %5437 = vmatprep.mubr.msk.bf16.mxu0 %vm671_vm0, %v6797_v6  ;;  %v7103_v50 = vpop.permute.xlu1 %1723 }
 0x21a   :  { %5512 = vmatmul.mubr.msk.bf16.gmra.mxu1 %vm671_vm0, %v6608_v17  ;;  %v7107_v14 = vpop.permute.xlu0 %1720 }
 0x21b   :  { %5513 = vmatprep.mubr.msk.bf16.mxu1 %vm671_vm0, %v6602_v16  ;;  %v7111_v21 = vpop.permute.xlu1 %1729 }
 0x21c   :  { %11883 = vst [vmem:[#allocation3_spill] sm:$0xff] %v7111_v21 }
 0x21e   :  { %5438 = vmatmul.mubr.msk.bf16.gmra.mxu0 %vm671_vm0, %v6797_v6  ;;  %v7115_v38 = vpop.permute.xlu0 %1726 }
 0x21f   :  { %11884 = vst [vmem:[#allocation4_spill] sm:$0xff] %v7115_v38  ;;  %5439 = vmatprep.mubr.msk.bf16.mxu0 %vm671_vm0, %v6841_v60  ;;  %v638_v35 = vpop.permute.xlu1 %637 }
 0x220   :  { %4501 = vmatpush1.bf16.msra.mxu1 %v638_v35 }
 0x221   :  { %4502 = vmatprep.subr.bf16.mxu1 %v6369_v1 }
 0x222   :  { %5514 = vmatmul.mubr.msk.bf16.gmra.mxu1 %vm671_vm0, %v6602_v16  ;;  %v7122_v17 = vpop.permute.xlu0 %1732 }
 0x223   :  { %11885 = vst [vmem:[#allocation5_spill] sm:$0xff] %v7122_v17  ;;  %5515 = vmatprep.mubr.msk.bf16.mxu1 %vm671_vm0, %v6824_v29  ;;  %v634_v37 = vpop.permute.xlu1 %633 }
 0x226   :  { %5440 = vmatmul.mubr.msk.bf16.gmra.mxu0 %vm671_vm0, %v6841_v60  ;;  %v636_v30 = vpop.permute.xlu0 %635 }
 0x227   :  { %5441 = vmatprep.mubr.msk.bf16.mxu0 %vm671_vm0, %v6808_v23  ;;  %4503 = vmatpush1.bf16.msra.mxu1 %v636_v30  ;;  %v630_v25 = vpop.permute.xlu1 %629 }
 0x228   :  { %4504 = vmatprep.subr.bf16.mxu1 %v6369_v1 }
 0x22a   :  { %5516 = vmatmul.mubr.msk.bf16.gmra.mxu1 %vm671_vm0, %v6824_v29  ;;  %v632_v16 = vpop.permute.xlu0 %631 }
 0x22b   :  { %5517 = vmatprep.mubr.msk.bf16.mxu1 %vm671_vm0, %v6797_v6  ;;  %4505 = vmatpush1.bf16.msra.mxu1 %v634_v37  ;;  %v626_v35 = vpop.permute.xlu1 %625 }
 0x22c   :  { %4506 = vmatprep.subr.bf16.mxu1 %v6369_v1 }
 0x22e   :  { %5442 = vmatmul.mubr.msk.bf16.gmra.mxu0 %vm671_vm0, %v6808_v23  ;;  %v628_v17 = vpop.permute.xlu0 %627 }
 0x22f   :  { %5443 = vmatprep.mubr.msk.bf16.mxu0 %vm671_vm0, %v6855_v39  ;;  %4507 = vmatpush1.bf16.msra.mxu1 %v632_v16  ;;  %v614_v30 = vpop.permute.xlu1 %613 }
 0x230   :  { %4508 = vmatprep.subr.bf16.mxu1 %v6369_v1  ;;  %4228 = vmatpush2.bf16.msra.mxu0 %v614_v30 }
 0x231   :  { %4229 = vmatprep.subr.bf16.mxu0 %v6369_v1 }
 0x232   :  { %5518 = vmatmul.mubr.msk.bf16.gmra.mxu1 %vm671_vm0, %v6797_v6  ;;  %v624_v29 = vpop.permute.xlu0 %623 }
 0x233   :  { %5519 = vmatprep.mubr.msk.bf16.mxu1 %vm671_vm0, %v6841_v60  ;;  %4509 = vmatpush1.bf16.msra.mxu1 %v630_v25  ;;  %v612_v37 = vpop.permute.xlu1 %611 }
 0x234   :  { %4510 = vmatprep.subr.bf16.mxu1 %v6369_v1  ;;  %4230 = vmatpush2.bf16.msra.mxu0 %v612_v37 }
 0x235   :  { %4231 = vmatprep.subr.bf16.mxu0 %v6369_v1 }
 0x236   :  { %5444 = vmatmul.mubr.msk.bf16.gmra.mxu0 %vm671_vm0, %v6855_v39  ;;  %v662_v16 = vpop.permute.xlu0 %661 }
 0x237   :  { %5445 = vmatprep.mubr.msk.bf16.mxu0 %vm671_vm0, %v6839_v54  ;;  %4511 = vmatpush1.bf16.msra.mxu1 %v628_v17  ;;  %v610_v6 = vpop.permute.xlu1 %609 }
 0x238   :  { %4512 = vmatprep.subr.bf16.mxu1 %v6369_v1  ;;  %4232 = vmatpush2.bf16.msra.mxu0 %v610_v6 }
 0x239   :  { %4233 = vmatprep.subr.bf16.mxu0 %v6369_v1 }
 0x23a   :  { %5520 = vmatmul.mubr.msk.bf16.gmra.mxu1 %vm671_vm0, %v6841_v60  ;;  %v660_v25 = vpop.permute.xlu0 %659 }
 0x23b   :  { %5521 = vmatprep.mubr.msk.bf16.mxu1 %vm671_vm0, %v6808_v23  ;;  %4513 = vmatpush1.bf16.msra.mxu1 %v626_v35  ;;  %v608_v30 = vpop.permute.xlu1 %607 }
 0x23c   :  { %4514 = vmatprep.subr.bf16.mxu1 %v6369_v1  ;;  %4234 = vmatpush2.bf16.msra.mxu0 %v608_v30 }
 0x23d   :  { %4235 = vmatprep.subr.bf16.mxu0 %v6369_v1 }
 0x23e   :  { %5446 = vmatmul.mubr.msk.bf16.gmra.mxu0 %vm671_vm0, %v6839_v54  ;;  %v658_v60 = vpop.permute.xlu0 %657 }
 0x23f   :  { %5447 = vmatprep.mubr.msk.bf16.mxu0 %vm671_vm0, %v6871_v33  ;;  %4515 = vmatpush1.bf16.msra.mxu1 %v624_v29  ;;  %v606_v17 = vpop.permute.xlu1 %605 }
 0x240   :  { %4516 = vmatprep.subr.bf16.mxu1 %v6369_v1  ;;  %4236 = vmatpush2.bf16.msra.mxu0 %v606_v17 }
 0x241   :  { %4237 = vmatprep.subr.bf16.mxu0 %v6369_v1 }
 0x242   :  { %5522 = vmatmul.mubr.msk.bf16.gmra.mxu1 %vm671_vm0, %v6808_v23  ;;  %v656_v29 = vpop.permute.xlu0 %655 }
 0x243   :  { %5523 = vmatprep.mubr.msk.bf16.mxu1 %vm671_vm0, %v6855_v39  ;;  %4517 = vmatpush2.bf16.msra.mxu1 %v662_v16  ;;  %v604_v35 = vpop.permute.xlu1 %603 }
 0x244   :  { %4518 = vmatprep.subr.bf16.mxu1 %v6369_v1  ;;  %4238 = vmatpush2.bf16.msra.mxu0 %v604_v35 }
 0x245   :  { %4239 = vmatprep.subr.bf16.mxu0 %v6369_v1 }
 0x246   :  { %5448 = vmatmul.mubr.msk.bf16.gmra.mxu0 %vm671_vm0, %v6871_v33  ;;  %v654_v23 = vpop.permute.xlu0 %653 }
 0x247   :  { %5449 = vmatprep.mubr.msk.bf16.mxu0 %vm671_vm0, %v6859_v57  ;;  %4519 = vmatpush2.bf16.msra.mxu1 %v660_v25  ;;  %v602_v37 = vpop.permute.xlu1 %601 }
 0x248   :  { %4520 = vmatprep.subr.bf16.mxu1 %v6369_v1  ;;  %4240 = vmatpush2.bf16.msra.mxu0 %v602_v37 }
 0x249   :  { %4241 = vmatprep.subr.bf16.mxu0 %v6369_v1 }
 0x24a   :  { %5524 = vmatmul.mubr.msk.bf16.gmra.mxu1 %vm671_vm0, %v6855_v39  ;;  %v652_v39 = vpop.permute.xlu0 %651 }
 0x24b   :  { %5525 = vmatprep.mubr.msk.bf16.mxu1 %vm671_vm0, %v6839_v54  ;;  %4521 = vmatpush2.bf16.msra.mxu1 %v658_v60 }
 0x24c   :  { %4522 = vmatprep.subr.bf16.mxu1 %v6369_v1 }
 0x24e   :  { %5450 = vmatmul.mubr.msk.bf16.gmra.mxu0 %vm671_vm0, %v6859_v57  ;;  %v650_v16 = vpop.permute.xlu0 %649 }
 0x24f   :  { %5451 = vmatprep.mubr.msk.bf16.mxu0 %vm671_vm0, %v6885_v0  ;;  %4523 = vmatpush2.bf16.msra.mxu1 %v656_v29 }
 0x250   :  { %4524 = vmatprep.subr.bf16.mxu1 %v6369_v1 }
 0x252   :  { %5526 = vmatmul.mubr.msk.bf16.gmra.mxu1 %vm671_vm0, %v6839_v54  ;;  %v1827_v54 = vlaneseq }
 0x253   :  { %5527 = vmatprep.mubr.msk.bf16.mxu1 %vm671_vm0, %v6871_v33  ;;  %4525 = vmatpush2.bf16.msra.mxu1 %v654_v23 }
 0x254   :  { %4526 = vmatprep.subr.bf16.mxu1 %v6369_v1 }
 0x256   :  { %5452 = vmatmul.mubr.msk.bf16.gmra.mxu0 %vm671_vm0, %v6885_v0 }
 0x257   :  { %5453 = vmatprep.mubr.msk.bf16.mxu0 %vm671_vm0, %v6877_v42  ;;  %4527 = vmatpush2.bf16.msra.mxu1 %v652_v39 }
 0x258   :  { %4528 = vmatprep.subr.bf16.mxu1 %v6369_v1 }
 0x25a   :  { %5528 = vmatmul.mubr.msk.bf16.gmra.mxu1 %vm671_vm0, %v6871_v33  ;;  %v1828_v33 = vshrl.u32 %v1827_v54, 7 }
 0x25b   :  { %5529 = vmatprep.mubr.msk.bf16.mxu1 %vm671_vm0, %v6859_v57  ;;  %4529 = vmatpush2.bf16.msra.mxu1 %v650_v16 }
 0x25c   :  { %4530 = vmatprep.subr.bf16.mxu1 %v6369_v1  ;;  %v1837_v17 = vsub.s32 2, %v1828_v33  ;;  %v1841_v35 = vsub.s32 3, %v1828_v33 }
 0x25e   :  { %5454 = vmatmul.mubr.msk.bf16.gmra.mxu0 %vm671_vm0, %v6877_v42 }
 0x25f   :  { %5455 = vmatprep.mubr.msk.bf16.mxu0 %vm671_vm0, %v6899_v61 }
 0x262   :  { %5530 = vmatmul.mubr.msk.bf16.gmra.mxu1 %vm671_vm0, %v6859_v57 }
 0x263   :  { %5531 = vmatprep.mubr.msk.bf16.mxu1 %vm671_vm0, %v6885_v0 }
 0x266   :  { %5456 = vmatmul.mubr.msk.bf16.gmra.mxu0 %vm671_vm0, %v6899_v61 }
 0x267   :  { %5457 = vmatprep.mubr.msk.bf16.mxu0 %vm671_vm0, %v6893_v52 }
 0x26a   :  { %5532 = vmatmul.mubr.msk.bf16.gmra.mxu1 %vm671_vm0, %v6885_v0  ;;  %v1833_v0 = vsub.s32 1, %v1828_v33 }
 0x26b   :  { %5533 = vmatprep.mubr.msk.bf16.mxu1 %vm671_vm0, %v6877_v42 }
 0x26e   :  { %5458 = vmatmul.mubr.msk.bf16.gmra.mxu0 %vm671_vm0, %v6893_v52 }
 0x26f   :  { %5459 = vmatprep.mubr.msk.bf16.mxu0 %vm671_vm0, %v6915_v20 }
 0x272   :  { %5534 = vmatmul.mubr.msk.bf16.gmra.mxu1 %vm671_vm0, %v6877_v42 }
 0x273   :  { %5535 = vmatprep.mubr.msk.bf16.mxu1 %vm671_vm0, %v6899_v61 }
 0x276   :  { %5460 = vmatmul.mubr.msk.bf16.gmra.mxu0 %vm671_vm0, %v6915_v20 }
 0x277   :  { %5461 = vmatprep.mubr.msk.bf16.mxu0 %vm671_vm0, %v6909_v47 }
 0x27a   :  { %5536 = vmatmul.mubr.msk.bf16.gmra.mxu1 %vm671_vm0, %v6899_v61  ;;  %v1829_v61 = vsub.s32 0, %v1828_v33 }
 0x27b   :  { %5537 = vmatprep.mubr.msk.bf16.mxu1 %vm671_vm0, %v6893_v52 }
 0x27e   :  { %5462 = vmatmul.mubr.msk.bf16.gmra.mxu0 %vm671_vm0, %v6909_v47 }
 0x27f   :  { %5463 = vmatprep.mubr.msk.bf16.mxu0 %vm671_vm0, %v6931_v9 }
 0x282   :  { %5538 = vmatmul.mubr.msk.bf16.gmra.mxu1 %vm671_vm0, %v6893_v52 }
 0x283   :  { %5539 = vmatprep.mubr.msk.bf16.mxu1 %vm671_vm0, %v6915_v20 }
 0x286   :  { %5464 = vmatmul.mubr.msk.bf16.gmra.mxu0 %vm671_vm0, %v6931_v9 }
 0x287   :  { %5465 = vmatprep.mubr.msk.bf16.mxu0 %vm671_vm0, %v6927_v48 }
 0x28a   :  { %5540 = vmatmul.mubr.msk.bf16.gmra.mxu1 %vm671_vm0, %v6915_v20  ;;  %v1634_v20 = vld [vmem:[%s11432_s4] sm:$0xf] }
 0x28b   :  { %5541 = vmatprep.mubr.msk.bf16.mxu1 %vm671_vm0, %v6909_v47  ;;  %v7274_v6 = vrot.slane %v1634_v20, %v1833_v0  ;;  %v7276_v25 = vrot.slane %v1634_v20, %v1829_v61  ;;  %v7300_v39 = vrot.slane %v1634_v20, %v1841_v35 }
 0x28d   :  { %vm1844_vm1 = vcmp.eq.s32.totalorder %v6937_v34, %v7274_v6  ;;  %vm1843_vm2 = vcmp.eq.s32.totalorder %v6937_v34, %v7276_v25  ;;  %vm1848_vm3 = vcmp.eq.s32.totalorder %v6956_v43, %v7274_v6  ;;  %vm1847_vm4 = vcmp.eq.s32.totalorder %v6956_v43, %v7276_v25 }
 0x28e   :  { %5466 = vmatmul.mubr.msk.bf16.gmra.mxu0 %vm671_vm0, %v6927_v48  ;;  %vm1846_vm6 = vcmp.eq.s32.totalorder %v6937_v34, %v7300_v39  ;;  %vm1852_vm8 = vcmp.eq.s32.totalorder %v6954_v11, %v7274_v6  ;;  %vm1850_vm9 = vcmp.eq.s32.totalorder %v6956_v43, %v7300_v39  ;;  %vm1851_vm10 = vcmp.eq.s32.totalorder %v6954_v11, %v7276_v25 }
 0x28f   :  { %5467 = vmatprep.mubr.msk.bf16.mxu0 %vm671_vm0, %v6946_v40  ;;  %vm1856_vm11 = vcmp.eq.s32.totalorder %v6968_v44, %v7274_v6  ;;  %vm1855_vm12 = vcmp.eq.s32.totalorder %v6968_v44, %v7276_v25  ;;  %vm1860_vm14 = vcmp.eq.s32.totalorder %v6976_v58, %v7274_v6  ;;  %vm1854_vm15 = vcmp.eq.s32.totalorder %v6954_v11, %v7300_v39 }
 0x292   :  { %5542 = vmatmul.mubr.msk.bf16.gmra.mxu1 %vm671_vm0, %v6909_v47 }
 0x293   :  { %5543 = vmatprep.mubr.msk.bf16.mxu1 %vm671_vm0, %v6931_v9 }
 0x296   :  { %v898_v1 = vpop.f32.mrf.mxu0  ;;  %5468 = vmatmul.mubr.msk.bf16.gmra.mxu0 %vm671_vm0, %v6946_v40 }
 0x297   :  { %5469 = vmatprep.mubr.msk.bf16.mxu0 %vm671_vm0, %v6948_v31  ;;  %v7302_v16 = vsel %vm1843_vm2, %v898_v1, -1e+30 }
 0x298   :  { %v900_v57 = vpop.f32.mrf.mxu0 }
 0x299   :  { %v7294_v37 = vsel %vm1844_vm1, %v900_v57, -1e+30  ;;  %vm1859_vm1 = vcmp.eq.s32.totalorder %v6976_v58, %v7276_v25 }
 0x29a   :  { %5544 = vmatmul.mubr.msk.bf16.gmra.mxu1 %vm671_vm0, %v6931_v9  ;;  %v902_v42 = vpop.f32.mrf.mxu0  ;;  %v2355_v54 = vmax.f32 %v7302_v16, %v7294_v37 }
 0x29b   :  { %5545 = vmatprep.mubr.msk.bf16.mxu1 %vm671_vm0, %v6927_v48 }
 0x29c   :  { %v904_v52 = vpop.f32.mrf.mxu0 }
 0x29d   :  { %v7314_v0 = vsel %vm1848_vm3, %v904_v52, -1e+30  ;;  %vm1858_vm3 = vcmp.eq.s32.totalorder %v6968_v44, %v7300_v39 }
 0x29e   :  { %v908_v47 = vpop.f32.mrf.mxu0  ;;  %5470 = vmatmul.mubr.msk.bf16.gmra.mxu0 %vm671_vm0, %v6948_v31  ;;  %11886 = vst [vmem:[#allocation6_spill] sm:$0xff] %v7314_v0 }
 0x29f   :  { %5471 = vmatprep.mubr.msk.bf16.mxu0 %vm671_vm0, %v6966_v10 }
 0x2a0   :  { %v910_v9 = vpop.f32.mrf.mxu0 }
 0x2a2   :  { %5546 = vmatmul.mubr.msk.bf16.gmra.mxu1 %vm671_vm0, %v6927_v48  ;;  %v7280_v30 = vpop.f32.mrf.mxu0  ;;  %v7292_v48 = vrot.slane %v1634_v20, %v1837_v17 }
 0x2a3   :  { %5547 = vmatprep.mubr.msk.bf16.mxu1 %vm671_vm0, %v6946_v40 }
 0x2a4   :  { %v914_v60 = vpop.f32.mrf.mxu0  ;;  %vm1845_vm5 = vcmp.eq.s32.totalorder %v6937_v34, %v7292_v48  ;;  %vm1849_vm7 = vcmp.eq.s32.totalorder %v6956_v43, %v7292_v48  ;;  %v7342_v34 = vsel %vm1852_vm8, %v910_v9, -1e+30  ;;  %v7355_v43 = vsel %vm1851_vm10, %v908_v47, -1e+30 }
 0x2a5   :  { %11887 = vst [vmem:[#allocation7_spill] sm:$0xff] %v7342_v34  ;;  %vm1853_vm13 = vcmp.eq.s32.totalorder %v6954_v11, %v7292_v48  ;;  %v7370_v47 = vsel %vm1856_vm11, %v914_v60, -1e+30  ;;  %v7384_v60 = vsel %vm1855_vm12, %v7280_v30, -1e+30  ;;  %vm1857_vm2 = vcmp.eq.s32.totalorder %v6968_v44, %v7292_v48 }
 0x2a6   :  { %v7288_v29 = vpop.f32.mrf.mxu0  ;;  %5472 = vmatmul.mubr.msk.bf16.gmra.mxu0 %vm671_vm0, %v6966_v10  ;;  %11888 = vst [vmem:[#allocation8_spill] sm:$0xff] %v7370_v47  ;;  %11890 = vst [vmem:[#allocation10_spill] sm:$0xff] %v7384_v60  ;;  %vm1868_vm8 = vcmp.eq.s32.totalorder %v6986_v51, %v7274_v6  ;;  %vm1867_vm10 = vcmp.eq.s32.totalorder %v6986_v51, %v7276_v25  ;;  %vm1872_vm11 = vcmp.eq.s32.totalorder %v6995_v3, %v7274_v6 }
 0x2a7   :  { %5473 = vmatprep.mubr.msk.bf16.mxu0 %vm671_vm0, %v6988_v59  ;;  %vm1866_vm12 = vcmp.eq.s32.totalorder %v6974_v53, %v7300_v39 }
 0x2a8   :  { %v920_v23 = vpop.f32.mrf.mxu0 }
 0x2aa   :  { %v1251_v33 = vpop.f32.mrf.mxu1  ;;  %5548 = vmatmul.mubr.msk.bf16.gmra.mxu1 %vm671_vm0, %v6946_v40  ;;  %v7312_v57 = vpop.f32.mrf.mxu0  ;;  %v7327_v40 = vsel %vm1847_vm4, %v902_v42, -1e+30  ;;  %vm1864_vm4 = vcmp.eq.s32.totalorder %v6974_v53, %v7274_v6 }
 0x2ab   :  { %v7316_v61 = vsel %vm1845_vm5, %v1251_v33, -1e+30  ;;  %5549 = vmatprep.mubr.msk.bf16.mxu1 %vm671_vm0, %v6948_v31  ;;  %v2360_v35 = vmax.f32 %v7327_v40, %v7314_v0  ;;  %vm1861_vm5 = vcmp.eq.s32.totalorder %v6976_v58, %v7292_v48 }
 0x2ac   :  { %v2356_v1 = vmax.f32 %v2355_v54, %v7316_v61  ;;  %v7321_v20 = vpop.f32.mrf.mxu0  ;;  %v1253_v17 = vpop.f32.mrf.mxu1 }
 0x2ad   :  { %v7329_v52 = vsel %vm1846_vm6, %v1253_v17, -1e+30  ;;  %vm1863_vm6 = vcmp.eq.s32.totalorder %v6974_v53, %v7276_v25 }
 0x2ae   :  { %v2357_v54 = vmax.f32 %v2356_v1, %v7329_v52  ;;  %v1255_v33 = vpop.f32.mrf.mxu1  ;;  %v7336_v56 = vpop.f32.mrf.mxu0  ;;  %5474 = vmatmul.mubr.msk.bf16.gmra.mxu0 %vm671_vm0, %v6988_v59 }
 0x2af   :  { %v7344_v42 = vsel %vm1849_vm7, %v1255_v33, -1e+30  ;;  %5475 = vmatprep.mubr.msk.bf16.mxu0 %vm671_vm0, %v6993_v2  ;;  %v2365_v33 = vmax.f32 %v7355_v43, %v7342_v34  ;;  %v2370_v34 = vmax.f32 %v7384_v60, %v7370_v47  ;;  %v7411_v60 = vsel %vm1859_vm1, %v7288_v29, -1e+30 }
 0x2b0   :  { %v2361_v1 = vmax.f32 %v2360_v35, %v7344_v42  ;;  %v1257_v17 = vpop.f32.mrf.mxu1  ;;  %2358 = vmax.xlane.f32.xlu1 %v2357_v54  ;;  %v7353_v21 = vpop.f32.mrf.mxu0  ;;  %v7427_v29 = vsel %vm1864_vm4, %v7321_v20, -1e+30  ;;  %vm1862_vm7 = vcmp.eq.s32.totalorder %v6976_v58, %v7300_v39  ;;  %v7441_v20 = vsel %vm1863_vm6, %v7312_v57, -1e+30 }
 0x2b1   :  { %v7357_v9 = vsel %vm1850_vm9, %v1257_v17, -1e+30  ;;  %11893 = vst [vmem:[#allocation13_spill] sm:$0xff] %v7427_v29  ;;  %11895 = vst [vmem:[#allocation15_spill] sm:$0xff] %v7441_v20  ;;  %vm1865_vm9 = vcmp.eq.s32.totalorder %v6974_v53, %v7292_v48  ;;  %v7457_v57 = vsel %vm1868_vm8, %v7353_v21, -1e+30  ;;  %vm1876_vm1 = vcmp.eq.s32.totalorder %v7007_v18, %v7274_v6 }
 0x2b2   :  { %v2362_v38 = vmax.f32 %v2361_v1, %v7357_v9  ;;  %v1261_v0 = vpop.f32.mrf.mxu1  ;;  %5550 = vmatmul.mubr.msk.bf16.gmra.mxu1 %vm671_vm0, %v6948_v31  ;;  %v7368_v35 = vpop.f32.mrf.mxu0  ;;  %11896 = vst [vmem:[#allocation16_spill] sm:$0xff] %v7457_v57  ;;  %vm1874_vm4 = vcmp.eq.s32.totalorder %v6995_v3, %v7300_v39  ;;  %vm1877_vm6 = vcmp.eq.s32.totalorder %v7007_v18, %v7292_v48 }
 0x2b3   :  { %v7372_v54 = vsel %vm1853_vm13, %v1261_v0, -1e+30  ;;  %5551 = vmatprep.mubr.msk.bf16.mxu1 %vm671_vm0, %v6966_v10  ;;  %vm1871_vm13 = vcmp.eq.s32.totalorder %v6995_v3, %v7276_v25  ;;  %vm1878_vm8 = vcmp.eq.s32.totalorder %v7007_v18, %v7300_v39 }
 0x2b4   :  { %11889 = vst [vmem:[#allocation9_spill] sm:$0xff] %v7372_v54  ;;  %v2366_v1 = vmax.f32 %v2365_v33, %v7372_v54  ;;  %v1263_v17 = vpop.f32.mrf.mxu1  ;;  %2363 = vmax.xlane.f32.xlu0 %v2362_v38  ;;  %v7381_v31 = vpop.f32.mrf.mxu0  ;;  %v7399_v38 = vsel %vm1860_vm14, %v920_v23, -1e+30  ;;  %vm1869_vm14 = vcmp.eq.s32.totalorder %v6986_v51, %v7292_v48 }
 0x2b5   :  { %v7386_v0 = vsel %vm1854_vm15, %v1263_v17, -1e+30  ;;  %11892 = vst [vmem:[#allocation12_spill] sm:$0xff] %v7399_v38  ;;  %v2375_v23 = vmax.f32 %v7411_v60, %v7399_v38  ;;  %v2380_v38 = vmax.f32 %v7441_v20, %v7427_v29  ;;  %vm1870_vm15 = vcmp.eq.s32.totalorder %v6986_v51, %v7300_v39 }
 0x2b6   :  { %11891 = vst [vmem:[#allocation11_spill] sm:$0xff] %v7386_v0  ;;  %v2367_v33 = vmax.f32 %v2366_v1, %v7386_v0  ;;  %v1265_v54 = vpop.f32.mrf.mxu1  ;;  %v7395_v11 = vpop.f32.mrf.mxu0  ;;  %5476 = vmatmul.mubr.msk.bf16.gmra.mxu0 %vm671_vm0, %v6993_v2 }
 0x2b7   :  { %v7401_v30 = vsel %vm1857_vm2, %v1265_v54, -1e+30  ;;  %5477 = vmatprep.mubr.msk.bf16.mxu0 %vm671_vm0, %v7015_v55  ;;  %vm1873_vm2 = vcmp.eq.s32.totalorder %v6995_v3, %v7292_v48 }
 0x2b8   :  { %v2371_v17 = vmax.f32 %v2370_v34, %v7401_v30  ;;  %v1267_v47 = vpop.f32.mrf.mxu1  ;;  %2368 = vmax.xlane.f32.xlu1 %v2367_v33  ;;  %v7408_v1 = vpop.f32.mrf.mxu0 }
 0x2b9   :  { %v7413_v0 = vsel %vm1858_vm3, %v1267_v47, -1e+30  ;;  %vm1875_vm3 = vcmp.eq.s32.totalorder %v7007_v18, %v7276_v25 }
 0x2ba   :  { %v2372_v34 = vmax.f32 %v2371_v17, %v7413_v0  ;;  %v1271_v54 = vpop.f32.mrf.mxu1  ;;  %5552 = vmatmul.mubr.msk.bf16.gmra.mxu1 %vm671_vm0, %v6966_v10  ;;  %v7424_v44 = vpop.f32.mrf.mxu0 }
 0x2bb   :  { %v7429_v47 = vsel %vm1861_vm5, %v1271_v54, -1e+30  ;;  %5553 = vmatprep.mubr.msk.bf16.mxu1 %vm671_vm0, %v6988_v59  ;;  %vm1880_vm5 = vcmp.eq.s32.totalorder %v7003_v8, %v7274_v6 }
 0x2bc   :  { %11894 = vst [vmem:[#allocation14_spill] sm:$0xff] %v7429_v47  ;;  %v2376_v33 = vmax.f32 %v2375_v23, %v7429_v47  ;;  %v1273_v17 = vpop.f32.mrf.mxu1  ;;  %2373 = vmax.xlane.f32.xlu0 %v2372_v34  ;;  %v7438_v10 = vpop.f32.mrf.mxu0 }
 0x2bd   :  { %v7443_v54 = vsel %vm1862_vm7, %v1273_v17, -1e+30  ;;  %v7545_v3 = vsel %vm1880_vm5, %v7438_v10, -1e+30  ;;  %vm1879_vm7 = vcmp.eq.s32.totalorder %v7003_v8, %v7276_v25  ;;  %vm1890_vm5 = vcmp.eq.s32.totalorder %v7027_v26, %v7300_v39 }
 0x2be   :  { %v2377_v23 = vmax.f32 %v2376_v33, %v7443_v54  ;;  %v1275_v47 = vpop.f32.mrf.mxu1  ;;  %v7452_v58 = vpop.f32.mrf.mxu0  ;;  %5478 = vmatmul.mubr.msk.bf16.gmra.mxu0 %vm671_vm0, %v7015_v55  ;;  %11904 = vst [vmem:[#allocation24_spill] sm:$0xff] %v7545_v3 }
 0x2bf   :  { %v7459_v34 = vsel %vm1865_vm9, %v1275_v47, -1e+30  ;;  %5479 = vmatprep.mubr.msk.bf16.mxu0 %vm671_vm0, %v7023_v36  ;;  %v7473_v47 = vsel %vm1867_vm10, %v7336_v56, -1e+30  ;;  %v7489_v56 = vsel %vm1872_vm11, %v7381_v31, -1e+30  ;;  %vm1884_vm9 = vcmp.eq.s32.totalorder %v7013_v4, %v7274_v6 }
 0x2c0   :  { %11897 = vst [vmem:[#allocation17_spill] sm:$0xff] %v7459_v34  ;;  %v2381_v33 = vmax.f32 %v2380_v38, %v7459_v34  ;;  %v1277_v17 = vpop.f32.mrf.mxu1  ;;  %2378 = vmax.xlane.f32.xlu1 %v2377_v23  ;;  %v7470_v21 = vpop.f32.mrf.mxu0  ;;  %11898 = vst [vmem:[#allocation18_spill] sm:$0xff] %v7473_v47  ;;  %v2385_v20 = vmax.f32 %v7473_v47, %v7457_v57  ;;  %vm1881_vm10 = vcmp.eq.s32.totalorder %v7003_v8, %v7292_v48 }
 0x2c1   :  { %v7475_v29 = vsel %vm1866_vm12, %v1277_v17, -1e+30  ;;  %11899 = vst [vmem:[#allocation19_spill] sm:$0xff] %v7489_v56  ;;  %vm1883_vm11 = vcmp.eq.s32.totalorder %v7013_v4, %v7276_v25  ;;  %vm1882_vm12 = vcmp.eq.s32.totalorder %v7003_v8, %v7300_v39 }
 0x2c2   :  { %v2382_v38 = vmax.f32 %v2381_v33, %v7475_v29  ;;  %v1281_v34 = vpop.f32.mrf.mxu1  ;;  %5554 = vmatmul.mubr.msk.bf16.gmra.mxu1 %vm671_vm0, %v6988_v59  ;;  %v7486_v53 = vpop.f32.mrf.mxu0  ;;  %v7501_v59 = vsel %vm1871_vm13, %v7368_v35, -1e+30  ;;  %v7517_v35 = vsel %vm1876_vm1, %v7408_v1, -1e+30  ;;  %vm1888_vm13 = vcmp.eq.s32.totalorder %v7027_v26, %v7274_v6 }
 0x2c3   :  { %v7491_v23 = vsel %vm1869_vm14, %v1281_v34, -1e+30  ;;  %5555 = vmatprep.mubr.msk.bf16.mxu1 %vm671_vm0, %v6993_v2  ;;  %11900 = vst [vmem:[#allocation20_spill] sm:$0xff] %v7501_v59  ;;  %v2390_v31 = vmax.f32 %v7501_v59, %v7489_v56  ;;  %11902 = vst [vmem:[#allocation22_spill] sm:$0xff] %v7517_v35  ;;  %v7529_v59 = vsel %vm1875_vm3, %v7395_v11, -1e+30  ;;  %vm1885_vm14 = vcmp.eq.s32.totalorder %v7013_v4, %v7292_v48 }
 0x2c4   :  { %v2386_v17 = vmax.f32 %v2385_v20, %v7491_v23  ;;  %v1283_v33 = vpop.f32.mrf.mxu1  ;;  %2383 = vmax.xlane.f32.xlu0 %v2382_v38  ;;  %v7498_v57 = vpop.f32.mrf.mxu0  ;;  %vm1886_vm1 = vcmp.eq.s32.totalorder %v7013_v4, %v7300_v39  ;;  %vm1889_vm3 = vcmp.eq.s32.totalorder %v7027_v26, %v7292_v48 }
 0x2c5   :  { %v7503_v47 = vsel %vm1870_vm15, %v1283_v33, -1e+30  ;;  %v7599_v8 = vsel %vm1888_vm13, %v7498_v57, -1e+30  ;;  %vm1887_vm15 = vcmp.eq.s32.totalorder %v7027_v26, %v7276_v25  ;;  %vm1898_vm13 = vcmp.eq.s32.totalorder %v7037_v27, %v7300_v39 }
 0x2c6   :  { %11901 = vst [vmem:[#allocation21_spill] sm:$0xff] %v7503_v47  ;;  %v2387_v20 = vmax.f32 %v2386_v17, %v7503_v47  ;;  %v1285_v34 = vpop.f32.mrf.mxu1  ;;  %v7512_v51 = vpop.f32.mrf.mxu0  ;;  %5480 = vmatmul.mubr.msk.bf16.gmra.mxu0 %vm671_vm0, %v7023_v36 }
 0x2c7   :  { %v7519_v38 = vsel %vm1873_vm2, %v1285_v34, -1e+30  ;;  %5481 = vmatprep.mubr.msk.bf16.mxu0 %vm671_vm0, %v7043_v12  ;;  %v2395_v34 = vmax.f32 %v7529_v59, %v7517_v35  ;;  %vm1892_vm2 = vcmp.eq.s32.totalorder %v7033_v24, %v7274_v6 }
 0x2c8   :  { %11903 = vst [vmem:[#allocation23_spill] sm:$0xff] %v7519_v38  ;;  %v2391_v17 = vmax.f32 %v2390_v31, %v7519_v38  ;;  %v1287_v33 = vpop.f32.mrf.mxu1  ;;  %2388 = vmax.xlane.f32.xlu1 %v2387_v20  ;;  %v960_v56 = vpop.f32.mrf.mxu0 }
 0x2c9   :  { %v7531_v1 = vsel %vm1874_vm4, %v1287_v33, -1e+30  ;;  %v7624_v4 = vsel %vm1892_vm2, %v960_v56, -1e+30  ;;  %vm1891_vm4 = vcmp.eq.s32.totalorder %v7033_v24, %v7276_v25  ;;  %vm1902_vm2 = vcmp.eq.s32.totalorder %v7045_v5, %v7300_v39 }
 0x2ca   :  { %v2392_v47 = vmax.f32 %v2391_v17, %v7531_v1  ;;  %v7538_v31 = vpop.f32.mrf.mxu0  ;;  %v1291_v38 = vpop.f32.mrf.mxu1  ;;  %5556 = vmatmul.mubr.msk.bf16.gmra.mxu1 %vm671_vm0, %v6993_v2  ;;  %v7557_v2 = vsel %vm1879_vm7, %v7424_v44, -1e+30  ;;  %v7573_v44 = vsel %vm1884_vm9, %v7470_v21, -1e+30  ;;  %11912 = vst [vmem:[#allocation32_spill] sm:$0xff] %v7624_v4  ;;  %vm1893_vm7 = vcmp.eq.s32.totalorder %v7033_v24, %v7292_v48 }
 0x2cb   :  { %v7547_v11 = vsel %vm1877_vm6, %v1291_v38, -1e+30  ;;  %5557 = vmatprep.mubr.msk.bf16.mxu1 %vm671_vm0, %v7015_v55  ;;  %11905 = vst [vmem:[#allocation25_spill] sm:$0xff] %v7557_v2  ;;  %v2400_v38 = vmax.f32 %v7557_v2, %v7545_v3  ;;  %11907 = vst [vmem:[#allocation27_spill] sm:$0xff] %v7573_v44  ;;  %v7583_v2 = vsel %vm1883_vm11, %v7452_v58, -1e+30  ;;  %vm1896_vm6 = vcmp.eq.s32.totalorder %v7037_v27, %v7274_v6 }
 0x2cc   :  { %v2396_v20 = vmax.f32 %v2395_v34, %v7547_v11  ;;  %v1293_v17 = vpop.f32.mrf.mxu1  ;;  %2393 = vmax.xlane.f32.xlu0 %v2392_v47  ;;  %v964_v33 = vpop.f32.mrf.mxu0  ;;  %11909 = vst [vmem:[#allocation29_spill] sm:$0xff] %v7583_v2  ;;  %v2405_v21 = vmax.f32 %v7583_v2, %v7573_v44  ;;  %vm1894_vm9 = vcmp.eq.s32.totalorder %v7033_v24, %v7300_v39 }
 0x2cd   :  { %v7559_v10 = vsel %vm1878_vm8, %v1293_v17, -1e+30  ;;  %v7649_v26 = vsel %vm1896_vm6, %v964_v33, -1e+30  ;;  %vm1895_vm8 = vcmp.eq.s32.totalorder %v7037_v27, %v7276_v25  ;;  %vm1897_vm11 = vcmp.eq.s32.totalorder %v7037_v27, %v7292_v48 }
 0x2ce   :  { %11906 = vst [vmem:[#allocation26_spill] sm:$0xff] %v7559_v10  ;;  %v2397_v35 = vmax.f32 %v2396_v20, %v7559_v10  ;;  %v7566_v34 = vpop.f32.mrf.mxu0  ;;  %5482 = vmatmul.mubr.msk.bf16.gmra.mxu0 %vm671_vm0, %v7043_v12  ;;  %v1295_v18 = vpop.f32.mrf.mxu1  ;;  %11914 = vst [vmem:[#allocation34_spill] sm:$0xff] %v7649_v26  ;;  %vm1906_vm6 = vcmp.eq.s32.totalorder %v7051_v19, %v7300_v39 }
 0x2cf   :  { %v7575_v47 = vsel %vm1881_vm10, %v1295_v18, -1e+30  ;;  %vm1900_vm10 = vcmp.eq.s32.totalorder %v7045_v5, %v7274_v6 }
 0x2d0   :  { %11908 = vst [vmem:[#allocation28_spill] sm:$0xff] %v7575_v47  ;;  %v2401_v17 = vmax.f32 %v2400_v38, %v7575_v47  ;;  %v1297_v20 = vpop.f32.mrf.mxu1  ;;  %2398 = vmax.xlane.f32.xlu1 %v2397_v35  ;;  %v970_v3 = vpop.f32.mrf.mxu0 }
 0x2d1   :  { %v7585_v10 = vsel %vm1882_vm12, %v1297_v20, -1e+30  ;;  %v7674_v24 = vsel %vm1900_vm10, %v970_v3, -1e+30  ;;  %vm1899_vm12 = vcmp.eq.s32.totalorder %v7045_v5, %v7276_v25  ;;  %vm1910_vm10 = vcmp.eq.s32.totalorder %v7053_v32, %v7300_v39 }
 0x2d2   :  { %v2402_v18 = vmax.f32 %v2401_v17, %v7585_v10  ;;  %v7592_v38 = vpop.f32.mrf.mxu0  ;;  %v1301_v47 = vpop.f32.mrf.mxu1  ;;  %5558 = vmatmul.mubr.msk.bf16.gmra.mxu1 %vm671_vm0, %v7015_v55  ;;  %v7611_v55 = vsel %vm1887_vm15, %v7486_v53, -1e+30  ;;  %11917 = vst [vmem:[#allocation37_spill] sm:$0xff] %v7674_v24  ;;  %vm1901_vm15 = vcmp.eq.s32.totalorder %v7045_v5, %v7292_v48 }
 0x2d3   :  { %v7601_v58 = vsel %vm1885_vm14, %v1301_v47, -1e+30  ;;  %5559 = vmatprep.mubr.msk.bf16.mxu1 %vm671_vm0, %v7023_v36  ;;  %v2410_v47 = vmax.f32 %v7611_v55, %v7599_v8  ;;  %vm1904_vm14 = vcmp.eq.s32.totalorder %v7051_v19, %v7274_v6 }
 0x2d4   :  { %11910 = vst [vmem:[#allocation30_spill] sm:$0xff] %v7601_v58  ;;  %v2406_v35 = vmax.f32 %v2405_v21, %v7601_v58  ;;  %v1303_v17 = vpop.f32.mrf.mxu1  ;;  %2403 = vmax.xlane.f32.xlu0 %v2402_v18  ;;  %v974_v20 = vpop.f32.mrf.mxu0 }
 0x2d5   :  { %v7613_v57 = vsel %vm1886_vm1, %v1303_v17, -1e+30  ;;  %v7699_v27 = vsel %vm1904_vm14, %v974_v20, -1e+30  ;;  %vm1903_vm1 = vcmp.eq.s32.totalorder %v7051_v19, %v7276_v25  ;;  %vm1914_vm14 = vcmp.eq.s32.totalorder %v7059_v45, %v7300_v39 }
 0x2d6   :  { %11911 = vst [vmem:[#allocation31_spill] sm:$0xff] %v7613_v57  ;;  %v2407_v44 = vmax.f32 %v2406_v35, %v7613_v57  ;;  %v7620_v21 = vpop.f32.mrf.mxu0  ;;  %v1305_v58 = vpop.f32.mrf.mxu1  ;;  %v7634_v57 = vsel %vm1891_vm4, %v7512_v51, -1e+30  ;;  %vm1905_vm4 = vcmp.eq.s32.totalorder %v7051_v19, %v7292_v48 }
 0x2d7   :  { %v7626_v53 = vsel %vm1889_vm3, %v1305_v58, -1e+30  ;;  %v2415_v56 = vmax.f32 %v7634_v57, %v7624_v4  ;;  %vm1908_vm3 = vcmp.eq.s32.totalorder %v7053_v32, %v7274_v6 }
 0x2d8   :  { %11913 = vst [vmem:[#allocation33_spill] sm:$0xff] %v7626_v53  ;;  %v2411_v18 = vmax.f32 %v2410_v47, %v7626_v53  ;;  %v1307_v17 = vpop.f32.mrf.mxu1  ;;  %2408 = vmax.xlane.f32.xlu1 %v2407_v44  ;;  %v980_v35 = vpop.f32.mrf.mxu0 }
 0x2d9   :  { %v7636_v2 = vsel %vm1890_vm5, %v1307_v17, -1e+30  ;;  %v7722_v5 = vsel %vm1908_vm3, %v980_v35, -1e+30  ;;  %vm1907_vm5 = vcmp.eq.s32.totalorder %v7053_v32, %v7276_v25  ;;  %vm1918_vm3 = vcmp.eq.s32.totalorder %v7067_v41, %v7300_v39 }
 0x2da   :  { %v2412_v58 = vmax.f32 %v2411_v18, %v7636_v2  ;;  %v7643_v47 = vpop.f32.mrf.mxu0  ;;  %v1311_v53 = vpop.f32.mrf.mxu1  ;;  %5560 = vmatmul.mubr.msk.bf16.gmra.mxu1 %vm671_vm0, %v7023_v36  ;;  %v7661_v36 = vsel %vm1895_vm8, %v7538_v31, -1e+30  ;;  %11922 = vst [vmem:[#allocation42_spill] sm:$0xff] %v7722_v5  ;;  %vm1909_vm8 = vcmp.eq.s32.totalorder %v7053_v32, %v7292_v48 }
 0x2db   :  { %v7651_v51 = vsel %vm1893_vm7, %v1311_v53, -1e+30  ;;  %5561 = vmatprep.mubr.msk.bf16.mxu1 %vm671_vm0, %v7043_v12  ;;  %v2420_v53 = vmax.f32 %v7661_v36, %v7649_v26  ;;  %vm1912_vm7 = vcmp.eq.s32.totalorder %v7059_v45, %v7274_v6 }
 0x2dc   :  { %11915 = vst [vmem:[#allocation35_spill] sm:$0xff] %v7651_v51  ;;  %v2416_v44 = vmax.f32 %v2415_v56, %v7651_v51  ;;  %v1313_v18 = vpop.f32.mrf.mxu1  ;;  %2413 = vmax.xlane.f32.xlu0 %v2412_v58  ;;  %v984_v17 = vpop.f32.mrf.mxu0 }
 0x2dd   :  { %v7663_v33 = vsel %vm1894_vm9, %v1313_v18, -1e+30  ;;  %v7745_v19 = vsel %vm1912_vm7, %v984_v17, -1e+30  ;;  %vm1911_vm9 = vcmp.eq.s32.totalorder %v7059_v45, %v7276_v25  ;;  %vm1922_vm7 = vcmp.eq.s32.totalorder %v7061_v62, %v7300_v39 }
 0x2de   :  { %11916 = vst [vmem:[#allocation36_spill] sm:$0xff] %v7663_v33  ;;  %v2417_v4 = vmax.f32 %v2416_v44, %v7663_v33  ;;  %v7670_v56 = vpop.f32.mrf.mxu0  ;;  %v1315_v51 = vpop.f32.mrf.mxu1  ;;  %v7684_v33 = vsel %vm1899_vm12, %v7566_v34, -1e+30  ;;  %11925 = vst [vmem:[#allocation45_spill] sm:$0xff] %v7745_v19  ;;  %vm1913_vm12 = vcmp.eq.s32.totalorder %v7059_v45, %v7292_v48 }
 0x2df   :  { %v7676_v31 = vsel %vm1897_vm11, %v1315_v51, -1e+30  ;;  %11919 = vst [vmem:[#allocation39_spill] sm:$0xff] %v7684_v33  ;;  %v2425_v3 = vmax.f32 %v7684_v33, %v7674_v24  ;;  %v7709_v24 = vsel %vm1903_vm1, %v7592_v38, -1e+30  ;;  %vm1916_vm11 = vcmp.eq.s32.totalorder %v7067_v41, %v7274_v6 }
 0x2e0   :  { %11918 = vst [vmem:[#allocation38_spill] sm:$0xff] %v7676_v31  ;;  %v2421_v58 = vmax.f32 %v2420_v53, %v7676_v31  ;;  %v1317_v18 = vpop.f32.mrf.mxu1  ;;  %2418 = vmax.xlane.f32.xlu1 %v2417_v4  ;;  %v990_v44 = vpop.f32.mrf.mxu0  ;;  %vm1917_vm1 = vcmp.eq.s32.totalorder %v7067_v41, %v7292_v48 }
 0x2e1   :  { %v7686_v26 = vsel %vm1898_vm13, %v1317_v18, -1e+30  ;;  %v7768_v32 = vsel %vm1916_vm11, %v990_v44, -1e+30  ;;  %vm1915_vm13 = vcmp.eq.s32.totalorder %v7067_v41, %v7276_v25  ;;  %vm1926_vm11 = vcmp.eq.s32.totalorder %v7075_v13, %v7300_v39 }
 0x2e2   :  { %v2422_v51 = vmax.f32 %v2421_v58, %v7686_v26  ;;  %v7693_v53 = vpop.f32.mrf.mxu0  ;;  %v1321_v31 = vpop.f32.mrf.mxu1  ;;  %5562 = vmatmul.mubr.msk.bf16.gmra.mxu1 %vm671_vm0, %v7043_v12  ;;  %v2430_v12 = vmax.f32 %v7709_v24, %v7699_v27  ;;  %11928 = vst [vmem:[#allocation48_spill] sm:$0xff] %v7768_v32 }
 0x2e3   :  { %v7701_v34 = vsel %vm1901_vm15, %v1321_v31, -1e+30  ;;  %vm1920_vm15 = vcmp.eq.s32.totalorder %v7061_v62, %v7274_v6 }
 0x2e4   :  { %11920 = vst [vmem:[#allocation40_spill] sm:$0xff] %v7701_v34  ;;  %v2426_v4 = vmax.f32 %v2425_v3, %v7701_v34  ;;  %v1323_v18 = vpop.f32.mrf.mxu1  ;;  %2423 = vmax.xlane.f32.xlu0 %v2422_v51  ;;  %v994_v58 = vpop.f32.mrf.mxu0 }
 0x2e5   :  { %v7711_v33 = vsel %vm1902_vm2, %v1323_v18, -1e+30  ;;  %v7791_v45 = vsel %vm1920_vm15, %v994_v58, -1e+30  ;;  %vm1919_vm2 = vcmp.eq.s32.totalorder %v7061_v62, %v7276_v25  ;;  %vm1930_vm15 = vcmp.eq.s32.totalorder %v7069_v7, %v7300_v39 }
 0x2e6   :  { %11921 = vst [vmem:[#allocation41_spill] sm:$0xff] %v7711_v33  ;;  %v2427_v20 = vmax.f32 %v2426_v4, %v7711_v33  ;;  %v7718_v31 = vpop.f32.mrf.mxu0  ;;  %v1325_v3 = vpop.f32.mrf.mxu1  ;;  %v7732_v33 = vsel %vm1907_vm5, %v7620_v21, -1e+30  ;;  %11931 = vst [vmem:[#allocation51_spill] sm:$0xff] %v7791_v45  ;;  %vm1921_vm5 = vcmp.eq.s32.totalorder %v7061_v62, %v7292_v48 }
 0x2e7   :  { %v7724_v38 = vsel %vm1905_vm4, %v1325_v3, -1e+30  ;;  %11924 = vst [vmem:[#allocation44_spill] sm:$0xff] %v7732_v33  ;;  %v2435_v35 = vmax.f32 %v7732_v33, %v7722_v5  ;;  %v7755_v5 = vsel %vm1911_vm9, %v7643_v47, -1e+30  ;;  %vm1924_vm4 = vcmp.eq.s32.totalorder %v7075_v13, %v7274_v6 }
 0x2e8   :  { %11923 = vst [vmem:[#allocation43_spill] sm:$0xff] %v7724_v38  ;;  %v2431_v51 = vmax.f32 %v2430_v12, %v7724_v38  ;;  %v1327_v18 = vpop.f32.mrf.mxu1  ;;  %2428 = vmax.xlane.f32.xlu1 %v2427_v20  ;;  %v1000_v4 = vpop.f32.mrf.mxu0  ;;  %v2440_v17 = vmax.f32 %v7755_v5, %v7745_v19  ;;  %vm1925_vm9 = vcmp.eq.s32.totalorder %v7075_v13, %v7292_v48 }
 0x2e9   :  { %v7734_v34 = vsel %vm1906_vm6, %v1327_v18, -1e+30  ;;  %v7814_v41 = vsel %vm1924_vm4, %v1000_v4, -1e+30  ;;  %vm1923_vm6 = vcmp.eq.s32.totalorder %v7075_v13, %v7276_v25  ;;  %vm1934_vm4 = vcmp.eq.s32.totalorder %v7083_v46, %v7300_v39 }
 0x2ea   :  { %v2432_v3 = vmax.f32 %v2431_v51, %v7734_v34  ;;  %v7741_v12 = vpop.f32.mrf.mxu0  ;;  %v1331_v38 = vpop.f32.mrf.mxu1  ;;  %11934 = vst [vmem:[#allocation54_spill] sm:$0xff] %v7814_v41 }
 0x2eb   :  { %v7747_v21 = vsel %vm1909_vm8, %v1331_v38, -1e+30  ;;  %vm1928_vm8 = vcmp.eq.s32.totalorder %v7069_v7, %v7274_v6 }
 0x2ec   :  { %11926 = vst [vmem:[#allocation46_spill] sm:$0xff] %v7747_v21  ;;  %v2436_v20 = vmax.f32 %v2435_v35, %v7747_v21  ;;  %v1333_v18 = vpop.f32.mrf.mxu1  ;;  %2433 = vmax.xlane.f32.xlu0 %v2432_v3  ;;  %v1004_v51 = vpop.f32.mrf.mxu0 }
 0x2ed   :  { %v7757_v33 = vsel %vm1910_vm10, %v1333_v18, -1e+30  ;;  %v7837_v62 = vsel %vm1928_vm8, %v1004_v51, -1e+30  ;;  %vm1927_vm10 = vcmp.eq.s32.totalorder %v7069_v7, %v7276_v25  ;;  %vm1938_vm8 = vcmp.eq.s32.totalorder %v7077_v22, %v7300_v39 }
 0x2ee   :  { %11927 = vst [vmem:[#allocation47_spill] sm:$0xff] %v7757_v33  ;;  %v2437_v38 = vmax.f32 %v2436_v20, %v7757_v33  ;;  %v7764_v35 = vpop.f32.mrf.mxu0  ;;  %v1335_v21 = vpop.f32.mrf.mxu1  ;;  %v7778_v33 = vsel %vm1915_vm13, %v7670_v56, -1e+30  ;;  %11937 = vst [vmem:[#allocation57_spill] sm:$0xff] %v7837_v62  ;;  %vm1929_vm13 = vcmp.eq.s32.totalorder %v7069_v7, %v7292_v48 }
 0x2ef   :  { %v7770_v47 = vsel %vm1913_vm12, %v1335_v21, -1e+30  ;;  %11930 = vst [vmem:[#allocation50_spill] sm:$0xff] %v7778_v33  ;;  %v2445_v44 = vmax.f32 %v7778_v33, %v7768_v32  ;;  %v7801_v32 = vsel %vm1919_vm2, %v7693_v53, -1e+30  ;;  %vm1932_vm12 = vcmp.eq.s32.totalorder %v7083_v46, %v7274_v6 }
 0x2f0   :  { %11929 = vst [vmem:[#allocation49_spill] sm:$0xff] %v7770_v47  ;;  %v2441_v3 = vmax.f32 %v2440_v17, %v7770_v47  ;;  %v1337_v18 = vpop.f32.mrf.mxu1  ;;  %2438 = vmax.xlane.f32.xlu0 %v2437_v38  ;;  %v1010_v20 = vpop.f32.mrf.mxu0  ;;  %v2450_v58 = vmax.f32 %v7801_v32, %v7791_v45  ;;  %vm1933_vm2 = vcmp.eq.s32.totalorder %v7083_v46, %v7292_v48 }
 0x2f1   :  { %v7780_v19 = vsel %vm1914_vm14, %v1337_v18, -1e+30  ;;  %v7860_v13 = vsel %vm1932_vm12, %v1010_v20, -1e+30  ;;  %vm1931_vm14 = vcmp.eq.s32.totalorder %v7083_v46, %v7276_v25  ;;  %vm1942_vm12 = vcmp.eq.s32.totalorder %v7091_v15, %v7300_v39 }
 0x2f2   :  { %v2442_v21 = vmax.f32 %v2441_v3, %v7780_v19  ;;  %v7787_v17 = vpop.f32.mrf.mxu0  ;;  %v1341_v47 = vpop.f32.mrf.mxu1  ;;  %11940 = vst [vmem:[#allocation60_spill] sm:$0xff] %v7860_v13 }
 0x2f3   :  { %v7793_v56 = vsel %vm1917_vm1, %v1341_v47, -1e+30  ;;  %vm1936_vm1 = vcmp.eq.s32.totalorder %v7077_v22, %v7274_v6 }
 0x2f4   :  { %11932 = vst [vmem:[#allocation52_spill] sm:$0xff] %v7793_v56  ;;  %v2446_v38 = vmax.f32 %v2445_v44, %v7793_v56  ;;  %v1343_v18 = vpop.f32.mrf.mxu1  ;;  %2443 = vmax.xlane.f32.xlu1 %v2442_v21  ;;  %v1014_v3 = vpop.f32.mrf.mxu0 }
 0x2f5   :  { %v7803_v33 = vsel %vm1918_vm3, %v1343_v18, -1e+30  ;;  %v7881_v7 = vsel %vm1936_vm1, %v1014_v3, -1e+30  ;;  %vm1935_vm3 = vcmp.eq.s32.totalorder %v7077_v22, %v7276_v25  ;;  %vm1946_vm1 = vcmp.eq.s32.totalorder %v7085_v63, %v7300_v39 }
 0x2f6   :  { %11933 = vst [vmem:[#allocation53_spill] sm:$0xff] %v7803_v33  ;;  %v2447_v47 = vmax.f32 %v2446_v38, %v7803_v33  ;;  %v7810_v44 = vpop.f32.mrf.mxu0  ;;  %v1345_v56 = vpop.f32.mrf.mxu1  ;;  %v7824_v33 = vsel %vm1923_vm6, %v7718_v31, -1e+30  ;;  %11944 = vst [vmem:[#allocation64_spill] sm:$0xff] %v7881_v7  ;;  %vm1937_vm6 = vcmp.eq.s32.totalorder %v7077_v22, %v7292_v48 }
 0x2f7   :  { %v7816_v53 = vsel %vm1921_vm5, %v1345_v56, -1e+30  ;;  %11936 = vst [vmem:[#allocation56_spill] sm:$0xff] %v7824_v33  ;;  %v2455_v4 = vmax.f32 %v7824_v33, %v7814_v41  ;;  %v7847_v41 = vsel %vm1927_vm10, %v7741_v12, -1e+30  ;;  %vm1940_vm5 = vcmp.eq.s32.totalorder %v7091_v15, %v7274_v6 }
 0x2f8   :  { %11935 = vst [vmem:[#allocation55_spill] sm:$0xff] %v7816_v53  ;;  %v2451_v21 = vmax.f32 %v2450_v58, %v7816_v53  ;;  %v1347_v18 = vpop.f32.mrf.mxu1  ;;  %2448 = vmax.xlane.f32.xlu0 %v2447_v47  ;;  %v1020_v38 = vpop.f32.mrf.mxu0  ;;  %v2460_v51 = vmax.f32 %v7847_v41, %v7837_v62  ;;  %vm1941_vm10 = vcmp.eq.s32.totalorder %v7091_v15, %v7292_v48 }
 0x2f9   :  { %v7826_v45 = vsel %vm1922_vm7, %v1347_v18, -1e+30  ;;  %vm1939_vm7 = vcmp.eq.s32.totalorder %v7091_v15, %v7276_v25 }
 0x2fa   :  { %v2452_v56 = vmax.f32 %v2451_v21, %v7826_v45  ;;  %v7833_v58 = vpop.f32.mrf.mxu0  ;;  %v1351_v53 = vpop.f32.mrf.mxu1 }
 0x2fb   :  { %v7839_v31 = vsel %vm1925_vm9, %v1351_v53, -1e+30  ;;  %vm1944_vm9 = vcmp.eq.s32.totalorder %v7085_v63, %v7274_v6 }
 0x2fc   :  { %11938 = vst [vmem:[#allocation58_spill] sm:$0xff] %v7839_v31  ;;  %v2456_v47 = vmax.f32 %v2455_v4, %v7839_v31  ;;  %v1353_v18 = vpop.f32.mrf.mxu1  ;;  %2453 = vmax.xlane.f32.xlu1 %v2452_v56  ;;  %v1024_v21 = vpop.f32.mrf.mxu0 }
 0x2fd   :  { %v7849_v33 = vsel %vm1926_vm11, %v1353_v18, -1e+30  ;;  %vm1943_vm11 = vcmp.eq.s32.totalorder %v7085_v63, %v7276_v25 }
 0x2fe   :  { %11939 = vst [vmem:[#allocation59_spill] sm:$0xff] %v7849_v33  ;;  %v2457_v53 = vmax.f32 %v2456_v47, %v7849_v33  ;;  %v7856_v4 = vpop.f32.mrf.mxu0  ;;  %v1355_v31 = vpop.f32.mrf.mxu1  ;;  %v7870_v33 = vsel %vm1931_vm14, %v7764_v35, -1e+30  ;;  %vm1945_vm14 = vcmp.eq.s32.totalorder %v7085_v63, %v7292_v48 }
 0x2ff   :  { %v7862_v12 = vsel %vm1929_vm13, %v1355_v31, -1e+30  ;;  %11942 = vst [vmem:[#allocation62_spill] sm:$0xff] %v7870_v33  ;;  %v2465_v20 = vmax.f32 %v7870_v33, %v7860_v13  ;;  %vm1948_vm13 = vcmp.eq.s32.totalorder %v7099_v28, %v7274_v6 }
 0x300   :  { %11941 = vst [vmem:[#allocation61_spill] sm:$0xff] %v7862_v12  ;;  %v2461_v56 = vmax.f32 %v2460_v51, %v7862_v12  ;;  %v1357_v18 = vpop.f32.mrf.mxu1  ;;  %2458 = vmax.xlane.f32.xlu0 %v2457_v53  ;;  %v1030_v47 = vpop.f32.mrf.mxu0  ;;  %v12077_v12 = vld [vmem:[#allocation49_spill] sm:$0xff] }
 0x301   :  { %v7872_v62 = vsel %vm1930_vm15, %v1357_v18, -1e+30  ;;  %vm1947_vm15 = vcmp.eq.s32.totalorder %v7099_v28, %v7276_v25 }
 0x302   :  { %11943 = vst [vmem:[#allocation63_spill] sm:$0xff] %v7872_v62  ;;  %v2462_v31 = vmax.f32 %v2461_v56, %v7872_v62  ;;  %v1361_v51 = vpop.f32.mrf.mxu1  ;;  %v7887_v35 = vpop.f32.mrf.mxu0  ;;  %v7893_v56 = vsel %vm1935_vm3, %v7787_v17, -1e+30  ;;  %vm1949_vm3 = vcmp.eq.s32.totalorder %v7099_v28, %v7292_v48 }
 0x303   :  { %v7883_v53 = vsel %vm1933_vm2, %v1361_v51, -1e+30  ;;  %11946 = vst [vmem:[#allocation66_spill] sm:$0xff] %v7893_v56  ;;  %v2470_v3 = vmax.f32 %v7893_v56, %v7881_v7  ;;  %vm1952_vm2 = vcmp.eq.s32.totalorder %v7095_v49, %v7274_v6 }
 0x304   :  { %11945 = vst [vmem:[#allocation65_spill] sm:$0xff] %v7883_v53  ;;  %v2466_v18 = vmax.f32 %v2465_v20, %v7883_v53  ;;  %v1363_v13 = vpop.f32.mrf.mxu1  ;;  %2463 = vmax.xlane.f32.xlu1 %v2462_v31  ;;  %v7904_v20 = vsel %vm1940_vm5, %v1020_v38, -1e+30  ;;  %v1034_v17 = vpop.f32.mrf.mxu0  ;;  %vm1950_vm5 = vcmp.eq.s32.totalorder %v7099_v28, %v7300_v39 }
 0x305   :  { %v7895_v33 = vsel %vm1934_vm4, %v1363_v13, -1e+30  ;;  %11948 = vst [vmem:[#allocation68_spill] sm:$0xff] %v7904_v20  ;;  %vm1951_vm4 = vcmp.eq.s32.totalorder %v7095_v49, %v7276_v25 }
 0x306   :  { %11947 = vst [vmem:[#allocation67_spill] sm:$0xff] %v7895_v33  ;;  %v2467_v51 = vmax.f32 %v2466_v18, %v7895_v33  ;;  %v1365_v62 = vpop.f32.mrf.mxu1  ;;  %v7914_v18 = vsel %vm1939_vm7, %v7810_v44, -1e+30  ;;  %v1038_v44 = vpop.f32.mrf.mxu0  ;;  %vm1953_vm7 = vcmp.eq.s32.totalorder %v7095_v49, %v7292_v48 }
 0x307   :  { %v7906_v46 = vsel %vm1937_vm6, %v1365_v62, -1e+30  ;;  %11950 = vst [vmem:[#allocation70_spill] sm:$0xff] %v7914_v18  ;;  %v2475_v38 = vmax.f32 %v7914_v18, %v7904_v20  ;;  %vm1956_vm6 = vcmp.eq.s32.totalorder %v7107_v14, %v7274_v6 }
 0x308   :  { %11949 = vst [vmem:[#allocation69_spill] sm:$0xff] %v7906_v46  ;;  %v2471_v13 = vmax.f32 %v2470_v3, %v7906_v46  ;;  %v1367_v31 = vpop.f32.mrf.mxu1  ;;  %2468 = vmax.xlane.f32.xlu0 %v2467_v51  ;;  %v7925_v3 = vsel %vm1944_vm9, %v1024_v21, -1e+30  ;;  %vm1954_vm9 = vcmp.eq.s32.totalorder %v7095_v49, %v7300_v39 }
 0x309   :  { %v7916_v33 = vsel %vm1938_vm8, %v1367_v31, -1e+30  ;;  %11952 = vst [vmem:[#allocation72_spill] sm:$0xff] %v7925_v3  ;;  %vm1955_vm8 = vcmp.eq.s32.totalorder %v7107_v14, %v7276_v25 }
 0x30a   :  { %11951 = vst [vmem:[#allocation71_spill] sm:$0xff] %v7916_v33  ;;  %v2472_v62 = vmax.f32 %v2471_v13, %v7916_v33  ;;  %v1371_v53 = vpop.f32.mrf.mxu1  ;;  %v7935_v13 = vsel %vm1943_vm11, %v7833_v58, -1e+30  ;;  %v1040_v58 = vpop.f32.mrf.mxu0  ;;  %vm1957_vm11 = vcmp.eq.s32.totalorder %v7107_v14, %v7292_v48  ;;  %v12010_v33 = vld [vmem:[#allocation3_spill] sm:$0xff] }
 0x30b   :  { %v7927_v22 = vsel %vm1941_vm10, %v1371_v53, -1e+30  ;;  %11954 = vst [vmem:[#allocation74_spill] sm:$0xff] %v7935_v13  ;;  %v2480_v21 = vmax.f32 %v7935_v13, %v7925_v3  ;;  %vm1960_vm10 = vcmp.eq.s32.totalorder %v7103_v50, %v7274_v6 }
 0x30c   :  { %11953 = vst [vmem:[#allocation73_spill] sm:$0xff] %v7927_v22  ;;  %v2476_v51 = vmax.f32 %v2475_v38, %v7927_v22  ;;  %v1373_v31 = vpop.f32.mrf.mxu1  ;;  %2473 = vmax.xlane.f32.xlu1 %v2472_v62  ;;  %v7946_v38 = vsel %vm1948_vm13, %v1030_v47, -1e+30  ;;  %vm1958_vm13 = vcmp.eq.s32.totalorder %v7107_v14, %v7300_v39 }
 0x30d   :  { %v7937_v20 = vsel %vm1942_vm12, %v1373_v31, -1e+30  ;;  %11956 = vst [vmem:[#allocation76_spill] sm:$0xff] %v7946_v38  ;;  %vm1959_vm12 = vcmp.eq.s32.totalorder %v7103_v50, %v7276_v25 }
 0x30e   :  { %11955 = vst [vmem:[#allocation75_spill] sm:$0xff] %v7937_v20  ;;  %v2477_v53 = vmax.f32 %v2476_v51, %v7937_v20  ;;  %v1375_v18 = vpop.f32.mrf.mxu1  ;;  %v7956_v51 = vsel %vm1947_vm15, %v7856_v4, -1e+30  ;;  %v1042_v4 = vpop.f32.mrf.mxu0  ;;  %vm1962_vm15 = vcmp.eq.s32.totalorder %v7103_v50, %v7300_v39 }
 0x30f   :  { %v7948_v15 = vsel %vm1945_vm14, %v1375_v18, -1e+30  ;;  %11958 = vst [vmem:[#allocation78_spill] sm:$0xff] %v7956_v51  ;;  %v2485_v47 = vmax.f32 %v7956_v51, %v7946_v38  ;;  %vm1961_vm14 = vcmp.eq.s32.totalorder %v7103_v50, %v7292_v48 }
 0x310   :  { %11957 = vst [vmem:[#allocation77_spill] sm:$0xff] %v7948_v15  ;;  %v2481_v62 = vmax.f32 %v2480_v21, %v7948_v15  ;;  %v1377_v31 = vpop.f32.mrf.mxu1  ;;  %2478 = vmax.xlane.f32.xlu0 %v2477_v53  ;;  %v7967_v21 = vsel %vm1952_vm2, %v1034_v17, -1e+30 }
 0x311   :  { %v7958_v3 = vsel %vm1946_vm1, %v1377_v31, -1e+30  ;;  %11960 = vst [vmem:[#allocation80_spill] sm:$0xff] %v7967_v21 }
 0x312   :  { %11959 = vst [vmem:[#allocation79_spill] sm:$0xff] %v7958_v3  ;;  %v2482_v18 = vmax.f32 %v2481_v62, %v7958_v3  ;;  %v1381_v13 = vpop.f32.mrf.mxu1  ;;  %v7977_v62 = vsel %vm1951_vm4, %v7887_v35, -1e+30  ;;  %v1044_v35 = vpop.f32.mrf.mxu0  ;;  %vm1968_vm4 = vcmp.eq.s32.totalorder %v12010_v33, %v7274_v6 }
 0x313   :  { %v7969_v63 = vsel %vm1949_vm3, %v1381_v13, -1e+30  ;;  %11962 = vst [vmem:[#allocation82_spill] sm:$0xff] %v7977_v62  ;;  %v2490_v17 = vmax.f32 %v7977_v62, %v7967_v21 }
 0x314   :  { %11961 = vst [vmem:[#allocation81_spill] sm:$0xff] %v7969_v63  ;;  %v2486_v53 = vmax.f32 %v2485_v47, %v7969_v63  ;;  %v1383_v31 = vpop.f32.mrf.mxu1  ;;  %2483 = vmax.xlane.f32.xlu1 %v2482_v18  ;;  %v7988_v47 = vsel %vm1956_vm6, %v1040_v58, -1e+30  ;;  %vm1969_vm6 = vcmp.eq.s32.totalorder %v12010_v33, %v7292_v48 }
 0x315   :  { %v7979_v38 = vsel %vm1950_vm5, %v1383_v31, -1e+30  ;;  %11964 = vst [vmem:[#allocation84_spill] sm:$0xff] %v7988_v47  ;;  %vm1967_vm5 = vcmp.eq.s32.totalorder %v12010_v33, %v7276_v25 }
 0x316   :  { %11963 = vst [vmem:[#allocation83_spill] sm:$0xff] %v7979_v38  ;;  %v2487_v13 = vmax.f32 %v2486_v53, %v7979_v38  ;;  %v1385_v51 = vpop.f32.mrf.mxu1  ;;  %v7997_v53 = vsel %vm1955_vm8, %v1038_v44, -1e+30  ;;  %vm1970_vm8 = vcmp.eq.s32.totalorder %v12010_v33, %v7300_v39 }
 0x317   :  { %v7990_v28 = vsel %vm1953_vm7, %v1385_v51, -1e+30  ;;  %11966 = vst [vmem:[#allocation86_spill] sm:$0xff] %v7997_v53  ;;  %v2495_v58 = vmax.f32 %v7997_v53, %v7988_v47 }
 0x318   :  { %11965 = vst [vmem:[#allocation85_spill] sm:$0xff] %v7990_v28  ;;  %v2491_v18 = vmax.f32 %v2490_v17, %v7990_v28  ;;  %v1387_v31 = vpop.f32.mrf.mxu1  ;;  %2488 = vmax.xlane.f32.xlu0 %v2487_v13  ;;  %v8008_v17 = vsel %vm1960_vm10, %v1044_v35, -1e+30 }
 0x319   :  { %v7999_v21 = vsel %vm1954_vm9, %v1387_v31, -1e+30  ;;  %11968 = vst [vmem:[#allocation88_spill] sm:$0xff] %v8008_v17  ;;  %v8017_v31 = vsel %vm1959_vm12, %v1042_v4, -1e+30 }
 0x31a   :  { %11967 = vst [vmem:[#allocation87_spill] sm:$0xff] %v7999_v21  ;;  %v2492_v51 = vmax.f32 %v2491_v18, %v7999_v21  ;;  %v1391_v62 = vpop.f32.mrf.mxu1  ;;  %11970 = vst [vmem:[#allocation90_spill] sm:$0xff] %v8017_v31  ;;  %v2500_v35 = vmax.f32 %v8017_v31, %v8008_v17 }
 0x31b   :  { %v8010_v49 = vsel %vm1957_vm11, %v1391_v62, -1e+30 }
 0x31c   :  { %11969 = vst [vmem:[#allocation89_spill] sm:$0xff] %v8010_v49  ;;  %v2496_v44 = vmax.f32 %v2495_v58, %v8010_v49  ;;  %v1393_v13 = vpop.f32.mrf.mxu1  ;;  %2493 = vmax.xlane.f32.xlu1 %v2492_v51 }
 0x31d   :  { %v8019_v18 = vsel %vm1958_vm13, %v1393_v13, -1e+30 }
 0x31e   :  { %11971 = vst [vmem:[#allocation91_spill] sm:$0xff] %v8019_v18  ;;  %v2497_v62 = vmax.f32 %v2496_v44, %v8019_v18  ;;  %v1395_v21 = vpop.f32.mrf.mxu1 }
 0x31f   :  { %v8026_v28 = vsel %vm1961_vm14, %v1395_v21, -1e+30 }
 0x320   :  { %11972 = vst [vmem:[#allocation92_spill] sm:$0xff] %v8026_v28  ;;  %v2501_v58 = vmax.f32 %v2500_v35, %v8026_v28  ;;  %v1397_v49 = vpop.f32.mrf.mxu1  ;;  %2498 = vmax.xlane.f32.xlu0 %v2497_v62  ;;  %v11974_v62 = vld [vmem:[#allocation6_spill] sm:$0xff] }
 0x321   :  { %v8031_v14 = vsel %vm1962_vm15, %v1397_v49, -1e+30 }
 0x322   :  { %11973 = vst [vmem:[#allocation93_spill] sm:$0xff] %v8031_v14  ;;  %v2502_v4 = vmax.f32 %v2501_v58, %v8031_v14 }
 0x324   :  { %2503 = vmax.xlane.f32.xlu1 %v2502_v4 }
 0x339   :  { %v2359_v51 = vpop.xlane.xlu1 %2358 }
 0x33a   :  { %v2675_v44 = vsub.f32 %v7302_v16, %v2359_v51  ;;  %v2676_v13 = vsub.f32 %v7294_v37, %v2359_v51  ;;  %v2677_v21 = vsub.f32 %v7316_v61, %v2359_v51  ;;  %v2678_v17 = vsub.f32 %v7329_v52, %v2359_v51 }
 0x33c   :  { %v2931_v35 = vmul.f32 1.442695, %v2675_v44  ;;  %v2933_v28 = vmul.f32 1.442695, %v2676_v13  ;;  %v2935_v31 = vmul.f32 1.442695, %v2677_v21 }
 0x33d   :  { %v2937_v18 = vmul.f32 1.442695, %v2678_v17  ;;  %v2364_v50 = vpop.xlane.xlu0 %2363  ;;  %v11975_v44 = vld [vmem:[#allocation7_spill] sm:$0xff] }
 0x33e   :  { %5729 = vpow2.f32 %v2931_v35  ;;  %v2679_v49 = vsub.f32 %v7327_v40, %v2364_v50  ;;  %v2680_v58 = vsub.f32 %v11974_v62, %v2364_v50  ;;  %v2681_v4 = vsub.f32 %v7344_v42, %v2364_v50  ;;  %v11976_v40 = vld [vmem:[#allocation9_spill] sm:$0xff]  ;;  %v11977_v35 = vld [vmem:[#allocation11_spill] sm:$0xff] }
 0x33f   :  { %5731 = vpow2.f32 %v2933_v28  ;;  %v2682_v16 = vsub.f32 %v7357_v9, %v2364_v50 }
 0x340   :  { %5733 = vpow2.f32 %v2935_v31  ;;  %v2939_v37 = vmul.f32 1.442695, %v2679_v49  ;;  %v2941_v61 = vmul.f32 1.442695, %v2680_v58  ;;  %v2943_v14 = vmul.f32 1.442695, %v2681_v4 }
 0x341   :  { %5735 = vpow2.f32 %v2937_v18  ;;  %v2945_v52 = vmul.f32 1.442695, %v2682_v16  ;;  %v2369_v51 = vpop.xlane.xlu1 %2368  ;;  %v11978_v18 = vld [vmem:[#allocation10_spill] sm:$0xff]  ;;  %v11979_v58 = vld [vmem:[#allocation8_spill] sm:$0xff] }
 0x342   :  { %5737 = vpow2.f32 %v2939_v37  ;;  %v2683_v17 = vsub.f32 %v7355_v43, %v2369_v51  ;;  %v2684_v13 = vsub.f32 %v11975_v44, %v2369_v51  ;;  %v2685_v21 = vsub.f32 %v11976_v40, %v2369_v51  ;;  %v11980_v44 = vld [vmem:[#allocation12_spill] sm:$0xff]  ;;  %v11981_v40 = vld [vmem:[#allocation14_spill] sm:$0xff] }
 0x343   :  { %5739 = vpow2.f32 %v2941_v61  ;;  %v2686_v42 = vsub.f32 %v11977_v35, %v2369_v51 }
 0x344   :  { %5741 = vpow2.f32 %v2943_v14  ;;  %v2947_v28 = vmul.f32 1.442695, %v2683_v17  ;;  %v2949_v9 = vmul.f32 1.442695, %v2684_v13  ;;  %v2951_v31 = vmul.f32 1.442695, %v2685_v21 }
 0x345   :  { %5743 = vpow2.f32 %v2945_v52  ;;  %v2953_v50 = vmul.f32 1.442695, %v2686_v42  ;;  %v2374_v49 = vpop.xlane.xlu0 %2373 }
 0x346   :  { %5745 = vpow2.f32 %v2947_v28  ;;  %v2687_v62 = vsub.f32 %v11978_v18, %v2374_v49  ;;  %v2688_v4 = vsub.f32 %v11979_v58, %v2374_v49  ;;  %v2689_v43 = vsub.f32 %v7401_v30, %v2374_v49 }
 0x347   :  { %5747 = vpow2.f32 %v2949_v9  ;;  %v2690_v16 = vsub.f32 %v7413_v0, %v2374_v49 }
 0x348   :  { %5749 = vpow2.f32 %v2951_v31  ;;  %v2955_v37 = vmul.f32 1.442695, %v2687_v62  ;;  %v2957_v61 = vmul.f32 1.442695, %v2688_v4  ;;  %v2959_v14 = vmul.f32 1.442695, %v2689_v43 }
 0x349   :  { %5751 = vpow2.f32 %v2953_v50  ;;  %v2961_v51 = vmul.f32 1.442695, %v2690_v16  ;;  %v2379_v17 = vpop.xlane.xlu1 %2378  ;;  %v11983_v62 = vld [vmem:[#allocation15_spill] sm:$0xff]  ;;  %v11985_v43 = vld [vmem:[#allocation17_spill] sm:$0xff] }
 0x34a   :  { %5753 = vpow2.f32 %v2955_v37  ;;  %v2691_v52 = vsub.f32 %v7411_v60, %v2379_v17  ;;  %v2692_v13 = vsub.f32 %v11980_v44, %v2379_v17  ;;  %v2693_v21 = vsub.f32 %v11981_v40, %v2379_v17 }
 0x34b   :  { %v8053_v35 = vpop.eup %5729  ;;  %5755 = vpow2.f32 %v2957_v61  ;;  %v2694_v30 = vsub.f32 %v7443_v54, %v2379_v17  ;;  %v11984_v54 = vld [vmem:[#allocation13_spill] sm:$0xff] }
 0x34c   :  { %v8056_v0 = vpop.eup %5731  ;;  %5757 = vpow2.f32 %v2959_v14  ;;  %v2963_v42 = vmul.f32 1.442695, %v2691_v52  ;;  %v2965_v28 = vmul.f32 1.442695, %v2692_v13  ;;  %v2967_v9 = vmul.f32 1.442695, %v2693_v21 }
 0x34d   :  { %v8058_v31 = vpop.eup %5733  ;;  %5759 = vpow2.f32 %v2961_v51  ;;  %v2969_v50 = vmul.f32 1.442695, %v2694_v30  ;;  %v2384_v60 = vpop.xlane.xlu0 %2383  ;;  %v3443_v49 = vadd.f32 %v8056_v0, %v8053_v35 }
 0x34e   :  { %11982 = vst [vmem:[#allocation6_spill] sm:$0xff] %v8058_v31  ;;  %v8062_v18 = vpop.eup %5735  ;;  %5761 = vpow2.f32 %v2963_v42  ;;  %v2695_v58 = vsub.f32 %v11983_v62, %v2384_v60  ;;  %v2696_v4 = vsub.f32 %v11984_v54, %v2384_v60  ;;  %v2697_v16 = vsub.f32 %v11985_v43, %v2384_v60 }
 0x34f   :  { %v8067_v37 = vpop.eup %5737  ;;  %5763 = vpow2.f32 %v2965_v28  ;;  %v2698_v61 = vsub.f32 %v7475_v29, %v2384_v60  ;;  %v3444_v14 = vadd.f32 %v8058_v31, %v3443_v49  ;;  %v11987_v29 = vld [vmem:[#allocation18_spill] sm:$0xff]  ;;  %v11988_v49 = vld [vmem:[#allocation16_spill] sm:$0xff] }
 0x350   :  { %v8071_v51 = vpop.eup %5739  ;;  %5765 = vpow2.f32 %v2967_v9  ;;  %v2971_v17 = vmul.f32 1.442695, %v2695_v58  ;;  %v2973_v52 = vmul.f32 1.442695, %v2696_v4  ;;  %v2975_v44 = vmul.f32 1.442695, %v2697_v16 }
 0x351   :  { %v8073_v13 = vpop.eup %5741  ;;  %5767 = vpow2.f32 %v2969_v50  ;;  %v2977_v40 = vmul.f32 1.442695, %v2698_v61  ;;  %v2389_v21 = vpop.xlane.xlu1 %2388  ;;  %v3445_v30 = vadd.f32 %v8062_v18, %v3444_v14  ;;  %v3448_v42 = vadd.f32 %v8071_v51, %v8067_v37  ;;  %v11989_v50 = vld [vmem:[#allocation21_spill] sm:$0xff] }
 0x352   :  { %11986 = vst [vmem:[#allocation7_spill] sm:$0xff] %v8073_v13  ;;  %v8078_v28 = vpop.eup %5743  ;;  %5769 = vpow2.f32 %v2971_v17  ;;  %v2699_v60 = vsub.f32 %v11987_v29, %v2389_v21  ;;  %v2700_v9 = vsub.f32 %v11988_v49, %v2389_v21  ;;  %v2701_v62 = vsub.f32 %v7491_v23, %v2389_v21  ;;  %v1048_v29 = vpop.f32.mrf.mxu0 }
 0x353   :  { %v8083_v58 = vpop.eup %5745  ;;  %5771 = vpow2.f32 %v2973_v52  ;;  %v2702_v54 = vsub.f32 %v11989_v50, %v2389_v21  ;;  %3446 = vadd.xlane.f32.xlu1 %v3445_v30  ;;  %v3449_v4 = vadd.f32 %v8073_v13, %v3448_v42  ;;  %v11992_v30 = vld [vmem:[#allocation20_spill] sm:$0xff] }
 0x354   :  { %v8087_v43 = vpop.eup %5747  ;;  %5773 = vpow2.f32 %v2975_v44  ;;  %v2979_v16 = vmul.f32 1.442695, %v2699_v60  ;;  %v2981_v61 = vmul.f32 1.442695, %v2700_v9  ;;  %v2983_v14 = vmul.f32 1.442695, %v2701_v62 }
 0x355   :  { %v8089_v17 = vpop.eup %5749  ;;  %5775 = vpow2.f32 %v2977_v40  ;;  %v2985_v49 = vmul.f32 1.442695, %v2702_v54  ;;  %v2394_v23 = vpop.xlane.xlu0 %2393  ;;  %v3450_v47 = vadd.f32 %v8078_v28, %v3449_v4  ;;  %v3453_v52 = vadd.f32 %v8087_v43, %v8083_v58  ;;  %v11993_v44 = vld [vmem:[#allocation19_spill] sm:$0xff] }
 0x356   :  { %11990 = vst [vmem:[#allocation9_spill] sm:$0xff] %v8089_v17  ;;  %v8094_v21 = vpop.eup %5751  ;;  %5777 = vpow2.f32 %v2979_v16  ;;  %v2703_v42 = vsub.f32 %v11992_v30, %v2394_v23  ;;  %v2704_v60 = vsub.f32 %v11993_v44, %v2394_v23  ;;  %v11994_v9 = vld [vmem:[#allocation23_spill] sm:$0xff]  ;;  %v2706_v40 = vsub.f32 %v7531_v1, %v2394_v23  ;;  %v1050_v30 = vpop.f32.mrf.mxu0 }
 0x357   :  { %11991 = vst [vmem:[#allocation11_spill] sm:$0xff] %v8094_v21  ;;  %v2705_v62 = vsub.f32 %v11994_v9, %v2394_v23  ;;  %v8099_v50 = vpop.eup %5753  ;;  %5779 = vpow2.f32 %v2981_v61  ;;  %3451 = vadd.xlane.f32.xlu0 %v3450_v47  ;;  %v3454_v54 = vadd.f32 %v8089_v17, %v3453_v52  ;;  %v1401_v47 = vpop.f32.mrf.mxu1 }
 0x358   :  { %v8103_v4 = vpop.eup %5755  ;;  %5781 = vpow2.f32 %v2983_v14  ;;  %v2987_v53 = vmul.f32 1.442695, %v2703_v42  ;;  %v2989_v38 = vmul.f32 1.442695, %v2704_v60  ;;  %v2993_v14 = vmul.f32 1.442695, %v2706_v40  ;;  %v1052_v42 = vpop.f32.mrf.mxu0 }
 0x359   :  { %v8105_v16 = vpop.eup %5757  ;;  %5783 = vpow2.f32 %v2985_v49  ;;  %v2991_v44 = vmul.f32 1.442695, %v2705_v62  ;;  %v3455_v9 = vadd.f32 %v8094_v21, %v3454_v54  ;;  %v3458_v61 = vadd.f32 %v8103_v4, %v8099_v50  ;;  %v1403_v40 = vpop.f32.mrf.mxu1 }
 0x35a   :  { %11995 = vst [vmem:[#allocation10_spill] sm:$0xff] %v8105_v16  ;;  %v8110_v63 = vpop.eup %5759  ;;  %5785 = vpow2.f32 %v2987_v53  ;;  %v1054_v3 = vpop.f32.mrf.mxu0  ;;  %v8173_v56 = vsel %vm1967_vm5, %v1052_v42, -1e+30 }
 0x35b   :  { %11996 = vst [vmem:[#allocation8_spill] sm:$0xff] %v8110_v63  ;;  %v8112_v1 = vpop.eup %5761  ;;  %5787 = vpow2.f32 %v2989_v38  ;;  %3456 = vadd.xlane.f32.xlu1 %v3455_v9  ;;  %v3459_v23 = vadd.f32 %v8105_v16, %v3458_v61  ;;  %v12002_v38 = vld [vmem:[#allocation4_spill] sm:$0xff]  ;;  %v1405_v46 = vpop.f32.mrf.mxu1  ;;  %12015 = vst [vmem:[#allocation97_spill] sm:$0xff] %v8173_v56 }
 0x35c   :  { %11997 = vst [vmem:[#allocation12_spill] sm:$0xff] %v8112_v1  ;;  %v8115_v52 = vpop.eup %5763  ;;  %5789 = vpow2.f32 %v2991_v44  ;;  %vm1964_vm1 = vcmp.eq.s32.totalorder %v12002_v38, %v7274_v6  ;;  %vm1963_vm2 = vcmp.eq.s32.totalorder %v12002_v38, %v7276_v25  ;;  %vm1965_vm3 = vcmp.eq.s32.totalorder %v12002_v38, %v7292_v48 }
 0x35d   :  { %11998 = vst [vmem:[#allocation14_spill] sm:$0xff] %v8115_v52  ;;  %v8117_v49 = vpop.eup %5765  ;;  %v3460_v60 = vadd.f32 %v8110_v63, %v3459_v23  ;;  %v3463_v62 = vadd.f32 %v8115_v52, %v8112_v1  ;;  %5791 = vpow2.f32 %v2993_v14  ;;  %v8131_v44 = vsel %vm1964_vm1, %v1050_v30, -1e+30 }
 0x35e   :  { %11999 = vst [vmem:[#allocation15_spill] sm:$0xff] %v8117_v49  ;;  %v8122_v53 = vpop.eup %5767  ;;  %12004 = vst [vmem:[#allocation16_spill] sm:$0xff] %v8131_v44  ;;  %v8146_v30 = vsel %vm1965_vm3, %v1401_v47, -1e+30  ;;  %vm1966_vm7 = vcmp.eq.s32.totalorder %v12002_v38, %v7300_v39 }
 0x35f   :  { %12000 = vst [vmem:[#allocation13_spill] sm:$0xff] %v8122_v53  ;;  %v8124_v54 = vpop.eup %5769  ;;  %3461 = vadd.xlane.f32.xlu0 %v3460_v60  ;;  %v3464_v9 = vadd.f32 %v8117_v49, %v3463_v62  ;;  %v8144_v62 = vsel %vm1963_vm2, %v1048_v29, -1e+30  ;;  %12008 = vst [vmem:[#allocation23_spill] sm:$0xff] %v8146_v30  ;;  %v8159_v29 = vsel %vm1968_vm4, %v1054_v3, -1e+30 }
 0x360   :  { %12001 = vst [vmem:[#allocation17_spill] sm:$0xff] %v8124_v54  ;;  %v8129_v61 = vpop.eup %5771  ;;  %12007 = vst [vmem:[#allocation19_spill] sm:$0xff] %v8144_v62  ;;  %v2505_v22 = vmax.f32 %v8144_v62, %v8131_v44  ;;  %v8175_v3 = vsel %vm1966_vm7, %v1403_v40, -1e+30  ;;  %v8177_v49 = vsel %vm1969_vm6, %v1405_v46, -1e+30 }
 0x361   :  { %12003 = vst [vmem:[#allocation18_spill] sm:$0xff] %v8129_v61  ;;  %v8133_v23 = vpop.eup %5773  ;;  %v3465_v15 = vadd.f32 %v8122_v53, %v3464_v9  ;;  %v3468_v14 = vadd.f32 %v8129_v61, %v8124_v54  ;;  %12012 = vst [vmem:[#allocation94_spill] sm:$0xff] %v8159_v29 }
 0x362   :  { %12005 = vst [vmem:[#allocation21_spill] sm:$0xff] %v8133_v23  ;;  %v8142_v60 = vpop.eup %5775  ;;  %v2506_v44 = vmax.f32 %v2505_v22, %v8146_v30  ;;  %12016 = vst [vmem:[#allocation98_spill] sm:$0xff] %v8175_v3  ;;  %v2510_v22 = vmax.f32 %v8173_v56, %v8159_v29  ;;  %v1407_v30 = vpop.f32.mrf.mxu1 }
 0x363   :  { %12006 = vst [vmem:[#allocation20_spill] sm:$0xff] %v8142_v60  ;;  %v8148_v20 = vpop.eup %5777  ;;  %3466 = vadd.xlane.f32.xlu1 %v3465_v15  ;;  %v3469_v9 = vadd.f32 %v8133_v23, %v3468_v14  ;;  %12017 = vst [vmem:[#allocation99_spill] sm:$0xff] %v8177_v49  ;;  %v8195_v29 = vsel %vm1970_vm8, %v1407_v30, -1e+30  ;;  %v1605_v30 = vld [vmem:[%s11431_s3 + $0x118] sm:$0xff] }
 0x364   :  { %12009 = vst [vmem:[#allocation4_spill] sm:$0xff] %v8148_v20  ;;  %v8155_v7 = vpop.eup %5779  ;;  %v2507_v42 = vmax.f32 %v2506_v44, %v8175_v3  ;;  %v2511_v40 = vmax.f32 %v2510_v22, %v8177_v49  ;;  %12021 = vst [vmem:[#allocation103_spill] sm:$0xff] %v8195_v29  ;;  %v1603_v22 = vld [vmem:[%s11431_s3 + $0x108] sm:$0xff] }
 0x365   :  { %12011 = vst [vmem:[#allocation3_spill] sm:$0xff] %v8155_v7  ;;  %v8163_v47 = vpop.eup %5781  ;;  %v3470_v15 = vadd.f32 %v8142_v60, %v3469_v9  ;;  %v3473_v14 = vadd.f32 %v8155_v7, %v8148_v20 }
 0x366   :  { %12013 = vst [vmem:[#allocation95_spill] sm:$0xff] %v8163_v47  ;;  %v8171_v62 = vpop.eup %5783  ;;  %v2512_v33 = vmax.f32 %v2511_v40, %v8195_v29  ;;  %v2399_v40 = vpop.xlane.xlu1 %2398 }
 0x367   :  { %12014 = vst [vmem:[#allocation96_spill] sm:$0xff] %v8171_v62  ;;  %v8179_v23 = vpop.eup %5785  ;;  %3471 = vadd.xlane.f32.xlu0 %v3470_v15  ;;  %v3474_v38 = vadd.f32 %v8163_v47, %v3473_v14  ;;  %v2709_v29 = vsub.f32 %v7547_v11, %v2399_v40 }
 0x368   :  { %12018 = vst [vmem:[#allocation100_spill] sm:$0xff] %v8179_v23  ;;  %v8184_v9 = vpop.eup %5787 }
 0x369   :  { %12019 = vst [vmem:[#allocation101_spill] sm:$0xff] %v8184_v9  ;;  %v3475_v46 = vadd.f32 %v8171_v62, %v3474_v38  ;;  %v3478_v53 = vadd.f32 %v8184_v9, %v8179_v23  ;;  %v8193_v20 = vpop.eup %5789  ;;  %v1607_v38 = vld [vmem:[%s11431_s3 + $0x128] sm:$0xff]  ;;  %v2999_v56 = vmul.f32 1.442695, %v2709_v29  ;;  %v12061_v23 = vld [vmem:[#allocation34_spill] sm:$0xff] }
 0x36a   :  { %12020 = vst [vmem:[#allocation102_spill] sm:$0xff] %v8193_v20  ;;  %v8198_v14 = vpop.eup %5791 }
 0x36b   :  { %3476 = vadd.xlane.f32.xlu1 %v3475_v46  ;;  %2508 = vmax.xlane.f32.xlu0 %v2507_v42  ;;  %v3479_v15 = vadd.f32 %v8193_v20, %v3478_v53  ;;  %12022 = vst [vmem:[#allocation104_spill] sm:$0xff] %v8198_v14  ;;  %v1604_v53 = vld [vmem:[%s11431_s3 + $0x110] sm:$0xff]  ;;  %v1606_v42 = vld [vmem:[%s11431_s3 + $0x120] sm:$0xff] }
 0x36c   :  { %v1608_v46 = vld [vmem:[%s11431_s3 + $0x130] sm:$0xff] }
 0x36d   :  { %v3480_v44 = vadd.f32 %v8198_v14, %v3479_v15  ;;  %v12023_v15 = vld [vmem:[#allocation2_spill] sm:$0xff] }
 0x36f   :  { %3481 = vadd.xlane.f32.xlu0 %v3480_v44  ;;  %2513 = vmax.xlane.f32.xlu1 %v2512_v33  ;;  %v2707_v33 = vsub.f32 %v7529_v59, %v2399_v40  ;;  %v12024_v44 = vld [vmem:[#allocation22_spill] sm:$0xff]  ;;  %v2404_v59 = vpop.xlane.xlu0 %2403 }
 0x380   :  { %1735 = vperm.xlu1 %5679, %v1603_v22   ;;  %v2708_v22 = vsub.f32 %v12024_v44, %v2399_v40  ;;  %v12025_v44 = vld [vmem:[#allocation26_spill] sm:$0xff] }
 0x381   :  { %v2710_v49 = vsub.f32 %v12025_v44, %v2399_v40 }
 0x383   :  { %v3001_v47 = vmul.f32 1.442695, %v2710_v49 }
 0x384   :  { %1741 = vperm.xlu1 %5679, %v1605_v30   ;;  %v1610_v30 = vld [vmem:[%s11431_s3 + $0x140] sm:$0xff] }
 0x385   :  { %1738 = vperm.xlu0 %5680, %v1604_v53   ;;  %v2995_v53 = vmul.f32 1.442695, %v2707_v33  ;;  %v12026_v33 = vld [vmem:[#allocation25_spill] sm:$0xff] }
 0x387   :  { %5793 = vpow2.f32 %v2995_v53  ;;  %v2414_v53 = vpop.xlane.xlu0 %2413 }
 0x388   :  { %1747 = vperm.xlu1 %5679, %v1607_v38   ;;  %v2997_v38 = vmul.f32 1.442695, %v2708_v22  ;;  %v12027_v22 = vld [vmem:[#allocation24_spill] sm:$0xff]  ;;  %v2719_v40 = vsub.f32 %v7611_v55, %v2414_v53 }
 0x389   :  { %1744 = vperm.xlu0 %5680, %v1606_v42   ;;  %v1612_v42 = vld [vmem:[%s11431_s3 + $0x150] sm:$0xff]  ;;  %v2712_v3 = vsub.f32 %v12027_v22, %v2404_v59  ;;  %v2722_v22 = vsub.f32 %v7636_v2, %v2414_v53  ;;  %v1411_v2 = vpop.f32.mrf.mxu1 }
 0x38a   :  { %5795 = vpow2.f32 %v2997_v38  ;;  %v12028_v38 = vld [vmem:[#allocation28_spill] sm:$0xff] }
 0x38b   :  { %5797 = vpow2.f32 %v2999_v56  ;;  %v3005_v11 = vmul.f32 1.442695, %v2712_v3  ;;  %v2714_v56 = vsub.f32 %v7585_v10, %v2404_v59 }
 0x38c   :  { %599 = vrot.lane.b32.xlu1 %v12023_v15, %s6371_s6  ;;  %5799 = vpow2.f32 %v3001_v47 }
 0x38d   :  { %1750 = vperm.xlu0 %5680, %v1608_v46   ;;  %v1614_v46 = vld [vmem:[%s11431_s3 + $0x160] sm:$0xff]  ;;  %v3009_v3 = vmul.f32 1.442695, %v2714_v56 }
 0x391   :  { %1756 = vperm.xlu0 %5680, %v1610_v30   ;;  %v2711_v30 = vsub.f32 %v12026_v33, %v2404_v59  ;;  %v3019_v33 = vmul.f32 1.442695, %v2719_v40 }
 0x393   :  { %v3003_v20 = vmul.f32 1.442695, %v2711_v30 }
 0x394   :  { %v8241_v29 = vpop.eup %5793 }
 0x395   :  { %1762 = vperm.xlu0 %5680, %v1612_v42   ;;  %v2713_v42 = vsub.f32 %v12028_v38, %v2404_v59  ;;  %5801 = vpow2.f32 %v3003_v20  ;;  %12029 = vst [vmem:[#allocation2_spill] sm:$0xff] %v8241_v29  ;;  %v12031_v20 = vld [vmem:[#allocation33_spill] sm:$0xff]  ;;  %v1058_v38 = vpop.f32.mrf.mxu0 }
 0x396   :  { %5803 = vpow2.f32 %v3005_v11  ;;  %v2721_v30 = vsub.f32 %v12031_v20, %v2414_v53 }
 0x397   :  { %v8244_v44 = vpop.eup %5795  ;;  %v3007_v49 = vmul.f32 1.442695, %v2713_v42  ;;  %v1060_v56 = vpop.f32.mrf.mxu0 }
 0x398   :  { %12030 = vst [vmem:[#allocation22_spill] sm:$0xff] %v8244_v44  ;;  %v3483_v47 = vadd.f32 %v8244_v44, %v8241_v29  ;;  %v8250_v55 = vpop.eup %5797  ;;  %v3023_v10 = vmul.f32 1.442695, %v2721_v30  ;;  %v12056_v29 = vld [vmem:[#allocation29_spill] sm:$0xff] }
 0x399   :  { %1768 = vperm.xlu0 %5680, %v1614_v46   ;;  %v2720_v46 = vsub.f32 %v7599_v8, %v2414_v53  ;;  %5805 = vpow2.f32 %v3007_v49  ;;  %12032 = vst [vmem:[#allocation26_spill] sm:$0xff] %v8250_v55  ;;  %v8254_v59 = vpop.eup %5799  ;;  %v8265_v53 = vpop.xlane.xlu1 %2408 }
 0x39a   :  { %5807 = vpow2.f32 %v3019_v33  ;;  %v3484_v8 = vadd.f32 %v8250_v55, %v3483_v47  ;;  %12033 = vst [vmem:[#allocation25_spill] sm:$0xff] %v8254_v59  ;;  %v12036_v33 = vld [vmem:[#allocation5_spill] sm:$0xff] }
 0x39b   :  { %vm1972_vm9 = vcmp.eq.s32.totalorder %v12036_v33, %v7274_v6  ;;  %vm1971_vm10 = vcmp.eq.s32.totalorder %v12036_v33, %v7276_v25  ;;  %vm1973_vm11 = vcmp.eq.s32.totalorder %v12036_v33, %v7292_v48  ;;  %vm1974_vm12 = vcmp.eq.s32.totalorder %v12036_v33, %v7300_v39 }
 0x39c   :  { %v3485_v42 = vadd.f32 %v8254_v59, %v3484_v8  ;;  %v8269_v47 = vsel %vm1972_vm9, %v1060_v56, -1e+30  ;;  %v8280_v8 = vsel %vm1971_vm10, %v1058_v38, -1e+30  ;;  %v2715_v59 = vsub.f32 %v12056_v29, %v8265_v53  ;;  %v12060_v29 = vld [vmem:[#allocation32_spill] sm:$0xff] }
 0x39d   :  { %647 = vrot.lane.b32.xlu0 %v12023_v15, %s6372_s7  ;;  %v3021_v15 = vmul.f32 1.442695, %v2720_v46  ;;  %v3025_v46 = vmul.f32 1.442695, %v2722_v22  ;;  %12038 = vst [vmem:[#allocation5_spill] sm:$0xff] %v8269_v47  ;;  %12041 = vst [vmem:[#allocation107_spill] sm:$0xff] %v8280_v8 }
 0x39e   :  { %v8282_v22 = vsel %vm1973_vm11, %v1411_v2, -1e+30 }
 0x39f   :  { %5809 = vpow2.f32 %v3021_v15  ;;  %12042 = vst [vmem:[#allocation108_spill] sm:$0xff] %v8282_v22 }
 0x3a0   :  { %5811 = vpow2.f32 %v3009_v3 }
 0x3a1   :  { %5813 = vpow2.f32 %v3023_v10  ;;  %v2515_v10 = vmax.f32 %v8280_v8, %v8269_v47 }
 0x3a2   :  { %v8256_v11 = vpop.eup %5801  ;;  %5815 = vpow2.f32 %v3025_v46  ;;  %v8286_v46 = vpop.xlane.xlu1 %2418 }
 0x3a3   :  { %12034 = vst [vmem:[#allocation24_spill] sm:$0xff] %v8256_v11  ;;  %v8259_v40 = vpop.eup %5803  ;;  %v2724_v60 = vsub.f32 %v12060_v29, %v8286_v46  ;;  %v12063_v29 = vld [vmem:[#allocation30_spill] sm:$0xff] }
 0x3a4   :  { %12035 = vst [vmem:[#allocation28_spill] sm:$0xff] %v8259_v40  ;;  %v3488_v49 = vadd.f32 %v8259_v40, %v8256_v11  ;;  %v2516_v11 = vmax.f32 %v2515_v10, %v8282_v22  ;;  %v2717_v7 = vsub.f32 %v12063_v29, %v8265_v53 }
 0x3a6   :  { %v8267_v15 = vpop.eup %5805  ;;  %v8300_v47 = vpop.xlane.xlu1 %2428 }
 0x3a7   :  { %12037 = vst [vmem:[#allocation33_spill] sm:$0xff] %v8267_v15  ;;  %v8271_v3 = vpop.eup %5807  ;;  %v3489_v20 = vadd.f32 %v8267_v15, %v3488_v49  ;;  %v8293_v49 = vpop.xlane.xlu0 %2423  ;;  %12045 = vst [vmem:[#allocation111_spill] sm:$0xff] %v8300_v47 }
 0x3a8   :  { %12039 = vst [vmem:[#allocation105_spill] sm:$0xff] %v8271_v3 }
 0x3aa   :  { %v8308_v22 = vpop.xlane.xlu1 %2443 }
 0x3ab   :  { %v8305_v10 = vpop.xlane.xlu0 %2433  ;;  %v2745_v61 = vsub.f32 %v12077_v12, %v8308_v22 }
 0x3ac   :  { %v8278_v30 = vpop.eup %5809 }
 0x3ad   :  { %12040 = vst [vmem:[#allocation106_spill] sm:$0xff] %v8278_v30  ;;  %v8288_v56 = vpop.eup %5811  ;;  %v3498_v2 = vadd.f32 %v8278_v30, %v8271_v3 }
 0x3ae   :  { %12043 = vst [vmem:[#allocation109_spill] sm:$0xff] %v8288_v56  ;;  %v3490_v38 = vadd.f32 %v8288_v56, %v3489_v20  ;;  %v8302_v8 = vpop.eup %5813  ;;  %v8315_v30 = vpop.xlane.xlu1 %2453 }
 0x3af   :  { %12046 = vst [vmem:[#allocation112_spill] sm:$0xff] %v8302_v8  ;;  %v3499_v33 = vadd.f32 %v8302_v8, %v3498_v2  ;;  %v8310_v20 = vpop.eup %5815  ;;  %v2751_v12 = vsub.f32 %v7801_v32, %v8315_v30 }
 0x3b0   :  { %3486 = vadd.xlane.f32.xlu1 %v3485_v42  ;;  %v1413_v42 = vpop.f32.mrf.mxu1  ;;  %12047 = vst [vmem:[#allocation113_spill] sm:$0xff] %v8310_v20 }
 0x3b1   :  { %v8298_v15 = vsel %vm1974_vm12, %v1413_v42, -1e+30  ;;  %v3500_v3 = vadd.f32 %v8310_v20, %v3499_v33  ;;  %v8313_v42 = vpop.xlane.xlu0 %2438 }
 0x3b2   :  { %12044 = vst [vmem:[#allocation110_spill] sm:$0xff] %v8298_v15  ;;  %v2517_v40 = vmax.f32 %v2516_v11, %v8298_v15  ;;  %12048 = vst [vmem:[#allocation114_spill] sm:$0xff] %v8313_v42  ;;  %v8321_v11 = vpop.xlane.xlu1 %2463  ;;  %v8335_v42 = vpop.f32.mrf.mxu1 }
 0x3b5   :  { %v8319_v56 = vpop.xlane.xlu0 %2448 }
 0x3b6   :  { %12049 = vst [vmem:[#allocation115_spill] sm:$0xff] %v8319_v56 }
 0x3b9   :  { %v8325_v2 = vpop.xlane.xlu0 %2458 }
 0x3ba   :  { %12050 = vst [vmem:[#allocation116_spill] sm:$0xff] %v8325_v2  ;;  %v8345_v2 = vpop.f32.mrf.mxu1 }
 0x3bc   :  { %3491 = vadd.xlane.f32.xlu0 %v3490_v38  ;;  %v8317_v38 = vpop.f32.mrf.mxu0  ;;  %v8357_v14 = vpop.f32.mrf.mxu1 }
 0x3bd   :  { %v8331_v33 = vpop.xlane.xlu0 %2468 }
 0x3be   :  { %v8323_v15 = vpop.f32.mrf.mxu0  ;;  %12052 = vst [vmem:[#allocation118_spill] sm:$0xff] %v8331_v33 }
 0x3c0   :  { %2518 = vmax.xlane.f32.xlu0 %v2517_v40  ;;  %v8327_v40 = vpop.xlane.xlu1 %2473  ;;  %v8329_v8 = vpop.f32.mrf.mxu0 }
 0x3c1   :  { %12051 = vst [vmem:[#allocation117_spill] sm:$0xff] %v8327_v40  ;;  %v8339_v55 = vpop.xlane.xlu0 %2478  ;;  %v12057_v40 = vld [vmem:[#allocation27_spill] sm:$0xff] }
 0x3c2   :  { %12054 = vst [vmem:[#allocation120_spill] sm:$0xff] %v8339_v55  ;;  %v2716_v44 = vsub.f32 %v12057_v40, %v8265_v53  ;;  %v3011_v55 = vmul.f32 1.442695, %v2715_v59  ;;  %v2727_v40 = vsub.f32 %v7661_v36, %v8293_v49  ;;  %v8369_v59 = vpop.f32.mrf.mxu1  ;;  %v12064_v36 = vld [vmem:[#allocation31_spill] sm:$0xff] }
 0x3c4   :  { %3501 = vadd.xlane.f32.xlu0 %v3500_v3  ;;  %v8333_v20 = vpop.xlane.xlu1 %2483  ;;  %v8337_v3 = vpop.f32.mrf.mxu0  ;;  %5817 = vpow2.f32 %v3011_v55  ;;  %v3035_v1 = vmul.f32 1.442695, %v2727_v40  ;;  %v3015_v40 = vmul.f32 1.442695, %v2717_v7 }
 0x3c5   :  { %12053 = vst [vmem:[#allocation119_spill] sm:$0xff] %v8333_v20  ;;  %v2723_v20 = vsub.f32 %v7634_v57, %v8286_v46  ;;  %v8353_v33 = vpop.xlane.xlu0 %2488  ;;  %v2728_v57 = vsub.f32 %v12061_v23, %v8293_v49  ;;  %v8379_v9 = vpop.f32.mrf.mxu1 }
 0x3c6   :  { %v8349_v47 = vpop.f32.mrf.mxu0  ;;  %12058 = vst [vmem:[#allocation29_spill] sm:$0xff] %v8353_v33 }
 0x3c7   :  { %v3027_v16 = vmul.f32 1.442695, %v2723_v20  ;;  %v2718_v20 = vsub.f32 %v12064_v36, %v8265_v53  ;;  %v3037_v23 = vmul.f32 1.442695, %v2728_v57  ;;  %v2735_v53 = vsub.f32 %v7709_v24, %v8305_v10  ;;  %v8391_v57 = vpop.f32.mrf.mxu1 }
 0x3c8   :  { %v8341_v56 = vpop.xlane.xlu1 %2493  ;;  %v8361_v17 = vpop.f32.mrf.mxu0 }
 0x3c9   :  { %12055 = vst [vmem:[#allocation121_spill] sm:$0xff] %v8341_v56  ;;  %v3013_v56 = vmul.f32 1.442695, %v2716_v44  ;;  %v8367_v21 = vpop.xlane.xlu0 %2498  ;;  %v3029_v44 = vmul.f32 1.442695, %v2724_v60  ;;  %v12066_v60 = vld [vmem:[#allocation38_spill] sm:$0xff]  ;;  %v8399_v24 = vpop.f32.mrf.mxu1 }
 0x3ca   :  { %12062 = vst [vmem:[#allocation32_spill] sm:$0xff] %v8367_v21  ;;  %v12065_v21 = vld [vmem:[#allocation35_spill] sm:$0xff] }
 0x3cb   :  { %5819 = vpow2.f32 %v3013_v56  ;;  %v2725_v55 = vsub.f32 %v12065_v21, %v8286_v46  ;;  %v2729_v56 = vsub.f32 %v12066_v60, %v8293_v49 }
 0x3cc   :  { %v8355_v62 = vpop.xlane.xlu1 %2503 }
 0x3cd   :  { %12059 = vst [vmem:[#allocation27_spill] sm:$0xff] %v8355_v62  ;;  %v8371_v62 = vpop.f32.mrf.mxu0  ;;  %v3031_v21 = vmul.f32 1.442695, %v2725_v55  ;;  %v3039_v36 = vmul.f32 1.442695, %v2729_v56 }
 0x3cf   :  { %v8383_v31 = vpop.f32.mrf.mxu0 }
 0x3d1   :  { %v8395_v7 = vpop.f32.mrf.mxu0 }
 0x3d3   :  { %v8403_v60 = vpop.f32.mrf.mxu0 }
 0x3dc   :  { %v3447_v33 = vpop.xlane.xlu1 %3446 }
 0x3dd   :  { %5821 = vrcp.f32 %v3447_v33  ;;  %v12067_v33 = vld [vmem:[#allocation36_spill] sm:$0xff] }
 0x3de   :  { %5823 = vpow2.f32 %v3027_v16  ;;  %v2726_v29 = vsub.f32 %v12067_v33, %v8286_v46  ;;  %v3017_v16 = vmul.f32 1.442695, %v2718_v20 }
 0x3e0   :  { %v3452_v63 = vpop.xlane.xlu0 %3451  ;;  %v3033_v46 = vmul.f32 1.442695, %v2726_v29  ;;  %v8411_v29 = vpop.f32.mrf.mxu1 }
 0x3e1   :  { %5825 = vrcp.f32 %v3452_v63  ;;  %v2736_v63 = vsub.f32 %v7699_v27, %v8305_v10  ;;  %12071 = vst [vmem:[#allocation35_spill] sm:$0xff] %v8411_v29  ;;  %v2746_v29 = vsub.f32 %v7780_v19, %v8308_v22 }
 0x3e2   :  { %5827 = vpow2.f32 %v3029_v44  ;;  %v2730_v44 = vsub.f32 %v7686_v26, %v8293_v49  ;;  %v8441_v52 = vpop.f32.mrf.mxu1 }
 0x3e3   :  { %5829 = vpow2.f32 %v3035_v1  ;;  %v3051_v1 = vmul.f32 1.442695, %v2735_v53  ;;  %v3053_v20 = vmul.f32 1.442695, %v2736_v63 }
 0x3e4   :  { %5831 = vpow2.f32 %v3037_v23  ;;  %v8397_v23 = vpop.eup %5817  ;;  %v3041_v27 = vmul.f32 1.442695, %v2730_v44  ;;  %v3457_v49 = vpop.xlane.xlu1 %3456 }
 0x3e5   :  { %5833 = vpow2.f32 %v3015_v40  ;;  %12068 = vst [vmem:[#allocation34_spill] sm:$0xff] %v8397_v23  ;;  %v8401_v55 = vpop.eup %5819  ;;  %v8419_v44 = vpop.f32.mrf.mxu0 }
 0x3e6   :  { %5835 = vpow2.f32 %v3017_v16  ;;  %12069 = vst [vmem:[#allocation30_spill] sm:$0xff] %v8401_v55  ;;  %v12072_v16 = vld [vmem:[#allocation43_spill] sm:$0xff] }
 0x3e7   :  { %5837 = vpow2.f32 %v3031_v21  ;;  %v2737_v53 = vsub.f32 %v12072_v16, %v8305_v10  ;;  %v2738_v21 = vsub.f32 %v7734_v34, %v8305_v10  ;;  %v2743_v34 = vsub.f32 %v7755_v5, %v8308_v22  ;;  %v8445_v5 = vpop.f32.mrf.mxu0 }
 0x3e8   :  { %5839 = vpow2.f32 %v3039_v36  ;;  %v3462_v56 = vpop.xlane.xlu0 %3461 }
 0x3e9   :  { %5841 = vpow2.f32 %v3033_v46 }
 0x3ea   :  { %v8405_v26 = vpop.eup %5821  ;;  %5843 = vpow2.f32 %v3051_v1 }
 0x3eb   :  { %v8407_v40 = vpop.eup %5823  ;;  %5845 = vpow2.f32 %v3053_v20  ;;  %v3828_v36 = vmul.f32 %v8405_v26, %v8056_v0  ;;  %v3830_v1 = vmul.f32 %v8405_v26, %v8062_v18 }
 0x3ec   :  { %12070 = vst [vmem:[#allocation31_spill] sm:$0xff] %v8407_v40  ;;  %5847 = vpow2.f32 %v3041_v27  ;;  %v8433_v10 = vpop.xlane.xlu1 %3466 }
 0x3ed   :  { %5849 = vrcp.f32 %v3457_v49  ;;  %v3057_v49 = vmul.f32 1.442695, %v2738_v21 }
 0x3ee   :  { %v8409_v33 = vpop.eup %5825  ;;  %5851 = vrcp.f32 %v3462_v56 }
 0x3ef   :  { %v8417_v63 = vpop.eup %5827  ;;  %v3832_v46 = vmul.f32 %v8409_v33, %v8071_v51  ;;  %v3834_v20 = vmul.f32 %v8409_v33, %v8078_v28  ;;  %v12076_v51 = vld [vmem:[#allocation45_spill] sm:$0xff]  ;;  %v3055_v28 = vmul.f32 1.442695, %v2737_v53  ;;  %v3067_v53 = vmul.f32 1.442695, %v2743_v34 }
 0x3f0   :  { %12073 = vst [vmem:[#allocation38_spill] sm:$0xff] %v8417_v63  ;;  %v8429_v27 = vpop.eup %5829  ;;  %v8435_v16 = vpop.xlane.xlu0 %3471  ;;  %v2744_v13 = vsub.f32 %v12076_v51, %v8308_v22  ;;  %v3493_v51 = vadd.f32 %v8401_v55, %v8397_v23  ;;  %v3503_v56 = vadd.f32 %v8417_v63, %v8407_v40  ;;  %v12078_v22 = vld [vmem:[#allocation51_spill] sm:$0xff]  ;;  %v3071_v34 = vmul.f32 1.442695, %v2745_v61 }
 0x3f1   :  { %12074 = vst [vmem:[#allocation36_spill] sm:$0xff] %v8429_v27  ;;  %v8437_v0 = vpop.eup %5831  ;;  %v4084_v18 = vpack.c.bf16 %v3832_v46, %v3828_v36  ;;  %v4086_v54 = vpack.c.bf16 %v3834_v20, %v3830_v1  ;;  %v2752_v1 = vsub.f32 %v12078_v22, %v8315_v30  ;;  %5853 = vpow2.f32 %v3055_v28  ;;  %v8473_v63 = vpop.f32.mrf.mxu0  ;;  %v12084_v22 = vld [vmem:[#allocation55_spill] sm:$0xff] }
 0x3f2   :  { %12075 = vst [vmem:[#allocation43_spill] sm:$0xff] %v8437_v0  ;;  %v8453_v36 = vpop.eup %5833  ;;  %v3508_v21 = vadd.f32 %v8437_v0, %v8429_v27  ;;  %5855 = vpow2.f32 %v3057_v49  ;;  %v3073_v27 = vmul.f32 1.442695, %v2746_v29  ;;  %v2753_v55 = vsub.f32 %v12084_v22, %v8315_v30 }
 0x3f3   :  { %4243 = vmatprep.mubr.bf16.mxu0 %v4084_v18  ;;  %4532 = vmatprep.mubr.bf16.mxu1 %v4086_v54  ;;  %v8461_v19 = vpop.eup %5835  ;;  %v3069_v54 = vmul.f32 1.442695, %v2744_v13  ;;  %v8467_v18 = vpop.f32.mrf.mxu1  ;;  %v3494_v0 = vadd.f32 %v8453_v36, %v3493_v51  ;;  %5857 = vpow2.f32 %v3067_v53  ;;  %v3083_v28 = vmul.f32 1.442695, %v2751_v12 }
 0x3f4   :  { %v8457_v46 = vpop.xlane.xlu1 %3476  ;;  %v8465_v20 = vpop.eup %5837  ;;  %12080 = vst [vmem:[#allocation49_spill] sm:$0xff] %v8467_v18  ;;  %v3085_v49 = vmul.f32 1.442695, %v2752_v1 }
 0x3f5   :  { %12079 = vst [vmem:[#allocation45_spill] sm:$0xff] %v8465_v20  ;;  %v8469_v40 = vpop.xlane.xlu0 %2508  ;;  %v8471_v32 = vpop.eup %5839  ;;  %v3504_v13 = vadd.f32 %v8465_v20, %v3503_v56  ;;  %5859 = vpow2.f32 %v3069_v54  ;;  %v8495_v12 = vadd.f32 %v8461_v19, %v3494_v0  ;;  %v8502_v54 = vmul.f32 1.442695, %v2753_v55 }
 0x3f6   :  { %12081 = vst [vmem:[#allocation51_spill] sm:$0xff] %v8469_v40  ;;  %12082 = vst [vmem:[#allocation122_spill] sm:$0xff] %v8471_v32  ;;  %v8477_v23 = vpop.eup %5841  ;;  %v3509_v40 = vadd.f32 %v8471_v32, %v3508_v21  ;;  %v8488_v51 = vpop.f32.mrf.mxu1  ;;  %5861 = vpow2.f32 %v3071_v34  ;;  %v12091_v21 = vld [vmem:[#allocation57_spill] sm:$0xff]  ;;  %v8545_v20 = vmul.f32 %v8409_v33, %v8067_v37 }
 0x3f7   :  { %12083 = vst [vmem:[#allocation123_spill] sm:$0xff] %v8477_v23  ;;  %v8484_v18 = vpop.eup %5843  ;;  %v8492_v53 = vpop.f32.mrf.mxu0  ;;  %5863 = vpow2.f32 %v3073_v27  ;;  %v8498_v22 = vadd.f32 %v8477_v23, %v3504_v13 }
 0x3f8   :  { %v8481_v61 = vpop.xlane.xlu1 %2513  ;;  %12086 = vst [vmem:[#allocation124_spill] sm:$0xff] %v8484_v18  ;;  %v8486_v29 = vpop.eup %5845  ;;  %5865 = vpow2.f32 %v3083_v28 }
 0x3f9   :  { %12085 = vst [vmem:[#allocation55_spill] sm:$0xff] %v8481_v61  ;;  %12087 = vst [vmem:[#allocation125_spill] sm:$0xff] %v8486_v29  ;;  %v8490_v56 = vpop.eup %5847  ;;  %v3482_v1 = vpop.xlane.xlu0 %3481  ;;  %5867 = vpow2.f32 %v3085_v49  ;;  %v8513_v27 = vadd.f32 %v8486_v29, %v8484_v18 }
 0x3fa   :  { %12088 = vst [vmem:[#allocation126_spill] sm:$0xff] %v8490_v56  ;;  %v8505_v34 = vadd.f32 %v8490_v56, %v3509_v40  ;;  %v8507_v32 = vpop.eup %5849  ;;  %v8517_v55 = vpop.f32.mrf.mxu1  ;;  %5869 = vrcp.f32 %v8435_v16 }
 0x3fb   :  { %v8515_v0 = vpop.eup %5851  ;;  %v8528_v49 = vpop.f32.mrf.mxu0  ;;  %5871 = vrcp.f32 %v8433_v10  ;;  %v8549_v16 = vmul.f32 %v8507_v32, %v8087_v43 }
 0x3fc   :  { %v1736_v61 = vpop.permute.xlu1 %1735  ;;  %v8562_v18 = vpop.f32.mrf.mxu1  ;;  %5873 = vrcp.f32 %v3482_v1 }
 0x3fd   :  { %vm1975_vm13 = vcmp.eq.s32.totalorder %v1736_v61, %v7276_v25  ;;  %vm1976_vm14 = vcmp.eq.s32.totalorder %v1736_v61, %v7274_v6  ;;  %vm1977_vm15 = vcmp.eq.s32.totalorder %v1736_v61, %v7292_v48  ;;  %vm1978_vm1 = vcmp.eq.s32.totalorder %v1736_v61, %v7300_v39  ;;  %v8572_v61 = vpop.f32.mrf.mxu0 }
 0x3fe   :  { %v8523_v40 = vsel %vm1975_vm13, %v8317_v38, -1e+30  ;;  %v8526_v28 = vsel %vm1976_vm14, %v8323_v15, -1e+30  ;;  %v8541_v15 = vmul.f32 %v8405_v26, %v8053_v35  ;;  %v8556_v10 = vsel %vm1977_vm15, %v8335_v42, -1e+30 }
 0x3ff   :  { %12089 = vst [vmem:[#allocation127_spill] sm:$0xff] %v8523_v40  ;;  %12090 = vst [vmem:[#allocation128_spill] sm:$0xff] %v8526_v28  ;;  %v2520_v13 = vmax.f32 %v8523_v40, %v8526_v28  ;;  %v8560_v35 = vmul.f32 %v8515_v0, %v8103_v4  ;;  %v8565_v37 = vsel %vm1978_vm1, %v8345_v2, -1e+30  ;;  %v8570_v28 = vpop.eup %5853  ;;  %5875 = vrcp.f32 %v8457_v46 }
 0x400   :  { %v1739_v29 = vpop.permute.xlu0 %1738  ;;  %v8537_v38 = vpop.permute.xlu1 %1741  ;;  %12092 = vst [vmem:[#allocation57_spill] sm:$0xff] %v8556_v10  ;;  %12093 = vst [vmem:[#allocation129_spill] sm:$0xff] %v8565_v37  ;;  %5877 = vpow2.f32 %v8502_v54 }
 0x401   :  { %vm1979_vm2 = vcmp.eq.s32.totalorder %v1739_v29, %v7276_v25  ;;  %vm1980_vm3 = vcmp.eq.s32.totalorder %v1739_v29, %v7274_v6  ;;  %v2521_v43 = vmax.f32 %v2520_v13, %v8556_v10  ;;  %vm1981_vm4 = vcmp.eq.s32.totalorder %v1739_v29, %v7292_v48  ;;  %12094 = vst [vmem:[#allocation130_spill] sm:$0xff] %v8570_v28  ;;  %v8584_v2 = vpop.eup %5855 }
 0x402   :  { %vm1982_vm5 = vcmp.eq.s32.totalorder %v1739_v29, %v7300_v39  ;;  %vm1983_vm6 = vcmp.eq.s32.totalorder %v8537_v38, %v7276_v25  ;;  %vm1984_vm7 = vcmp.eq.s32.totalorder %v8537_v38, %v7274_v6  ;;  %v8579_v4 = vsel %vm1979_vm2, %v8329_v8, -1e+30  ;;  %12097 = vst [vmem:[#allocation133_spill] sm:$0xff] %v8584_v2  ;;  %v8595_v8 = vpop.eup %5857 }
 0x403   :  { %12095 = vst [vmem:[#allocation131_spill] sm:$0xff] %v8579_v4  ;;  %v8582_v42 = vsel %vm1980_vm3, %v8337_v3, -1e+30  ;;  %v2522_v40 = vmax.f32 %v2521_v43, %v8565_v37  ;;  %vm1985_vm8 = vcmp.eq.s32.totalorder %v8537_v38, %v7292_v48  ;;  %12098 = vst [vmem:[#allocation134_spill] sm:$0xff] %v8595_v8  ;;  %v8604_v3 = vsel %vm1981_vm4, %v8357_v14, -1e+30  ;;  %v8611_v43 = vpop.eup %5859  ;;  %v8613_v37 = vpop.f32.mrf.mxu1 }
 0x404   :  { %12096 = vst [vmem:[#allocation132_spill] sm:$0xff] %v8582_v42  ;;  %v8586_v13 = vpop.permute.xlu0 %1744  ;;  %v8588_v10 = vpop.permute.xlu1 %1747  ;;  %v2525_v56 = vmax.f32 %v8579_v4, %v8582_v42  ;;  %12099 = vst [vmem:[#allocation135_spill] sm:$0xff] %v8604_v3  ;;  %v8609_v1 = vsel %vm1982_vm5, %v8369_v59, -1e+30  ;;  %vm1986_vm11 = vcmp.eq.s32.totalorder %v8537_v38, %v7300_v39  ;;  %v8622_v14 = vsel %vm1983_vm6, %v8349_v47, -1e+30 }
 0x405   :  { %vm1987_vm9 = vcmp.eq.s32.totalorder %v8586_v13, %v7276_v25  ;;  %vm1988_vm10 = vcmp.eq.s32.totalorder %v8586_v13, %v7274_v6  ;;  %12100 = vst [vmem:[#allocation136_spill] sm:$0xff] %v8609_v1  ;;  %12101 = vst [vmem:[#allocation137_spill] sm:$0xff] %v8611_v43  ;;  %2523 = vmax.xlane.f32.xlu1 %v2522_v40  ;;  %v8628_v59 = vsel %vm1984_vm7, %v8361_v17, -1e+30  ;;  %v8630_v29 = vpop.eup %5861  ;;  %v8632_v40 = vpop.f32.mrf.mxu0  ;;  %v8642_v47 = vsel %vm1985_vm8, %v8379_v9, -1e+30 }
 0x406   :  { %12102 = vst [vmem:[#allocation138_spill] sm:$0xff] %v8613_v37  ;;  %v2526_v42 = vmax.f32 %v2525_v56, %v8604_v3  ;;  %12103 = vst [vmem:[#allocation139_spill] sm:$0xff] %v8622_v14  ;;  %vm1991_vm12 = vcmp.eq.s32.totalorder %v8588_v10, %v7276_v25  ;;  %vm1992_vm13 = vcmp.eq.s32.totalorder %v8588_v10, %v7274_v6  ;;  %v8646_v56 = vpop.eup %5863  ;;  %v8657_v37 = vsel %vm1987_vm9, %v8371_v62, -1e+30  ;;  %v8675_v23 = vpop.f32.mrf.mxu1 }
 0x407   :  { %12104 = vst [vmem:[#allocation140_spill] sm:$0xff] %v8628_v59  ;;  %12105 = vst [vmem:[#allocation141_spill] sm:$0xff] %v8630_v29  ;;  %v2530_v17 = vmax.f32 %v8622_v14, %v8628_v59  ;;  %vm1989_vm14 = vcmp.eq.s32.totalorder %v8586_v13, %v7292_v48  ;;  %v8663_v9 = vsel %vm1988_vm10, %v8383_v31, -1e+30  ;;  %v8665_v59 = vpop.eup %5865  ;;  %v4088_v14 = vpack.c.bf16 %v8560_v35, %v8549_v16  ;;  %v8712_v38 = vpop.f32.mrf.mxu0 }
 0x408   :  { %12106 = vst [vmem:[#allocation142_spill] sm:$0xff] %v8632_v40  ;;  %12107 = vst [vmem:[#allocation143_spill] sm:$0xff] %v8642_v47  ;;  %v8648_v3 = vpop.permute.xlu0 %1750  ;;  %v600_v4 = vpop.permute.xlu1 %599  ;;  %v2527_v40 = vmax.f32 %v2526_v42, %v8609_v1  ;;  %v4083_v42 = vpack.c.bf16 %v8545_v20, %v8541_v15  ;;  %v8684_v31 = vsel %vm1986_vm11, %v8391_v57, -1e+30  ;;  %v2535_v46 = vmax.f32 %v8657_v37, %v8663_v9 }
 0x409   :  { %12108 = vst [vmem:[#allocation144_spill] sm:$0xff] %v8646_v56  ;;  %12109 = vst [vmem:[#allocation145_spill] sm:$0xff] %v8657_v37  ;;  %4242 = vmatpush2.bf16.msra.mxu0 %v600_v4  ;;  %v2531_v62 = vmax.f32 %v2530_v17, %v8642_v47  ;;  %v8673_v1 = vpop.eup %5867  ;;  %vm1995_vm15 = vcmp.eq.s32.totalorder %v8648_v3, %v7276_v25  ;;  %3496 = vadd.xlane.f32.xlu1 %v8495_v12  ;;  %v8692_v20 = vsel %vm1991_vm12, %v8395_v7, -1e+30 }
 0x40a   :  { %12110 = vst [vmem:[#allocation146_spill] sm:$0xff] %v8663_v9  ;;  %12111 = vst [vmem:[#allocation147_spill] sm:$0xff] %v8665_v59  ;;  %2528 = vmax.xlane.f32.xlu0 %v2527_v40  ;;  %vm1996_vm1 = vcmp.eq.s32.totalorder %v8648_v3, %v7274_v6  ;;  %vm1990_vm2 = vcmp.eq.s32.totalorder %v8586_v13, %v7300_v39  ;;  %v8702_v57 = vsel %vm1989_vm14, %v8399_v24, -1e+30  ;;  %v8708_v12 = vsel %vm1992_vm13, %v8403_v60, -1e+30  ;;  %v8710_v7 = vpop.eup %5869 }
 0x40b   :  { %12112 = vst [vmem:[#allocation148_spill] sm:$0xff] %v8673_v1  ;;  %12113 = vst [vmem:[#allocation149_spill] sm:$0xff] %v8684_v31  ;;  %v2532_v16 = vmax.f32 %v2531_v62, %v8684_v31  ;;  %v2536_v35 = vmax.f32 %v2535_v46, %v8702_v57  ;;  %vm1993_vm3 = vcmp.eq.s32.totalorder %v8588_v10, %v7292_v48  ;;  %v8722_v4 = vpop.eup %5871  ;;  %v8736_v46 = vsel %vm1995_vm15, %v8419_v44, -1e+30  ;;  %v8738_v31 = vpop.f32.mrf.mxu1 }
 0x40c   :  { %12114 = vst [vmem:[#allocation150_spill] sm:$0xff] %v8692_v20  ;;  %12115 = vst [vmem:[#allocation151_spill] sm:$0xff] %v8702_v57  ;;  %v8714_v15 = vpop.permute.xlu0 %1756  ;;  %4244 = vmatmul.mubr.bf16.vlgmr.msra.gmra.mxu0 %v4083_v42  ;;  %v2540_v24 = vmax.f32 %v8692_v20, %v8708_v12  ;;  %v12117_v60 = vsub.f32 %v7826_v45, %v8315_v30  ;;  %v12118_v17 = vsub.f32 %v7847_v41, %v8321_v11 }
 0x40d   :  { %12116 = vst [vmem:[#allocation152_spill] sm:$0xff] %v8708_v12  ;;  %4251 = vmatprep.mubr.bf16.mxu0 %v4088_v14  ;;  %v3519_v62 = vadd.f32 %v8570_v28, %v8513_v27  ;;  %12119 = vst [vmem:[#allocation153_spill] sm:$0xff] %v8736_v46  ;;  %v12120_v45 = vsub.f32 %v12091_v21, %v8321_v11  ;;  %2533 = vmax.xlane.f32.xlu1 %v2532_v16  ;;  %v8752_v44 = vsel %vm1996_vm1, %v8445_v5, -1e+30  ;;  %v12122_v14 = vld [vmem:[#allocation35_spill] sm:$0xff]  ;;  %v12178_v12 = vld [vmem:[#allocation22_spill] sm:$0xff] }
 0x40e   :  { %v3089_v40 = vmul.f32 1.442695, %v12117_v60  ;;  %v3099_v42 = vmul.f32 1.442695, %v12118_v17  ;;  %3511 = vadd.xlane.f32.xlu0 %v8505_v34  ;;  %v3835_v41 = vmul.f32 %v8507_v32, %v8083_v58  ;;  %v3839_v27 = vmul.f32 %v8515_v0, %v8099_v50  ;;  %12121 = vst [vmem:[#allocation154_spill] sm:$0xff] %v8752_v44  ;;  %v12124_v34 = vld [vmem:[#allocation18_spill] sm:$0xff]  ;;  %v8770_v50 = vpop.f32.mrf.mxu0 }
 0x40f   :  { %v3101_v30 = vmul.f32 1.442695, %v12120_v45  ;;  %v8758_v21 = vsel %vm1990_vm2, %v12122_v14, -1e+30  ;;  %v3848_v16 = vmul.f32 %v8710_v7, %v12124_v34  ;;  %vm1994_vm4 = vcmp.eq.s32.totalorder %v8588_v10, %v7300_v39  ;;  %v8780_v45 = vpop.eup %5873  ;;  %v12127_v34 = vld [vmem:[#allocation14_spill] sm:$0xff] }
 0x410   :  { %12123 = vst [vmem:[#allocation35_spill] sm:$0xff] %v8758_v21  ;;  %v8768_v58 = vsel %vm1993_vm3, %v8441_v52, -1e+30  ;;  %v8772_v5 = vpop.permute.xlu0 %1762  ;;  %v2537_v13 = vmax.f32 %v2536_v35, %v8758_v21  ;;  %vm1997_vm5 = vcmp.eq.s32.totalorder %v8648_v3, %v7292_v48  ;;  %v2545_v17 = vmax.f32 %v8736_v46, %v8752_v44  ;;  %v12126_v52 = vld [vmem:[#allocation61_spill] sm:$0xff]  ;;  %v12243_v46 = vld [vmem:[#allocation58_spill] sm:$0xff] }
 0x411   :  { %12125 = vst [vmem:[#allocation18_spill] sm:$0xff] %v8768_v58  ;;  %v2541_v60 = vmax.f32 %v2540_v24, %v8768_v58  ;;  %v2761_v14 = vsub.f32 %v12126_v52, %v8321_v11  ;;  %v3844_v47 = vmul.f32 %v8722_v4, %v12127_v34  ;;  %v3528_v35 = vadd.f32 %v8611_v43, %v8595_v8  ;;  %v8789_v24 = vpop.f32.mrf.mxu1  ;;  %v12128_v58 = vld [vmem:[#allocation49_spill] sm:$0xff]  ;;  %v1110_v8 = vpop.f32.mrf.mxu0 }
 0x412   :  { %5879 = vpow2.f32 %v3099_v42  ;;  %vm2003_vm6 = vcmp.eq.s32.totalorder %v8714_v15, %v7276_v25  ;;  %vm2004_vm7 = vcmp.eq.s32.totalorder %v8714_v15, %v7274_v6  ;;  %3506 = vadd.xlane.f32.xlu1 %v8498_v22  ;;  %2538 = vmax.xlane.f32.xlu0 %v2537_v13  ;;  %v4087_v54 = vpack.c.bf16 %v3839_v27, %v3835_v41  ;;  %v12135_v13 = vld [vmem:[#allocation7_spill] sm:$0xff] }
 0x413   :  { %5881 = vpow2.f32 %v3101_v30  ;;  %v4092_v52 = vpack.c.bf16 %v3848_v16, %v3844_v47  ;;  %v8800_v34 = vsel %vm1994_vm4, %v12128_v58, -1e+30  ;;  %v8806_v42 = vsel %vm1997_vm5, %v8488_v51, -1e+30  ;;  %v12131_v30 = vld [vmem:[#allocation63_spill] sm:$0xff]  ;;  %v8831_v16 = vpop.f32.mrf.mxu1 }
 0x414   :  { %12129 = vst [vmem:[#allocation61_spill] sm:$0xff] %v8800_v34  ;;  %12130 = vst [vmem:[#allocation14_spill] sm:$0xff] %v8806_v42  ;;  %v8808_v43 = vpop.permute.xlu0 %1768  ;;  %4252 = vmatmul.mubr.bf16.gmra.mxu0 %v4087_v54  ;;  %v3520_v22 = vadd.f32 %v8584_v2, %v3519_v62  ;;  %v2542_v47 = vmax.f32 %v2541_v60, %v8800_v34  ;;  %vm1998_vm8 = vcmp.eq.s32.totalorder %v8648_v3, %v7300_v39  ;;  %v8829_v3 = vpop.eup %5875  ;;  %v12138_v54 = vld [vmem:[#allocation101_spill] sm:$0xff] }
 0x415   :  { %v2546_v10 = vmax.f32 %v2545_v17, %v8806_v42  ;;  %v2762_v41 = vsub.f32 %v12131_v30, %v8321_v11  ;;  %v3103_v27 = vmul.f32 1.442695, %v2761_v14  ;;  %4259 = vmatprep.mubr.bf16.mxu0 %v4092_v52  ;;  %v8821_v51 = vsel %vm2003_vm6, %v8528_v49, -1e+30  ;;  %v12134_v11 = vld [vmem:[#allocation17_spill] sm:$0xff] }
 0x416   :  { %12132 = vst [vmem:[#allocation49_spill] sm:$0xff] %v8821_v51  ;;  %v8827_v62 = vsel %vm2004_vm7, %v8572_v61, -1e+30  ;;  %5883 = vpow2.f32 %v3089_v40  ;;  %3521 = vadd.xlane.f32.xlu0 %v3520_v22  ;;  %2543 = vmax.xlane.f32.xlu1 %v2542_v47  ;;  %v3847_v58 = vmul.f32 %v8710_v7, %v12134_v11  ;;  %v3833_v49 = vmul.f32 %v8409_v33, %v12135_v13  ;;  %v12137_v61 = vld [vmem:[#allocation6_spill] sm:$0xff]  ;;  %v12139_v40 = vld [vmem:[#allocation8_spill] sm:$0xff]  ;;  %v8847_v47 = vpop.f32.mrf.mxu0  ;;  %v12141_v13 = vld [vmem:[#allocation3_spill] sm:$0xff] }
 0x417   :  { %12133 = vst [vmem:[#allocation63_spill] sm:$0xff] %v8827_v62  ;;  %v3529_v60 = vadd.f32 %v8630_v29, %v3528_v35  ;;  %v8839_v17 = vsel %vm1998_vm8, %v8517_v55, -1e+30  ;;  %v3829_v14 = vmul.f32 %v8405_v26, %v12137_v61  ;;  %v3856_v52 = vmul.f32 %v8780_v45, %v12138_v54  ;;  %v12140_v33 = vld [vmem:[#allocation12_spill] sm:$0xff]  ;;  %v12142_v54 = vld [vmem:[#allocation11_spill] sm:$0xff]  ;;  %v1461_v29 = vpop.f32.mrf.mxu1 }
 0x418   :  { %12136 = vst [vmem:[#allocation17_spill] sm:$0xff] %v8839_v17  ;;  %v3842_v22 = vmul.f32 %v8515_v0, %v12139_v40  ;;  %v648_v30 = vpop.permute.xlu0 %647  ;;  %v2547_v11 = vmax.f32 %v2546_v10, %v8839_v17  ;;  %v3843_v35 = vmul.f32 %v8722_v4, %v12140_v33  ;;  %vm2005_vm9 = vcmp.eq.s32.totalorder %v8714_v15, %v7292_v48 }
 0x419   :  { %v2555_v26 = vmax.f32 %v8821_v51, %v8827_v62  ;;  %5885 = vpow2.f32 %v3103_v27  ;;  %v3105_v55 = vmul.f32 1.442695, %v2762_v41  ;;  %4531 = vmatpush2.bf16.msra.mxu1 %v648_v30  ;;  %v3852_v61 = vmul.f32 %v8829_v3, %v12141_v13  ;;  %v8869_v13 = vpop.f32.mrf.mxu0  ;;  %v12232_v51 = vld [vmem:[#allocation50_spill] sm:$0xff] }
 0x41a   :  { %v3838_v40 = vmul.f32 %v8507_v32, %v12142_v54  ;;  %vm2011_vm10 = vcmp.eq.s32.totalorder %v8772_v5, %v7276_v25  ;;  %vm2012_vm11 = vcmp.eq.s32.totalorder %v8772_v5, %v7274_v6  ;;  %2548 = vmax.xlane.f32.xlu0 %v2547_v11  ;;  %v4091_v10 = vpack.c.bf16 %v3847_v58, %v3843_v35  ;;  %v12151_v35 = vld [vmem:[#allocation9_spill] sm:$0xff] }
 0x41b   :  { %v4085_v33 = vpack.c.bf16 %v3833_v49, %v3829_v14  ;;  %v4096_v34 = vpack.c.bf16 %v3856_v52, %v3852_v61  ;;  %v8865_v41 = vsel %vm2005_vm9, %v8675_v23, -1e+30  ;;  %v3538_v30 = vadd.f32 %v8673_v1, %v8665_v59  ;;  %v8886_v14 = vpop.eup %5877  ;;  %v12148_v52 = vld [vmem:[#allocation10_spill] sm:$0xff]  ;;  %v1609_v59 = vld [vmem:[%s11431_s3 + $0x138] sm:$0xff] }
 0x41c   :  { %v4090_v27 = vpack.c.bf16 %v3842_v22, %v3838_v40  ;;  %12143 = vst [vmem:[#allocation7_spill] sm:$0xff] %v8865_v41  ;;  %4260 = vmatmul.mubr.bf16.gmra.mxu0 %v4091_v10  ;;  %v3530_v54 = vadd.f32 %v8646_v56, %v3529_v60  ;;  %vm2006_vm12 = vcmp.eq.s32.totalorder %v8714_v15, %v7300_v39  ;;  %v8879_v23 = vsel %vm2011_vm10, %v8770_v50, -1e+30  ;;  %v1463_v60 = vpop.f32.mrf.mxu1  ;;  %v12147_v15 = vld [vmem:[#allocation100_spill] sm:$0xff]  ;;  %v1118_v10 = vpop.f32.mrf.mxu0 }
 0x41d   :  { %4533 = vmatmul.mubr.bf16.vlgmr.msra.gmra.mxu1 %v4085_v33  ;;  %v2556_v58 = vmax.f32 %v2555_v26, %v8865_v41  ;;  %4267 = vmatprep.mubr.bf16.mxu0 %v4096_v34  ;;  %12144 = vst [vmem:[#allocation6_spill] sm:$0xff] %v8879_v23  ;;  %v8884_v49 = vsel %vm2012_vm11, %v1110_v8, -1e+30  ;;  %12146 = vst [vmem:[#allocation8_spill] sm:$0xff] %v8886_v14  ;;  %5887 = vpow2.f32 %v3105_v55  ;;  %v8895_v50 = vsel %vm2006_vm12, %v8738_v31, -1e+30 }
 0x41e   :  { %4540 = vmatprep.mubr.bf16.mxu1 %v4090_v27  ;;  %12145 = vst [vmem:[#allocation101_spill] sm:$0xff] %v8884_v49  ;;  %3531 = vadd.xlane.f32.xlu0 %v3530_v54  ;;  %v3855_v34 = vmul.f32 %v8780_v45, %v12147_v15  ;;  %v3841_v22 = vmul.f32 %v8515_v0, %v12148_v52  ;;  %12150 = vst [vmem:[#allocation3_spill] sm:$0xff] %v8895_v50  ;;  %v12152_v26 = vld [vmem:[#allocation20_spill] sm:$0xff]  ;;  %v8913_v15 = vpop.f32.mrf.mxu1 }
 0x41f   :  { %v8892_v11 = vpop.eup %5879  ;;  %v3837_v8 = vmul.f32 %v8507_v32, %v12151_v35  ;;  %v3850_v61 = vmul.f32 %v8710_v7, %v12152_v26  ;;  %v3539_v55 = vadd.f32 %v8886_v14, %v3538_v30  ;;  %v2557_v33 = vmax.f32 %v2556_v58, %v8895_v50  ;;  %v12154_v27 = vld [vmem:[#allocation4_spill] sm:$0xff]  ;;  %v12155_v32 = vld [vmem:[#allocation13_spill] sm:$0xff] }
 0x420   :  { %12149 = vst [vmem:[#allocation12_spill] sm:$0xff] %v8892_v11  ;;  %v8902_v40 = vpop.eup %5881  ;;  %v3851_v0 = vmul.f32 %v8829_v3, %v12154_v27  ;;  %vm2013_vm13 = vcmp.eq.s32.totalorder %v8772_v5, %v7292_v48  ;;  %v2565_v31 = vmax.f32 %v8879_v23, %v8884_v49  ;;  %v3846_v54 = vmul.f32 %v8722_v4, %v12155_v32  ;;  %v1120_v32 = vpop.f32.mrf.mxu0  ;;  %v12226_v23 = vld [vmem:[#allocation46_spill] sm:$0xff] }
 0x421   :  { %12153 = vst [vmem:[#allocation11_spill] sm:$0xff] %v8902_v40  ;;  %vm2019_vm14 = vcmp.eq.s32.totalorder %v8808_v43, %v7276_v25  ;;  %vm2020_vm15 = vcmp.eq.s32.totalorder %v8808_v43, %v7274_v6  ;;  %v4089_v58 = vpack.c.bf16 %v3841_v22, %v3837_v8  ;;  %v8921_v26 = vsel %vm2013_vm13, %v1461_v29, -1e+30 }
 0x422   :  { %2558 = vmax.xlane.f32.xlu0 %v2557_v33  ;;  %v4095_v30 = vpack.c.bf16 %v3855_v34, %v3851_v0  ;;  %v4094_v35 = vpack.c.bf16 %v3850_v61, %v3846_v54  ;;  %12157 = vst [vmem:[#allocation10_spill] sm:$0xff] %v8921_v26  ;;  %v3548_v27 = vadd.f32 %v8902_v40, %v8892_v11  ;;  %v8935_v29 = vsel %vm2019_vm14, %v1118_v10, -1e+30  ;;  %v8944_v61 = vpop.f32.mrf.mxu1  ;;  %v12163_v0 = vld [vmem:[#allocation104_spill] sm:$0xff] }
 0x423   :  { %v8919_v52 = vpop.eup %5883  ;;  %vm2014_vm1 = vcmp.eq.s32.totalorder %v8772_v5, %v7300_v39  ;;  %v2566_v34 = vmax.f32 %v2565_v31, %v8921_v26  ;;  %12158 = vst [vmem:[#allocation9_spill] sm:$0xff] %v8935_v29  ;;  %v8940_v22 = vsel %vm2020_vm15, %v1120_v32, -1e+30  ;;  %v3858_v10 = vmul.f32 %v8780_v45, %v12163_v0  ;;  %v1613_v0 = vld [vmem:[%s11431_s3 + $0x158] sm:$0xff] }
 0x424   :  { %12156 = vst [vmem:[#allocation100_spill] sm:$0xff] %v8919_v52  ;;  %4268 = vmatmul.mubr.bf16.gmra.mxu0 %v4095_v30  ;;  %v3540_v14 = vadd.f32 %v8919_v52, %v3539_v55  ;;  %12159 = vst [vmem:[#allocation20_spill] sm:$0xff] %v8940_v22  ;;  %v12161_v55 = vld [vmem:[#allocation21_spill] sm:$0xff]  ;;  %v8948_v33 = vsel %vm2014_vm1, %v1463_v60, -1e+30  ;;  %v1611_v30 = vld [vmem:[%s11431_s3 + $0x148] sm:$0xff]  ;;  %vm2021_vm2 = vcmp.eq.s32.totalorder %v8808_v43, %v7292_v48 }
 0x425   :  { %4541 = vmatmul.mubr.bf16.gmra.mxu1 %v4089_v58  ;;  %v3849_v5 = vmul.f32 %v8710_v7, %v12161_v55  ;;  %12162 = vst [vmem:[#allocation13_spill] sm:$0xff] %v8948_v33  ;;  %v2567_v54 = vmax.f32 %v2566_v34, %v8948_v33  ;;  %v12164_v58 = vld [vmem:[#allocation15_spill] sm:$0xff]  ;;  %v12165_v7 = vld [vmem:[#allocation96_spill] sm:$0xff]  ;;  %vm2022_vm3 = vcmp.eq.s32.totalorder %v8808_v43, %v7300_v39 }
 0x426   :  { %4548 = vmatprep.mubr.bf16.mxu1 %v4094_v35  ;;  %v8942_v8 = vpop.eup %5885  ;;  %3541 = vadd.xlane.f32.xlu0 %v3540_v14  ;;  %v3845_v14 = vmul.f32 %v8722_v4, %v12164_v58  ;;  %v3854_v60 = vmul.f32 %v8829_v3, %v12165_v7  ;;  %v1471_v35 = vpop.f32.mrf.mxu1  ;;  %v12170_v7 = vld [vmem:[#allocation95_spill] sm:$0xff]  ;;  %v12184_v33 = vld [vmem:[#allocation24_spill] sm:$0xff] }
 0x427   :  { %12160 = vst [vmem:[#allocation4_spill] sm:$0xff] %v8942_v8  ;;  %1753 = vperm.xlu1 %5679, %v1609_v59   ;;  %v3549_v31 = vadd.f32 %v8942_v8, %v3548_v27  ;;  %v2575_v59 = vmax.f32 %v8935_v29, %v8940_v22  ;;  %v8967_v55 = vsel %vm2021_vm2, %v1471_v35, -1e+30  ;;  %v3853_v43 = vmul.f32 %v8829_v3, %v12170_v7  ;;  %v1619_v35 = vld [vmem:[%s11431_s3 + $0x188] sm:$0xff]  ;;  %v1621_v3 = vld [vmem:[%s11431_s3 + $0x198] sm:$0xff] }
 0x428   :  { %v4093_v27 = vpack.c.bf16 %v3849_v5, %v3845_v14  ;;  %v4098_v34 = vpack.c.bf16 %v3858_v10, %v3854_v60  ;;  %12167 = vst [vmem:[#allocation104_spill] sm:$0xff] %v8967_v55  ;;  %v1473_v5 = vpop.f32.mrf.mxu1  ;;  %v1615_v14 = vld [vmem:[%s11431_s3 + $0x168] sm:$0xff]  ;;  %v8989_v60 = vpop.f32.mrf.mxu0  ;;  %v12185_v29 = vld [vmem:[#allocation33_spill] sm:$0xff] }
 0x429   :  { %v2576_v58 = vmax.f32 %v2575_v59, %v8967_v55  ;;  %v12172_v7 = vld [vmem:[#allocation111_spill] sm:$0xff] }
 0x42a   :  { %2568 = vmax.xlane.f32.xlu0 %v2567_v54  ;;  %v8965_v32 = vpop.eup %5887  ;;  %v12168_v54 = vld [vmem:[#allocation102_spill] sm:$0xff] }
 0x42b   :  { %12166 = vst [vmem:[#allocation21_spill] sm:$0xff] %v8965_v32  ;;  %1759 = vperm.xlu1 %5679, %v1611_v30   ;;  %v3550_v4 = vadd.f32 %v8965_v32, %v3549_v31  ;;  %v3857_v10 = vmul.f32 %v8780_v45, %v12168_v54  ;;  %v8978_v30 = vsel %vm2022_vm3, %v1473_v5, -1e+30  ;;  %v1617_v45 = vld [vmem:[%s11431_s3 + $0x178] sm:$0xff]  ;;  %v9009_v54 = vpop.f32.mrf.mxu1 }
 0x42c   :  { %12169 = vst [vmem:[#allocation15_spill] sm:$0xff] %v8978_v30  ;;  %v2577_v31 = vmax.f32 %v2576_v58, %v8978_v30  ;;  %v1625_v5 = vld [vmem:[%s11431_s3 + $0x1b8] sm:$0xff] }
 0x42d   :  { %4549 = vmatmul.mubr.bf16.gmra.mxu1 %v4093_v27  ;;  %v4097_v59 = vpack.c.bf16 %v3857_v10, %v3853_v43  ;;  %v8994_v27 = vpop.f32.mrf.mxu0  ;;  %v12173_v43 = vld [vmem:[#allocation39_spill] sm:$0xff]  ;;  %v12183_v30 = vld [vmem:[#allocation109_spill] sm:$0xff] }
 0x42e   :  { %4556 = vmatprep.mubr.bf16.mxu1 %v4098_v34  ;;  %3551 = vadd.xlane.f32.xlu0 %v3550_v4 }
 0x42f   :  { %1765 = vperm.xlu1 %5679, %v1613_v0   ;;  %v8999_v34 = vpop.f32.mrf.mxu0  ;;  %v1623_v0 = vld [vmem:[%s11431_s3 + $0x1a8] sm:$0xff] }
 0x431   :  { %v9004_v58 = vpop.f32.mrf.mxu0 }
 0x432   :  { %2578 = vmax.xlane.f32.xlu0 %v2577_v31  ;;  %v1616_v31 = vld [vmem:[%s11431_s3 + $0x170] sm:$0xff] }
 0x433   :  { %1771 = vperm.xlu1 %5679, %v1615_v14   ;;  %v9014_v14 = vpop.f32.mrf.mxu0 }
 0x434   :  { %12171 = vst [vmem:[#allocation96_spill] sm:$0xff] %v9014_v14  ;;  %v12181_v14 = vld [vmem:[#allocation26_spill] sm:$0xff] }
 0x435   :  { %4557 = vmatmul.mubr.bf16.gmra.mxu1 %v4097_v59  ;;  %v2731_v59 = vsub.f32 %v12173_v43, %v12172_v7  ;;  %v12176_v43 = vld [vmem:[#allocation40_spill] sm:$0xff] }
 0x437   :  { %1777 = vperm.xlu1 %5679, %v1617_v45   ;;  %v9018_v45 = vpop.f32.mrf.mxu1  ;;  %v3043_v8 = vmul.f32 1.442695, %v2731_v59  ;;  %v1622_v59 = vld [vmem:[%s11431_s3 + $0x1a0] sm:$0xff] }
 0x439   :  { %v3487_v4 = vpop.xlane.xlu1 %3486  ;;  %v9027_v11 = vpop.f32.mrf.mxu1 }
 0x43a   :  { %5889 = vrcp.f32 %v3487_v4  ;;  %v1618_v4 = vld [vmem:[%s11431_s3 + $0x180] sm:$0xff] }
 0x43b   :  { %1783 = vperm.xlu1 %5679, %v1619_v35   ;;  %v12174_v35 = vld [vmem:[#allocation37_spill] sm:$0xff]  ;;  %v9036_v40 = vpop.f32.mrf.mxu1 }
 0x43f   :  { %1789 = vperm.xlu1 %5679, %v1621_v3   ;;  %v2732_v3 = vsub.f32 %v12174_v35, %v12172_v7  ;;  %v2733_v35 = vsub.f32 %v12176_v43, %v12172_v7  ;;  %v12179_v43 = vld [vmem:[#allocation25_spill] sm:$0xff] }
 0x441   :  { %v3047_v1 = vmul.f32 1.442695, %v2733_v35 }
 0x443   :  { %1795 = vperm.xlu1 %5679, %v1623_v0   ;;  %v9025_v0 = vpop.f32.mrf.mxu0 }
 0x444   :  { %12175 = vst [vmem:[#allocation102_spill] sm:$0xff] %v9025_v0 }
 0x445   :  { %v3492_v10 = vpop.xlane.xlu0 %3491 }
 0x446   :  { %5891 = vrcp.f32 %v3492_v10  ;;  %v1620_v10 = vld [vmem:[%s11431_s3 + $0x190] sm:$0xff] }
 0x447   :  { %1801 = vperm.xlu1 %5679, %v1625_v5   ;;  %v3045_v5 = vmul.f32 1.442695, %v2732_v3  ;;  %v5890_v32 = vpop.eup %5889  ;;  %5893 = vpow2.f32 %v3043_v8  ;;  %v12180_v8 = vld [vmem:[#allocation2_spill] sm:$0xff] }
 0x448   :  { %1774 = vperm.xlu0 %5680, %v1616_v31   ;;  %v9032_v31 = vpop.f32.mrf.mxu0  ;;  %v3860_v20 = vmul.f32 %v5890_v32, %v12178_v12  ;;  %v3862_v0 = vmul.f32 %v5890_v32, %v12179_v43  ;;  %v3861_v28 = vmul.f32 %v5890_v32, %v12181_v14  ;;  %v1624_v12 = vld [vmem:[%s11431_s3 + $0x1b0] sm:$0xff] }
 0x449   :  { %5895 = vpow2.f32 %v3045_v5  ;;  %v12182_v5 = vld [vmem:[#allocation28_spill] sm:$0xff] }
 0x44a   :  { %v9041_v3 = vpop.f32.mrf.mxu0  ;;  %5897 = vpow2.f32 %v3047_v1  ;;  %v1628_v1 = vld [vmem:[%s11431_s3 + $0x1d0] sm:$0xff] }
 0x44c   :  { %1780 = vperm.xlu0 %5680, %v1618_v4   ;;  %v12177_v4 = vld [vmem:[#allocation41_spill] sm:$0xff]  ;;  %v9058_v35 = vpop.f32.mrf.mxu0 }
 0x44d   :  { %v2734_v52 = vsub.f32 %v12177_v4, %v12172_v7  ;;  %v9053_v7 = vpop.f32.mrf.mxu1  ;;  %12187 = vst [vmem:[#allocation111_spill] sm:$0xff] %v9058_v35 }
 0x44e   :  { %12186 = vst [vmem:[#allocation95_spill] sm:$0xff] %v9053_v7 }
 0x450   :  { %1786 = vperm.xlu0 %5680, %v1620_v10   ;;  %v3859_v10 = vmul.f32 %v5890_v32, %v12180_v8  ;;  %v12193_v8 = vld [vmem:[#allocation117_spill] sm:$0xff] }
 0x453   :  { %v5892_v56 = vpop.eup %5891 }
 0x454   :  { %1792 = vperm.xlu0 %5680, %v1622_v59   ;;  %v3864_v2 = vmul.f32 %v5892_v56, %v12182_v5  ;;  %v3866_v55 = vmul.f32 %v5892_v56, %v12183_v30  ;;  %v3863_v22 = vmul.f32 %v5892_v56, %v12184_v33  ;;  %v3865_v26 = vmul.f32 %v5892_v56, %v12185_v29  ;;  %v9060_v30 = vpop.f32.mrf.mxu1  ;;  %v1626_v56 = vld [vmem:[%s11431_s3 + $0x1c0] sm:$0xff]  ;;  %v9065_v29 = vpop.f32.mrf.mxu0 }
 0x455   :  { %v3049_v59 = vmul.f32 1.442695, %v2734_v52  ;;  %12188 = vst [vmem:[#allocation39_spill] sm:$0xff] %v9060_v30  ;;  %12189 = vst [vmem:[#allocation37_spill] sm:$0xff] %v9065_v29 }
 0x456   :  { %v4100_v4 = vpack.c.bf16 %v3864_v2, %v3860_v20  ;;  %v4102_v43 = vpack.c.bf16 %v3866_v55, %v3862_v0  ;;  %v4099_v32 = vpack.c.bf16 %v3863_v22, %v3859_v10  ;;  %v4101_v14 = vpack.c.bf16 %v3865_v26, %v3861_v28  ;;  %v9067_v2 = vpop.eup %5893  ;;  %v9069_v28 = vpop.f32.mrf.mxu1  ;;  %v1630_v22 = vld [vmem:[%s11431_s3 + $0x1e0] sm:$0xff] }
 0x457   :  { %5899 = vpow2.f32 %v3049_v59  ;;  %12190 = vst [vmem:[#allocation40_spill] sm:$0xff] %v9067_v2  ;;  %v9074_v20 = vpop.eup %5895  ;;  %v9076_v52 = vpop.f32.mrf.mxu0  ;;  %v12194_v10 = vld [vmem:[#allocation66_spill] sm:$0xff] }
 0x458   :  { %1798 = vperm.xlu0 %5680, %v1624_v12   ;;  %4275 = vmatprep.mubr.bf16.mxu0 %v4100_v4  ;;  %12191 = vst [vmem:[#allocation41_spill] sm:$0xff] %v9074_v20  ;;  %v9078_v26 = vpop.f32.mrf.mxu1  ;;  %v3513_v33 = vadd.f32 %v9074_v20, %v9067_v2  ;;  %v9087_v0 = vpop.eup %5897  ;;  %v2767_v5 = vsub.f32 %v12194_v10, %v12193_v8  ;;  %v12196_v4 = vld [vmem:[#allocation64_spill] sm:$0xff] }
 0x459   :  { %4564 = vmatprep.mubr.bf16.mxu1 %v4102_v43  ;;  %4276 = vmatmul.mubr.bf16.gmra.mxu0 %v4099_v32  ;;  %v9085_v55 = vpop.f32.mrf.mxu0  ;;  %12192 = vst [vmem:[#allocation22_spill] sm:$0xff] %v9087_v0  ;;  %v2768_v43 = vsub.f32 %v12196_v4, %v12193_v8  ;;  %v1632_v32 = vld [vmem:[%s11431_s3 + $0x1f0] sm:$0xff]  ;;  %v12201_v4 = vld [vmem:[#allocation69_spill] sm:$0xff] }
 0x45a   :  { %4565 = vmatmul.mubr.bf16.gmra.mxu1 %v4101_v14  ;;  %v9091_v12 = vpop.f32.mrf.mxu1  ;;  %v3514_v14 = vadd.f32 %v9087_v0, %v3513_v33  ;;  %v2769_v29 = vsub.f32 %v12201_v4, %v12193_v8  ;;  %v12224_v20 = vld [vmem:[#allocation44_spill] sm:$0xff] }
 0x45b   :  { %12195 = vst [vmem:[#allocation25_spill] sm:$0xff] %v9091_v12  ;;  %v9099_v59 = vpop.f32.mrf.mxu0 }
 0x45c   :  { %1804 = vperm.xlu0 %5680, %v1626_v56   ;;  %12197 = vst [vmem:[#allocation2_spill] sm:$0xff] %v9099_v59  ;;  %v9103_v30 = vpop.f32.mrf.mxu1  ;;  %v3119_v59 = vmul.f32 1.442695, %v2769_v29 }
 0x45d   :  { %12199 = vst [vmem:[#allocation28_spill] sm:$0xff] %v9103_v30  ;;  %v9106_v12 = vpop.f32.mrf.mxu0 }
 0x45e   :  { %12200 = vst [vmem:[#allocation109_spill] sm:$0xff] %v9106_v12  ;;  %v9110_v35 = vpop.f32.mrf.mxu1 }
 0x45f   :  { %12202 = vst [vmem:[#allocation24_spill] sm:$0xff] %v9110_v35  ;;  %v9112_v33 = vpop.f32.mrf.mxu0 }
 0x460   :  { %1810 = vperm.xlu0 %5680, %v1628_v1   ;;  %v3115_v1 = vmul.f32 1.442695, %v2767_v5  ;;  %12203 = vst [vmem:[#allocation33_spill] sm:$0xff] %v9112_v33  ;;  %v12204_v5 = vld [vmem:[#allocation71_spill] sm:$0xff]  ;;  %v9116_v30 = vpop.f32.mrf.mxu1  ;;  %v12285_v33 = vld [vmem:[#allocation112_spill] sm:$0xff] }
 0x461   :  { %12205 = vst [vmem:[#allocation117_spill] sm:$0xff] %v9116_v30 }
 0x462   :  { %5901 = vpow2.f32 %v3115_v1  ;;  %v9120_v12 = vpop.f32.mrf.mxu1 }
 0x463   :  { %12207 = vst [vmem:[#allocation64_spill] sm:$0xff] %v9120_v12 }
 0x464   :  { %1816 = vperm.xlu0 %5680, %v1630_v22   ;;  %v9101_v56 = vpop.eup %5899  ;;  %v3117_v22 = vmul.f32 1.442695, %v2768_v43  ;;  %v9118_v43 = vpop.f32.mrf.mxu0 }
 0x465   :  { %12198 = vst [vmem:[#allocation26_spill] sm:$0xff] %v9101_v56  ;;  %v3515_v10 = vadd.f32 %v9101_v56, %v3514_v14  ;;  %12206 = vst [vmem:[#allocation66_spill] sm:$0xff] %v9118_v43  ;;  %v12223_v56 = vld [vmem:[#allocation114_spill] sm:$0xff] }
 0x466   :  { %5903 = vpow2.f32 %v3117_v22  ;;  %v9122_v4 = vpop.f32.mrf.mxu0  ;;  %v9126_v22 = vpop.f32.mrf.mxu1 }
 0x467   :  { %5905 = vpow2.f32 %v3119_v59  ;;  %12208 = vst [vmem:[#allocation69_spill] sm:$0xff] %v9122_v4  ;;  %12210 = vst [vmem:[#allocation155_spill] sm:$0xff] %v9126_v22 }
 0x468   :  { %1822 = vperm.xlu0 %5680, %v1632_v32   ;;  %v2770_v32 = vsub.f32 %v12204_v5, %v12193_v8  ;;  %v9130_v7 = vpop.f32.mrf.mxu0  ;;  %v9132_v29 = vpop.f32.mrf.mxu1 }
 0x469   :  { %12212 = vst [vmem:[#allocation157_spill] sm:$0xff] %v9130_v7  ;;  %12213 = vst [vmem:[#allocation158_spill] sm:$0xff] %v9132_v29 }
 0x46a   :  { %v3121_v14 = vmul.f32 1.442695, %v2770_v32  ;;  %v9136_v59 = vpop.f32.mrf.mxu0  ;;  %v9140_v32 = vpop.f32.mrf.mxu1 }
 0x46b   :  { %3516 = vadd.xlane.f32.xlu1 %v3515_v10  ;;  %12214 = vst [vmem:[#allocation159_spill] sm:$0xff] %v9136_v59  ;;  %12216 = vst [vmem:[#allocation161_spill] sm:$0xff] %v9140_v32 }
 0x46c   :  { %5907 = vpow2.f32 %v3121_v14  ;;  %v9143_v4 = vpop.f32.mrf.mxu0  ;;  %v9147_v12 = vpop.f32.mrf.mxu1 }
 0x46d   :  { %12217 = vst [vmem:[#allocation162_spill] sm:$0xff] %v9143_v4  ;;  %12219 = vst [vmem:[#allocation164_spill] sm:$0xff] %v9147_v12  ;;  %v2741_v12 = vsub.f32 %v12226_v23, %v12223_v56  ;;  %v12235_v23 = vld [vmem:[#allocation48_spill] sm:$0xff] }
 0x46e   :  { %v9150_v0 = vpop.f32.mrf.mxu0 }
 0x46f   :  { %v9124_v1 = vpop.eup %5901  ;;  %12220 = vst [vmem:[#allocation165_spill] sm:$0xff] %v9150_v0  ;;  %v3063_v62 = vmul.f32 1.442695, %v2741_v12  ;;  %v12237_v12 = vld [vmem:[#allocation116_spill] sm:$0xff] }
 0x470   :  { %12209 = vst [vmem:[#allocation71_spill] sm:$0xff] %v9124_v1  ;;  %v9156_v2 = vpop.f32.mrf.mxu0  ;;  %v2757_v4 = vsub.f32 %v12243_v46, %v12237_v12  ;;  %v12249_v46 = vld [vmem:[#allocation62_spill] sm:$0xff] }
 0x471   :  { %12222 = vst [vmem:[#allocation167_spill] sm:$0xff] %v9156_v2 }
 0x473   :  { %v9128_v10 = vpop.eup %5903 }
 0x474   :  { %12211 = vst [vmem:[#allocation156_spill] sm:$0xff] %v9128_v10  ;;  %v3558_v8 = vadd.f32 %v9128_v10, %v9124_v1  ;;  %v9138_v5 = vpop.eup %5905  ;;  %v9152_v1 = vpop.f32.mrf.mxu1 }
 0x475   :  { %12215 = vst [vmem:[#allocation160_spill] sm:$0xff] %v9138_v5  ;;  %12221 = vst [vmem:[#allocation166_spill] sm:$0xff] %v9152_v1  ;;  %v9154_v10 = vpop.xlane.xlu0 %2518 }
 0x476   :  { %v3559_v14 = vadd.f32 %v9138_v5, %v3558_v8  ;;  %v2739_v8 = vsub.f32 %v12224_v20, %v12223_v56  ;;  %v12225_v5 = vld [vmem:[#allocation42_spill] sm:$0xff]  ;;  %v9164_v50 = vpop.f32.mrf.mxu1  ;;  %v12231_v20 = vld [vmem:[#allocation115_spill] sm:$0xff] }
 0x477   :  { %v2740_v49 = vsub.f32 %v12225_v5, %v12223_v56  ;;  %12227 = vst [vmem:[#allocation114_spill] sm:$0xff] %v9164_v50  ;;  %v2747_v17 = vsub.f32 %v12232_v51, %v12231_v20 }
 0x478   :  { %v9174_v5 = vpop.f32.mrf.mxu1 }
 0x479   :  { %v9145_v22 = vpop.eup %5907  ;;  %v3061_v0 = vmul.f32 1.442695, %v2740_v49  ;;  %v3502_v41 = vpop.xlane.xlu0 %3501  ;;  %12233 = vst [vmem:[#allocation46_spill] sm:$0xff] %v9174_v5  ;;  %v3075_v51 = vmul.f32 1.442695, %v2747_v17 }
 0x47a   :  { %12218 = vst [vmem:[#allocation163_spill] sm:$0xff] %v9145_v22  ;;  %v3560_v7 = vadd.f32 %v9145_v22, %v3559_v14  ;;  %v9166_v14 = vpop.f32.mrf.mxu0  ;;  %v12229_v22 = vld [vmem:[#allocation47_spill] sm:$0xff]  ;;  %v9186_v5 = vpop.f32.mrf.mxu1 }
 0x47b   :  { %12228 = vst [vmem:[#allocation44_spill] sm:$0xff] %v9166_v14  ;;  %v2742_v1 = vsub.f32 %v12229_v22, %v12223_v56  ;;  %v2748_v14 = vsub.f32 %v12235_v23, %v12231_v20  ;;  %v12236_v56 = vld [vmem:[#allocation52_spill] sm:$0xff]  ;;  %12239 = vst [vmem:[#allocation115_spill] sm:$0xff] %v9186_v5 }
 0x47c   :  { %v9176_v42 = vpop.f32.mrf.mxu0  ;;  %v2749_v49 = vsub.f32 %v12236_v56, %v12231_v20  ;;  %v9198_v5 = vpop.f32.mrf.mxu1 }
 0x47d   :  { %12234 = vst [vmem:[#allocation47_spill] sm:$0xff] %v9176_v42  ;;  %v3077_v23 = vmul.f32 1.442695, %v2748_v14  ;;  %12245 = vst [vmem:[#allocation52_spill] sm:$0xff] %v9198_v5  ;;  %v3095_v14 = vmul.f32 1.442695, %v2757_v4 }
 0x47e   :  { %v9190_v44 = vpop.f32.mrf.mxu0  ;;  %v3079_v56 = vmul.f32 1.442695, %v2749_v49 }
 0x47f   :  { %12241 = vst [vmem:[#allocation50_spill] sm:$0xff] %v9190_v44 }
 0x487   :  { %3561 = vadd.xlane.f32.xlu0 %v3560_v7  ;;  %v3059_v7 = vmul.f32 1.442695, %v2739_v8  ;;  %v3065_v8 = vmul.f32 1.442695, %v2742_v1 }
 0x489   :  { %5909 = vpow2.f32 %v3059_v7  ;;  %v12240_v7 = vld [vmem:[#allocation54_spill] sm:$0xff] }
 0x48a   :  { %5911 = vpow2.f32 %v3061_v0  ;;  %v2756_v42 = vsub.f32 %v12240_v7, %v12237_v12  ;;  %v12242_v0 = vld [vmem:[#allocation53_spill] sm:$0xff]  ;;  %v12246_v7 = vld [vmem:[#allocation59_spill] sm:$0xff] }
 0x48b   :  { %5913 = vpow2.f32 %v3063_v62  ;;  %v2750_v1 = vsub.f32 %v12242_v0, %v12231_v20  ;;  %v2758_v44 = vsub.f32 %v12246_v7, %v12237_v12  ;;  %v9202_v20 = vpop.f32.mrf.mxu0 }
 0x48c   :  { %5915 = vrcp.f32 %v3502_v41  ;;  %v3093_v59 = vmul.f32 1.442695, %v2756_v42  ;;  %12247 = vst [vmem:[#allocation116_spill] sm:$0xff] %v9202_v20  ;;  %v12253_v42 = vld [vmem:[#allocation65_spill] sm:$0xff] }
 0x48d   :  { %5917 = vpow2.f32 %v3065_v8  ;;  %v3081_v41 = vmul.f32 1.442695, %v2750_v1  ;;  %v12248_v8 = vld [vmem:[#allocation118_spill] sm:$0xff]  ;;  %v9214_v1 = vpop.f32.mrf.mxu0 }
 0x48e   :  { %v9170_v2 = vpop.xlane.xlu1 %2523  ;;  %v2763_v49 = vsub.f32 %v12249_v46, %v12248_v8  ;;  %12254 = vst [vmem:[#allocation53_spill] sm:$0xff] %v9214_v1 }
 0x48f   :  { %12230 = vst [vmem:[#allocation42_spill] sm:$0xff] %v9170_v2  ;;  %v12238_v2 = vld [vmem:[#allocation56_spill] sm:$0xff]  ;;  %v9230_v5 = vpop.f32.mrf.mxu0 }
 0x490   :  { %v2755_v32 = vsub.f32 %v12238_v2, %v12237_v12  ;;  %v9210_v12 = vpop.f32.mrf.mxu1 }
 0x491   :  { %12252 = vst [vmem:[#allocation54_spill] sm:$0xff] %v9210_v12 }
 0x492   :  { %v3497_v22 = vpop.xlane.xlu1 %3496  ;;  %v3091_v17 = vmul.f32 1.442695, %v2755_v32  ;;  %v12251_v32 = vld [vmem:[#allocation60_spill] sm:$0xff] }
 0x493   :  { %v9182_v50 = vpop.xlane.xlu0 %2528  ;;  %5919 = vrcp.f32 %v3497_v22  ;;  %v2764_v22 = vsub.f32 %v12251_v32, %v12248_v8 }
 0x494   :  { %5921 = vpow2.f32 %v3075_v51  ;;  %v3097_v51 = vmul.f32 1.442695, %v2758_v44 }
 0x495   :  { %5923 = vpow2.f32 %v3077_v23  ;;  %v2765_v23 = vsub.f32 %v12253_v42, %v12248_v8  ;;  %v3109_v44 = vmul.f32 1.442695, %v2764_v22 }
 0x496   :  { %v9196_v62 = vpop.xlane.xlu1 %2533  ;;  %5925 = vpow2.f32 %v3079_v56  ;;  %v9216_v4 = vpop.eup %5909  ;;  %v12256_v56 = vld [vmem:[#allocation67_spill] sm:$0xff] }
 0x497   :  { %v3512_v2 = vpop.xlane.xlu0 %3511  ;;  %12244 = vst [vmem:[#allocation48_spill] sm:$0xff] %v9196_v62  ;;  %5927 = vpow2.f32 %v3091_v17  ;;  %12255 = vst [vmem:[#allocation58_spill] sm:$0xff] %v9216_v4  ;;  %v2766_v7 = vsub.f32 %v12256_v56, %v12248_v8  ;;  %v3107_v17 = vmul.f32 1.442695, %v2763_v49  ;;  %v9222_v32 = vpop.eup %5911  ;;  %v3111_v42 = vmul.f32 1.442695, %v2765_v23 }
 0x498   :  { %5929 = vpow2.f32 %v3093_v59  ;;  %12258 = vst [vmem:[#allocation118_spill] sm:$0xff] %v9222_v32  ;;  %v9224_v59 = vpop.f32.mrf.mxu1  ;;  %12262 = vst [vmem:[#allocation67_spill] sm:$0xff] %v9230_v5  ;;  %v12263_v49 = vld [vmem:[#allocation120_spill] sm:$0xff]  ;;  %v12264_v56 = vld [vmem:[#allocation70_spill] sm:$0xff] }
 0x499   :  { %5931 = vpow2.f32 %v3081_v41  ;;  %12259 = vst [vmem:[#allocation62_spill] sm:$0xff] %v9224_v59  ;;  %v9228_v41 = vpop.eup %5913  ;;  %v3113_v8 = vmul.f32 1.442695, %v2766_v7  ;;  %v2771_v1 = vsub.f32 %v12264_v56, %v12263_v49  ;;  %v12269_v7 = vld [vmem:[#allocation73_spill] sm:$0xff]  ;;  %v9248_v56 = vpop.f32.mrf.mxu0  ;;  %v12272_v5 = vld [vmem:[#allocation30_spill] sm:$0xff] }
 0x49a   :  { %5933 = vpow2.f32 %v3095_v14  ;;  %12261 = vst [vmem:[#allocation65_spill] sm:$0xff] %v9228_v41  ;;  %v5916_v14 = vpop.eup %5915  ;;  %v9240_v23 = vpop.f32.mrf.mxu1  ;;  %12271 = vst [vmem:[#allocation73_spill] sm:$0xff] %v9248_v56 }
 0x49b   :  { %v3507_v0 = vpop.xlane.xlu1 %3506  ;;  %v9206_v62 = vpop.xlane.xlu0 %2538  ;;  %5935 = vrcp.f32 %v3512_v2  ;;  %v3523_v2 = vadd.f32 %v9222_v32, %v9216_v4  ;;  %12267 = vst [vmem:[#allocation168_spill] sm:$0xff] %v9240_v23  ;;  %v12273_v4 = vld [vmem:[#allocation106_spill] sm:$0xff]  ;;  %v3123_v21 = vmul.f32 1.442695, %v2771_v1  ;;  %v12283_v1 = vld [vmem:[#allocation119_spill] sm:$0xff] }
 0x49c   :  { %12250 = vst [vmem:[#allocation56_spill] sm:$0xff] %v9206_v62  ;;  %5937 = vpow2.f32 %v3097_v51  ;;  %v9238_v22 = vpop.eup %5917  ;;  %v3872_v32 = vmul.f32 %v5916_v14, %v12273_v4 }
 0x49d   :  { %5939 = vrcp.f32 %v3507_v0  ;;  %12266 = vst [vmem:[#allocation70_spill] sm:$0xff] %v9238_v22  ;;  %v12268_v0 = vld [vmem:[#allocation68_spill] sm:$0xff]  ;;  %v3524_v56 = vadd.f32 %v9228_v41, %v3523_v2  ;;  %v3873_v2 = vmul.f32 %v5916_v14, %v12285_v33 }
 0x49e   :  { %5941 = vpow2.f32 %v3107_v17  ;;  %v2773_v17 = vsub.f32 %v12269_v7, %v12263_v49 }
 0x49f   :  { %v9220_v46 = vpop.xlane.xlu0 %3521  ;;  %v9226_v20 = vpop.xlane.xlu1 %2543  ;;  %5943 = vpow2.f32 %v3109_v44 }
 0x4a0   :  { %12257 = vst [vmem:[#allocation59_spill] sm:$0xff] %v9220_v46  ;;  %12260 = vst [vmem:[#allocation60_spill] sm:$0xff] %v9226_v20  ;;  %v5920_v51 = vpop.eup %5919  ;;  %5945 = vpow2.f32 %v3111_v42  ;;  %v2772_v20 = vsub.f32 %v12268_v0, %v12263_v49  ;;  %v12276_v42 = vld [vmem:[#allocation75_spill] sm:$0xff] }
 0x4a1   :  { %v9246_v59 = vpop.eup %5921  ;;  %v3868_v46 = vmul.f32 %v5920_v51, %v12272_v5  ;;  %v3870_v44 = vmul.f32 %v5920_v51, %v8461_v19  ;;  %5947 = vpow2.f32 %v3113_v8  ;;  %v2774_v0 = vsub.f32 %v12276_v42, %v12263_v49  ;;  %v12279_v19 = vld [vmem:[#allocation34_spill] sm:$0xff]  ;;  %v9269_v8 = vpop.f32.mrf.mxu1 }
 0x4a2   :  { %12270 = vst [vmem:[#allocation68_spill] sm:$0xff] %v9246_v59  ;;  %v9254_v23 = vpop.eup %5923  ;;  %v3867_v9 = vmul.f32 %v5920_v51, %v12279_v19  ;;  %12282 = vst [vmem:[#allocation34_spill] sm:$0xff] %v9269_v8  ;;  %v3125_v49 = vmul.f32 1.442695, %v2772_v20  ;;  %v12284_v42 = vld [vmem:[#allocation74_spill] sm:$0xff]  ;;  %5949 = vpow2.f32 %v3123_v21 }
 0x4a3   :  { %v9234_v12 = vpop.xlane.xlu0 %2548  ;;  %12275 = vst [vmem:[#allocation30_spill] sm:$0xff] %v9254_v23  ;;  %v9258_v7 = vpop.permute.xlu1 %1753  ;;  %v4104_v4 = vpack.c.bf16 %v3872_v32, %v3868_v46  ;;  %v2775_v43 = vsub.f32 %v12284_v42, %v12283_v1 }
 0x4a4   :  { %12265 = vst [vmem:[#allocation120_spill] sm:$0xff] %v9234_v12  ;;  %v12274_v12 = vld [vmem:[#allocation113_spill] sm:$0xff]  ;;  %v9263_v5 = vpop.eup %5925  ;;  %v9277_v46 = vpop.f32.mrf.mxu0  ;;  %vm1999_vm4 = vcmp.eq.s32.totalorder %v9258_v7, %v7276_v25  ;;  %vm2000_vm5 = vcmp.eq.s32.totalorder %v9258_v7, %v7274_v6  ;;  %5951 = vpow2.f32 %v3125_v49  ;;  %v12298_v49 = vld [vmem:[#allocation79_spill] sm:$0xff]  ;;  %vm2001_vm6 = vcmp.eq.s32.totalorder %v9258_v7, %v7292_v48 }
 0x4a5   :  { %v3874_v29 = vmul.f32 %v5916_v14, %v12274_v12  ;;  %12278 = vst [vmem:[#allocation113_spill] sm:$0xff] %v9263_v5  ;;  %v12280_v12 = vld [vmem:[#allocation105_spill] sm:$0xff]  ;;  %v9267_v62 = vpop.eup %5927  ;;  %12287 = vst [vmem:[#allocation119_spill] sm:$0xff] %v9277_v46  ;;  %4283 = vmatprep.mubr.bf16.mxu0 %v4104_v4  ;;  %v9294_v4 = vadd.f32 %v9238_v22, %v3524_v56  ;;  %v9310_v21 = vsel %vm2000_vm5, %v8492_v53, -1e+30  ;;  %v12309_v22 = vld [vmem:[#allocation126_spill] sm:$0xff] }
 0x4a6   :  { %v3871_v37 = vmul.f32 %v5916_v14, %v12280_v12  ;;  %12281 = vst [vmem:[#allocation75_spill] sm:$0xff] %v9267_v62  ;;  %v9275_v41 = vpop.eup %5929  ;;  %v12290_v14 = vld [vmem:[#allocation77_spill] sm:$0xff]  ;;  %12295 = vst [vmem:[#allocation170_spill] sm:$0xff] %v9310_v21  ;;  %v9316_v42 = vpop.f32.mrf.mxu0  ;;  %vm2002_vm7 = vcmp.eq.s32.totalorder %v9258_v7, %v7300_v39 }
 0x4a7   :  { %v9260_v57 = vpop.xlane.xlu0 %3531  ;;  %v4106_v30 = vpack.c.bf16 %v3874_v29, %v3870_v44  ;;  %12286 = vst [vmem:[#allocation105_spill] sm:$0xff] %v9275_v41  ;;  %v3127_v29 = vmul.f32 1.442695, %v2773_v17  ;;  %v9283_v32 = vpop.eup %5931  ;;  %v3129_v44 = vmul.f32 1.442695, %v2774_v0  ;;  %v3543_v56 = vadd.f32 %v9275_v41, %v9267_v62  ;;  %12297 = vst [vmem:[#allocation172_spill] sm:$0xff] %v9316_v42 }
 0x4a8   :  { %12277 = vst [vmem:[#allocation106_spill] sm:$0xff] %v9260_v57  ;;  %v3869_v57 = vmul.f32 %v5920_v51, %v8453_v36  ;;  %v4103_v20 = vpack.c.bf16 %v3871_v37, %v3867_v9  ;;  %12288 = vst [vmem:[#allocation74_spill] sm:$0xff] %v9283_v32  ;;  %v12289_v36 = vld [vmem:[#allocation72_spill] sm:$0xff]  ;;  %v2777_v51 = vsub.f32 %v12290_v14, %v12283_v1  ;;  %v9291_v12 = vpop.eup %5933  ;;  %v12299_v14 = vld [vmem:[#allocation29_spill] sm:$0xff]  ;;  %v9324_v62 = vpop.permute.xlu1 %1759 }
 0x4a9   :  { %4572 = vmatprep.mubr.bf16.mxu1 %v4106_v30  ;;  %v2776_v33 = vsub.f32 %v12289_v36, %v12283_v1  ;;  %12292 = vst [vmem:[#allocation72_spill] sm:$0xff] %v9291_v12  ;;  %v3533_v37 = vadd.f32 %v9254_v23, %v9246_v59  ;;  %v5936_v9 = vpop.eup %5935  ;;  %v9298_v30 = vpop.f32.mrf.mxu1  ;;  %5953 = vpow2.f32 %v3127_v29  ;;  %v12308_v59 = vld [vmem:[#allocation123_spill] sm:$0xff]  ;;  %vm2007_vm8 = vcmp.eq.s32.totalorder %v9324_v62, %v7276_v25 }
 0x4aa   :  { %v4105_v19 = vpack.c.bf16 %v3873_v2, %v3869_v57  ;;  %4284 = vmatmul.mubr.bf16.gmra.mxu0 %v4103_v20  ;;  %12293 = vst [vmem:[#allocation77_spill] sm:$0xff] %v9298_v30  ;;  %v9304_v57 = vsel %vm1999_vm4, %v8473_v63, -1e+30  ;;  %v9314_v0 = vpop.eup %5937  ;;  %v2778_v2 = vsub.f32 %v12298_v49, %v12283_v1  ;;  %v3131_v20 = vmul.f32 1.442695, %v2775_v43  ;;  %v12303_v1 = vld [vmem:[#allocation38_spill] sm:$0xff] }
 0x4ab   :  { %v9289_v17 = vpop.xlane.xlu0 %2558  ;;  %12294 = vst [vmem:[#allocation169_spill] sm:$0xff] %v9304_v57  ;;  %12296 = vst [vmem:[#allocation171_spill] sm:$0xff] %v9314_v0  ;;  %v5940_v63 = vpop.eup %5939  ;;  %5955 = vpow2.f32 %v3129_v44  ;;  %v3133_v36 = vmul.f32 1.442695, %v2776_v33  ;;  %v3135_v53 = vmul.f32 1.442695, %v2777_v51  ;;  %v2550_v43 = vmax.f32 %v9304_v57, %v9310_v21 }
 0x4ac   :  { %12291 = vst [vmem:[#allocation112_spill] sm:$0xff] %v9289_v17  ;;  %4573 = vmatmul.mubr.bf16.gmra.mxu1 %v4105_v19  ;;  %v12300_v19 = vld [vmem:[#allocation78_spill] sm:$0xff]  ;;  %v9328_v46 = vpop.eup %5941  ;;  %v3876_v29 = vmul.f32 %v5940_v63, %v12303_v1  ;;  %v12304_v44 = vld [vmem:[#allocation43_spill] sm:$0xff]  ;;  %v9338_v49 = vpop.f32.mrf.mxu1  ;;  %v3878_v23 = vmul.f32 %v5940_v63, %v12308_v59  ;;  %v12313_v57 = vld [vmem:[#allocation36_spill] sm:$0xff]  ;;  %5957 = vpow2.f32 %v3131_v20  ;;  %vm2008_vm9 = vcmp.eq.s32.totalorder %v9324_v62, %v7274_v6 }
 0x4ad   :  { %v2779_v8 = vsub.f32 %v12300_v19, %v12299_v14  ;;  %12302 = vst [vmem:[#allocation29_spill] sm:$0xff] %v9328_v46  ;;  %v3880_v33 = vmul.f32 %v5936_v9, %v12304_v44  ;;  %v9336_v51 = vpop.eup %5943  ;;  %12306 = vst [vmem:[#allocation38_spill] sm:$0xff] %v9338_v49  ;;  %v9341_v19 = vsel %vm2001_vm6, %v8562_v18, -1e+30  ;;  %v12310_v42 = vld [vmem:[#allocation31_spill] sm:$0xff]  ;;  %v9348_v21 = vpop.f32.mrf.mxu0  ;;  %v3879_v49 = vmul.f32 %v5936_v9, %v12313_v57  ;;  %v12314_v18 = vld [vmem:[#allocation138_spill] sm:$0xff] }
 0x4ae   :  { %12305 = vst [vmem:[#allocation78_spill] sm:$0xff] %v9336_v51  ;;  %12307 = vst [vmem:[#allocation43_spill] sm:$0xff] %v9341_v19  ;;  %v3875_v30 = vmul.f32 %v5940_v63, %v12310_v42  ;;  %v9346_v46 = vpop.eup %5945  ;;  %v2551_v1 = vmax.f32 %v2550_v43, %v9341_v19  ;;  %v9358_v59 = vsel %vm2002_vm7, %v12314_v18, -1e+30  ;;  %v12315_v42 = vld [vmem:[#allocation45_spill] sm:$0xff]  ;;  %v12318_v43 = vld [vmem:[#allocation76_spill] sm:$0xff]  ;;  %v9371_v18 = vpop.f32.mrf.mxu1  ;;  %5959 = vpow2.f32 %v3133_v36 }
 0x4af   :  { %v9326_v41 = vpop.xlane.xlu0 %3541  ;;  %12311 = vst [vmem:[#allocation123_spill] sm:$0xff] %v9346_v46  ;;  %12312 = vst [vmem:[#allocation126_spill] sm:$0xff] %v9348_v21  ;;  %v4108_v44 = vpack.c.bf16 %v3880_v33, %v3876_v29  ;;  %v3877_v51 = vmul.f32 %v5940_v63, %v12315_v42  ;;  %v12316_v46 = vld [vmem:[#allocation122_spill] sm:$0xff]  ;;  %v9364_v35 = vpop.eup %5947  ;;  %v2780_v29 = vsub.f32 %v12318_v43, %v12299_v14  ;;  %v12319_v57 = vld [vmem:[#allocation81_spill] sm:$0xff]  ;;  %5961 = vpow2.f32 %v3135_v53 }
 0x4b0   :  { %12301 = vst [vmem:[#allocation79_spill] sm:$0xff] %v9326_v41  ;;  %v3882_v41 = vmul.f32 %v5936_v9, %v12309_v22  ;;  %v3881_v17 = vmul.f32 %v5936_v9, %v12316_v46  ;;  %12317 = vst [vmem:[#allocation31_spill] sm:$0xff] %v9364_v35  ;;  %v2781_v33 = vsub.f32 %v12319_v57, %v12299_v14  ;;  %v9378_v46 = vpop.f32.mrf.mxu0  ;;  %v3137_v9 = vmul.f32 1.442695, %v2778_v2  ;;  %v12322_v63 = vld [vmem:[#allocation83_spill] sm:$0xff]  ;;  %v9403_v53 = vpop.eup %5949 }
 0x4b1   :  { %v2552_v19 = vmax.f32 %v2551_v1, %v9358_v59  ;;  %4291 = vmatprep.mubr.bf16.mxu0 %v4108_v44  ;;  %v4107_v7 = vpack.c.bf16 %v3879_v49, %v3875_v30  ;;  %12320 = vst [vmem:[#allocation36_spill] sm:$0xff] %v9371_v18  ;;  %12321 = vst [vmem:[#allocation138_spill] sm:$0xff] %v9378_v46  ;;  %v2782_v1 = vsub.f32 %v12322_v63, %v12299_v14  ;;  %v9382_v44 = vpop.permute.xlu1 %1765  ;;  %v12323_v30 = vld [vmem:[#allocation142_spill] sm:$0xff]  ;;  %v12324_v14 = vld [vmem:[#allocation32_spill] sm:$0xff] }
 0x4b2   :  { %v4110_v22 = vpack.c.bf16 %v3882_v41, %v3878_v23  ;;  %v4109_v41 = vpack.c.bf16 %v3881_v17, %v3877_v51  ;;  %v9376_v23 = vadd.f32 %v9263_v5, %v3533_v37  ;;  %v9388_v20 = vsel %vm2007_vm8, %v12323_v30, -1e+30  ;;  %v12325_v51 = vld [vmem:[#allocation86_spill] sm:$0xff]  ;;  %12326 = vst [vmem:[#allocation45_spill] sm:$0xff] %v9403_v53  ;;  %v12333_v30 = vld [vmem:[#allocation51_spill] sm:$0xff]  ;;  %v12355_v46 = vld [vmem:[#allocation5_spill] sm:$0xff] }
 0x4b3   :  { %v9362_v21 = vpop.xlane.xlu0 %2568  ;;  %2553 = vmax.xlane.f32.xlu1 %v2552_v19  ;;  %4292 = vmatmul.mubr.bf16.gmra.mxu0 %v4107_v7  ;;  %v3139_v17 = vmul.f32 1.442695, %v2779_v8  ;;  %vm2009_vm10 = vcmp.eq.s32.totalorder %v9324_v62, %v7292_v48  ;;  %v9393_v37 = vadd.f32 %v9291_v12, %v3543_v56  ;;  %v3141_v2 = vmul.f32 1.442695, %v2780_v29  ;;  %v9405_v8 = vpop.f32.mrf.mxu1 }
 0x4b4   :  { %4580 = vmatprep.mubr.bf16.mxu1 %v4110_v22  ;;  %v3143_v36 = vmul.f32 1.442695, %v2781_v33  ;;  %v2787_v49 = vsub.f32 %v12325_v51, %v12324_v14  ;;  %v9401_v19 = vsel %vm2008_vm9, %v8712_v38, -1e+30  ;;  %12327 = vst [vmem:[#allocation122_spill] sm:$0xff] %v9405_v8  ;;  %v12328_v22 = vld [vmem:[#allocation84_spill] sm:$0xff]  ;;  %vm2015_vm11 = vcmp.eq.s32.totalorder %v9382_v44, %v7276_v25  ;;  %v9417_v38 = vpop.eup %5951  ;;  %v9419_v29 = vpop.f32.mrf.mxu0 }
 0x4b5   :  { %4581 = vmatmul.mubr.bf16.gmra.mxu1 %v4109_v41  ;;  %v2788_v42 = vsub.f32 %v12328_v22, %v12324_v14  ;;  %vm2010_vm12 = vcmp.eq.s32.totalorder %v9324_v62, %v7300_v39  ;;  %v2560_v56 = vmax.f32 %v9388_v20, %v9401_v19  ;;  %12329 = vst [vmem:[#allocation76_spill] sm:$0xff] %v9417_v38  ;;  %12330 = vst [vmem:[#allocation81_spill] sm:$0xff] %v9419_v29  ;;  %v12331_v33 = vld [vmem:[#allocation89_spill] sm:$0xff]  ;;  %v12334_v51 = vld [vmem:[#allocation19_spill] sm:$0xff] }
 0x4b6   :  { %5963 = vpow2.f32 %v3137_v9  ;;  %v3145_v57 = vmul.f32 1.442695, %v2782_v1  ;;  %v2789_v7 = vsub.f32 %v12331_v33, %v12324_v14  ;;  %v9428_v41 = vsel %vm2009_vm10, %v8789_v24, -1e+30  ;;  %v9430_v63 = vpop.eup %5953  ;;  %v9439_v33 = vpop.permute.xlu1 %1771  ;;  %v12338_v62 = vld [vmem:[#allocation16_spill] sm:$0xff] }
 0x4b7   :  { %v9415_v43 = vpop.xlane.xlu0 %3551  ;;  %3526 = vadd.xlane.f32.xlu1 %v9294_v4  ;;  %12332 = vst [vmem:[#allocation83_spill] sm:$0xff] %v9430_v63  ;;  %5965 = vpow2.f32 %v3139_v17  ;;  %v2795_v22 = vsub.f32 %v12334_v51, %v12333_v30  ;;  %vm2016_vm13 = vcmp.eq.s32.totalorder %v9382_v44, %v7274_v6  ;;  %v2561_v9 = vmax.f32 %v2560_v56, %v9428_v41  ;;  %v9453_v51 = vpop.f32.mrf.mxu1 }
 0x4b8   :  { %v9437_v1 = vpop.eup %5955  ;;  %5967 = vpow2.f32 %v3141_v2  ;;  %v3155_v4 = vmul.f32 1.442695, %v2787_v49  ;;  %v9445_v24 = vsel %vm2010_vm12, %v8831_v16, -1e+30  ;;  %v9451_v17 = vsel %vm2015_vm11, %v8847_v47, -1e+30  ;;  %v9458_v49 = vpop.f32.mrf.mxu0 }
 0x4b9   :  { %12335 = vst [vmem:[#allocation142_spill] sm:$0xff] %v9437_v1  ;;  %12336 = vst [vmem:[#allocation32_spill] sm:$0xff] %v9445_v24  ;;  %5969 = vpow2.f32 %v3143_v36  ;;  %v3157_v56 = vmul.f32 1.442695, %v2788_v42  ;;  %v2562_v2 = vmax.f32 %v2561_v9, %v9445_v24  ;;  %vm2017_vm14 = vcmp.eq.s32.totalorder %v9382_v44, %v7292_v48  ;;  %v9479_v9 = vpop.f32.mrf.mxu1 }
 0x4ba   :  { %12337 = vst [vmem:[#allocation86_spill] sm:$0xff] %v9451_v17  ;;  %5971 = vpow2.f32 %v3145_v57  ;;  %v3159_v16 = vmul.f32 1.442695, %v2789_v7  ;;  %v2796_v8 = vsub.f32 %v12338_v62, %v12333_v30  ;;  %v9466_v47 = vsel %vm2016_vm13, %v8869_v13, -1e+30  ;;  %v9488_v62 = vpop.f32.mrf.mxu0 }
 0x4bb   :  { %12339 = vst [vmem:[#allocation84_spill] sm:$0xff] %v9466_v47  ;;  %v3171_v36 = vmul.f32 1.442695, %v2795_v22  ;;  %vm2023_vm15 = vcmp.eq.s32.totalorder %v9439_v33, %v7276_v25  ;;  %vm2024_vm1 = vcmp.eq.s32.totalorder %v9439_v33, %v7274_v6  ;;  %2563 = vmax.xlane.f32.xlu1 %v2562_v2  ;;  %v9472_v42 = vpop.xlane.xlu0 %2578  ;;  %v2570_v57 = vmax.f32 %v9451_v17, %v9466_v47  ;;  %v9486_v2 = vpop.eup %5957 }
 0x4bc   :  { %5973 = vpow2.f32 %v3155_v4  ;;  %v9477_v7 = vsel %vm2017_vm14, %v8913_v15, -1e+30  ;;  %v3535_v13 = vadd.f32 %v9283_v32, %v9376_v23  ;;  %vm2018_vm2 = vcmp.eq.s32.totalorder %v9382_v44, %v7300_v39  ;;  %12341 = vst [vmem:[#allocation51_spill] sm:$0xff] %v9486_v2 }
 0x4bd   :  { %12340 = vst [vmem:[#allocation89_spill] sm:$0xff] %v9477_v7  ;;  %5975 = vpow2.f32 %v3157_v56  ;;  %v2571_v22 = vmax.f32 %v2570_v57, %v9477_v7  ;;  %v3173_v4 = vmul.f32 1.442695, %v2796_v8  ;;  %v9494_v15 = vsel %vm2023_vm15, %v8989_v60, -1e+30  ;;  %v9502_v56 = vpop.eup %5959  ;;  %v12345_v57 = vld [vmem:[#allocation91_spill] sm:$0xff] }
 0x4be   :  { %5977 = vpow2.f32 %v3159_v16  ;;  %12342 = vst [vmem:[#allocation19_spill] sm:$0xff] %v9494_v15  ;;  %v9500_v23 = vsel %vm2024_vm1, %v8994_v27, -1e+30  ;;  %12344 = vst [vmem:[#allocation173_spill] sm:$0xff] %v9502_v56  ;;  %v2790_v18 = vsub.f32 %v12345_v57, %v12324_v14  ;;  %v3545_v8 = vadd.f32 %v9314_v0, %v9393_v37  ;;  %v9510_v29 = vpop.eup %5961  ;;  %v9522_v37 = vpop.f32.mrf.mxu1 }
 0x4bf   :  { %12343 = vst [vmem:[#allocation16_spill] sm:$0xff] %v9500_v23  ;;  %5979 = vpow2.f32 %v3171_v36  ;;  %3536 = vadd.xlane.f32.xlu1 %v3535_v13  ;;  %v3563_v60 = vadd.f32 %v9417_v38, %v9403_v53  ;;  %12346 = vst [vmem:[#allocation91_spill] sm:$0xff] %v9510_v29  ;;  %v9516_v27 = vsel %vm2018_vm2, %v8944_v61, -1e+30  ;;  %vm2025_vm5 = vcmp.eq.s32.totalorder %v9439_v33, %v7292_v48  ;;  %v9531_v61 = vpop.f32.mrf.mxu0  ;;  %v12351_v13 = vld [vmem:[#allocation23_spill] sm:$0xff] }
 0x4c0   :  { %12347 = vst [vmem:[#allocation174_spill] sm:$0xff] %v9516_v27  ;;  %12348 = vst [vmem:[#allocation175_spill] sm:$0xff] %v9522_v37  ;;  %v2572_v14 = vmax.f32 %v2571_v22, %v9516_v27  ;;  %v2580_v36 = vmax.f32 %v9494_v15, %v9500_v23  ;;  %v2797_v57 = vsub.f32 %v12351_v13, %v12333_v30  ;;  %5981 = vpow2.f32 %v3173_v4  ;;  %v12352_v53 = vld [vmem:[#allocation107_spill] sm:$0xff]  ;;  %v9570_v13 = vpop.f32.mrf.mxu1  ;;  %v12366_v23 = vld [vmem:[#allocation82_spill] sm:$0xff] }
 0x4c1   :  { %12350 = vst [vmem:[#allocation177_spill] sm:$0xff] %v9531_v61  ;;  %v2803_v38 = vsub.f32 %v12352_v53, %v9154_v10  ;;  %v2804_v12 = vsub.f32 %v12355_v46, %v9154_v10  ;;  %vm2026_vm7 = vcmp.eq.s32.totalorder %v9439_v33, %v7300_v39  ;;  %12360 = vst [vmem:[#allocation181_spill] sm:$0xff] %v9570_v13  ;;  %v12373_v33 = vld [vmem:[#allocation98_spill] sm:$0xff] }
 0x4c2   :  { %v3175_v13 = vmul.f32 1.442695, %v2797_v57 }
 0x4c3   :  { %v1775_v16 = vpop.permute.xlu0 %1774  ;;  %v9540_v22 = vpop.eup %5963  ;;  %2573 = vmax.xlane.f32.xlu1 %v2572_v14 }
 0x4c4   :  { %vm2027_vm3 = vcmp.eq.s32.totalorder %v1775_v16, %v7276_v25  ;;  %vm2028_vm4 = vcmp.eq.s32.totalorder %v1775_v16, %v7274_v6  ;;  %vm2029_vm6 = vcmp.eq.s32.totalorder %v1775_v16, %v7292_v48  ;;  %12354 = vst [vmem:[#allocation107_spill] sm:$0xff] %v9540_v22  ;;  %vm2030_vm8 = vcmp.eq.s32.totalorder %v1775_v16, %v7300_v39  ;;  %v9551_v53 = vpop.eup %5965 }
 0x4c5   :  { %v9529_v44 = vsel %vm2027_vm3, %v8999_v34, -1e+30  ;;  %v9538_v37 = vsel %vm2028_vm4, %v9004_v58, -1e+30  ;;  %12356 = vst [vmem:[#allocation5_spill] sm:$0xff] %v9551_v53  ;;  %v9568_v14 = vpop.eup %5967 }
 0x4c6   :  { %12349 = vst [vmem:[#allocation176_spill] sm:$0xff] %v9529_v44  ;;  %12353 = vst [vmem:[#allocation23_spill] sm:$0xff] %v9538_v37  ;;  %v2585_v4 = vmax.f32 %v9529_v44, %v9538_v37  ;;  %v9557_v58 = vsel %vm2025_vm5, %v9009_v54, -1e+30  ;;  %v9566_v46 = vsel %vm2029_vm6, %v9027_v11, -1e+30  ;;  %v9580_v32 = vpop.eup %5969  ;;  %v9582_v37 = vpop.f32.mrf.mxu0  ;;  %v3573_v57 = vadd.f32 %v9568_v14, %v9551_v53 }
 0x4c7   :  { %v9546_v34 = vpop.permute.xlu0 %1780  ;;  %12357 = vst [vmem:[#allocation178_spill] sm:$0xff] %v9557_v58  ;;  %12358 = vst [vmem:[#allocation179_spill] sm:$0xff] %v9566_v46  ;;  %v2581_v61 = vmax.f32 %v2580_v36, %v9557_v58  ;;  %v12365_v11 = vld [vmem:[#allocation121_spill] sm:$0xff]  ;;  %v3161_v44 = vmul.f32 1.442695, %v2790_v18  ;;  %3546 = vadd.xlane.f32.xlu1 %v3545_v8 }
 0x4c8   :  { %vm2035_vm9 = vcmp.eq.s32.totalorder %v9546_v34, %v7276_v25  ;;  %vm2036_vm10 = vcmp.eq.s32.totalorder %v9546_v34, %v7274_v6  ;;  %12359 = vst [vmem:[#allocation180_spill] sm:$0xff] %v9568_v14  ;;  %v2586_v54 = vmax.f32 %v2585_v4, %v9566_v46  ;;  %12363 = vst [vmem:[#allocation184_spill] sm:$0xff] %v9580_v32  ;;  %v9589_v36 = vsel %vm2030_vm8, %v9036_v40, -1e+30 }
 0x4c9   :  { %v9575_v0 = vsel %vm2035_vm9, %v9032_v31, -1e+30  ;;  %v9578_v5 = vsel %vm2036_vm10, %v9041_v3, -1e+30  ;;  %12364 = vst [vmem:[#allocation185_spill] sm:$0xff] %v9582_v37  ;;  %v2783_v15 = vsub.f32 %v12366_v23, %v12365_v11  ;;  %12367 = vst [vmem:[#allocation121_spill] sm:$0xff] %v9589_v36  ;;  %v3564_v4 = vadd.f32 %v9430_v63, %v3563_v60  ;;  %v9592_v31 = vpop.eup %5971  ;;  %v9615_v63 = vpop.f32.mrf.mxu1 }
 0x4ca   :  { %12361 = vst [vmem:[#allocation182_spill] sm:$0xff] %v9575_v0  ;;  %12362 = vst [vmem:[#allocation183_spill] sm:$0xff] %v9578_v5  ;;  %v2587_v46 = vmax.f32 %v2586_v54, %v9589_v36  ;;  %vm2037_vm11 = vcmp.eq.s32.totalorder %v9546_v34, %v7292_v48  ;;  %v2595_v18 = vmax.f32 %v9575_v0, %v9578_v5  ;;  %v12369_v23 = vld [vmem:[#allocation80_spill] sm:$0xff]  ;;  %v3187_v16 = vmul.f32 1.442695, %v2803_v38  ;;  %v9613_v54 = vpop.eup %5973  ;;  %v12419_v36 = vld [vmem:[#allocation161_spill] sm:$0xff] }
 0x4cb   :  { %12368 = vst [vmem:[#allocation82_spill] sm:$0xff] %v9592_v31  ;;  %v9594_v3 = vpop.permute.xlu0 %1786  ;;  %v2784_v40 = vsub.f32 %v12369_v23, %v12365_v11  ;;  %v9607_v60 = vsel %vm2026_vm7, %v9018_v45, -1e+30  ;;  %12371 = vst [vmem:[#allocation186_spill] sm:$0xff] %v9613_v54  ;;  %v3189_v37 = vmul.f32 1.442695, %v2804_v12  ;;  %v9622_v45 = vpop.eup %5975  ;;  %5983 = vpow2.f32 %v3161_v44 }
 0x4cc   :  { %12370 = vst [vmem:[#allocation80_spill] sm:$0xff] %v9607_v60  ;;  %v9609_v8 = vpop.f32.mrf.mxu0  ;;  %v2582_v5 = vmax.f32 %v2581_v61, %v9607_v60  ;;  %vm2043_vm12 = vcmp.eq.s32.totalorder %v9594_v3, %v7276_v25  ;;  %vm2044_vm13 = vcmp.eq.s32.totalorder %v9594_v3, %v7274_v6  ;;  %2588 = vmax.xlane.f32.xlu0 %v2587_v46  ;;  %12372 = vst [vmem:[#allocation187_spill] sm:$0xff] %v9622_v45  ;;  %v9632_v61 = vpop.eup %5977 }
 0x4cd   :  { %v3147_v38 = vmul.f32 1.442695, %v2783_v15  ;;  %v2798_v23 = vsub.f32 %v12373_v33, %v12333_v30  ;;  %v9630_v12 = vsel %vm2037_vm11, %v9069_v28, -1e+30  ;;  %12375 = vst [vmem:[#allocation188_spill] sm:$0xff] %v9632_v61  ;;  %5985 = vpow2.f32 %v3175_v13  ;;  %v9638_v44 = vpop.eup %5979  ;;  %v9654_v13 = vpop.f32.mrf.mxu1 }
 0x4ce   :  { %v4247_v53 = vpop.f32.mrf.mxu0  ;;  %12374 = vst [vmem:[#allocation98_spill] sm:$0xff] %v9630_v12  ;;  %2583 = vmax.xlane.f32.xlu1 %v2582_v5  ;;  %v3565_v46 = vadd.f32 %v9437_v1, %v3564_v4  ;;  %vm2038_vm14 = vcmp.eq.s32.totalorder %v9546_v34, %v7300_v39  ;;  %v2596_v15 = vmax.f32 %v2595_v18, %v9630_v12  ;;  %12376 = vst [vmem:[#allocation189_spill] sm:$0xff] %v9638_v44  ;;  %v12379_v4 = vld [vmem:[#allocation108_spill] sm:$0xff]  ;;  %v9669_v12 = vpop.eup %5981 }
 0x4cf   :  { %v3149_v30 = vmul.f32 1.442695, %v2784_v40  ;;  %5987 = vpow2.f32 %v3187_v16  ;;  %v9644_v28 = vsel %vm2043_vm12, %v9076_v52, -1e+30  ;;  %v9650_v5 = vsel %vm2044_vm13, %v9085_v55, -1e+30  ;;  %v9661_v14 = vpop.permute.xlu0 %1792 }
 0x4d0   :  { %12377 = vst [vmem:[#allocation190_spill] sm:$0xff] %v9644_v28  ;;  %12378 = vst [vmem:[#allocation191_spill] sm:$0xff] %v9650_v5  ;;  %v9652_v53 = vpop.f32.mrf.mxu0  ;;  %v2805_v18 = vsub.f32 %v12379_v4, %v9154_v10  ;;  %5989 = vpow2.f32 %v3189_v37  ;;  %3566 = vadd.xlane.f32.xlu0 %v3565_v46  ;;  %v3574_v40 = vadd.f32 %v9580_v32, %v3573_v57  ;;  %v3177_v52 = vmul.f32 1.442695, %v2798_v23  ;;  %v12380_v16 = vld [vmem:[#allocation110_spill] sm:$0xff]  ;;  %v9699_v32 = vpop.permute.xlu1 %1777 }
 0x4d1   :  { %5991 = vpow2.f32 %v3147_v38  ;;  %v2806_v33 = vsub.f32 %v12380_v16, %v9154_v10  ;;  %v9667_v1 = vsel %vm2038_vm14, %v9078_v26, -1e+30  ;;  %12382 = vst [vmem:[#allocation110_spill] sm:$0xff] %v9669_v12  ;;  %vm2045_vm15 = vcmp.eq.s32.totalorder %v9594_v3, %v7292_v48  ;;  %v12383_v38 = vld [vmem:[#allocation131_spill] sm:$0xff]  ;;  %v9682_v26 = vpop.f32.mrf.mxu1 }
 0x4d2   :  { %v4250_v55 = vpop.f32.mrf.mxu0  ;;  %12381 = vst [vmem:[#allocation108_spill] sm:$0xff] %v9667_v1  ;;  %v2605_v37 = vmax.f32 %v9644_v28, %v9650_v5  ;;  %v2597_v57 = vmax.f32 %v2596_v15, %v9667_v1  ;;  %v3583_v10 = vadd.f32 %v9622_v45, %v9613_v54  ;;  %5993 = vpow2.f32 %v3149_v30  ;;  %12384 = vst [vmem:[#allocation131_spill] sm:$0xff] %v9682_v26  ;;  %v12385_v30 = vld [vmem:[#allocation132_spill] sm:$0xff]  ;;  %v12388_v54 = vld [vmem:[#allocation135_spill] sm:$0xff] }
 0x4d3   :  { %v2811_v23 = vsub.f32 %v12383_v38, %v9182_v50  ;;  %v3191_v46 = vmul.f32 1.442695, %v2805_v18  ;;  %vm2051_vm1 = vcmp.eq.s32.totalorder %v9661_v14, %v7276_v25  ;;  %vm2052_vm2 = vcmp.eq.s32.totalorder %v9661_v14, %v7274_v6  ;;  %v12386_v55 = vld [vmem:[#allocation24_spill] sm:$0xff]  ;;  %v9729_v5 = vpop.permute.xlu0 %1798  ;;  %v12398_v28 = vld [vmem:[#allocation117_spill] sm:$0xff] }
 0x4d4   :  { %v9680_v34 = vpop.f32.mrf.mxu0  ;;  %2598 = vmax.xlane.f32.xlu0 %v2597_v57  ;;  %v3575_v15 = vadd.f32 %v9592_v31, %v3574_v40  ;;  %5995 = vpow2.f32 %v3177_v52  ;;  %v3193_v4 = vmul.f32 1.442695, %v2806_v33  ;;  %v2812_v16 = vsub.f32 %v12385_v30, %v9182_v50  ;;  %v12389_v33 = vld [vmem:[#allocation136_spill] sm:$0xff]  ;;  %v12390_v31 = vld [vmem:[#allocation33_spill] sm:$0xff]  ;;  %v9753_v0 = vpop.permute.xlu1 %1783 }
 0x4d5   :  { %v9695_v38 = vsel %vm2045_vm15, %v12386_v55, -1e+30  ;;  %v2813_v45 = vsub.f32 %v12388_v54, %v9182_v50  ;;  %vm2046_vm3 = vcmp.eq.s32.totalorder %v9594_v3, %v7300_v39  ;;  %v3584_v52 = vadd.f32 %v9632_v61, %v3583_v10  ;;  %v12392_v54 = vld [vmem:[#allocation66_spill] sm:$0xff]  ;;  %v12395_v10 = vld [vmem:[#allocation56_spill] sm:$0xff] }
 0x4d6   :  { %12387 = vst [vmem:[#allocation132_spill] sm:$0xff] %v9695_v38  ;;  %v4255_v18 = vpop.f32.mrf.mxu0  ;;  %v2606_v40 = vmax.f32 %v2605_v37, %v9695_v38  ;;  %v2814_v57 = vsub.f32 %v12389_v33, %v9182_v50  ;;  %v3203_v30 = vmul.f32 1.442695, %v2811_v23  ;;  %v9711_v55 = vsel %vm2051_vm1, %v12390_v31, -1e+30  ;;  %v9721_v37 = vpop.f32.mrf.mxu1  ;;  %v12396_v50 = vld [vmem:[#allocation145_spill] sm:$0xff] }
 0x4d7   :  { %12391 = vst [vmem:[#allocation24_spill] sm:$0xff] %v9711_v55  ;;  %v9717_v18 = vsel %vm2052_vm2, %v12392_v54, -1e+30  ;;  %12394 = vst [vmem:[#allocation136_spill] sm:$0xff] %v9721_v37  ;;  %5997 = vpow2.f32 %v3191_v46  ;;  %v2819_v23 = vsub.f32 %v12396_v50, %v12395_v10  ;;  %v3593_v33 = vadd.f32 %v9669_v12, %v9638_v44  ;;  %v12397_v61 = vld [vmem:[#allocation146_spill] sm:$0xff] }
 0x4d8   :  { %12393 = vst [vmem:[#allocation135_spill] sm:$0xff] %v9717_v18  ;;  %v9719_v26 = vpop.f32.mrf.mxu0  ;;  %3576 = vadd.xlane.f32.xlu0 %v3575_v15  ;;  %5999 = vpow2.f32 %v3193_v4  ;;  %v3205_v31 = vmul.f32 1.442695, %v2812_v16  ;;  %v2820_v38 = vsub.f32 %v12397_v61, %v12395_v10  ;;  %v9735_v46 = vsel %vm2046_vm3, %v12398_v28, -1e+30  ;;  %v9737_v37 = vpop.eup %5983 }
 0x4d9   :  { %12399 = vst [vmem:[#allocation33_spill] sm:$0xff] %v9735_v46  ;;  %12400 = vst [vmem:[#allocation66_spill] sm:$0xff] %v9737_v37  ;;  %v3207_v15 = vmul.f32 1.442695, %v2813_v45  ;;  %vm2053_vm4 = vcmp.eq.s32.totalorder %v9661_v14, %v7292_v48  ;;  %v2615_v4 = vmax.f32 %v9711_v55, %v9717_v18  ;;  %v2607_v61 = vmax.f32 %v2606_v40, %v9735_v46  ;;  %v1627_v40 = vld [vmem:[%s11431_s3 + $0x1c8] sm:$0xff] }
 0x4da   :  { %v4258_v54 = vpop.f32.mrf.mxu0  ;;  %v9744_v16 = vpop.eup %5985  ;;  %6001 = vpow2.f32 %v3203_v30  ;;  %v3209_v50 = vmul.f32 1.442695, %v2814_v57  ;;  %v3585_v45 = vadd.f32 %v9737_v37, %v3584_v52  ;;  %v3219_v1 = vmul.f32 1.442695, %v2819_v23  ;;  %v12406_v30 = vld [vmem:[#allocation35_spill] sm:$0xff]  ;;  %v12407_v37 = vld [vmem:[#allocation158_spill] sm:$0xff] }
 0x4db   :  { %12401 = vst [vmem:[#allocation56_spill] sm:$0xff] %v9744_v16  ;;  %v12402_v54 = vld [vmem:[#allocation151_spill] sm:$0xff]  ;;  %vm2059_vm5 = vcmp.eq.s32.totalorder %v9729_v5, %v7276_v25  ;;  %vm2060_vm6 = vcmp.eq.s32.totalorder %v9729_v5, %v7274_v6  ;;  %6003 = vpow2.f32 %v3205_v31  ;;  %v2822_v23 = vsub.f32 %v12406_v30, %v12395_v10  ;;  %v1629_v30 = vld [vmem:[%s11431_s3 + $0x1d8] sm:$0xff] }
 0x4dc   :  { %v2821_v3 = vsub.f32 %v12402_v54, %v12395_v10  ;;  %v9748_v44 = vpop.f32.mrf.mxu0  ;;  %v9751_v12 = vpop.eup %5987  ;;  %2608 = vmax.xlane.f32.xlu0 %v2607_v61  ;;  %v3221_v54 = vmul.f32 1.442695, %v2820_v38  ;;  %v9773_v18 = vsel %vm2053_vm4, %v12407_v37, -1e+30  ;;  %6005 = vpow2.f32 %v3207_v15  ;;  %v12410_v10 = vld [vmem:[#allocation159_spill] sm:$0xff] }
 0x4dd   :  { %v4534_v28 = vpop.f32.mrf.mxu1  ;;  %12403 = vst [vmem:[#allocation145_spill] sm:$0xff] %v9751_v12  ;;  %v9765_v52 = vpop.eup %5989  ;;  %12408 = vst [vmem:[#allocation151_spill] sm:$0xff] %v9773_v18  ;;  %vm2054_vm7 = vcmp.eq.s32.totalorder %v9661_v14, %v7300_v39  ;;  %v3594_v31 = vadd.f32 %v9744_v16, %v3593_v33  ;;  %6007 = vpow2.f32 %v3209_v50  ;;  %v9785_v37 = vsel %vm2059_vm5, %v12410_v10, -1e+30  ;;  %v12415_v33 = vld [vmem:[#allocation120_spill] sm:$0xff]  ;;  %v12416_v50 = vld [vmem:[#allocation153_spill] sm:$0xff] }
 0x4de   :  { %v9763_v57 = vadd.f32 %v4534_v28, %v9609_v8  ;;  %12405 = vst [vmem:[#allocation117_spill] sm:$0xff] %v9765_v52  ;;  %v4263_v46 = vpop.f32.mrf.mxu0  ;;  %v9775_v60 = vpop.eup %5991  ;;  %v2616_v8 = vmax.f32 %v2615_v4, %v9773_v18  ;;  %v3223_v38 = vmul.f32 1.442695, %v2821_v3  ;;  %12411 = vst [vmem:[#allocation158_spill] sm:$0xff] %v9785_v37  ;;  %6009 = vpow2.f32 %v3219_v1  ;;  %v12418_v1 = vld [vmem:[#allocation154_spill] sm:$0xff] }
 0x4df   :  { %v4536_v55 = vpop.f32.mrf.mxu1  ;;  %12409 = vst [vmem:[#allocation35_spill] sm:$0xff] %v9775_v60  ;;  %1807 = vperm.xlu1 %5679, %v1627_v40   ;;  %v9795_v4 = vpop.eup %5993  ;;  %v2827_v3 = vsub.f32 %v12416_v50, %v12415_v33  ;;  %v3603_v40 = vadd.f32 %v9765_v52, %v9751_v12  ;;  %6011 = vpow2.f32 %v3221_v54  ;;  %v2828_v16 = vsub.f32 %v12418_v1, %v12415_v33  ;;  %v12422_v14 = vld [vmem:[#allocation14_spill] sm:$0xff] }
 0x4e0   :  { %12404 = vst [vmem:[#allocation146_spill] sm:$0xff] %v9763_v57  ;;  %v12412_v55 = vld [vmem:[#allocation162_spill] sm:$0xff]  ;;  %v9793_v61 = vpop.f32.mrf.mxu0  ;;  %v9799_v28 = vpop.permute.xlu0 %1804  ;;  %3586 = vadd.xlane.f32.xlu0 %v3585_v45  ;;  %v9815_v58 = vsel %vm2054_vm7, %v12419_v36, -1e+30  ;;  %vm2061_vm8 = vcmp.eq.s32.totalorder %v9729_v5, %v7292_v48  ;;  %6013 = vpow2.f32 %v3223_v38  ;;  %v2829_v36 = vsub.f32 %v12422_v14, %v12415_v33 }
 0x4e1   :  { %v9791_v46 = vsel %vm2060_vm6, %v12412_v55, -1e+30  ;;  %v4537_v15 = vpop.f32.mrf.mxu1  ;;  %12414 = vst [vmem:[#allocation162_spill] sm:$0xff] %v9795_v4  ;;  %v3225_v55 = vmul.f32 1.442695, %v2822_v23  ;;  %12420 = vst [vmem:[#allocation153_spill] sm:$0xff] %v9815_v58  ;;  %v9817_v45 = vpop.eup %5995  ;;  %v2617_v54 = vmax.f32 %v2616_v8, %v9815_v58  ;;  %vm2067_vm9 = vcmp.eq.s32.totalorder %v9799_v28, %v7276_v25 }
 0x4e2   :  { %12413 = vst [vmem:[#allocation159_spill] sm:$0xff] %v9791_v46  ;;  %v9805_v10 = vadd.f32 %v4537_v15, %v9652_v53  ;;  %v4266_v50 = vpop.f32.mrf.mxu0  ;;  %12421 = vst [vmem:[#allocation154_spill] sm:$0xff] %v9817_v45  ;;  %v9819_v53 = vpop.permute.xlu1 %1789  ;;  %v2625_v23 = vmax.f32 %v9785_v37, %v9791_v46  ;;  %v12423_v15 = vld [vmem:[#allocation17_spill] sm:$0xff]  ;;  %v3595_v52 = vadd.f32 %v9817_v45, %v3594_v31  ;;  %v3235_v27 = vmul.f32 1.442695, %v2827_v3  ;;  %v1631_v8 = vld [vmem:[%s11431_s3 + $0x1e8] sm:$0xff] }
 0x4e3   :  { %v4539_v18 = vpop.f32.mrf.mxu1  ;;  %v2830_v1 = vsub.f32 %v12423_v15, %v12415_v33  ;;  %1813 = vperm.xlu1 %5679, %v1629_v30   ;;  %vm2068_vm10 = vcmp.eq.s32.totalorder %v9799_v28, %v7274_v6  ;;  %6015 = vpow2.f32 %v3225_v55  ;;  %v3237_v30 = vmul.f32 1.442695, %v2828_v16  ;;  %v12426_v31 = vld [vmem:[#allocation112_spill] sm:$0xff]  ;;  %v12427_v3 = vld [vmem:[#allocation49_spill] sm:$0xff]  ;;  %v12428_v15 = vld [vmem:[#allocation114_spill] sm:$0xff] }
 0x4e4   :  { %12417 = vst [vmem:[#allocation120_spill] sm:$0xff] %v9805_v10  ;;  %v9832_v50 = vpop.f32.mrf.mxu0  ;;  %2618 = vmax.xlane.f32.xlu0 %v2617_v54  ;;  %v9845_v33 = vpop.eup %5997  ;;  %v2835_v14 = vsub.f32 %v12427_v3, %v12426_v31  ;;  %v9853_v18 = vsel %vm2061_vm8, %v12428_v15, -1e+30  ;;  %v12431_v54 = vld [vmem:[#allocation59_spill] sm:$0xff]  ;;  %vm2062_vm11 = vcmp.eq.s32.totalorder %v9729_v5, %v7300_v39  ;;  %v3239_v16 = vmul.f32 1.442695, %v2829_v36 }
 0x4e5   :  { %v4542_v12 = vpop.f32.mrf.mxu1  ;;  %12425 = vst [vmem:[#allocation14_spill] sm:$0xff] %v9845_v33  ;;  %12429 = vst [vmem:[#allocation17_spill] sm:$0xff] %v9853_v18  ;;  %v9855_v45 = vpop.eup %5999  ;;  %6017 = vrcp.f32 %v12431_v54  ;;  %v12432_v55 = vld [vmem:[#allocation63_spill] sm:$0xff]  ;;  %v12433_v46 = vld [vmem:[#allocation44_spill] sm:$0xff]  ;;  %v3241_v54 = vmul.f32 1.442695, %v2830_v1  ;;  %vm2069_vm12 = vcmp.eq.s32.totalorder %v9799_v28, %v7292_v48  ;;  %vm2070_vm15 = vcmp.eq.s32.totalorder %v9799_v28, %v7300_v39 }
 0x4e6   :  { %v9843_v38 = vadd.f32 %v4542_v12, %v9680_v34  ;;  %v4271_v57 = vpop.f32.mrf.mxu0  ;;  %12430 = vst [vmem:[#allocation112_spill] sm:$0xff] %v9855_v45  ;;  %v2626_v12 = vmax.f32 %v2625_v23, %v9853_v18  ;;  %v3604_v34 = vadd.f32 %v9845_v33, %v3603_v40  ;;  %v2836_v3 = vsub.f32 %v12432_v55, %v12426_v31  ;;  %v12438_v55 = vld [vmem:[#allocation7_spill] sm:$0xff]  ;;  %v9882_v18 = vpop.permute.xlu1 %1795  ;;  %v12465_v28 = vld [vmem:[#allocation10_spill] sm:$0xff] }
 0x4e7   :  { %v4544_v10 = vpop.f32.mrf.mxu1  ;;  %v9868_v57 = vsel %vm2067_vm9, %v12433_v46, -1e+30  ;;  %1819 = vperm.xlu1 %5679, %v1631_v8   ;;  %v9878_v36 = vpop.eup %6001  ;;  %6019 = vpow2.f32 %v3235_v27  ;;  %v2837_v33 = vsub.f32 %v12438_v55, %v12426_v31  ;;  %v12440_v37 = vld [vmem:[#allocation3_spill] sm:$0xff]  ;;  %v3251_v1 = vmul.f32 1.442695, %v2835_v14  ;;  %v12441_v55 = vld [vmem:[#allocation46_spill] sm:$0xff] }
 0x4e8   :  { %12424 = vst [vmem:[#allocation161_spill] sm:$0xff] %v9843_v38  ;;  %12434 = vst [vmem:[#allocation49_spill] sm:$0xff] %v9868_v57  ;;  %v12435_v10 = vld [vmem:[#allocation47_spill] sm:$0xff]  ;;  %v9876_v23 = vpop.f32.mrf.mxu0  ;;  %v9884_v46 = vpop.permute.xlu0 %1810  ;;  %3596 = vadd.xlane.f32.xlu0 %v3595_v52  ;;  %6021 = vpow2.f32 %v3237_v30  ;;  %v2838_v27 = vsub.f32 %v12440_v37, %v12426_v31  ;;  %v9898_v47 = vsel %vm2062_vm11, %v12441_v55, -1e+30  ;;  %vm2031_vm8 = vcmp.eq.s32.totalorder %v9699_v32, %v7276_v25 }
 0x4e9   :  { %v9874_v15 = vsel %vm2068_vm10, %v12435_v10, -1e+30  ;;  %v4545_v40 = vpop.f32.mrf.mxu1  ;;  %12437 = vst [vmem:[#allocation59_spill] sm:$0xff] %v9878_v36  ;;  %v1633_v10 = vld [vmem:[%s11431_s3 + $0x1f8] sm:$0xff]  ;;  %12442 = vst [vmem:[#allocation44_spill] sm:$0xff] %v9898_v47  ;;  %v9900_v17 = vpop.eup %6003  ;;  %6023 = vpow2.f32 %v3239_v16  ;;  %vm2075_vm13 = vcmp.eq.s32.totalorder %v9884_v46, %v7276_v25  ;;  %vm2076_vm14 = vcmp.eq.s32.totalorder %v9884_v46, %v7274_v6 }
 0x4ea   :  { %12436 = vst [vmem:[#allocation114_spill] sm:$0xff] %v9874_v15  ;;  %v9890_v8 = vadd.f32 %v4545_v40, %v9719_v26  ;;  %v4274_v58 = vpop.f32.mrf.mxu0  ;;  %12443 = vst [vmem:[#allocation47_spill] sm:$0xff] %v9900_v17  ;;  %v2635_v26 = vmax.f32 %v9868_v57, %v9874_v15  ;;  %v3253_v37 = vmul.f32 1.442695, %v2836_v3  ;;  %v3255_v31 = vmul.f32 1.442695, %v2837_v33 }
 0x4eb   :  { %v4547_v7 = vpop.f32.mrf.mxu1  ;;  %v2627_v58 = vmax.f32 %v2626_v12, %v9898_v47  ;;  %1825 = vperm.xlu1 %5679, %v1633_v10   ;;  %6025 = vpow2.f32 %v3241_v54  ;;  %v3257_v16 = vmul.f32 1.442695, %v2838_v27  ;;  %v12448_v3 = vld [vmem:[#allocation54_spill] sm:$0xff]  ;;  %v3613_v10 = vadd.f32 %v9900_v17, %v9878_v36 }
 0x4ec   :  { %12439 = vst [vmem:[#allocation63_spill] sm:$0xff] %v9890_v8  ;;  %v9909_v7 = vpop.eup %6005  ;;  %v9926_v40 = vsel %vm2069_vm12, %v12448_v3, -1e+30  ;;  %6027 = vpow2.f32 %v3251_v1  ;;  %v12451_v27 = vld [vmem:[#allocation6_spill] sm:$0xff]  ;;  %v12452_v3 = vld [vmem:[#allocation53_spill] sm:$0xff]  ;;  %v12454_v1 = vld [vmem:[#allocation67_spill] sm:$0xff]  ;;  %v9956_v38 = vpop.permute.xlu0 %1816  ;;  %vm2077_vm1 = vcmp.eq.s32.totalorder %v9884_v46, %v7292_v48  ;;  %vm2078_vm4 = vcmp.eq.s32.totalorder %v9884_v46, %v7300_v39 }
 0x4ed   :  { %12444 = vst [vmem:[#allocation7_spill] sm:$0xff] %v9909_v7  ;;  %v4550_v5 = vpop.f32.mrf.mxu1  ;;  %v9911_v30 = vpop.eup %6007  ;;  %2628 = vmax.xlane.f32.xlu0 %v2627_v58  ;;  %12449 = vst [vmem:[#allocation54_spill] sm:$0xff] %v9926_v40  ;;  %v2636_v54 = vmax.f32 %v2635_v26, %v9926_v40  ;;  %6029 = vpow2.f32 %v3253_v37  ;;  %v2843_v58 = vsub.f32 %v12451_v27, %v9362_v21  ;;  %v9950_v52 = vsel %vm2076_vm14, %v12454_v1, -1e+30  ;;  %v12457_v37 = vld [vmem:[#allocation101_spill] sm:$0xff]  ;;  %v12460_v36 = vld [vmem:[#allocation78_spill] sm:$0xff] }
 0x4ee   :  { %12445 = vst [vmem:[#allocation3_spill] sm:$0xff] %v9911_v30  ;;  %v9918_v14 = vadd.f32 %v4550_v5, %v9748_v44  ;;  %v9920_v12 = vpop.eup %6009  ;;  %v3605_v44 = vadd.f32 %v9855_v45, %v3604_v34  ;;  %v9938_v5 = vpop.permute.xlu1 %1801  ;;  %12455 = vst [vmem:[#allocation53_spill] sm:$0xff] %v9950_v52  ;;  %6031 = vpow2.f32 %v3255_v31  ;;  %v2844_v27 = vsub.f32 %v12457_v37, %v9362_v21  ;;  %v12461_v45 = vld [vmem:[#allocation85_spill] sm:$0xff]  ;;  %v12462_v15 = vld [vmem:[#allocation62_spill] sm:$0xff] }
 0x4ef   :  { %12447 = vst [vmem:[#allocation192_spill] sm:$0xff] %v9920_v12  ;;  %v4552_v33 = vpop.f32.mrf.mxu1  ;;  %v9930_v55 = vpop.eup %6011  ;;  %v2785_v1 = vsub.f32 %v12461_v45, %v12365_v11  ;;  %6033 = vpow2.f32 %v3257_v16  ;;  %v9969_v31 = vsel %vm2070_vm15, %v12462_v15, -1e+30  ;;  %v3614_v37 = vadd.f32 %v9909_v7, %v3613_v10 }
 0x4f0   :  { %12446 = vst [vmem:[#allocation46_spill] sm:$0xff] %v9918_v14  ;;  %12450 = vst [vmem:[#allocation193_spill] sm:$0xff] %v9930_v55  ;;  %v9944_v33 = vsel %vm2075_vm13, %v12452_v3, -1e+30  ;;  %v9952_v26 = vpop.eup %6013  ;;  %v12459_v3 = vld [vmem:[#allocation29_spill] sm:$0xff]  ;;  %v2637_v16 = vmax.f32 %v2636_v54, %v9969_v31  ;;  %v2845_v15 = vsub.f32 %v12465_v28, %v9362_v21  ;;  %vm2083_vm2 = vcmp.eq.s32.totalorder %v9956_v38, %v7276_v25  ;;  %v10035_v24 = vpop.permute.xlu0 %1822 }
 0x4f1   :  { %12453 = vst [vmem:[#allocation6_spill] sm:$0xff] %v9944_v33  ;;  %v4553_v34 = vpop.f32.mrf.mxu1  ;;  %12456 = vst [vmem:[#allocation67_spill] sm:$0xff] %v9952_v26  ;;  %3606 = vadd.xlane.f32.xlu0 %v3605_v44  ;;  %v3553_v17 = vadd.f32 %v12460_v36, %v12459_v3  ;;  %v9972_v44 = vpop.eup %6015  ;;  %vm2084_vm3 = vcmp.eq.s32.totalorder %v9956_v38, %v7274_v6  ;;  %v3269_v3 = vmul.f32 1.442695, %v2844_v27  ;;  %v12466_v36 = vld [vmem:[#allocation9_spill] sm:$0xff] }
 0x4f2   :  { %v9959_v8 = vadd.f32 %v4553_v34, %v9793_v61  ;;  %12463 = vst [vmem:[#allocation85_spill] sm:$0xff] %v9969_v31  ;;  %12464 = vst [vmem:[#allocation62_spill] sm:$0xff] %v9972_v44  ;;  %v2645_v61 = vmax.f32 %v9944_v33, %v9950_v52  ;;  %v3267_v34 = vmul.f32 1.442695, %v2843_v58  ;;  %v2851_v45 = vsub.f32 %v12466_v36, %v9472_v42  ;;  %v12469_v58 = vld [vmem:[#allocation20_spill] sm:$0xff]  ;;  %v12477_v31 = vld [vmem:[#allocation123_spill] sm:$0xff] }
 0x4f3   :  { %v4555_v40 = vpop.f32.mrf.mxu1  ;;  %v2852_v28 = vsub.f32 %v12469_v58, %v9472_v42  ;;  %v3615_v33 = vadd.f32 %v9911_v30, %v3614_v37  ;;  %v3623_v36 = vadd.f32 %v9930_v55, %v9920_v12  ;;  %v12475_v58 = vld [vmem:[#allocation87_spill] sm:$0xff]  ;;  %v12476_v12 = vld [vmem:[#allocation13_spill] sm:$0xff]  ;;  %v10029_v57 = vadd.f32 %v12477_v31, %v3553_v17 }
 0x4f4   :  { %12458 = vst [vmem:[#allocation101_spill] sm:$0xff] %v9959_v8  ;;  %v9981_v40 = vpop.eup %6017  ;;  %v3517_v10 = vpop.xlane.xlu1 %3516  ;;  %v12470_v8 = vld [vmem:[#allocation77_spill] sm:$0xff]  ;;  %v2846_v55 = vsub.f32 %v12476_v12, %v9362_v21  ;;  %v10033_v47 = vmul.f32 1.442695, %v2785_v1  ;;  %vm2085_vm5 = vcmp.eq.s32.totalorder %v9956_v38, %v7292_v48  ;;  %v12480_v12 = vld [vmem:[#allocation38_spill] sm:$0xff]  ;;  %vm2091_vm6 = vcmp.eq.s32.totalorder %v10035_v24, %v7276_v25 }
 0x4f5   :  { %v4558_v7 = vpop.f32.mrf.mxu1  ;;  %6035 = vrcp.f32 %v3517_v10  ;;  %2638 = vmax.xlane.f32.xlu0 %v2637_v16  ;;  %v9994_v14 = vpop.eup %6019  ;;  %v10002_v52 = vsel %vm2077_vm1, %v12470_v8, -1e+30  ;;  %v12473_v10 = vld [vmem:[#allocation126_spill] sm:$0xff]  ;;  %vm2092_vm7 = vcmp.eq.s32.totalorder %v10035_v24, %v7274_v6  ;;  %vm2086_vm9 = vcmp.eq.s32.totalorder %v9956_v38, %v7300_v39 }
 0x4f6   :  { %v9992_v54 = vadd.f32 %v4558_v7, %v9832_v50  ;;  %12468 = vst [vmem:[#allocation9_spill] sm:$0xff] %v9994_v14  ;;  %v10007_v16 = vpop.eup %6021  ;;  %v12472_v50 = vld [vmem:[#allocation172_spill] sm:$0xff]  ;;  %v10021_v8 = vsel %vm2084_vm3, %v12473_v10, -1e+30  ;;  %v2646_v37 = vmax.f32 %v2645_v61, %v10002_v52  ;;  %6037 = vpow2.f32 %v3267_v34 }
 0x4f7   :  { %v4560_v27 = vpop.f32.mrf.mxu1  ;;  %12471 = vst [vmem:[#allocation20_spill] sm:$0xff] %v10007_v16  ;;  %v10015_v7 = vsel %vm2083_vm2, %v12472_v50, -1e+30  ;;  %12474 = vst [vmem:[#allocation77_spill] sm:$0xff] %v10021_v8  ;;  %v10031_v50 = vpop.eup %6023  ;;  %6039 = vpow2.f32 %v3269_v3  ;;  %v3271_v10 = vmul.f32 1.442695, %v2845_v15  ;;  %vm2093_vm10 = vcmp.eq.s32.totalorder %v10035_v24, %v7292_v48 }
 0x4f8   :  { %12467 = vst [vmem:[#allocation10_spill] sm:$0xff] %v9992_v54  ;;  %12478 = vst [vmem:[#allocation172_spill] sm:$0xff] %v10031_v50  ;;  %v3283_v27 = vmul.f32 1.442695, %v2851_v45  ;;  %v2655_v21 = vmax.f32 %v10015_v7, %v10021_v8  ;;  %v10048_v3 = vsel %vm2078_vm4, %v12480_v12, -1e+30  ;;  %v10050_v1 = vpop.eup %6025  ;;  %v3624_v45 = vadd.f32 %v9952_v26, %v3623_v36 }
 0x4f9   :  { %v4561_v30 = vpop.f32.mrf.mxu1  ;;  %3616 = vadd.xlane.f32.xlu0 %v3615_v33  ;;  %12481 = vst [vmem:[#allocation87_spill] sm:$0xff] %v10050_v1  ;;  %v3285_v33 = vmul.f32 1.442695, %v2852_v28  ;;  %v10056_v15 = vpop.eup %6027  ;;  %v3273_v34 = vmul.f32 1.442695, %v2846_v55  ;;  %v12485_v28 = vld [vmem:[#allocation27_spill] sm:$0xff]  ;;  %6041 = vpow2.f32 %v3271_v10  ;;  %vm2032_vm11 = vcmp.eq.s32.totalorder %v9699_v32, %v7274_v6 }
 0x4fa   :  { %v10038_v61 = vadd.f32 %v4561_v30, %v9876_v23  ;;  %v2647_v30 = vmax.f32 %v2646_v37, %v10048_v3  ;;  %12482 = vst [vmem:[#allocation13_spill] sm:$0xff] %v10056_v15  ;;  %v10064_v46 = vpop.eup %6029  ;;  %v12486_v12 = vld [vmem:[#allocation90_spill] sm:$0xff]  ;;  %v10074_v55 = vsel %vm2085_vm5, %v9453_v51, -1e+30  ;;  %6043 = vpow2.f32 %v3283_v27  ;;  %v12492_v27 = vld [vmem:[#allocation15_spill] sm:$0xff] }
 0x4fb   :  { %v4563_v17 = vpop.f32.mrf.mxu1  ;;  %12484 = vst [vmem:[#allocation38_spill] sm:$0xff] %v10064_v46  ;;  %v2791_v23 = vsub.f32 %v12486_v12, %v12485_v28  ;;  %v10076_v36 = vpop.eup %6031  ;;  %v2656_v37 = vmax.f32 %v2655_v21, %v10074_v55  ;;  %6045 = vpow2.f32 %v3285_v33  ;;  %v10086_v10 = vsel %vm2091_vm6, %v9458_v49, -1e+30  ;;  %v12493_v21 = vld [vmem:[#allocation125_spill] sm:$0xff]  ;;  %v12496_v26 = vld [vmem:[#allocation130_spill] sm:$0xff] }
 0x4fc   :  { %12479 = vst [vmem:[#allocation126_spill] sm:$0xff] %v10038_v61  ;;  %v12483_v17 = vld [vmem:[#allocation104_spill] sm:$0xff]  ;;  %12488 = vst [vmem:[#allocation27_spill] sm:$0xff] %v10076_v36  ;;  %v10083_v12 = vpop.eup %6033  ;;  %v10089_v51 = vsel %vm2092_vm7, %v9488_v62, -1e+30  ;;  %6047 = vpow2.f32 %v3273_v34  ;;  %v2854_v38 = vsub.f32 %v12492_v27, %v9472_v42  ;;  %v3888_v61 = vmul.f32 %v9981_v40, %v12493_v21  ;;  %v12494_v33 = vld [vmem:[#allocation133_spill] sm:$0xff] }
 0x4fd   :  { %v2853_v31 = vsub.f32 %v12483_v17, %v9472_v42  ;;  %12487 = vst [vmem:[#allocation104_spill] sm:$0xff] %v10074_v55  ;;  %2648 = vmax.xlane.f32.xlu0 %v2647_v30  ;;  %v3633_v17 = vadd.f32 %v10007_v16, %v9994_v14  ;;  %12489 = vst [vmem:[#allocation90_spill] sm:$0xff] %v10083_v12  ;;  %v3625_v30 = vadd.f32 %v9972_v44, %v3624_v45  ;;  %v12495_v16 = vld [vmem:[#allocation124_spill] sm:$0xff]  ;;  %v12498_v21 = vld [vmem:[#allocation26_spill] sm:$0xff] }
 0x4fe   :  { %12490 = vst [vmem:[#allocation194_spill] sm:$0xff] %v10086_v10  ;;  %12491 = vst [vmem:[#allocation195_spill] sm:$0xff] %v10089_v51  ;;  %v10097_v14 = vsel %vm2086_vm9, %v9479_v9, -1e+30  ;;  %v3890_v49 = vmul.f32 %v9981_v40, %v12494_v33  ;;  %v3887_v62 = vmul.f32 %v9981_v40, %v12495_v16  ;;  %v3889_v45 = vmul.f32 %v9981_v40, %v12496_v26  ;;  %v12499_v44 = vld [vmem:[#allocation40_spill] sm:$0xff]  ;;  %v12500_v55 = vld [vmem:[#allocation22_spill] sm:$0xff] }
 0x4ff   :  { %v3287_v54 = vmul.f32 1.442695, %v2853_v31  ;;  %v2665_v42 = vmax.f32 %v10086_v10, %v10089_v51  ;;  %v2657_v31 = vmax.f32 %v2656_v37, %v10097_v14  ;;  %v3634_v9 = vadd.f32 %v10031_v50, %v3633_v17  ;;  %v12501_v26 = vld [vmem:[#allocation88_spill] sm:$0xff] }
 0x500   :  { %v2792_v40 = vsub.f32 %v12501_v26, %v12485_v28  ;;  %v3289_v51 = vmul.f32 1.442695, %v2854_v38  ;;  %v12505_v38 = vld [vmem:[#allocation96_spill] sm:$0xff]  ;;  %vm2094_vm12 = vcmp.eq.s32.totalorder %v10035_v24, %v7300_v39  ;;  %vm2033_vm13 = vcmp.eq.s32.totalorder %v9699_v32, %v7292_v48 }
 0x501   :  { %3626 = vadd.xlane.f32.xlu0 %v3625_v30  ;;  %v12497_v30 = vld [vmem:[#allocation41_spill] sm:$0xff]  ;;  %6049 = vpow2.f32 %v3287_v54  ;;  %v3635_v54 = vadd.f32 %v10050_v1, %v3634_v9  ;;  %v3555_v9 = vadd.f32 %v9364_v35, %v10029_v57  ;;  %vm2039_vm14 = vcmp.eq.s32.totalorder %v9753_v0, %v7276_v25 }
 0x502   :  { %v6036_v34 = vpop.eup %6035  ;;  %6051 = vpow2.f32 %v10033_v47  ;;  %vm2040_vm15 = vcmp.eq.s32.totalorder %v9753_v0, %v7274_v6  ;;  %v3568_v24 = vadd.f32 %v9502_v56, %v9486_v2  ;;  %vm2034_vm1 = vcmp.eq.s32.totalorder %v9699_v32, %v7300_v39  ;;  %v12614_v56 = vld [vmem:[#allocation65_spill] sm:$0xff] }
 0x503   :  { %v3884_v27 = vmul.f32 %v6036_v34, %v12497_v30  ;;  %v3886_v33 = vmul.f32 %v6036_v34, %v12498_v21  ;;  %v3883_v16 = vmul.f32 %v6036_v34, %v12499_v44  ;;  %v3885_v8 = vmul.f32 %v6036_v34, %v12500_v55  ;;  %v10119_v10 = vpop.eup %6037 }
 0x504   :  { %12502 = vst [vmem:[#allocation15_spill] sm:$0xff] %v10119_v10  ;;  %v10121_v21 = vpop.eup %6039  ;;  %v12504_v44 = vsub.f32 %v12475_v58, %v12365_v11  ;;  %v10130_v34 = vsel %vm2093_vm10, %v9615_v63, -1e+30  ;;  %v12506_v11 = vld [vmem:[#allocation102_spill] sm:$0xff]  ;;  %v3643_v58 = vadd.f32 %v10064_v46, %v10056_v15  ;;  %6053 = vpow2.f32 %v3289_v51  ;;  %v12569_v46 = vld [vmem:[#allocation52_spill] sm:$0xff] }
 0x505   :  { %2658 = vmax.xlane.f32.xlu0 %v2657_v31  ;;  %v4112_v37 = vpack.c.bf16 %v3888_v61, %v3884_v27  ;;  %v4114_v17 = vpack.c.bf16 %v3890_v49, %v3886_v33  ;;  %v4111_v30 = vpack.c.bf16 %v3887_v62, %v3883_v16  ;;  %v4113_v50 = vpack.c.bf16 %v3889_v45, %v3885_v8  ;;  %v12507_v62 = vld [vmem:[#allocation92_spill] sm:$0xff]  ;;  %v12511_v16 = vld [vmem:[#allocation93_spill] sm:$0xff] }
 0x506   :  { %12503 = vst [vmem:[#allocation125_spill] sm:$0xff] %v10121_v21  ;;  %v3153_v55 = vmul.f32 1.442695, %v12504_v44  ;;  %v10137_v61 = vsel %vm2031_vm8, %v12505_v38, -1e+30  ;;  %v2666_v63 = vmax.f32 %v2665_v42, %v10130_v34  ;;  %v2793_v45 = vsub.f32 %v12507_v62, %v12485_v28  ;;  %v10155_v27 = vpop.eup %6041  ;;  %v12515_v44 = vld [vmem:[#allocation95_spill] sm:$0xff] }
 0x507   :  { %4299 = vmatprep.mubr.bf16.mxu0 %v4112_v37  ;;  %4588 = vmatprep.mubr.bf16.mxu1 %v4114_v17  ;;  %v10145_v8 = vsel %vm2032_vm11, %v12506_v11, -1e+30  ;;  %v3163_v49 = vmul.f32 1.442695, %v2791_v23  ;;  %v3165_v31 = vmul.f32 1.442695, %v2792_v40  ;;  %v10167_v23 = vpop.eup %6043  ;;  %v3644_v51 = vadd.f32 %v10076_v36, %v3643_v58 }
 0x508   :  { %4300 = vmatmul.mubr.bf16.gmra.mxu0 %v4111_v30  ;;  %4589 = vmatmul.mubr.bf16.gmra.mxu1 %v4113_v50  ;;  %12508 = vst [vmem:[#allocation133_spill] sm:$0xff] %v10155_v27  ;;  %6055 = vpow2.f32 %v3153_v55  ;;  %v2590_v47 = vmax.f32 %v10137_v61, %v10145_v8  ;;  %v10165_v50 = vsel %vm2094_vm12, %v9654_v13, -1e+30  ;;  %12509 = vst [vmem:[#allocation124_spill] sm:$0xff] %v10167_v23  ;;  %v10175_v33 = vpop.eup %6045  ;;  %v3167_v40 = vmul.f32 1.442695, %v2793_v45 }
 0x509   :  { %3636 = vadd.xlane.f32.xlu0 %v3635_v54  ;;  %v2667_v57 = vmax.f32 %v2666_v63, %v10165_v50  ;;  %v3653_v42 = vadd.f32 %v10121_v21, %v10119_v10  ;;  %12510 = vst [vmem:[#allocation130_spill] sm:$0xff] %v10175_v33  ;;  %v2794_v26 = vsub.f32 %v12511_v16, %v12485_v28  ;;  %6057 = vpow2.f32 %v3163_v49  ;;  %v10183_v13 = vpop.eup %6047  ;;  %v12513_v37 = vld [vmem:[#allocation55_spill] sm:$0xff]  ;;  %v12514_v17 = vld [vmem:[#allocation97_spill] sm:$0xff]  ;;  %v12516_v28 = vld [vmem:[#allocation94_spill] sm:$0xff] }
 0x50a   :  { %12512 = vst [vmem:[#allocation41_spill] sm:$0xff] %v10183_v13  ;;  %6059 = vpow2.f32 %v3165_v31  ;;  %v2799_v30 = vsub.f32 %v12514_v17, %v12513_v37  ;;  %v10191_v55 = vsel %vm2033_vm13, %v12515_v44, -1e+30  ;;  %v2800_v54 = vsub.f32 %v12516_v28, %v12513_v37  ;;  %v12517_v11 = vld [vmem:[#allocation111_spill] sm:$0xff]  ;;  %v12518_v49 = vld [vmem:[#allocation37_spill] sm:$0xff] }
 0x50b   :  { %v2591_v38 = vmax.f32 %v2590_v47, %v10191_v55  ;;  %v10202_v63 = vsel %vm2039_vm14, %v12517_v11, -1e+30  ;;  %v3645_v58 = vadd.f32 %v10083_v12, %v3644_v51  ;;  %v10206_v62 = vsel %vm2040_vm15, %v12518_v49, -1e+30  ;;  %v12520_v16 = vld [vmem:[#allocation39_spill] sm:$0xff]  ;;  %v12525_v49 = vld [vmem:[#allocation25_spill] sm:$0xff] }
 0x50c   :  { %v3654_v45 = vadd.f32 %v10155_v27, %v3653_v42  ;;  %v3663_v31 = vadd.f32 %v10175_v33, %v10167_v23  ;;  %v3569_v32 = vadd.f32 %v9510_v29, %v3568_v24  ;;  %v10215_v17 = vsel %vm2034_vm1, %v12520_v16, -1e+30  ;;  %v12532_v23 = vld [vmem:[#allocation109_spill] sm:$0xff]  ;;  %v12549_v36 = vld [vmem:[#allocation155_spill] sm:$0xff]  ;;  %v12613_v29 = vld [vmem:[#allocation58_spill] sm:$0xff] }
 0x50d   :  { %2668 = vmax.xlane.f32.xlu0 %v2667_v57  ;;  %v3179_v57 = vmul.f32 1.442695, %v2799_v30  ;;  %v3181_v44 = vmul.f32 1.442695, %v2800_v54  ;;  %v2592_v51 = vmax.f32 %v2591_v38, %v10215_v17  ;;  %vm2041_vm2 = vcmp.eq.s32.totalorder %v9753_v0, %v7292_v48  ;;  %v12521_v30 = vld [vmem:[#allocation99_spill] sm:$0xff] }
 0x50e   :  { %v10212_v47 = vpop.eup %6049  ;;  %v2600_v42 = vmax.f32 %v10202_v63, %v10206_v62  ;;  %6061 = vpow2.f32 %v3167_v40  ;;  %v3655_v24 = vadd.f32 %v10183_v13, %v3654_v45  ;;  %v2801_v11 = vsub.f32 %v12521_v30, %v12513_v37  ;;  %v12524_v40 = vld [vmem:[#allocation127_spill] sm:$0xff] }
 0x50f   :  { %3556 = vadd.xlane.f32.xlu1 %v3555_v9  ;;  %12519 = vst [vmem:[#allocation26_spill] sm:$0xff] %v10212_v47  ;;  %v3169_v9 = vmul.f32 1.442695, %v2794_v26  ;;  %v3664_v28 = vadd.f32 %v10212_v47, %v3663_v31  ;;  %vm2047_vm3 = vcmp.eq.s32.totalorder %v9819_v53, %v7276_v25  ;;  %vm2048_vm4 = vcmp.eq.s32.totalorder %v9819_v53, %v7274_v6  ;;  %v10231_v38 = vpop.eup %6051  ;;  %v12523_v26 = vld [vmem:[#allocation42_spill] sm:$0xff] }
 0x510   :  { %v3570_v54 = vadd.f32 %v9540_v22, %v3569_v32  ;;  %12522 = vst [vmem:[#allocation40_spill] sm:$0xff] %v10231_v38  ;;  %6063 = vpow2.f32 %v3179_v57  ;;  %v10236_v45 = vsel %vm2041_vm2, %v12525_v49, -1e+30  ;;  %v3578_v31 = vadd.f32 %v9795_v4, %v9775_v60  ;;  %v12530_v47 = vld [vmem:[#allocation2_spill] sm:$0xff]  ;;  %v12609_v4 = vld [vmem:[#allocation12_spill] sm:$0xff] }
 0x511   :  { %3646 = vadd.xlane.f32.xlu0 %v3645_v58  ;;  %v2807_v58 = vsub.f32 %v12524_v40, %v12523_v26  ;;  %v10240_v16 = vpop.eup %6053  ;;  %6065 = vpow2.f32 %v3181_v44  ;;  %vm2042_vm5 = vcmp.eq.s32.totalorder %v9753_v0, %v7300_v39  ;;  %v2601_v32 = vmax.f32 %v2600_v42, %v10236_v45  ;;  %v12529_v40 = vld [vmem:[#allocation103_spill] sm:$0xff] }
 0x512   :  { %12526 = vst [vmem:[#allocation22_spill] sm:$0xff] %v10240_v16  ;;  %v2802_v49 = vsub.f32 %v12529_v40, %v12513_v37  ;;  %v10256_v44 = vsel %vm2047_vm3, %v12530_v47, -1e+30  ;;  %v10262_v0 = vsel %vm2048_vm4, %v12532_v23, -1e+30  ;;  %6067 = vpow2.f32 %v3169_v9  ;;  %v12535_v40 = vld [vmem:[#allocation28_spill] sm:$0xff] }
 0x513   :  { %2593 = vmax.xlane.f32.xlu1 %v2592_v51  ;;  %v12527_v51 = vld [vmem:[#allocation128_spill] sm:$0xff]  ;;  %12531 = vst [vmem:[#allocation96_spill] sm:$0xff] %v10256_v44  ;;  %12533 = vst [vmem:[#allocation102_spill] sm:$0xff] %v10262_v0  ;;  %v3183_v42 = vmul.f32 1.442695, %v2801_v11  ;;  %vm2049_vm6 = vcmp.eq.s32.totalorder %v9819_v53, %v7292_v48  ;;  %v2610_v23 = vmax.f32 %v10256_v44, %v10262_v0 }
 0x514   :  { %v2808_v30 = vsub.f32 %v12527_v51, %v12523_v26  ;;  %v3195_v37 = vmul.f32 1.442695, %v2807_v58  ;;  %v3185_v11 = vmul.f32 1.442695, %v2802_v49  ;;  %vm2055_vm7 = vcmp.eq.s32.totalorder %v9882_v18, %v7276_v25  ;;  %v12654_v44 = vld [vmem:[#allocation36_spill] sm:$0xff] }
 0x515   :  { %3656 = vadd.xlane.f32.xlu0 %v3655_v24  ;;  %v10247_v57 = vpop.eup %6055  ;;  %v3665_v24 = vadd.f32 %v10240_v16, %v3664_v28  ;;  %v10267_v28 = vsel %vm2042_vm5, %v12535_v40, -1e+30  ;;  %v3579_v16 = vadd.f32 %v10231_v38, %v3578_v31  ;;  %6069 = vpow2.f32 %v3183_v42  ;;  %v12539_v31 = vld [vmem:[#allocation57_spill] sm:$0xff]  ;;  %v12540_v40 = vld [vmem:[#allocation64_spill] sm:$0xff] }
 0x516   :  { %12528 = vst [vmem:[#allocation88_spill] sm:$0xff] %v10247_v57  ;;  %v10264_v51 = vpop.eup %6057  ;;  %12536 = vst [vmem:[#allocation93_spill] sm:$0xff] %v10267_v28  ;;  %v3197_v27 = vmul.f32 1.442695, %v2808_v30  ;;  %v2602_v10 = vmax.f32 %v2601_v32, %v10267_v28  ;;  %vm2056_vm8 = vcmp.eq.s32.totalorder %v9882_v18, %v7274_v6  ;;  %6071 = vpow2.f32 %v3195_v37  ;;  %v12543_v37 = vld [vmem:[#allocation69_spill] sm:$0xff] }
 0x517   :  { %3571 = vadd.xlane.f32.xlu1 %v3570_v54  ;;  %12534 = vst [vmem:[#allocation92_spill] sm:$0xff] %v10264_v51  ;;  %v10270_v33 = vpop.eup %6059  ;;  %v3580_v32 = vadd.f32 %v10247_v57, %v3579_v16  ;;  %v10287_v49 = vsel %vm2049_vm6, %v12540_v40, -1e+30  ;;  %vm2050_vm9 = vcmp.eq.s32.totalorder %v9819_v53, %v7300_v39  ;;  %v12545_v16 = vld [vmem:[#allocation157_spill] sm:$0xff]  ;;  %vm2057_vm10 = vcmp.eq.s32.totalorder %v9882_v18, %v7292_v48 }
 0x518   :  { %12537 = vst [vmem:[#allocation55_spill] sm:$0xff] %v10270_v33  ;;  %12541 = vst [vmem:[#allocation95_spill] sm:$0xff] %v10287_v49  ;;  %6073 = vpow2.f32 %v3197_v27  ;;  %v2611_v42 = vmax.f32 %v2610_v23, %v10287_v49  ;;  %v10300_v40 = vsel %vm2056_vm8, %v12545_v16, -1e+30  ;;  %v12548_v53 = vld [vmem:[#allocation129_spill] sm:$0xff]  ;;  %vm2063_vm11 = vcmp.eq.s32.totalorder %v9938_v5, %v7276_v25 }
 0x519   :  { %3666 = vadd.xlane.f32.xlu0 %v3665_v24  ;;  %v4277_v47 = vpop.f32.mrf.mxu0  ;;  %v2809_v24 = vsub.f32 %v12539_v31, %v12523_v26  ;;  %12546 = vst [vmem:[#allocation37_spill] sm:$0xff] %v10300_v40  ;;  %6075 = vpow2.f32 %v3185_v11  ;;  %v2810_v27 = vsub.f32 %v12548_v53, %v12523_v26  ;;  %v10307_v15 = vsel %vm2050_vm9, %v12549_v36, -1e+30  ;;  %v12556_v53 = vld [vmem:[#allocation165_spill] sm:$0xff] }
 0x51a   :  { %v4566_v9 = vpop.f32.mrf.mxu1  ;;  %12550 = vst [vmem:[#allocation99_spill] sm:$0xff] %v10307_v15  ;;  %vm2064_vm12 = vcmp.eq.s32.totalorder %v9938_v5, %v7274_v6  ;;  %vm2058_vm13 = vcmp.eq.s32.totalorder %v9882_v18, %v7300_v39  ;;  %vm2065_vm14 = vcmp.eq.s32.totalorder %v9938_v5, %v7292_v48  ;;  %vm2066_vm15 = vcmp.eq.s32.totalorder %v9938_v5, %v7300_v39  ;;  %v12608_v57 = vld [vmem:[#allocation21_spill] sm:$0xff] }
 0x51b   :  { %v10277_v54 = vadd.f32 %v4566_v9, %v4277_v47  ;;  %v4279_v58 = vpop.f32.mrf.mxu0  ;;  %2603 = vmax.xlane.f32.xlu1 %v2602_v10  ;;  %v3588_v9 = vadd.f32 %v10270_v33, %v10264_v51  ;;  %v10302_v13 = vpop.eup %6061  ;;  %v3199_v23 = vmul.f32 1.442695, %v2809_v24  ;;  %v3201_v36 = vmul.f32 1.442695, %v2810_v27  ;;  %v12554_v24 = vld [vmem:[#allocation164_spill] sm:$0xff]  ;;  %v12579_v51 = vld [vmem:[#allocation18_spill] sm:$0xff] }
 0x51c   :  { %v4568_v30 = vpop.f32.mrf.mxu1  ;;  %12547 = vst [vmem:[#allocation39_spill] sm:$0xff] %v10302_v13  ;;  %v10337_v27 = vsel %vm2063_vm11, %v12556_v53, -1e+30  ;;  %v12580_v33 = vld [vmem:[#allocation106_spill] sm:$0xff] }
 0x51d   :  { %12538 = vst [vmem:[#allocation97_spill] sm:$0xff] %v10277_v54  ;;  %v4280_v47 = vpop.f32.mrf.mxu0  ;;  %v10297_v30 = vsel %vm2055_vm7, %v12543_v37, -1e+30  ;;  %v3589_v37 = vadd.f32 %v10302_v13, %v3588_v9  ;;  %6077 = vpow2.f32 %v3199_v23  ;;  %12557 = vst [vmem:[#allocation103_spill] sm:$0xff] %v10337_v27  ;;  %v12558_v23 = vld [vmem:[#allocation167_spill] sm:$0xff] }
 0x51e   :  { %v4569_v58 = vpop.f32.mrf.mxu1  ;;  %12544 = vst [vmem:[#allocation111_spill] sm:$0xff] %v10297_v30  ;;  %v2620_v26 = vmax.f32 %v10297_v30, %v10300_v40  ;;  %6079 = vpow2.f32 %v3201_v36  ;;  %v12612_v30 = vld [vmem:[#allocation70_spill] sm:$0xff] }
 0x51f   :  { %v10294_v31 = vadd.f32 %v4569_v58, %v4280_v47  ;;  %v4282_v10 = vpop.f32.mrf.mxu0  ;;  %3581 = vadd.xlane.f32.xlu1 %v3580_v32  ;;  %v10311_v58 = vpop.eup %6063  ;;  %v10328_v32 = vsel %vm2057_vm10, %v12554_v24, -1e+30  ;;  %v12561_v47 = vld [vmem:[#allocation166_spill] sm:$0xff] }
 0x520   :  { %v4571_v21 = vpop.f32.mrf.mxu1  ;;  %12551 = vst [vmem:[#allocation42_spill] sm:$0xff] %v10311_v58  ;;  %v2612_v10 = vmax.f32 %v2611_v42, %v10307_v15  ;;  %v10319_v11 = vpop.eup %6065  ;;  %12555 = vst [vmem:[#allocation128_spill] sm:$0xff] %v10328_v32  ;;  %v2621_v9 = vmax.f32 %v2620_v26, %v10328_v32 }
 0x521   :  { %12542 = vst [vmem:[#allocation94_spill] sm:$0xff] %v10294_v31  ;;  %12552 = vst [vmem:[#allocation127_spill] sm:$0xff] %v10319_v11  ;;  %v10325_v21 = vpop.eup %6067  ;;  %v3598_v16 = vadd.f32 %v10319_v11, %v10311_v58 }
 0x522   :  { %12553 = vst [vmem:[#allocation25_spill] sm:$0xff] %v10325_v21  ;;  %v3590_v42 = vadd.f32 %v10325_v21, %v3589_v37  ;;  %v10342_v24 = vpop.eup %6069  ;;  %v10345_v37 = vsel %vm2058_vm13, %v12561_v47, -1e+30 }
 0x523   :  { %2613 = vmax.xlane.f32.xlu1 %v2612_v10  ;;  %v10340_v10 = vsel %vm2064_vm12, %v12558_v23, -1e+30  ;;  %12560 = vst [vmem:[#allocation109_spill] sm:$0xff] %v10342_v24  ;;  %12562 = vst [vmem:[#allocation28_spill] sm:$0xff] %v10345_v37  ;;  %v10347_v54 = vpop.eup %6071  ;;  %v2622_v18 = vmax.f32 %v2621_v9, %v10345_v37  ;;  %v3599_v26 = vadd.f32 %v10342_v24, %v3598_v16  ;;  %v12571_v24 = vld [vmem:[#allocation48_spill] sm:$0xff] }
 0x524   :  { %12559 = vst [vmem:[#allocation2_spill] sm:$0xff] %v10340_v10  ;;  %12563 = vst [vmem:[#allocation57_spill] sm:$0xff] %v10347_v54  ;;  %v2630_v53 = vmax.f32 %v10337_v27, %v10340_v10 }
 0x525   :  { %v10355_v23 = vpop.eup %6073 }
 0x526   :  { %12564 = vst [vmem:[#allocation64_spill] sm:$0xff] %v10355_v23  ;;  %v10357_v36 = vpop.eup %6075  ;;  %v3608_v16 = vadd.f32 %v10355_v23, %v10347_v54  ;;  %v12575_v54 = vld [vmem:[#allocation60_spill] sm:$0xff] }
 0x527   :  { %3591 = vadd.xlane.f32.xlu1 %v3590_v42  ;;  %12565 = vst [vmem:[#allocation69_spill] sm:$0xff] %v10357_v36  ;;  %v12566_v42 = vld [vmem:[#allocation115_spill] sm:$0xff]  ;;  %v3600_v31 = vadd.f32 %v10357_v36, %v3599_v26 }
 0x528   :  { %v10360_v47 = vsel %vm2065_vm14, %v12566_v42, -1e+30  ;;  %v12572_v26 = vld [vmem:[#allocation139_spill] sm:$0xff] }
 0x529   :  { %12567 = vst [vmem:[#allocation157_spill] sm:$0xff] %v10360_v47  ;;  %v2631_v9 = vmax.f32 %v2630_v53, %v10360_v47  ;;  %v2815_v58 = vsub.f32 %v12572_v26, %v12571_v24  ;;  %v12574_v53 = vld [vmem:[#allocation140_spill] sm:$0xff]  ;;  %v12578_v26 = vld [vmem:[#allocation143_spill] sm:$0xff] }
 0x52a   :  { %v10368_v12 = vpop.eup %6077  ;;  %v2816_v36 = vsub.f32 %v12574_v53, %v12571_v24  ;;  %v2825_v53 = vsub.f32 %v12579_v51, %v12575_v54  ;;  %v12584_v51 = vld [vmem:[#allocation149_spill] sm:$0xff] }
 0x52b   :  { %2623 = vmax.xlane.f32.xlu1 %v2622_v18  ;;  %12568 = vst [vmem:[#allocation129_spill] sm:$0xff] %v10368_v12  ;;  %v10371_v18 = vsel %vm2066_vm15, %v12569_v46, -1e+30  ;;  %v3609_v42 = vadd.f32 %v10368_v12, %v3608_v16  ;;  %v10377_v5 = vpop.eup %6079  ;;  %v3211_v46 = vmul.f32 1.442695, %v2815_v58 }
 0x52c   :  { %12570 = vst [vmem:[#allocation155_spill] sm:$0xff] %v10371_v18  ;;  %v2632_v1 = vmax.f32 %v2631_v9, %v10371_v18  ;;  %12573 = vst [vmem:[#allocation164_spill] sm:$0xff] %v10377_v5  ;;  %v3213_v13 = vmul.f32 1.442695, %v2816_v36  ;;  %v12577_v9 = vld [vmem:[#allocation152_spill] sm:$0xff]  ;;  %v12582_v36 = vld [vmem:[#allocation169_spill] sm:$0xff] }
 0x52d   :  { %v3610_v11 = vadd.f32 %v10377_v5, %v3609_v42  ;;  %v2824_v16 = vsub.f32 %v12577_v9, %v12575_v54  ;;  %6081 = vpow2.f32 %v3211_v46  ;;  %v12583_v9 = vld [vmem:[#allocation170_spill] sm:$0xff]  ;;  %v3231_v5 = vmul.f32 1.442695, %v2825_v53 }
 0x52e   :  { %6083 = vpow2.f32 %v3213_v13 }
 0x52f   :  { %3601 = vadd.xlane.f32.xlu1 %v3600_v31  ;;  %v12576_v31 = vld [vmem:[#allocation150_spill] sm:$0xff]  ;;  %v3229_v21 = vmul.f32 1.442695, %v2824_v16  ;;  %v2818_v16 = vsub.f32 %v12584_v51, %v12571_v24 }
 0x530   :  { %v2823_v23 = vsub.f32 %v12576_v31, %v12575_v54 }
 0x532   :  { %v3227_v12 = vmul.f32 1.442695, %v2823_v23 }
 0x533   :  { %2633 = vmax.xlane.f32.xlu1 %v2632_v1  ;;  %v2817_v1 = vsub.f32 %v12578_v26, %v12571_v24 }
 0x534   :  { %6085 = vpow2.f32 %v3227_v12  ;;  %v12585_v12 = vld [vmem:[#allocation61_spill] sm:$0xff] }
 0x535   :  { %v3215_v31 = vmul.f32 1.442695, %v2817_v1  ;;  %6087 = vrcp.f32 %v12580_v33  ;;  %v2826_v33 = vsub.f32 %v12585_v12, %v12575_v54  ;;  %v12586_v1 = vld [vmem:[#allocation43_spill] sm:$0xff] }
 0x537   :  { %3611 = vadd.xlane.f32.xlu1 %v3610_v11  ;;  %v12581_v11 = vld [vmem:[#allocation79_spill] sm:$0xff] }
 0x538   :  { %6089 = vrcp.f32 %v12581_v11 }
 0x539   :  { %6091 = vpow2.f32 %v3229_v21 }
 0x53a   :  { %6093 = vpow2.f32 %v3215_v31  ;;  %v10401_v31 = vpop.eup %6081 }
 0x53b   :  { %6095 = vrcp.f32 %v9415_v43  ;;  %12587 = vst [vmem:[#allocation165_spill] sm:$0xff] %v10401_v31 }
 0x53c   :  { %v2554_v58 = vpop.xlane.xlu1 %2553  ;;  %6097 = vpow2.f32 %v3231_v5 }
 0x53d   :  { %v2831_v42 = vsub.f32 %v12582_v36, %v2554_v58  ;;  %v2832_v23 = vsub.f32 %v12583_v9, %v2554_v58  ;;  %v2833_v11 = vsub.f32 %v12586_v1, %v2554_v58  ;;  %v3217_v36 = vmul.f32 1.442695, %v2818_v16  ;;  %v10403_v9 = vpop.eup %6083 }
 0x53e   :  { %v2834_v21 = vsub.f32 %v9358_v59, %v2554_v58  ;;  %12588 = vst [vmem:[#allocation167_spill] sm:$0xff] %v10403_v9 }
 0x53f   :  { %v3243_v26 = vmul.f32 1.442695, %v2831_v42  ;;  %v3245_v13 = vmul.f32 1.442695, %v2832_v23  ;;  %v3233_v42 = vmul.f32 1.442695, %v2826_v33 }
 0x540   :  { %v3527_v46 = vpop.xlane.xlu1 %3526  ;;  %v3247_v24 = vmul.f32 1.442695, %v2833_v11  ;;  %v12593_v11 = vld [vmem:[#allocation144_spill] sm:$0xff] }
 0x541   :  { %6099 = vpow2.f32 %v3243_v26  ;;  %v10406_v23 = vpop.eup %6085  ;;  %v3249_v26 = vmul.f32 1.442695, %v2834_v21 }
 0x542   :  { %6101 = vpow2.f32 %v3245_v13  ;;  %12589 = vst [vmem:[#allocation166_spill] sm:$0xff] %v10406_v23  ;;  %v6088_v5 = vpop.eup %6087 }
 0x543   :  { %6103 = vrcp.f32 %v3527_v46  ;;  %v12590_v46 = vld [vmem:[#allocation32_spill] sm:$0xff]  ;;  %v3898_v18 = vmul.f32 %v6088_v5, %v12593_v11 }
 0x544   :  { %v2564_v53 = vpop.xlane.xlu1 %2563  ;;  %6105 = vpow2.f32 %v3217_v36 }
 0x545   :  { %v2839_v43 = vsub.f32 %v9388_v20, %v2564_v53  ;;  %v2840_v54 = vsub.f32 %v9401_v19, %v2564_v53  ;;  %v2841_v13 = vsub.f32 %v9428_v41, %v2564_v53  ;;  %v6090_v58 = vpop.eup %6089  ;;  %6107 = vpow2.f32 %v3233_v42  ;;  %v12592_v20 = vld [vmem:[#allocation137_spill] sm:$0xff]  ;;  %v12594_v19 = vld [vmem:[#allocation134_spill] sm:$0xff] }
 0x546   :  { %v2842_v51 = vsub.f32 %v12590_v46, %v2564_v53  ;;  %v10411_v16 = vpop.eup %6091  ;;  %6109 = vpow2.f32 %v3247_v24  ;;  %v3896_v1 = vmul.f32 %v6088_v5, %v12592_v20  ;;  %v10416_v47 = vmul.f32 %v6088_v5, %v12594_v19  ;;  %v12596_v42 = vld [vmem:[#allocation141_spill] sm:$0xff]  ;;  %v12597_v53 = vld [vmem:[#allocation148_spill] sm:$0xff]  ;;  %v10430_v19 = vpop.xlane.xlu0 %3561 }
 0x547   :  { %12591 = vst [vmem:[#allocation115_spill] sm:$0xff] %v10411_v16  ;;  %v3259_v12 = vmul.f32 1.442695, %v2839_v43  ;;  %v3261_v33 = vmul.f32 1.442695, %v2840_v54  ;;  %v10418_v36 = vpop.eup %6093  ;;  %6111 = vpow2.f32 %v3249_v26  ;;  %v3897_v10 = vmul.f32 %v6088_v5, %v12596_v42  ;;  %v12599_v26 = vld [vmem:[#allocation86_spill] sm:$0xff] }
 0x548   :  { %v3537_v59 = vpop.xlane.xlu1 %3536  ;;  %12595 = vst [vmem:[#allocation52_spill] sm:$0xff] %v10418_v36  ;;  %v3263_v41 = vmul.f32 1.442695, %v2841_v13  ;;  %v10422_v46 = vmul.f32 %v6090_v58, %v12597_v53  ;;  %v6096_v24 = vpop.eup %6095  ;;  %v3265_v43 = vmul.f32 1.442695, %v2842_v51  ;;  %v3618_v54 = vadd.f32 %v10403_v9, %v10401_v31  ;;  %v12600_v5 = vld [vmem:[#allocation100_spill] sm:$0xff] }
 0x549   :  { %6113 = vrcp.f32 %v3537_v59  ;;  %v3628_v20 = vadd.f32 %v10411_v16, %v10406_v23  ;;  %v10428_v11 = vpop.eup %6097  ;;  %v10434_v42 = vmul.f32 %v6090_v58, %v12600_v5  ;;  %v12601_v53 = vld [vmem:[#allocation147_spill] sm:$0xff]  ;;  %v12603_v51 = vld [vmem:[#allocation84_spill] sm:$0xff]  ;;  %v12604_v9 = vld [vmem:[#allocation89_spill] sm:$0xff]  ;;  %v10455_v37 = vmul.f32 %v6096_v24, %v12609_v4 }
 0x54a   :  { %12598 = vst [vmem:[#allocation48_spill] sm:$0xff] %v10428_v11  ;;  %6115 = vpow2.f32 %v3259_v12  ;;  %v10437_v27 = vmul.f32 %v6090_v58, %v12601_v53  ;;  %v12605_v16 = vld [vmem:[#allocation8_spill] sm:$0xff]  ;;  %v10452_v53 = vmul.f32 %v6096_v24, %v12608_v57 }
 0x54b   :  { %6117 = vpow2.f32 %v3261_v33  ;;  %v10444_v38 = vmul.f32 %v6090_v58, %v12605_v16  ;;  %v3619_v58 = vadd.f32 %v10418_v36, %v3618_v54  ;;  %v3629_v16 = vadd.f32 %v10428_v11, %v3628_v20 }
 0x54c   :  { %v2574_v21 = vpop.xlane.xlu1 %2573  ;;  %6119 = vpow2.f32 %v3263_v41  ;;  %v12611_v41 = vld [vmem:[#allocation118_spill] sm:$0xff] }
 0x54d   :  { %v2847_v13 = vsub.f32 %v12599_v26, %v2574_v21  ;;  %v2848_v31 = vsub.f32 %v12603_v51, %v2574_v21  ;;  %v2849_v23 = vsub.f32 %v12604_v9, %v2574_v21  ;;  %v12607_v26 = vld [vmem:[#allocation11_spill] sm:$0xff]  ;;  %6121 = vpow2.f32 %v3265_v43  ;;  %v12610_v51 = vld [vmem:[#allocation174_spill] sm:$0xff]  ;;  %v12615_v43 = vld [vmem:[#allocation176_spill] sm:$0xff] }
 0x54e   :  { %v10439_v59 = vpop.eup %6099  ;;  %v10449_v5 = vmul.f32 %v6096_v24, %v12607_v26  ;;  %v2850_v9 = vsub.f32 %v12610_v51, %v2574_v21 }
 0x54f   :  { %12602 = vst [vmem:[#allocation139_spill] sm:$0xff] %v10439_v59  ;;  %v10446_v60 = vpop.eup %6101  ;;  %v3275_v32 = vmul.f32 1.442695, %v2847_v13  ;;  %v3277_v22 = vmul.f32 1.442695, %v2848_v31 }
 0x550   :  { %12606 = vst [vmem:[#allocation140_spill] sm:$0xff] %v10446_v60  ;;  %v3547_v12 = vpop.xlane.xlu1 %3546  ;;  %v6104_v33 = vpop.eup %6103  ;;  %v3279_v4 = vmul.f32 1.442695, %v2849_v23  ;;  %v12617_v23 = vld [vmem:[#allocation19_spill] sm:$0xff] }
 0x551   :  { %v3892_v40 = vmul.f32 %v6104_v33, %v12611_v41  ;;  %v3894_v26 = vmul.f32 %v6104_v33, %v12612_v30  ;;  %v3891_v2 = vmul.f32 %v6104_v33, %v12613_v29  ;;  %v3893_v15 = vmul.f32 %v6104_v33, %v12614_v56  ;;  %v10473_v41 = vpop.eup %6105 }
 0x552   :  { %v3638_v30 = vadd.f32 %v10446_v60, %v10439_v59  ;;  %12616 = vst [vmem:[#allocation60_spill] sm:$0xff] %v10473_v41  ;;  %v3281_v29 = vmul.f32 1.442695, %v2850_v9  ;;  %6123 = vrcp.f32 %v3547_v12  ;;  %v10477_v33 = vpop.eup %6107  ;;  %v12629_v60 = vld [vmem:[#allocation116_spill] sm:$0xff] }
 0x553   :  { %v4116_v51 = vpack.c.bf16 %v3896_v1, %v3892_v40  ;;  %v4118_v54 = vpack.c.bf16 %v3898_v18, %v3894_v26  ;;  %v4115_v20 = vpack.c.bf16 %v10416_v47, %v3891_v2  ;;  %v4117_v31 = vpack.c.bf16 %v3897_v10, %v3893_v15  ;;  %12618 = vst [vmem:[#allocation150_spill] sm:$0xff] %v10477_v33  ;;  %v12619_v2 = vld [vmem:[#allocation16_spill] sm:$0xff]  ;;  %v12620_v47 = vld [vmem:[#allocation178_spill] sm:$0xff]  ;;  %v12621_v1 = vld [vmem:[#allocation23_spill] sm:$0xff]  ;;  %v10487_v15 = vpop.eup %6109 }
 0x554   :  { %6125 = vpow2.f32 %v3275_v32  ;;  %12622 = vst [vmem:[#allocation152_spill] sm:$0xff] %v10487_v15  ;;  %v12623_v32 = vld [vmem:[#allocation179_spill] sm:$0xff] }
 0x555   :  { %v10463_v57 = vpop.xlane.xlu0 %2588  ;;  %4307 = vmatprep.mubr.bf16.mxu0 %v4116_v51  ;;  %4596 = vmatprep.mubr.bf16.mxu1 %v4118_v54  ;;  %6127 = vpow2.f32 %v3277_v22  ;;  %v10503_v22 = vadd.f32 %v10487_v15, %v3638_v30 }
 0x556   :  { %v2859_v21 = vsub.f32 %v12615_v43, %v10463_v57  ;;  %v2860_v26 = vsub.f32 %v12621_v1, %v10463_v57  ;;  %4308 = vmatmul.mubr.bf16.gmra.mxu0 %v4115_v20  ;;  %4597 = vmatmul.mubr.bf16.gmra.mxu1 %v4117_v31  ;;  %v2861_v10 = vsub.f32 %v12623_v32, %v10463_v57  ;;  %v12624_v43 = vld [vmem:[#allocation4_spill] sm:$0xff]  ;;  %6129 = vpow2.f32 %v3279_v4  ;;  %v10505_v20 = vpop.eup %6111  ;;  %v12626_v32 = vld [vmem:[#allocation50_spill] sm:$0xff] }
 0x557   :  { %v10469_v13 = vpop.xlane.xlu1 %2583  ;;  %v10492_v51 = vmul.f32 %v6096_v24, %v12624_v43  ;;  %6131 = vpow2.f32 %v3281_v29  ;;  %v6114_v24 = vpop.eup %6113 }
 0x558   :  { %v2855_v56 = vsub.f32 %v12617_v23, %v10469_v13  ;;  %v2856_v40 = vsub.f32 %v12619_v2, %v10469_v13  ;;  %v2857_v18 = vsub.f32 %v12620_v47, %v10469_v13  ;;  %v3299_v12 = vmul.f32 1.442695, %v2859_v21  ;;  %v12625_v21 = vld [vmem:[#allocation121_spill] sm:$0xff]  ;;  %v10515_v30 = vpop.eup %6115 }
 0x559   :  { %v10485_v9 = vpop.xlane.xlu0 %3566  ;;  %v10497_v23 = vadd.f32 %v10473_v41, %v3619_v58  ;;  %v10500_v2 = vadd.f32 %v10477_v33, %v3629_v16  ;;  %v2862_v16 = vsub.f32 %v12625_v21, %v10463_v57  ;;  %v3301_v47 = vmul.f32 1.442695, %v2860_v26  ;;  %v10521_v59 = vpop.eup %6117  ;;  %v12632_v57 = vld [vmem:[#allocation68_spill] sm:$0xff]  ;;  %v12633_v21 = vld [vmem:[#allocation113_spill] sm:$0xff] }
 0x55a   :  { %v3291_v31 = vmul.f32 1.442695, %v2855_v56  ;;  %v3293_v4 = vmul.f32 1.442695, %v2856_v40  ;;  %v3295_v58 = vmul.f32 1.442695, %v2857_v18  ;;  %6133 = vpow2.f32 %v3299_v12  ;;  %v10531_v41 = vpop.eup %6119 }
 0x55b   :  { %v10494_v54 = vpop.permute.xlu1 %1807  ;;  %v12628_v56 = vld [vmem:[#allocation30_spill] sm:$0xff]  ;;  %v3303_v15 = vmul.f32 1.442695, %v2861_v10  ;;  %v3899_v26 = vmul.f32 %v6114_v24, %v12632_v57  ;;  %v3901_v33 = vmul.f32 %v6114_v24, %v12633_v21  ;;  %v12637_v57 = vld [vmem:[#allocation119_spill] sm:$0xff] }
 0x55c   :  { %vm2071_vm1 = vcmp.eq.s32.totalorder %v10494_v54, %v7276_v25  ;;  %vm2072_vm2 = vcmp.eq.s32.totalorder %v10494_v54, %v7274_v6  ;;  %v3900_v43 = vmul.f32 %v6114_v24, %v12628_v56  ;;  %v12631_v18 = vld [vmem:[#allocation74_spill] sm:$0xff]  ;;  %vm2073_vm3 = vcmp.eq.s32.totalorder %v10494_v54, %v7292_v48 }
 0x55d   :  { %v10513_v1 = vpop.xlane.xlu0 %2598  ;;  %v10518_v29 = vsel %vm2071_vm1, %v12626_v32, -1e+30  ;;  %v10524_v40 = vsel %vm2072_vm2, %v12629_v60, -1e+30  ;;  %v3902_v11 = vmul.f32 %v6114_v24, %v12631_v18  ;;  %v10540_v60 = vpop.eup %6121  ;;  %6135 = vpow2.f32 %v3291_v31  ;;  %v12639_v31 = vld [vmem:[#allocation80_spill] sm:$0xff] }
 0x55e   :  { %12627 = vst [vmem:[#allocation143_spill] sm:$0xff] %v10518_v29  ;;  %12630 = vst [vmem:[#allocation18_spill] sm:$0xff] %v10524_v40  ;;  %v4120_v10 = vpack.c.bf16 %v10422_v46, %v3900_v43  ;;  %v4119_v24 = vpack.c.bf16 %v10437_v27, %v3899_v26  ;;  %v4121_v32 = vpack.c.bf16 %v10444_v38, %v3901_v33  ;;  %6137 = vpow2.f32 %v3293_v4  ;;  %v12635_v43 = vld [vmem:[#allocation73_spill] sm:$0xff]  ;;  %v12640_v38 = vld [vmem:[#allocation168_spill] sm:$0xff] }
 0x55f   :  { %v10529_v36 = vpop.permute.xlu1 %1813  ;;  %v4122_v12 = vpack.c.bf16 %v10434_v42, %v3902_v11  ;;  %v2640_v46 = vmax.f32 %v10518_v29, %v10524_v40  ;;  %6139 = vpow2.f32 %v3295_v58  ;;  %vm2074_vm6 = vcmp.eq.s32.totalorder %v10494_v54, %v7300_v39  ;;  %v6124_v4 = vpop.eup %6123  ;;  %v12648_v29 = vld [vmem:[#allocation182_spill] sm:$0xff] }
 0x560   :  { %vm2079_vm4 = vcmp.eq.s32.totalorder %v10529_v36, %v7276_v25  ;;  %vm2080_vm5 = vcmp.eq.s32.totalorder %v10529_v36, %v7274_v6  ;;  %4315 = vmatprep.mubr.bf16.mxu0 %v4120_v10  ;;  %v10563_v27 = vsel %vm2073_vm3, %v12640_v38, -1e+30  ;;  %vm2081_vm7 = vcmp.eq.s32.totalorder %v10529_v36, %v7292_v48  ;;  %v12646_v38 = vld [vmem:[#allocation75_spill] sm:$0xff] }
 0x561   :  { %v10545_v56 = vpop.xlane.xlu0 %3576  ;;  %v10550_v18 = vsel %vm2079_vm4, %v12635_v43, -1e+30  ;;  %v10553_v21 = vsel %vm2080_vm5, %v12637_v57, -1e+30  ;;  %12641 = vst [vmem:[#allocation170_spill] sm:$0xff] %v10563_v27  ;;  %4604 = vmatprep.mubr.bf16.mxu1 %v4122_v12  ;;  %4316 = vmatmul.mubr.bf16.gmra.mxu0 %v4119_v24  ;;  %vm2082_vm8 = vcmp.eq.s32.totalorder %v10529_v36, %v7300_v39  ;;  %6141 = vpow2.f32 %v3301_v47  ;;  %v10579_v10 = vpop.eup %6125  ;;  %v12642_v12 = vld [vmem:[#allocation34_spill] sm:$0xff] }
 0x562   :  { %12634 = vst [vmem:[#allocation106_spill] sm:$0xff] %v10545_v56  ;;  %12636 = vst [vmem:[#allocation79_spill] sm:$0xff] %v10550_v18  ;;  %4605 = vmatmul.mubr.bf16.gmra.mxu1 %v4121_v32  ;;  %v2650_v33 = vmax.f32 %v10550_v18, %v10553_v21  ;;  %6143 = vpow2.f32 %v3303_v15  ;;  %v3305_v58 = vmul.f32 1.442695, %v2862_v16  ;;  %v10587_v47 = vsel %vm2074_vm6, %v12642_v12, -1e+30  ;;  %v10591_v32 = vpop.eup %6127 }
 0x563   :  { %12638 = vst [vmem:[#allocation169_spill] sm:$0xff] %v10553_v21  ;;  %v10565_v42 = vpop.permute.xlu1 %1819  ;;  %12643 = vst [vmem:[#allocation149_spill] sm:$0xff] %v10587_v47  ;;  %v2641_v15 = vmax.f32 %v2640_v46, %v10563_v27  ;;  %v12644_v16 = vld [vmem:[#allocation105_spill] sm:$0xff]  ;;  %v12645_v43 = vld [vmem:[#allocation171_spill] sm:$0xff]  ;;  %v3907_v11 = vmul.f32 %v6124_v4, %v12646_v38  ;;  %v2867_v49 = vsub.f32 %v12648_v29, %v10513_v1  ;;  %v10600_v54 = vpop.eup %6129  ;;  %vm4917_vm2 = vcmask 523264  }
 0x564   :  { %vm2087_vm9 = vcmp.eq.s32.totalorder %v10565_v42, %v7276_v25  ;;  %vm2088_vm10 = vcmp.eq.s32.totalorder %v10565_v42, %v7274_v6  ;;  %vm2089_vm11 = vcmp.eq.s32.totalorder %v10565_v42, %v7292_v48  ;;  %v3908_v24 = vmul.f32 %v6124_v4, %v12644_v16  ;;  %v12647_v21 = vld [vmem:[#allocation72_spill] sm:$0xff]  ;;  %v12649_v12 = vld [vmem:[#allocation138_spill] sm:$0xff]  ;;  %v12651_v46 = vld [vmem:[#allocation81_spill] sm:$0xff]  ;;  %v10610_v38 = vpop.eup %6131 }
 0x565   :  { %v10577_v26 = vpop.xlane.xlu0 %2608  ;;  %v3910_v57 = vmul.f32 %v6124_v4, %v12645_v43  ;;  %v3909_v18 = vmul.f32 %v6124_v4, %v12647_v21  ;;  %v10603_v0 = vsel %vm2087_vm9, %v12649_v12, -1e+30  ;;  %v10606_v16 = vsel %vm2088_vm10, %v12651_v46, -1e+30 }
 0x566   :  { %12650 = vst [vmem:[#allocation61_spill] sm:$0xff] %v10603_v0  ;;  %12652 = vst [vmem:[#allocation43_spill] sm:$0xff] %v10606_v16  ;;  %v2642_v27 = vmax.f32 %v2641_v15, %v10587_v47  ;;  %v4124_v43 = vpack.c.bf16 %v10449_v5, %v3908_v24  ;;  %v4123_v4 = vpack.c.bf16 %v10455_v37, %v3907_v11  ;;  %v10623_v15 = vsel %vm2081_vm7, %v12654_v44, -1e+30  ;;  %v12656_v5 = vld [vmem:[#allocation175_spill] sm:$0xff]  ;;  %v12659_v11 = vld [vmem:[#allocation98_spill] sm:$0xff] }
 0x567   :  { %v10596_v40 = vpop.permute.xlu1 %1825  ;;  %v4126_v21 = vpack.c.bf16 %v10452_v53, %v3910_v57  ;;  %v4125_v29 = vpack.c.bf16 %v10492_v51, %v3909_v18  ;;  %12655 = vst [vmem:[#allocation137_spill] sm:$0xff] %v10623_v15  ;;  %6145 = vpow2.f32 %v3305_v58  ;;  %vm2090_vm13 = vcmp.eq.s32.totalorder %v10565_v42, %v7300_v39  ;;  %v10633_v53 = vpop.eup %6133  ;;  %v12658_v44 = vld [vmem:[#allocation183_spill] sm:$0xff] }
 0x568   :  { %vm2095_vm12 = vcmp.eq.s32.totalorder %v10596_v40, %v7276_v25  ;;  %v10631_v37 = vsel %vm2089_vm11, %v12656_v5, -1e+30  ;;  %2643 = vmax.xlane.f32.xlu1 %v2642_v27  ;;  %4323 = vmatprep.mubr.bf16.mxu0 %v4124_v43  ;;  %12657 = vst [vmem:[#allocation144_spill] sm:$0xff] %v10633_v53  ;;  %v2660_v51 = vmax.f32 %v10603_v0, %v10606_v16  ;;  %v3315_v24 = vmul.f32 1.442695, %v2867_v49  ;;  %v12660_v27 = vld [vmem:[#allocation177_spill] sm:$0xff] }
 0x569   :  { %v10617_v12 = vpop.xlane.xlu0 %3586  ;;  %4612 = vmatprep.mubr.bf16.mxu1 %v4126_v21  ;;  %4324 = vmatmul.mubr.bf16.gmra.mxu0 %v4123_v4  ;;  %v2868_v18 = vsub.f32 %v12658_v44, %v10513_v1  ;;  %v2869_v58 = vsub.f32 %v12659_v11, %v10513_v1  ;;  %vm2096_vm14 = vcmp.eq.s32.totalorder %v10596_v40, %v7274_v6  ;;  %v10647_v46 = vsel %vm2095_vm12, %v12660_v27, -1e+30  ;;  %v12661_v43 = vld [vmem:[#allocation108_spill] sm:$0xff]  ;;  %v12663_v25 = vld [vmem:[#allocation122_spill] sm:$0xff] }
 0x56a   :  { %12653 = vst [vmem:[#allocation32_spill] sm:$0xff] %v10617_v12  ;;  %v4285_v57 = vpop.f32.mrf.mxu0  ;;  %4613 = vmatmul.mubr.bf16.gmra.mxu1 %v4125_v29  ;;  %v2870_v21 = vsub.f32 %v12661_v43, %v10513_v1  ;;  %v2651_v4 = vmax.f32 %v2650_v33, %v10623_v15  ;;  %6147 = vpow2.f32 %v3315_v24  ;;  %v12662_v29 = vld [vmem:[#allocation190_spill] sm:$0xff]  ;;  %v10654_v47 = vpop.eup %6135  ;;  %v10661_v1 = vsel %vm2082_vm8, %v12663_v25, -1e+30  ;;  %v12665_v33 = vld [vmem:[#allocation191_spill] sm:$0xff]  ;;  %v12667_v43 = vld [vmem:[#allocation33_spill] sm:$0xff] }
 0x56b   :  { %v3317_v44 = vmul.f32 1.442695, %v2868_v18  ;;  %v3319_v49 = vmul.f32 1.442695, %v2869_v58  ;;  %v2875_v11 = vsub.f32 %v12662_v29, %v10577_v26  ;;  %12664 = vst [vmem:[#allocation134_spill] sm:$0xff] %v10661_v1  ;;  %v2876_v18 = vsub.f32 %v12665_v33, %v10577_v26  ;;  %v12666_v58 = vld [vmem:[#allocation132_spill] sm:$0xff] }
 0x56c   :  { %v4574_v5 = vpop.f32.mrf.mxu1  ;;  %v4287_v16 = vpop.f32.mrf.mxu0  ;;  %v3321_v12 = vmul.f32 1.442695, %v2870_v21  ;;  %3621 = vadd.xlane.f32.xlu1 %v10497_v23  ;;  %v2877_v24 = vsub.f32 %v12666_v58, %v10577_v26  ;;  %v2878_v21 = vsub.f32 %v12667_v43, %v10577_v26  ;;  %v12669_v25 = vld [vmem:[#allocation185_spill] sm:$0xff]  ;;  %v2652_v58 = vmax.f32 %v2651_v4, %v10661_v1  ;;  %v12673_v4 = vld [vmem:[#allocation135_spill] sm:$0xff] }
 0x56d   :  { %v2619_v0 = vpop.xlane.xlu0 %2618  ;;  %v10667_v16 = vpop.eup %6137  ;;  %6149 = vpow2.f32 %v3317_v44  ;;  %v3331_v23 = vmul.f32 1.442695, %v2875_v11  ;;  %v10671_v29 = vadd.f32 %v4574_v5, %v4285_v57  ;;  %v10679_v33 = vsel %vm2096_vm14, %v12669_v25, -1e+30  ;;  %v12674_v1 = vld [vmem:[#allocation151_spill] sm:$0xff] }
 0x56e   :  { %v4576_v27 = vpop.f32.mrf.mxu1  ;;  %v4288_v15 = vpop.f32.mrf.mxu0  ;;  %6151 = vpow2.f32 %v3319_v49  ;;  %v3335_v26 = vmul.f32 1.442695, %v2877_v24  ;;  %v3337_v57 = vmul.f32 1.442695, %v2878_v21  ;;  %v12672_v49 = vld [vmem:[#allocation24_spill] sm:$0xff]  ;;  %v2885_v28 = vsub.f32 %v12674_v1, %v2619_v0  ;;  %v12676_v1 = vld [vmem:[#allocation181_spill] sm:$0xff] }
 0x56f   :  { %12668 = vst [vmem:[#allocation141_spill] sm:$0xff] %v10671_v29  ;;  %v10673_v36 = vpop.eup %6139  ;;  %v3333_v27 = vmul.f32 1.442695, %v2876_v18  ;;  %6153 = vpow2.f32 %v3321_v12  ;;  %v2883_v25 = vsub.f32 %v12672_v49, %v2619_v0  ;;  %v2884_v18 = vsub.f32 %v12673_v4, %v2619_v0  ;;  %v12677_v4 = vld [vmem:[#allocation158_spill] sm:$0xff]  ;;  %v12679_v12 = vld [vmem:[#allocation159_spill] sm:$0xff] }
 0x570   :  { %v4577_v44 = vpop.f32.mrf.mxu1  ;;  %v10682_v35 = vpop.eup %6141  ;;  %2653 = vmax.xlane.f32.xlu1 %v2652_v58  ;;  %6155 = vpow2.f32 %v3331_v23  ;;  %vm2097_vm15 = vcmp.eq.s32.totalorder %v10596_v40, %v7292_v48  ;;  %vm2098_vm1 = vcmp.eq.s32.totalorder %v10596_v40, %v7300_v39  ;;  %v2661_v21 = vmax.f32 %v2660_v51, %v10631_v37  ;;  %v12686_v40 = vld [vmem:[#allocation49_spill] sm:$0xff] }
 0x571   :  { %v10684_v5 = vadd.f32 %v4577_v44, %v4288_v15  ;;  %v4290_v11 = vpop.f32.mrf.mxu0  ;;  %v10686_v43 = vpop.xlane.xlu0 %3596  ;;  %6157 = vpow2.f32 %v3333_v27  ;;  %v12675_v15 = vld [vmem:[#allocation153_spill] sm:$0xff]  ;;  %v3347_v23 = vmul.f32 1.442695, %v2883_v25  ;;  %v3349_v58 = vmul.f32 1.442695, %v2884_v18 }
 0x572   :  { %v10688_v56 = vpop.eup %6143  ;;  %v4579_v6 = vpop.f32.mrf.mxu1  ;;  %v2886_v24 = vsub.f32 %v12675_v15, %v2619_v0  ;;  %v2670_v44 = vmax.f32 %v10647_v46, %v10679_v33  ;;  %6159 = vpow2.f32 %v3335_v26  ;;  %v10707_v27 = vsel %vm2090_vm13, %v12676_v1, -1e+30 }
 0x573   :  { %12670 = vst [vmem:[#allocation148_spill] sm:$0xff] %v10684_v5  ;;  %12671 = vst [vmem:[#allocation86_spill] sm:$0xff] %v10688_v56  ;;  %v3673_v0 = vadd.f32 %v10682_v35, %v10633_v53  ;;  %v4293_v11 = vpop.f32.mrf.mxu0  ;;  %6161 = vpow2.f32 %v3337_v57  ;;  %v3351_v51 = vmul.f32 1.442695, %v2885_v28  ;;  %v12680_v5 = vld [vmem:[#allocation131_spill] sm:$0xff]  ;;  %v2662_v28 = vmax.f32 %v2661_v21, %v10707_v27 }
 0x574   :  { %3631 = vadd.xlane.f32.xlu1 %v10500_v2  ;;  %v3353_v49 = vmul.f32 1.442695, %v2886_v24  ;;  %v10713_v26 = vpop.eup %6145  ;;  %6163 = vpow2.f32 %v3347_v23  ;;  %v10723_v2 = vsel %vm2097_vm15, %v12680_v5, -1e+30  ;;  %v12681_v24 = vld [vmem:[#allocation17_spill] sm:$0xff]  ;;  %v12683_v48 = vsub.f32 %v12639_v31, %v10469_v13 }
 0x575   :  { %v4582_v25 = vpop.f32.mrf.mxu1  ;;  %v3674_v42 = vadd.f32 %v10688_v56, %v3673_v0  ;;  %v4295_v1 = vpop.f32.mrf.mxu0  ;;  %6165 = vpow2.f32 %v3349_v58  ;;  %v2671_v21 = vmax.f32 %v2670_v44, %v10723_v2  ;;  %v3648_v44 = vadd.f32 %v10521_v59, %v10515_v30 }
 0x576   :  { %v2629_v6 = vpop.xlane.xlu0 %2628  ;;  %v10716_v15 = vadd.f32 %v4582_v25, %v4293_v11  ;;  %v12682_v11 = vld [vmem:[#allocation44_spill] sm:$0xff]  ;;  %v3297_v5 = vmul.f32 1.442695, %v12683_v48  ;;  %6167 = vpow2.f32 %v3351_v51  ;;  %vm4934_vm3 = vcmask 785408  }
 0x577   :  { %v2891_v18 = vsub.f32 %v12677_v4, %v2629_v6  ;;  %v2892_v29 = vsub.f32 %v12679_v12, %v2629_v6  ;;  %v4584_v57 = vpop.f32.mrf.mxu1  ;;  %v2893_v4 = vsub.f32 %v12681_v24, %v2629_v6  ;;  %v3675_v23 = vadd.f32 %v10713_v26, %v3674_v42  ;;  %v4296_v0 = vpop.f32.mrf.mxu0  ;;  %v12685_v24 = vld [vmem:[#allocation136_spill] sm:$0xff] }
 0x578   :  { %12678 = vst [vmem:[#allocation100_spill] sm:$0xff] %v10716_v15  ;;  %v2894_v25 = vsub.f32 %v12682_v11, %v2629_v6  ;;  %v10731_v53 = vpop.eup %6147  ;;  %2663 = vmax.xlane.f32.xlu1 %v2662_v28  ;;  %6169 = vpow2.f32 %v3353_v49  ;;  %v3640_v57 = vadd.f32 %v10505_v20, %v10503_v22  ;;  %v10747_v13 = vsel %vm2098_vm1, %v12685_v24, -1e+30  ;;  %v12687_v11 = vld [vmem:[#allocation114_spill] sm:$0xff] }
 0x579   :  { %v3363_v1 = vmul.f32 1.442695, %v2891_v18  ;;  %v3365_v56 = vmul.f32 1.442695, %v2892_v29  ;;  %v4585_v58 = vpop.f32.mrf.mxu1  ;;  %3676 = vadd.xlane.f32.xlu0 %v3675_v23  ;;  %v3367_v6 = vmul.f32 1.442695, %v2893_v4  ;;  %v4298_v18 = vpop.f32.mrf.mxu0  ;;  %v2672_v39 = vmax.f32 %v2671_v21, %v10747_v13 }
 0x57a   :  { %v10729_v12 = vpop.xlane.xlu0 %3606  ;;  %v10737_v42 = vadd.f32 %v4585_v58, %v4296_v0  ;;  %v10739_v29 = vpop.eup %6149  ;;  %v3369_v28 = vmul.f32 1.442695, %v2894_v25  ;;  %v3658_v25 = vadd.f32 %v10591_v32, %v10579_v10  ;;  %v12689_v58 = vld [vmem:[#allocation54_spill] sm:$0xff] }
 0x57b   :  { %v4587_v31 = vpop.f32.mrf.mxu1  ;;  %6171 = vpow2.f32 %v3363_v1  ;;  %v10751_v51 = vpop.eup %6151  ;;  %v3683_v22 = vadd.f32 %v10739_v29, %v10731_v53 }
 0x57c   :  { %12684 = vst [vmem:[#allocation147_spill] sm:$0xff] %v10737_v42  ;;  %6173 = vpow2.f32 %v3365_v56  ;;  %v10757_v23 = vpop.eup %6153  ;;  %3641 = vadd.xlane.f32.xlu1 %v3640_v57  ;;  %v12691_v57 = vld [vmem:[#allocation85_spill] sm:$0xff] }
 0x57d   :  { %6175 = vpow2.f32 %v3297_v5  ;;  %v10762_v48 = vpop.eup %6155  ;;  %v3684_v56 = vadd.f32 %v10751_v51, %v3683_v22  ;;  %v3649_v5 = vadd.f32 %v10531_v41, %v3648_v44  ;;  %v3659_v44 = vadd.f32 %v10600_v54, %v3658_v25 }
 0x57e   :  { %v2639_v4 = vpop.xlane.xlu0 %2638  ;;  %12688 = vst [vmem:[#allocation84_spill] sm:$0xff] %v10762_v48  ;;  %6177 = vpow2.f32 %v3367_v6  ;;  %v10768_v24 = vpop.eup %6157 }
 0x57f   :  { %v2899_v0 = vsub.f32 %v12686_v40, %v2639_v4  ;;  %v2900_v1 = vsub.f32 %v12687_v11, %v2639_v4  ;;  %v2901_v18 = vsub.f32 %v12689_v58, %v2639_v4  ;;  %12690 = vst [vmem:[#allocation89_spill] sm:$0xff] %v10768_v24  ;;  %v2902_v21 = vsub.f32 %v12691_v57, %v2639_v4  ;;  %v10777_v15 = vpop.eup %6159 }
 0x580   :  { %6179 = vpow2.f32 %v3369_v28  ;;  %v3685_v11 = vadd.f32 %v10757_v23, %v3684_v56  ;;  %v3693_v6 = vadd.f32 %v10768_v24, %v10762_v48  ;;  %12692 = vst [vmem:[#allocation8_spill] sm:$0xff] %v10777_v15  ;;  %2673 = vmax.xlane.f32.xlu1 %v2672_v39  ;;  %v10779_v58 = vpop.eup %6161  ;;  %v3668_v56 = vadd.f32 %v10667_v16, %v10654_v47  ;;  %v12762_v24 = vld [vmem:[#allocation2_spill] sm:$0xff] }
 0x581   :  { %v3379_v31 = vmul.f32 1.442695, %v2899_v0  ;;  %v3381_v40 = vmul.f32 1.442695, %v2900_v1  ;;  %v3383_v49 = vmul.f32 1.442695, %v2901_v18  ;;  %v10783_v0 = vpop.eup %6163  ;;  %v3650_v1 = vadd.f32 %v10540_v60, %v3649_v5 }
 0x582   :  { %v10775_v22 = vpop.xlane.xlu0 %3616  ;;  %12693 = vst [vmem:[#allocation11_spill] sm:$0xff] %v10779_v58  ;;  %3686 = vadd.xlane.f32.xlu0 %v3685_v11  ;;  %v3385_v4 = vmul.f32 1.442695, %v2902_v21  ;;  %v3694_v28 = vadd.f32 %v10777_v15, %v3693_v6  ;;  %12694 = vst [vmem:[#allocation21_spill] sm:$0xff] %v10783_v0  ;;  %v10788_v18 = vpop.eup %6165  ;;  %v3660_v5 = vadd.f32 %v10610_v38, %v3659_v44 }
 0x583   :  { %6181 = vpow2.f32 %v3379_v31  ;;  %12695 = vst [vmem:[#allocation12_spill] sm:$0xff] %v10788_v18  ;;  %v12696_v31 = vld [vmem:[#allocation6_spill] sm:$0xff]  ;;  %v10794_v6 = vpop.eup %6167  ;;  %v3703_v42 = vadd.f32 %v10788_v18, %v10783_v0  ;;  %v12749_v0 = vld [vmem:[#allocation128_spill] sm:$0xff] }
 0x584   :  { %6183 = vpow2.f32 %v3381_v40  ;;  %v3695_v39 = vadd.f32 %v10779_v58, %v3694_v28  ;;  %3651 = vadd.xlane.f32.xlu1 %v3650_v1  ;;  %v12697_v40 = vld [vmem:[#allocation53_spill] sm:$0xff]  ;;  %12698 = vst [vmem:[#allocation174_spill] sm:$0xff] %v10794_v6  ;;  %v3669_v28 = vadd.f32 %v10673_v36, %v3668_v56 }
 0x585   :  { %6185 = vpow2.f32 %v3383_v49  ;;  %v10799_v49 = vpop.eup %6169  ;;  %v3704_v48 = vadd.f32 %v10794_v6, %v3703_v42 }
 0x586   :  { %v2649_v57 = vpop.xlane.xlu0 %2648  ;;  %6187 = vpow2.f32 %v3385_v4  ;;  %3696 = vadd.xlane.f32.xlu0 %v3695_v39  ;;  %12699 = vst [vmem:[#allocation118_spill] sm:$0xff] %v10799_v49 }
 0x587   :  { %v2907_v25 = vsub.f32 %v12696_v31, %v2649_v57  ;;  %v2908_v21 = vsub.f32 %v12697_v40, %v2649_v57  ;;  %v2909_v11 = vsub.f32 %v10002_v52, %v2649_v57  ;;  %v2910_v1 = vsub.f32 %v10048_v3, %v2649_v57 }
 0x588   :  { %v10803_v40 = vpop.eup %6171  ;;  %3661 = vadd.xlane.f32.xlu1 %v3660_v5  ;;  %v3705_v56 = vadd.f32 %v10799_v49, %v3704_v48  ;;  %v12704_v5 = vld [vmem:[#allocation77_spill] sm:$0xff] }
 0x589   :  { %v3395_v31 = vmul.f32 1.442695, %v2907_v25  ;;  %v3397_v15 = vmul.f32 1.442695, %v2908_v21  ;;  %12700 = vst [vmem:[#allocation70_spill] sm:$0xff] %v10803_v40  ;;  %v10808_v44 = vpop.eup %6173 }
 0x58a   :  { %v3399_v52 = vmul.f32 1.442695, %v2909_v11  ;;  %v10806_v58 = vpop.xlane.xlu0 %3626  ;;  %12701 = vst [vmem:[#allocation58_spill] sm:$0xff] %v10808_v44  ;;  %v10810_v4 = vpop.eup %6175  ;;  %v3713_v3 = vadd.f32 %v10808_v44, %v10803_v40  ;;  %v3401_v25 = vmul.f32 1.442695, %v2910_v1  ;;  %3706 = vadd.xlane.f32.xlu0 %v3705_v56 }
 0x58b   :  { %6189 = vpow2.f32 %v3395_v31  ;;  %v10815_v39 = vpop.eup %6177  ;;  %v3670_v57 = vadd.f32 %v10810_v4, %v3669_v28  ;;  %v12705_v31 = vld [vmem:[#allocation104_spill] sm:$0xff] }
 0x58c   :  { %6191 = vpow2.f32 %v3397_v15  ;;  %12702 = vst [vmem:[#allocation65_spill] sm:$0xff] %v10815_v39  ;;  %v3714_v21 = vadd.f32 %v10815_v39, %v3713_v3  ;;  %v12747_v39 = vld [vmem:[#allocation111_spill] sm:$0xff] }
 0x58d   :  { %6193 = vpow2.f32 %v3399_v52  ;;  %v10819_v11 = vpop.eup %6179  ;;  %3671 = vadd.xlane.f32.xlu1 %v3670_v57 }
 0x58e   :  { %v2659_v42 = vpop.xlane.xlu0 %2658  ;;  %12703 = vst [vmem:[#allocation176_spill] sm:$0xff] %v10819_v11  ;;  %v3715_v44 = vadd.f32 %v10819_v11, %v3714_v21  ;;  %6195 = vpow2.f32 %v3401_v25  ;;  %v12748_v11 = vld [vmem:[#allocation37_spill] sm:$0xff] }
 0x58f   :  { %v2915_v15 = vsub.f32 %v10015_v7, %v2659_v42  ;;  %v2916_v48 = vsub.f32 %v12704_v5, %v2659_v42  ;;  %v2917_v6 = vsub.f32 %v12705_v31, %v2659_v42  ;;  %v2918_v1 = vsub.f32 %v10097_v14, %v2659_v42 }
 0x590   :  { %v10824_v40 = vpop.eup %6181  ;;  %3716 = vadd.xlane.f32.xlu0 %v3715_v44  ;;  %v12710_v44 = vld [vmem:[#allocation194_spill] sm:$0xff] }
 0x591   :  { %12706 = vst [vmem:[#allocation19_spill] sm:$0xff] %v10824_v40  ;;  %v10827_v28 = vpop.eup %6183  ;;  %v3411_v52 = vmul.f32 1.442695, %v2915_v15  ;;  %v3413_v56 = vmul.f32 1.442695, %v2916_v48  ;;  %v12711_v15 = vld [vmem:[#allocation195_spill] sm:$0xff] }
 0x592   :  { %12707 = vst [vmem:[#allocation16_spill] sm:$0xff] %v10827_v28  ;;  %v3415_v3 = vmul.f32 1.442695, %v2917_v6  ;;  %v10830_v57 = vpop.xlane.xlu0 %3636  ;;  %v3723_v7 = vadd.f32 %v10827_v28, %v10824_v40  ;;  %v10834_v5 = vpop.eup %6185  ;;  %v3417_v14 = vmul.f32 1.442695, %v2918_v1 }
 0x593   :  { %12708 = vst [vmem:[#allocation178_spill] sm:$0xff] %v10834_v5  ;;  %6197 = vpow2.f32 %v3411_v52  ;;  %v10837_v31 = vpop.eup %6187 }
 0x594   :  { %6199 = vpow2.f32 %v3413_v56  ;;  %v3724_v21 = vadd.f32 %v10834_v5, %v3723_v7  ;;  %12709 = vst [vmem:[#allocation23_spill] sm:$0xff] %v10837_v31 }
 0x595   :  { %6201 = vrcp.f32 %v10430_v19 }
 0x596   :  { %6203 = vpow2.f32 %v3415_v3  ;;  %v2669_v25 = vpop.xlane.xlu0 %2668  ;;  %v3725_v6 = vadd.f32 %v10837_v31, %v3724_v21  ;;  %v12730_v31 = vld [vmem:[#allocation29_spill] sm:$0xff] }
 0x597   :  { %v2923_v42 = vsub.f32 %v12710_v44, %v2669_v25  ;;  %v2924_v48 = vsub.f32 %v12711_v15, %v2669_v25  ;;  %v2925_v40 = vsub.f32 %v10130_v34, %v2669_v25  ;;  %6205 = vpow2.f32 %v3417_v14 }
 0x598   :  { %v10844_v28 = vpop.eup %6189  ;;  %3726 = vadd.xlane.f32.xlu0 %v3725_v6  ;;  %v3557_v56 = vpop.xlane.xlu1 %3556  ;;  %v2926_v19 = vsub.f32 %v10165_v50, %v2669_v25 }
 0x599   :  { %12712 = vst [vmem:[#allocation179_spill] sm:$0xff] %v10844_v28  ;;  %v10846_v52 = vpop.eup %6191  ;;  %v3427_v1 = vmul.f32 1.442695, %v2923_v42  ;;  %v3429_v3 = vmul.f32 1.442695, %v2924_v48  ;;  %6207 = vrcp.f32 %v3557_v56 }
 0x59a   :  { %12713 = vst [vmem:[#allocation4_spill] sm:$0xff] %v10846_v52  ;;  %v3431_v7 = vmul.f32 1.442695, %v2925_v40  ;;  %v3733_v21 = vadd.f32 %v10846_v52, %v10844_v28  ;;  %v10851_v44 = vpop.eup %6193  ;;  %v3433_v15 = vmul.f32 1.442695, %v2926_v19  ;;  %v12727_v28 = vld [vmem:[#allocation78_spill] sm:$0xff] }
 0x59b   :  { %12714 = vst [vmem:[#allocation121_spill] sm:$0xff] %v10851_v44  ;;  %6209 = vpow2.f32 %v3427_v1  ;;  %v10854_v5 = vpop.eup %6195  ;;  %v12729_v52 = vld [vmem:[#allocation31_spill] sm:$0xff] }
 0x59c   :  { %6211 = vpow2.f32 %v3429_v3  ;;  %v3734_v34 = vadd.f32 %v10851_v44, %v3733_v21  ;;  %v2594_v6 = vpop.xlane.xlu1 %2593  ;;  %12715 = vst [vmem:[#allocation50_spill] sm:$0xff] %v10854_v5 }
 0x59d   :  { %v2863_v14 = vsub.f32 %v10137_v61, %v2594_v6  ;;  %v2864_v50 = vsub.f32 %v10145_v8, %v2594_v6  ;;  %v2865_v25 = vsub.f32 %v10191_v55, %v2594_v6  ;;  %6213 = vpow2.f32 %v3431_v7 }
 0x59e   :  { %v2866_v40 = vsub.f32 %v10215_v17, %v2594_v6  ;;  %v3735_v42 = vadd.f32 %v10854_v5, %v3734_v34  ;;  %6215 = vrcp.f32 %v10485_v9  ;;  %v12719_v34 = vld [vmem:[#allocation156_spill] sm:$0xff] }
 0x59f   :  { %v3307_v56 = vmul.f32 1.442695, %v2863_v14  ;;  %v3309_v1 = vmul.f32 1.442695, %v2864_v50  ;;  %v3311_v3 = vmul.f32 1.442695, %v2865_v25  ;;  %6217 = vpow2.f32 %v3433_v15 }
 0x5a0   :  { %v10861_v48 = vpop.eup %6197  ;;  %v3572_v61 = vpop.xlane.xlu1 %3571  ;;  %3736 = vadd.xlane.f32.xlu0 %v3735_v42  ;;  %v3313_v7 = vmul.f32 1.442695, %v2866_v40  ;;  %v12720_v14 = vld [vmem:[#allocation163_spill] sm:$0xff] }
 0x5a1   :  { %12716 = vst [vmem:[#allocation30_spill] sm:$0xff] %v10861_v48  ;;  %v10864_v19 = vpop.eup %6199  ;;  %6219 = vpow2.f32 %v3307_v56  ;;  %v12721_v15 = vld [vmem:[#allocation71_spill] sm:$0xff] }
 0x5a2   :  { %12717 = vst [vmem:[#allocation116_spill] sm:$0xff] %v10864_v19  ;;  %v6202_v8 = vpop.eup %6201  ;;  %v3743_v55 = vadd.f32 %v10864_v19, %v10861_v48  ;;  %6221 = vpow2.f32 %v3309_v1 }
 0x5a3   :  { %v10868_v17 = vpop.eup %6203  ;;  %6223 = vpow2.f32 %v3311_v3  ;;  %v3920_v6 = vmul.f32 %v6202_v8, %v12719_v34  ;;  %v3922_v50 = vmul.f32 %v6202_v8, %v12720_v14  ;;  %v3919_v25 = vmul.f32 %v6202_v8, %v12721_v15  ;;  %v12726_v15 = vld [vmem:[#allocation106_spill] sm:$0xff] }
 0x5a4   :  { %12718 = vst [vmem:[#allocation74_spill] sm:$0xff] %v10868_v17  ;;  %v3744_v21 = vadd.f32 %v10868_v17, %v3743_v55  ;;  %v2604_v9 = vpop.xlane.xlu1 %2603  ;;  %v10874_v42 = vpop.eup %6205  ;;  %6225 = vrcp.f32 %v3572_v61  ;;  %v12723_v55 = vld [vmem:[#allocation93_spill] sm:$0xff]  ;;  %v12724_v17 = vld [vmem:[#allocation160_spill] sm:$0xff] }
 0x5a5   :  { %12722 = vst [vmem:[#allocation68_spill] sm:$0xff] %v10874_v42  ;;  %v2871_v56 = vsub.f32 %v10202_v63, %v2604_v9  ;;  %v2872_v48 = vsub.f32 %v10206_v62, %v2604_v9  ;;  %v2873_v1 = vsub.f32 %v10236_v45, %v2604_v9  ;;  %6227 = vpow2.f32 %v3313_v7 }
 0x5a6   :  { %v6208_v40 = vpop.eup %6207  ;;  %v2874_v3 = vsub.f32 %v12723_v55, %v2604_v9  ;;  %v3921_v19 = vmul.f32 %v6202_v8, %v12724_v17  ;;  %v3745_v34 = vadd.f32 %v10874_v42, %v3744_v21  ;;  %6229 = vrcp.f32 %v12726_v15  ;;  %v12731_v55 = vld [vmem:[#allocation123_spill] sm:$0xff] }
 0x5a7   :  { %v3323_v44 = vmul.f32 1.442695, %v2871_v56  ;;  %v3325_v61 = vmul.f32 1.442695, %v2872_v48  ;;  %v3916_v63 = vmul.f32 %v6208_v40, %v12727_v28  ;;  %v3327_v62 = vmul.f32 1.442695, %v2873_v1 }
 0x5a8   :  { %v10882_v14 = vpop.eup %6209  ;;  %v3582_v45 = vpop.xlane.xlu1 %3581  ;;  %v3918_v7 = vmul.f32 %v6208_v40, %v12729_v52  ;;  %v3915_v9 = vmul.f32 %v6208_v40, %v12730_v31  ;;  %v3917_v8 = vmul.f32 %v6208_v40, %v12731_v55  ;;  %3746 = vadd.xlane.f32.xlu0 %v3745_v34  ;;  %v3329_v17 = vmul.f32 1.442695, %v2874_v3  ;;  %v12735_v3 = vld [vmem:[#allocation102_spill] sm:$0xff] }
 0x5a9   :  { %12725 = vst [vmem:[#allocation113_spill] sm:$0xff] %v10882_v14  ;;  %v10886_v5 = vpop.eup %6211  ;;  %6231 = vpow2.f32 %v3323_v44  ;;  %v4128_v21 = vpack.c.bf16 %v3920_v6, %v3916_v63  ;;  %v12734_v6 = vld [vmem:[#allocation96_spill] sm:$0xff] }
 0x5aa   :  { %12728 = vst [vmem:[#allocation73_spill] sm:$0xff] %v10886_v5  ;;  %v3753_v56 = vadd.f32 %v10886_v5, %v10882_v14  ;;  %v10893_v48 = vpop.eup %6213  ;;  %6233 = vpow2.f32 %v3325_v61  ;;  %v4130_v28 = vpack.c.bf16 %v3922_v50, %v3918_v7  ;;  %v4127_v15 = vpack.c.bf16 %v3919_v25, %v3915_v9  ;;  %v12736_v61 = vld [vmem:[#allocation95_spill] sm:$0xff]  ;;  %v12738_v9 = vld [vmem:[#allocation32_spill] sm:$0xff] }
 0x5ab   :  { %12732 = vst [vmem:[#allocation119_spill] sm:$0xff] %v10893_v48  ;;  %v4129_v1 = vpack.c.bf16 %v3921_v19, %v3917_v8  ;;  %4331 = vmatprep.mubr.bf16.mxu0 %v4128_v21  ;;  %v6216_v42 = vpop.eup %6215  ;;  %6235 = vpow2.f32 %v3327_v62  ;;  %v12737_v19 = vld [vmem:[#allocation99_spill] sm:$0xff] }
 0x5ac   :  { %v3754_v52 = vadd.f32 %v10893_v48, %v3753_v56  ;;  %4620 = vmatprep.mubr.bf16.mxu1 %v4130_v28  ;;  %4332 = vmatmul.mubr.bf16.gmra.mxu0 %v4127_v15  ;;  %v2614_v31 = vpop.xlane.xlu1 %2613  ;;  %v10896_v44 = vpop.eup %6217  ;;  %6237 = vrcp.f32 %v3582_v45  ;;  %v12739_v15 = vld [vmem:[#allocation76_spill] sm:$0xff] }
 0x5ad   :  { %12733 = vst [vmem:[#allocation80_spill] sm:$0xff] %v10896_v44  ;;  %4621 = vmatmul.mubr.bf16.gmra.mxu1 %v4129_v1  ;;  %v2879_v40 = vsub.f32 %v12734_v6, %v2614_v31  ;;  %v2880_v34 = vsub.f32 %v12735_v3, %v2614_v31  ;;  %v2881_v50 = vsub.f32 %v12736_v61, %v2614_v31  ;;  %6239 = vpow2.f32 %v3329_v17  ;;  %v12742_v61 = vld [vmem:[#allocation173_spill] sm:$0xff] }
 0x5ae   :  { %v10901_v25 = vpop.eup %6219  ;;  %v2882_v63 = vsub.f32 %v12737_v19, %v2614_v31  ;;  %v3755_v62 = vadd.f32 %v10896_v44, %v3754_v52  ;;  %6241 = vrcp.f32 %v12738_v9  ;;  %v3924_v1 = vmul.f32 %v6216_v42, %v12739_v15  ;;  %v12740_v31 = vld [vmem:[#allocation142_spill] sm:$0xff]  ;;  %v12743_v19 = vld [vmem:[#allocation107_spill] sm:$0xff] }
 0x5af   :  { %v10905_v7 = vpop.eup %6221  ;;  %v3339_v55 = vmul.f32 1.442695, %v2879_v40  ;;  %v3341_v45 = vmul.f32 1.442695, %v2880_v34  ;;  %v3343_v8 = vmul.f32 1.442695, %v2881_v50  ;;  %6243 = vrcp.f32 %v10686_v43 }
 0x5b0   :  { %v3345_v21 = vmul.f32 1.442695, %v2882_v63  ;;  %v3592_v56 = vpop.xlane.xlu1 %3591  ;;  %v3678_v28 = vadd.f32 %v10905_v7, %v10901_v25  ;;  %3756 = vadd.xlane.f32.xlu0 %v3755_v62  ;;  %v10911_v17 = vpop.eup %6223  ;;  %v3926_v6 = vmul.f32 %v6216_v42, %v12740_v31  ;;  %v12741_v40 = vld [vmem:[#allocation45_spill] sm:$0xff]  ;;  %v12744_v62 = vld [vmem:[#allocation51_spill] sm:$0xff] }
 0x5b1   :  { %6245 = vpow2.f32 %v3339_v55  ;;  %v6226_v52 = vpop.eup %6225  ;;  %v3923_v3 = vmul.f32 %v6216_v42, %v12741_v40  ;;  %v12745_v15 = vld [vmem:[#allocation83_spill] sm:$0xff] }
 0x5b2   :  { %6247 = vpow2.f32 %v3341_v45  ;;  %v3679_v34 = vadd.f32 %v10911_v17, %v3678_v28  ;;  %v10917_v43 = vpop.eup %6227  ;;  %v3928_v50 = vmul.f32 %v6226_v52, %v12742_v61  ;;  %v3930_v63 = vmul.f32 %v6226_v52, %v12743_v19  ;;  %v12746_v45 = vld [vmem:[#allocation91_spill] sm:$0xff] }
 0x5b3   :  { %6249 = vpow2.f32 %v3343_v8  ;;  %v3927_v9 = vmul.f32 %v6226_v52, %v12744_v62  ;;  %v6230_v55 = vpop.eup %6229  ;;  %v3925_v48 = vmul.f32 %v6216_v42, %v12745_v15  ;;  %v3929_v14 = vmul.f32 %v6226_v52, %v12746_v45  ;;  %v12750_v52 = vld [vmem:[#allocation28_spill] sm:$0xff] }
 0x5b4   :  { %6251 = vpow2.f32 %v3345_v21  ;;  %v2624_v31 = vpop.xlane.xlu1 %2623  ;;  %v3680_v40 = vadd.f32 %v10917_v43, %v3679_v34  ;;  %v4132_v28 = vpack.c.bf16 %v3928_v50, %v3924_v1  ;;  %v4134_v44 = vpack.c.bf16 %v3930_v63, %v3926_v6 }
 0x5b5   :  { %6253 = vrcp.f32 %v3592_v56  ;;  %v4131_v5 = vpack.c.bf16 %v3927_v9, %v3923_v3  ;;  %v4133_v61 = vpack.c.bf16 %v3929_v14, %v3925_v48  ;;  %v2887_v19 = vsub.f32 %v12747_v39, %v2624_v31  ;;  %v12753_v3 = vld [vmem:[#allocation82_spill] sm:$0xff]  ;;  %v12754_v9 = vld [vmem:[#allocation5_spill] sm:$0xff] }
 0x5b6   :  { %v10925_v8 = vpop.eup %6231  ;;  %v2888_v62 = vsub.f32 %v12748_v11, %v2624_v31  ;;  %v2889_v21 = vsub.f32 %v12749_v0, %v2624_v31  ;;  %3681 = vadd.xlane.f32.xlu1 %v3680_v40  ;;  %4339 = vmatprep.mubr.bf16.mxu0 %v4132_v28  ;;  %v2890_v34 = vsub.f32 %v12750_v52, %v2624_v31  ;;  %v12752_v0 = vld [vmem:[#allocation180_spill] sm:$0xff]  ;;  %v12755_v31 = vld [vmem:[#allocation162_spill] sm:$0xff] }
 0x5b7   :  { %v10930_v42 = vpop.eup %6233  ;;  %4628 = vmatprep.mubr.bf16.mxu1 %v4134_v44  ;;  %4340 = vmatmul.mubr.bf16.gmra.mxu0 %v4131_v5  ;;  %v3355_v56 = vmul.f32 1.442695, %v2887_v19  ;;  %v3932_v48 = vmul.f32 %v6230_v55, %v12752_v0  ;;  %v3934_v50 = vmul.f32 %v6230_v55, %v12753_v3  ;;  %v3931_v5 = vmul.f32 %v6230_v55, %v12754_v9  ;;  %v12756_v28 = vld [vmem:[#allocation88_spill] sm:$0xff]  ;;  %v12757_v19 = vld [vmem:[#allocation35_spill] sm:$0xff] }
 0x5b8   :  { %4629 = vmatmul.mubr.bf16.gmra.mxu1 %v4133_v61  ;;  %v3357_v1 = vmul.f32 1.442695, %v2888_v62  ;;  %v3602_v6 = vpop.xlane.xlu1 %3601  ;;  %v3688_v14 = vadd.f32 %v10930_v42, %v10925_v8  ;;  %v10935_v39 = vpop.eup %6235  ;;  %v3359_v11 = vmul.f32 1.442695, %v2889_v21  ;;  %v3361_v44 = vmul.f32 1.442695, %v2890_v34 }
 0x5b9   :  { %12751 = vst [vmem:[#allocation168_spill] sm:$0xff] %v10935_v39  ;;  %6255 = vrcp.f32 %v3602_v6  ;;  %v6238_v63 = vpop.eup %6237  ;;  %v12758_v52 = vld [vmem:[#allocation184_spill] sm:$0xff] }
 0x5ba   :  { %6257 = vpow2.f32 %v3355_v56  ;;  %v3689_v15 = vadd.f32 %v10935_v39, %v3688_v14  ;;  %v10941_v45 = vpop.eup %6239  ;;  %v3936_v40 = vmul.f32 %v6238_v63, %v12755_v31  ;;  %v3938_v61 = vmul.f32 %v6238_v63, %v12756_v28  ;;  %v12759_v56 = vld [vmem:[#allocation40_spill] sm:$0xff]  ;;  %v12763_v39 = vld [vmem:[#allocation157_spill] sm:$0xff] }
 0x5bb   :  { %6259 = vpow2.f32 %v3357_v1  ;;  %v3935_v62 = vmul.f32 %v6238_v63, %v12757_v19  ;;  %v6242_v21 = vpop.eup %6241  ;;  %v3933_v6 = vmul.f32 %v6230_v55, %v12758_v52  ;;  %v3937_v34 = vmul.f32 %v6238_v63, %v12759_v56  ;;  %v12761_v19 = vld [vmem:[#allocation103_spill] sm:$0xff] }
 0x5bc   :  { %6261 = vrcp.f32 %v10729_v12  ;;  %v2634_v0 = vpop.xlane.xlu1 %2633  ;;  %v3690_v3 = vadd.f32 %v10941_v45, %v3689_v15  ;;  %v10950_v14 = vpop.eup %6243  ;;  %v4136_v1 = vpack.c.bf16 %v3936_v40, %v3932_v48  ;;  %v4138_v9 = vpack.c.bf16 %v3938_v61, %v3934_v50 }
 0x5bd   :  { %6263 = vpow2.f32 %v3359_v11  ;;  %v4135_v31 = vpack.c.bf16 %v3935_v62, %v3931_v5  ;;  %v4137_v28 = vpack.c.bf16 %v3937_v34, %v3933_v6  ;;  %v2895_v18 = vsub.f32 %v12761_v19, %v2634_v0  ;;  %v12765_v11 = vld [vmem:[#allocation155_spill] sm:$0xff]  ;;  %v12768_v34 = vld [vmem:[#allocation186_spill] sm:$0xff] }
 0x5be   :  { %v10952_v49 = vpop.eup %6245  ;;  %v2896_v12 = vsub.f32 %v12762_v24, %v2634_v0  ;;  %v2897_v55 = vsub.f32 %v12763_v39, %v2634_v0  ;;  %3691 = vadd.xlane.f32.xlu1 %v3690_v3  ;;  %6265 = vpow2.f32 %v3361_v44  ;;  %4347 = vmatprep.mubr.bf16.mxu0 %v4136_v1  ;;  %v2898_v48 = vsub.f32 %v12765_v11, %v2634_v0  ;;  %v12766_v39 = vld [vmem:[#allocation187_spill] sm:$0xff]  ;;  %v12767_v44 = vld [vmem:[#allocation66_spill] sm:$0xff]  ;;  %v12772_v11 = vld [vmem:[#allocation188_spill] sm:$0xff] }
 0x5bf   :  { %12760 = vst [vmem:[#allocation34_spill] sm:$0xff] %v10952_v49  ;;  %v10957_v63 = vpop.eup %6247  ;;  %4636 = vmatprep.mubr.bf16.mxu1 %v4138_v9  ;;  %4348 = vmatmul.mubr.bf16.gmra.mxu0 %v4135_v31  ;;  %v3371_v50 = vmul.f32 1.442695, %v2895_v18  ;;  %v3940_v62 = vmul.f32 %v6242_v21, %v12766_v39  ;;  %v3942_v52 = vmul.f32 %v6242_v21, %v12767_v44  ;;  %v12769_v18 = vld [vmem:[#allocation55_spill] sm:$0xff]  ;;  %v12770_v9 = vld [vmem:[#allocation25_spill] sm:$0xff] }
 0x5c0   :  { %12764 = vst [vmem:[#allocation105_spill] sm:$0xff] %v10957_v63  ;;  %v10959_v15 = vpop.eup %6249  ;;  %4637 = vmatmul.mubr.bf16.gmra.mxu1 %v4137_v28  ;;  %v3373_v5 = vmul.f32 1.442695, %v2896_v12  ;;  %v3612_v40 = vpop.xlane.xlu1 %3611  ;;  %v3698_v24 = vadd.f32 %v10957_v63, %v10952_v49  ;;  %v3375_v56 = vmul.f32 1.442695, %v2897_v55  ;;  %v3939_v3 = vmul.f32 %v6242_v21, %v12768_v34  ;;  %v12771_v28 = vld [vmem:[#allocation92_spill] sm:$0xff] }
 0x5c1   :  { %v10964_v61 = vpop.eup %6251  ;;  %6267 = vrcp.f32 %v3612_v40  ;;  %v3377_v12 = vmul.f32 1.442695, %v2898_v48  ;;  %v3941_v40 = vmul.f32 %v6242_v21, %v12772_v11  ;;  %v12773_v39 = vld [vmem:[#allocation39_spill] sm:$0xff] }
 0x5c2   :  { %v6254_v6 = vpop.eup %6253  ;;  %6269 = vpow2.f32 %v3371_v50  ;;  %v3699_v0 = vadd.f32 %v10959_v15, %v3698_v24  ;;  %v12775_v48 = vld [vmem:[#allocation127_spill] sm:$0xff] }
 0x5c3   :  { %6271 = vpow2.f32 %v3373_v5  ;;  %v3944_v1 = vmul.f32 %v6254_v6, %v12769_v18  ;;  %v3946_v31 = vmul.f32 %v6254_v6, %v12770_v9  ;;  %v3943_v19 = vmul.f32 %v6254_v6, %v12771_v28  ;;  %v12774_v5 = vld [vmem:[#allocation110_spill] sm:$0xff] }
 0x5c4   :  { %v3945_v49 = vmul.f32 %v6254_v6, %v12773_v39  ;;  %v3700_v44 = vadd.f32 %v10964_v61, %v3699_v0  ;;  %6273 = vpow2.f32 %v3375_v56  ;;  %v3948_v18 = vmul.f32 %v10950_v14, %v12774_v5  ;;  %v12776_v28 = vld [vmem:[#allocation154_spill] sm:$0xff]  ;;  %v12777_v0 = vld [vmem:[#allocation69_spill] sm:$0xff] }
 0x5c5   :  { %v4140_v50 = vpack.c.bf16 %v3944_v1, %v3940_v62  ;;  %v4142_v55 = vpack.c.bf16 %v3946_v31, %v3942_v52  ;;  %v4139_v63 = vpack.c.bf16 %v3943_v19, %v3939_v3  ;;  %v3950_v6 = vmul.f32 %v10950_v14, %v12776_v28  ;;  %v12779_v31 = vld [vmem:[#allocation109_spill] sm:$0xff] }
 0x5c6   :  { %v6256_v34 = vpop.eup %6255  ;;  %v4141_v24 = vpack.c.bf16 %v3945_v49, %v3941_v40  ;;  %3701 = vadd.xlane.f32.xlu1 %v3700_v44  ;;  %6275 = vpow2.f32 %v3377_v12  ;;  %v12778_v49 = vld [vmem:[#allocation42_spill] sm:$0xff]  ;;  %v12781_v28 = vld [vmem:[#allocation189_spill] sm:$0xff]  ;;  %v12782_v12 = vld [vmem:[#allocation56_spill] sm:$0xff] }
 0x5c7   :  { %v10978_v9 = vpop.eup %6257  ;;  %4355 = vmatprep.mubr.bf16.mxu0 %v4140_v50  ;;  %4644 = vmatprep.mubr.bf16.mxu1 %v4142_v55  ;;  %v3952_v21 = vmul.f32 %v6256_v34, %v12775_v48  ;;  %v3954_v62 = vmul.f32 %v6256_v34, %v12777_v0  ;;  %v3951_v56 = vmul.f32 %v6256_v34, %v12778_v49  ;;  %6277 = vrcp.f32 %v10775_v22 }
 0x5c8   :  { %v4301_v52 = vpop.f32.mrf.mxu0  ;;  %v4590_v3 = vpop.f32.mrf.mxu1  ;;  %4356 = vmatmul.mubr.bf16.gmra.mxu0 %v4139_v63  ;;  %4645 = vmatmul.mubr.bf16.gmra.mxu1 %v4141_v24  ;;  %v3953_v19 = vmul.f32 %v6256_v34, %v12779_v31  ;;  %v3947_v63 = vmul.f32 %v10950_v14, %v12781_v28  ;;  %v3949_v24 = vmul.f32 %v10950_v14, %v12782_v12  ;;  %v12787_v12 = vld [vmem:[#allocation112_spill] sm:$0xff] }
 0x5c9   :  { %v10984_v1 = vpop.eup %6259  ;;  %v10988_v11 = vadd.f32 %v4590_v3, %v4301_v52  ;;  %v4144_v39 = vpack.c.bf16 %v3952_v21, %v3948_v18  ;;  %v4146_v44 = vpack.c.bf16 %v3954_v62, %v3950_v6 }
 0x5ca   :  { %v6262_v40 = vpop.eup %6261  ;;  %v3708_v50 = vadd.f32 %v10984_v1, %v10978_v9  ;;  %v4303_v55 = vpop.f32.mrf.mxu0  ;;  %v4143_v6 = vpack.c.bf16 %v3951_v56, %v3947_v63  ;;  %v4145_v62 = vpack.c.bf16 %v3953_v19, %v3949_v24  ;;  %v12788_v19 = vld [vmem:[#allocation164_spill] sm:$0xff] }
 0x5cb   :  { %12780 = vst [vmem:[#allocation171_spill] sm:$0xff] %v10988_v11  ;;  %v4592_v5 = vpop.f32.mrf.mxu1  ;;  %v10992_v48 = vpop.eup %6263  ;;  %4363 = vmatprep.mubr.bf16.mxu0 %v4144_v39  ;;  %4652 = vmatprep.mubr.bf16.mxu1 %v4146_v44  ;;  %v12785_v44 = vld [vmem:[#allocation117_spill] sm:$0xff]  ;;  %v3958_v56 = vmul.f32 %v6262_v40, %v12787_v12 }
 0x5cc   :  { %v3709_v34 = vadd.f32 %v10992_v48, %v3708_v50  ;;  %v4304_v0 = vpop.f32.mrf.mxu0  ;;  %v10999_v21 = vpop.eup %6265  ;;  %v3956_v50 = vmul.f32 %v6262_v40, %v12785_v44  ;;  %v12786_v5 = vld [vmem:[#allocation64_spill] sm:$0xff]  ;;  %v12791_v11 = vld [vmem:[#allocation145_spill] sm:$0xff] }
 0x5cd   :  { %v4593_v18 = vpop.f32.mrf.mxu1 }
 0x5ce   :  { %v11001_v52 = vadd.f32 %v4593_v18, %v4304_v0  ;;  %v3710_v3 = vadd.f32 %v10999_v21, %v3709_v34  ;;  %v4306_v49 = vpop.f32.mrf.mxu0  ;;  %v6268_v55 = vpop.eup %6267  ;;  %v12789_v34 = vld [vmem:[#allocation57_spill] sm:$0xff] }
 0x5cf   :  { %v4595_v31 = vpop.f32.mrf.mxu1  ;;  %v11006_v39 = vpop.eup %6269  ;;  %v3960_v28 = vmul.f32 %v6268_v55, %v12786_v5  ;;  %v3962_v63 = vmul.f32 %v6268_v55, %v12788_v19  ;;  %v3959_v0 = vmul.f32 %v6268_v55, %v12789_v34  ;;  %v12790_v18 = vld [vmem:[#allocation129_spill] sm:$0xff] }
 0x5d0   :  { %12783 = vst [vmem:[#allocation75_spill] sm:$0xff] %v11001_v52  ;;  %12784 = vst [vmem:[#allocation72_spill] sm:$0xff] %v11006_v39  ;;  %3711 = vadd.xlane.f32.xlu1 %v3710_v3  ;;  %v11012_v24 = vpop.eup %6271  ;;  %4364 = vmatmul.mubr.bf16.gmra.mxu0 %v4143_v6  ;;  %v3961_v49 = vmul.f32 %v6268_v55, %v12790_v18  ;;  %v3955_v3 = vmul.f32 %v6262_v40, %v12791_v11  ;;  %v12792_v52 = vld [vmem:[#allocation14_spill] sm:$0xff]  ;;  %v12798_v18 = vld [vmem:[#allocation149_spill] sm:$0xff] }
 0x5d1   :  { %4653 = vmatmul.mubr.bf16.gmra.mxu1 %v4145_v62  ;;  %v4148_v31 = vpack.c.bf16 %v3960_v28, %v3956_v50  ;;  %v4150_v14 = vpack.c.bf16 %v3962_v63, %v3958_v56  ;;  %v3957_v44 = vmul.f32 %v6262_v40, %v12792_v52  ;;  %v3718_v5 = vadd.f32 %v11012_v24, %v11006_v39  ;;  %v11020_v12 = vpop.eup %6273  ;;  %v12795_v40 = vld [vmem:[#allocation143_spill] sm:$0xff]  ;;  %v12796_v50 = vld [vmem:[#allocation18_spill] sm:$0xff] }
 0x5d2   :  { %12793 = vst [vmem:[#allocation182_spill] sm:$0xff] %v11020_v12  ;;  %v4147_v19 = vpack.c.bf16 %v3959_v0, %v3955_v3  ;;  %v12797_v56 = vld [vmem:[#allocation170_spill] sm:$0xff] }
 0x5d3   :  { %4371 = vmatprep.mubr.bf16.mxu0 %v4148_v31  ;;  %4660 = vmatprep.mubr.bf16.mxu1 %v4150_v14  ;;  %v4149_v6 = vpack.c.bf16 %v3961_v49, %v3957_v44  ;;  %v3719_v62 = vadd.f32 %v11020_v12, %v3718_v5  ;;  %v11023_v34 = vpop.eup %6275 }
 0x5d4   :  { %12794 = vst [vmem:[#allocation138_spill] sm:$0xff] %v11023_v34 }
 0x5d5   :  { %v3720_v55 = vadd.f32 %v11023_v34, %v3719_v62  ;;  %v12800_v62 = vld [vmem:[#allocation169_spill] sm:$0xff] }
 0x5d7   :  { %3721 = vadd.xlane.f32.xlu1 %v3720_v55 }
 0x5d8   :  { %4372 = vmatmul.mubr.bf16.gmra.mxu0 %v4147_v19  ;;  %v12799_v19 = vld [vmem:[#allocation79_spill] sm:$0xff] }
 0x5d9   :  { %4661 = vmatmul.mubr.bf16.gmra.mxu1 %v4149_v6 }
 0x5f1   :  { %v2644_v11 = vpop.xlane.xlu1 %2643 }
 0x5f2   :  { %v2903_v52 = vsub.f32 %v12795_v40, %v2644_v11  ;;  %v2904_v28 = vsub.f32 %v12796_v50, %v2644_v11  ;;  %v2905_v63 = vsub.f32 %v12797_v56, %v2644_v11  ;;  %v2906_v14 = vsub.f32 %v12798_v18, %v2644_v11  ;;  %v12801_v40 = vld [vmem:[#allocation137_spill] sm:$0xff]  ;;  %v12802_v11 = vld [vmem:[#allocation134_spill] sm:$0xff] }
 0x5f4   :  { %v3387_v0 = vmul.f32 1.442695, %v2903_v52  ;;  %v3389_v49 = vmul.f32 1.442695, %v2904_v28  ;;  %v3391_v31 = vmul.f32 1.442695, %v2905_v63 }
 0x5f5   :  { %v3622_v3 = vpop.xlane.xlu1 %3621  ;;  %v3393_v44 = vmul.f32 1.442695, %v2906_v14 }
 0x5f6   :  { %6279 = vpow2.f32 %v3387_v0  ;;  %v6278_v0 = vpop.eup %6277 }
 0x5f7   :  { %6281 = vpow2.f32 %v3389_v49  ;;  %v3647_v49 = vpop.xlane.xlu0 %3646 }
 0x5f8   :  { %6283 = vpow2.f32 %v3391_v31  ;;  %v12803_v31 = vld [vmem:[#allocation61_spill] sm:$0xff] }
 0x5f9   :  { %v2654_v5 = vpop.xlane.xlu1 %2653  ;;  %6285 = vrcp.f32 %v3622_v3 }
 0x5fa   :  { %v2911_v6 = vsub.f32 %v12799_v19, %v2654_v5  ;;  %v2912_v55 = vsub.f32 %v12800_v62, %v2654_v5  ;;  %v2913_v50 = vsub.f32 %v12801_v40, %v2654_v5  ;;  %6287 = vpow2.f32 %v3393_v44  ;;  %v12804_v19 = vld [vmem:[#allocation43_spill] sm:$0xff] }
 0x5fb   :  { %v2914_v52 = vsub.f32 %v12802_v11, %v2654_v5  ;;  %6289 = vrcp.f32 %v10806_v58  ;;  %v3657_v39 = vpop.xlane.xlu0 %3656 }
 0x5fc   :  { %v3403_v28 = vmul.f32 1.442695, %v2911_v6  ;;  %v3405_v56 = vmul.f32 1.442695, %v2912_v55  ;;  %v3407_v22 = vmul.f32 1.442695, %v2913_v50 }
 0x5fd   :  { %v3632_v63 = vpop.xlane.xlu1 %3631  ;;  %v3409_v18 = vmul.f32 1.442695, %v2914_v52 }
 0x5fe   :  { %6291 = vpow2.f32 %v3403_v28 }
 0x5ff   :  { %6293 = vpow2.f32 %v3405_v56 }
 0x600   :  { %6295 = vpow2.f32 %v3407_v22 }
 0x601   :  { %v2664_v14 = vpop.xlane.xlu1 %2663  ;;  %6297 = vrcp.f32 %v3632_v63 }
 0x602   :  { %v2919_v3 = vsub.f32 %v12803_v31, %v2664_v14  ;;  %v2920_v44 = vsub.f32 %v12804_v19, %v2664_v14  ;;  %v2921_v5 = vsub.f32 %v10631_v37, %v2664_v14  ;;  %6299 = vpow2.f32 %v3409_v18  ;;  %v12808_v37 = vld [vmem:[#allocation47_spill] sm:$0xff] }
 0x603   :  { %v11039_v6 = vpop.eup %6279  ;;  %v2922_v58 = vsub.f32 %v10707_v27, %v2664_v14  ;;  %6301 = vrcp.f32 %v10830_v57  ;;  %v3964_v22 = vmul.f32 %v6278_v0, %v12808_v37  ;;  %v12809_v27 = vld [vmem:[#allocation3_spill] sm:$0xff] }
 0x604   :  { %12805 = vst [vmem:[#allocation81_spill] sm:$0xff] %v11039_v6  ;;  %v11042_v62 = vpop.eup %6281  ;;  %v3419_v55 = vmul.f32 1.442695, %v2919_v3  ;;  %v3421_v40 = vmul.f32 1.442695, %v2920_v44  ;;  %6303 = vrcp.f32 %v3647_v49  ;;  %v3966_v18 = vmul.f32 %v6278_v0, %v12809_v27  ;;  %v12810_v14 = vld [vmem:[#allocation59_spill] sm:$0xff] }
 0x605   :  { %12806 = vst [vmem:[#allocation36_spill] sm:$0xff] %v11042_v62  ;;  %v3423_v50 = vmul.f32 1.442695, %v2921_v5  ;;  %v3425_v11 = vmul.f32 1.442695, %v2922_v58  ;;  %v3642_v52 = vpop.xlane.xlu1 %3641  ;;  %v3728_v28 = vadd.f32 %v11042_v62, %v11039_v6  ;;  %v11047_v56 = vpop.eup %6283  ;;  %v3963_v57 = vmul.f32 %v6278_v0, %v12810_v14  ;;  %v12811_v49 = vld [vmem:[#allocation167_spill] sm:$0xff] }
 0x606   :  { %12807 = vst [vmem:[#allocation175_spill] sm:$0xff] %v11047_v56  ;;  %6305 = vpow2.f32 %v3419_v55  ;;  %v6286_v63 = vpop.eup %6285  ;;  %v12812_v44 = vld [vmem:[#allocation60_spill] sm:$0xff]  ;;  %v12813_v58 = vld [vmem:[#allocation165_spill] sm:$0xff]  ;;  %v12814_v55 = vld [vmem:[#allocation7_spill] sm:$0xff] }
 0x607   :  { %6307 = vpow2.f32 %v3421_v40  ;;  %v3729_v31 = vadd.f32 %v11047_v56, %v3728_v28  ;;  %v11053_v3 = vpop.eup %6287  ;;  %v3968_v19 = vmul.f32 %v6286_v63, %v12811_v49  ;;  %v3970_v5 = vmul.f32 %v6286_v63, %v12812_v44  ;;  %v12815_v62 = vld [vmem:[#allocation52_spill] sm:$0xff] }
 0x608   :  { %6309 = vpow2.f32 %v3423_v50  ;;  %v3967_v6 = vmul.f32 %v6286_v63, %v12813_v58  ;;  %v3965_v37 = vmul.f32 %v6278_v0, %v12814_v55  ;;  %v3969_v40 = vmul.f32 %v6286_v63, %v12815_v62  ;;  %v6290_v14 = vpop.eup %6289  ;;  %v12820_v55 = vld [vmem:[#allocation115_spill] sm:$0xff] }
 0x609   :  { %6311 = vpow2.f32 %v3425_v11  ;;  %v2674_v12 = vpop.xlane.xlu1 %2673  ;;  %v3730_v27 = vadd.f32 %v11053_v3, %v3729_v31  ;;  %v4152_v28 = vpack.c.bf16 %v3968_v19, %v3964_v22  ;;  %v4154_v56 = vpack.c.bf16 %v3970_v5, %v3966_v18  ;;  %v12818_v31 = vld [vmem:[#allocation62_spill] sm:$0xff] }
 0x60a   :  { %6313 = vrcp.f32 %v3642_v52  ;;  %v4151_v50 = vpack.c.bf16 %v3967_v6, %v3963_v57  ;;  %v4153_v49 = vpack.c.bf16 %v3969_v40, %v3965_v37  ;;  %v2927_v44 = vsub.f32 %v10647_v46, %v2674_v12  ;;  %v12821_v40 = vld [vmem:[#allocation150_spill] sm:$0xff] }
 0x60b   :  { %v11061_v34 = vpop.eup %6291  ;;  %v2928_v11 = vsub.f32 %v10679_v33, %v2674_v12  ;;  %v2929_v0 = vsub.f32 %v10723_v2, %v2674_v12  ;;  %3731 = vadd.xlane.f32.xlu1 %v3730_v27  ;;  %4379 = vmatprep.mubr.bf16.mxu0 %v4152_v28  ;;  %v2930_v63 = vsub.f32 %v10747_v13, %v2674_v12  ;;  %6315 = vrcp.f32 %v3657_v39  ;;  %v12817_v2 = vld [vmem:[#allocation193_spill] sm:$0xff]  ;;  %v12819_v39 = vld [vmem:[#allocation192_spill] sm:$0xff]  ;;  %v12822_v28 = vld [vmem:[#allocation166_spill] sm:$0xff] }
 0x60c   :  { %v11066_v62 = vpop.eup %6293  ;;  %4668 = vmatprep.mubr.bf16.mxu1 %v4154_v56  ;;  %4380 = vmatmul.mubr.bf16.gmra.mxu0 %v4151_v50  ;;  %v3435_v6 = vmul.f32 1.442695, %v2927_v44  ;;  %v3972_v57 = vmul.f32 %v6290_v14, %v12817_v2  ;;  %v3974_v19 = vmul.f32 %v6290_v14, %v12818_v31  ;;  %v3971_v12 = vmul.f32 %v6290_v14, %v12819_v39  ;;  %v12823_v44 = vld [vmem:[#allocation67_spill] sm:$0xff] }
 0x60d   :  { %4669 = vmatmul.mubr.bf16.gmra.mxu1 %v4153_v49  ;;  %v3437_v52 = vmul.f32 1.442695, %v2928_v11  ;;  %v3652_v22 = vpop.xlane.xlu1 %3651  ;;  %v3738_v46 = vadd.f32 %v11066_v62, %v11061_v34  ;;  %v11071_v18 = vpop.eup %6295  ;;  %v3439_v33 = vmul.f32 1.442695, %v2929_v0  ;;  %v3441_v13 = vmul.f32 1.442695, %v2930_v63 }
 0x60e   :  { %12816 = vst [vmem:[#allocation183_spill] sm:$0xff] %v11071_v18  ;;  %6317 = vrcp.f32 %v3652_v22  ;;  %v6298_v56 = vpop.eup %6297  ;;  %v3973_v11 = vmul.f32 %v6290_v14, %v12823_v44  ;;  %v12824_v0 = vld [vmem:[#allocation48_spill] sm:$0xff] }
 0x60f   :  { %6319 = vpow2.f32 %v3435_v6  ;;  %v3739_v5 = vadd.f32 %v11071_v18, %v3738_v46  ;;  %v11077_v58 = vpop.eup %6299  ;;  %v3976_v37 = vmul.f32 %v6298_v56, %v12820_v55  ;;  %v3978_v27 = vmul.f32 %v6298_v56, %v12821_v40  ;;  %v12831_v44 = vld [vmem:[#allocation172_spill] sm:$0xff]  ;;  %v12836_v18 = vld [vmem:[#allocation90_spill] sm:$0xff] }
 0x610   :  { %6321 = vpow2.f32 %v3437_v52  ;;  %v3975_v50 = vmul.f32 %v6298_v56, %v12822_v28  ;;  %v6302_v49 = vpop.eup %6301  ;;  %v3977_v22 = vmul.f32 %v6298_v56, %v12824_v0 }
 0x611   :  { %v3662_v6 = vpop.xlane.xlu1 %3661  ;;  %v3740_v63 = vadd.f32 %v11077_v58, %v3739_v5  ;;  %v11085_v2 = vpop.eup %6303  ;;  %6323 = vpow2.f32 %v3439_v33  ;;  %v4156_v46 = vpack.c.bf16 %v3976_v37, %v3972_v57  ;;  %v4158_v31 = vpack.c.bf16 %v3978_v27, %v3974_v19  ;;  %v12829_v37 = vld [vmem:[#allocation87_spill] sm:$0xff] }
 0x612   :  { %v4155_v52 = vpack.c.bf16 %v3975_v50, %v3971_v12  ;;  %v4157_v55 = vpack.c.bf16 %v3977_v22, %v3973_v11  ;;  %6325 = vrcp.f32 %v3662_v6  ;;  %v3667_v19 = vpop.xlane.xlu0 %3666  ;;  %v12828_v12 = vld [vmem:[#allocation20_spill] sm:$0xff]  ;;  %v3982_v27 = vmul.f32 %v6302_v49, %v12829_v37 }
 0x613   :  { %v11087_v39 = vpop.eup %6305  ;;  %3741 = vadd.xlane.f32.xlu1 %v3740_v63  ;;  %6327 = vpow2.f32 %v3441_v13  ;;  %4387 = vmatprep.mubr.bf16.mxu0 %v4156_v46  ;;  %v3980_v5 = vmul.f32 %v6302_v49, %v12828_v12  ;;  %v12830_v13 = vld [vmem:[#allocation9_spill] sm:$0xff]  ;;  %v3981_v11 = vmul.f32 %v6302_v49, %v12831_v44  ;;  %v12832_v22 = vld [vmem:[#allocation140_spill] sm:$0xff]  ;;  %v12833_v46 = vld [vmem:[#allocation139_spill] sm:$0xff] }
 0x614   :  { %12825 = vst [vmem:[#allocation98_spill] sm:$0xff] %v11087_v39  ;;  %v11089_v40 = vpop.eup %6307  ;;  %4676 = vmatprep.mubr.bf16.mxu1 %v4158_v31  ;;  %4388 = vmatmul.mubr.bf16.gmra.mxu0 %v4155_v52  ;;  %v3979_v50 = vmul.f32 %v6302_v49, %v12830_v13  ;;  %v12834_v52 = vld [vmem:[#allocation152_spill] sm:$0xff] }
 0x615   :  { %12826 = vst [vmem:[#allocation177_spill] sm:$0xff] %v11089_v40  ;;  %v11091_v14 = vpop.eup %6309  ;;  %4677 = vmatmul.mubr.bf16.gmra.mxu1 %v4157_v55  ;;  %v3748_v33 = vadd.f32 %v11089_v40, %v11087_v39 }
 0x616   :  { %12827 = vst [vmem:[#allocation108_spill] sm:$0xff] %v11091_v14  ;;  %v3672_v56 = vpop.xlane.xlu1 %3671  ;;  %v11095_v57 = vpop.eup %6311 }
 0x617   :  { %v6314_v28 = vpop.eup %6313  ;;  %6329 = vrcp.f32 %v3672_v56  ;;  %v3749_v0 = vadd.f32 %v11091_v14, %v3748_v33  ;;  %v4309_v39 = vpop.f32.mrf.mxu0 }
 0x618   :  { %v3984_v6 = vmul.f32 %v6314_v28, %v12832_v22  ;;  %v3986_v63 = vmul.f32 %v6314_v28, %v10505_v20  ;;  %v3983_v31 = vmul.f32 %v6314_v28, %v12833_v46  ;;  %v3985_v55 = vmul.f32 %v6314_v28, %v12834_v52  ;;  %v4598_v12 = vpop.f32.mrf.mxu1  ;;  %v11107_v56 = vpop.eup %6315  ;;  %v12835_v20 = vld [vmem:[#allocation38_spill] sm:$0xff] }
 0x619   :  { %6331 = vrcp.f32 %v3667_v19  ;;  %v3750_v37 = vadd.f32 %v11095_v57, %v3749_v0  ;;  %v4311_v14 = vpop.f32.mrf.mxu0  ;;  %v3988_v46 = vmul.f32 %v11085_v2, %v12835_v20  ;;  %v3990_v28 = vmul.f32 %v11085_v2, %v12836_v18 }
 0x61a   :  { %v4160_v13 = vpack.c.bf16 %v3984_v6, %v3980_v5  ;;  %v4162_v40 = vpack.c.bf16 %v3986_v63, %v3982_v27  ;;  %v4159_v49 = vpack.c.bf16 %v3983_v31, %v3979_v50  ;;  %v4161_v44 = vpack.c.bf16 %v3985_v55, %v3981_v11  ;;  %v4600_v33 = vpop.f32.mrf.mxu1 }
 0x61b   :  { %v6318_v22 = vpop.eup %6317  ;;  %3751 = vadd.xlane.f32.xlu1 %v3750_v37  ;;  %v4599_v19 = vadd.f32 %v4598_v12, %v4309_v39  ;;  %v4312_v0 = vpop.f32.mrf.mxu0 }
 0x61c   :  { %v11113_v52 = vpop.eup %6319  ;;  %4395 = vmatprep.mubr.bf16.mxu0 %v4160_v13  ;;  %4684 = vmatprep.mubr.bf16.mxu1 %v4162_v40  ;;  %v4601_v5 = vpop.f32.mrf.mxu1  ;;  %v3992_v27 = vmul.f32 %v6318_v22, %v10521_v59  ;;  %v3994_v50 = vmul.f32 %v6318_v22, %v10540_v60  ;;  %v3991_v6 = vmul.f32 %v6318_v22, %v10515_v30  ;;  %v12837_v60 = vld [vmem:[#allocation13_spill] sm:$0xff]  ;;  %v12838_v13 = vld [vmem:[#allocation27_spill] sm:$0xff] }
 0x61d   :  { %v11117_v14 = vpop.eup %6321  ;;  %4396 = vmatmul.mubr.bf16.gmra.mxu0 %v4159_v49  ;;  %4685 = vmatmul.mubr.bf16.gmra.mxu1 %v4161_v44  ;;  %v4602_v11 = vadd.f32 %v4601_v5, %v4312_v0  ;;  %v3993_v18 = vmul.f32 %v6318_v22, %v10531_v41  ;;  %v4314_v55 = vpop.f32.mrf.mxu0  ;;  %v3987_v37 = vmul.f32 %v11085_v2, %v12837_v60  ;;  %v12839_v30 = vld [vmem:[#allocation125_spill] sm:$0xff] }
 0x61e   :  { %v4164_v63 = vpack.c.bf16 %v3992_v27, %v3988_v46  ;;  %v4166_v31 = vpack.c.bf16 %v3994_v50, %v3990_v28  ;;  %v4603_v40 = vpop.f32.mrf.mxu1  ;;  %v3758_v39 = vadd.f32 %v11117_v14, %v11113_v52  ;;  %v11123_v12 = vpop.eup %6323  ;;  %v3989_v49 = vmul.f32 %v11085_v2, %v12838_v13  ;;  %v12840_v22 = vld [vmem:[#allocation41_spill] sm:$0xff] }
 0x61f   :  { %v4797_v59 = vpack.c.bf16 %v4602_v11, %v4599_v19  ;;  %v6326_v44 = vpop.eup %6325  ;;  %v3996_v33 = vmul.f32 %v11107_v56, %v12839_v30  ;;  %v3998_v20 = vmul.f32 %v11107_v56, %v12840_v22  ;;  %v4163_v28 = vpack.c.bf16 %v3991_v6, %v3987_v37 }
 0x620   :  { %4403 = vmatprep.mubr.bf16.mxu0 %v4164_v63  ;;  %4692 = vmatprep.mubr.bf16.mxu1 %v4166_v31  ;;  %v3759_v41 = vadd.f32 %v11123_v12, %v3758_v39  ;;  %v11134_v46 = vpop.eup %6327  ;;  %v4165_v19 = vpack.c.bf16 %v3993_v18, %v3989_v49  ;;  %v4000_v2 = vmul.f32 %v6326_v44, %v10591_v32 }
 0x621   :  { %v4317_v0 = vpop.f32.mrf.mxu0  ;;  %4829 = vrot.lane.b32.xlu0 %v4797_v59, %s6372_s7  ;;  %v4002_v5 = vmul.f32 %v6326_v44, %v10610_v38  ;;  %v3999_v60 = vmul.f32 %v6326_v44, %v10579_v10  ;;  %v4001_v37 = vmul.f32 %v6326_v44, %v10600_v54  ;;  %v12844_v10 = vld [vmem:[#allocation22_spill] sm:$0xff] }
 0x622   :  { %v3760_v27 = vadd.f32 %v11134_v46, %v3759_v41  ;;  %v4606_v50 = vpop.f32.mrf.mxu1  ;;  %v4168_v63 = vpack.c.bf16 %v4000_v2, %v3996_v33  ;;  %v12841_v33 = vld [vmem:[#allocation15_spill] sm:$0xff] }
 0x623   :  { %v11140_v11 = vadd.f32 %v4606_v50, %v4317_v0  ;;  %v4170_v31 = vpack.c.bf16 %v4002_v5, %v3998_v20  ;;  %v4319_v55 = vpop.f32.mrf.mxu0  ;;  %v3995_v22 = vmul.f32 %v11107_v56, %v12841_v33  ;;  %v12842_v20 = vld [vmem:[#allocation133_spill] sm:$0xff]  ;;  %v12843_v0 = vld [vmem:[#allocation130_spill] sm:$0xff] }
 0x624   :  { %v6330_v40 = vpop.eup %6329  ;;  %3761 = vadd.xlane.f32.xlu1 %v3760_v27  ;;  %v4608_v39 = vpop.f32.mrf.mxu1 }
 0x625   :  { %4404 = vmatmul.mubr.bf16.gmra.mxu0 %v4163_v28  ;;  %4693 = vmatmul.mubr.bf16.gmra.mxu1 %v4165_v19  ;;  %v4320_v6 = vpop.f32.mrf.mxu0  ;;  %v4008_v49 = vmul.f32 %v6330_v40, %v10667_v16  ;;  %v4010_v41 = vmul.f32 %v6330_v40, %v10810_v4  ;;  %v3997_v28 = vmul.f32 %v11107_v56, %v12842_v20 }
 0x626   :  { %v6332_v18 = vpop.eup %6331  ;;  %4411 = vmatprep.mubr.bf16.mxu0 %v4168_v63  ;;  %4700 = vmatprep.mubr.bf16.mxu1 %v4170_v31  ;;  %v4609_v32 = vpop.f32.mrf.mxu1  ;;  %v4167_v44 = vpack.c.bf16 %v3999_v60, %v3995_v22 }
 0x627   :  { %v11142_v59 = vadd.f32 %v4609_v32, %v4320_v6  ;;  %v4322_v38 = vpop.f32.mrf.mxu0  ;;  %v4004_v2 = vmul.f32 %v6332_v18, %v12843_v0  ;;  %v4006_v5 = vmul.f32 %v6332_v18, %v12844_v10  ;;  %v4169_v27 = vpack.c.bf16 %v4001_v37, %v3997_v28  ;;  %v3677_v28 = vpop.xlane.xlu0 %3676 }
 0x628   :  { %v4611_v13 = vpop.f32.mrf.mxu1  ;;  %v4007_v32 = vmul.f32 %v6330_v40, %v10654_v47  ;;  %v4009_v38 = vmul.f32 %v6330_v40, %v10673_v36  ;;  %6333 = vrcp.f32 %v3677_v28 }
 0x629   :  { %v4798_v30 = vpack.c.bf16 %v11142_v59, %v11140_v11  ;;  %v4325_v19 = vpop.f32.mrf.mxu0  ;;  %v4172_v50 = vpack.c.bf16 %v4008_v49, %v4004_v2  ;;  %v4174_v63 = vpack.c.bf16 %v4010_v41, %v4006_v5  ;;  %v12845_v13 = vld [vmem:[#allocation124_spill] sm:$0xff]  ;;  %v12846_v41 = vld [vmem:[#allocation26_spill] sm:$0xff] }
 0x62a   :  { %v4614_v54 = vpop.f32.mrf.mxu1  ;;  %v4003_v49 = vmul.f32 %v6332_v18, %v12845_v13  ;;  %v4005_v33 = vmul.f32 %v6332_v18, %v12846_v41  ;;  %v12847_v5 = vld [vmem:[#allocation144_spill] sm:$0xff] }
 0x62b   :  { %v11156_v16 = vadd.f32 %v4614_v54, %v4325_v19  ;;  %v4327_v4 = vpop.f32.mrf.mxu0  ;;  %v3687_v0 = vpop.xlane.xlu0 %3686 }
 0x62c   :  { %v4616_v31 = vpop.f32.mrf.mxu1  ;;  %v4171_v22 = vpack.c.bf16 %v4007_v32, %v4003_v49  ;;  %v4173_v20 = vpack.c.bf16 %v4009_v38, %v4005_v33  ;;  %v12849_v33 = vld [vmem:[#allocation168_spill] sm:$0xff] }
 0x62d   :  { %4412 = vmatmul.mubr.bf16.gmra.mxu0 %v4167_v44  ;;  %4701 = vmatmul.mubr.bf16.gmra.mxu1 %v4169_v27  ;;  %v4328_v55 = vpop.f32.mrf.mxu0  ;;  %v12848_v31 = vld [vmem:[#allocation86_spill] sm:$0xff] }
 0x62e   :  { %4419 = vmatprep.mubr.bf16.mxu0 %v4172_v50  ;;  %4708 = vmatprep.mubr.bf16.mxu1 %v4174_v63  ;;  %v4617_v56 = vpop.f32.mrf.mxu1 }
 0x62f   :  { %v11158_v39 = vadd.f32 %v4617_v56, %v4328_v55  ;;  %v4330_v6 = vpop.f32.mrf.mxu0  ;;  %v3697_v40 = vpop.xlane.xlu0 %3696 }
 0x630   :  { %v4619_v60 = vpop.f32.mrf.mxu1 }
 0x631   :  { %v4799_v37 = vpack.c.bf16 %v11158_v39, %v11156_v16 }
 0x635   :  { %4420 = vmatmul.mubr.bf16.gmra.mxu0 %v4171_v22  ;;  %4709 = vmatmul.mubr.bf16.gmra.mxu1 %v4173_v20  ;;  %v6334_v36 = vpop.eup %6333 }
 0x636   :  { %v4012_v10 = vmul.f32 %v6334_v36, %v10682_v35  ;;  %v4014_v18 = vmul.f32 %v6334_v36, %v10713_v26  ;;  %v4011_v54 = vmul.f32 %v6334_v36, %v12847_v5  ;;  %v4013_v55 = vmul.f32 %v6334_v36, %v12848_v31  ;;  %v3707_v35 = vpop.xlane.xlu0 %3706 }
 0x63f   :  { %v3682_v19 = vpop.xlane.xlu1 %3681 }
 0x640   :  { %6335 = vrcp.f32 %v3682_v19 }
 0x641   :  { %6337 = vrcp.f32 %v3687_v0 }
 0x647   :  { %v3692_v47 = vpop.xlane.xlu1 %3691 }
 0x648   :  { %6339 = vrcp.f32 %v3692_v47 }
 0x649   :  { %6341 = vrcp.f32 %v3697_v40 }
 0x64d   :  { %v6336_v2 = vpop.eup %6335 }
 0x64e   :  { %v4016_v44 = vmul.f32 %v6336_v2, %v10905_v7  ;;  %v4018_v27 = vmul.f32 %v6336_v2, %v10917_v43  ;;  %v4015_v4 = vmul.f32 %v6336_v2, %v10901_v25  ;;  %v4017_v50 = vmul.f32 %v6336_v2, %v10911_v17  ;;  %v6338_v26 = vpop.eup %6337  ;;  %v12853_v2 = vld [vmem:[#allocation8_spill] sm:$0xff] }
 0x64f   :  { %v3702_v63 = vpop.xlane.xlu1 %3701  ;;  %v4020_v25 = vmul.f32 %v6338_v26, %v10739_v29  ;;  %v4022_v17 = vmul.f32 %v6338_v26, %v10757_v23  ;;  %v4019_v43 = vmul.f32 %v6338_v26, %v10731_v53  ;;  %v4021_v60 = vmul.f32 %v6338_v26, %v10751_v51  ;;  %v3717_v53 = vpop.xlane.xlu0 %3716  ;;  %v12850_v23 = vld [vmem:[#allocation89_spill] sm:$0xff] }
 0x650   :  { %6343 = vrcp.f32 %v3702_v63  ;;  %v4176_v56 = vpack.c.bf16 %v4016_v44, %v4012_v10  ;;  %v4178_v6 = vpack.c.bf16 %v4018_v27, %v4014_v18  ;;  %v4175_v32 = vpack.c.bf16 %v4015_v4, %v4011_v54  ;;  %v12854_v18 = vld [vmem:[#allocation105_spill] sm:$0xff]  ;;  %v12855_v44 = vld [vmem:[#allocation34_spill] sm:$0xff] }
 0x651   :  { %v4177_v38 = vpack.c.bf16 %v4017_v50, %v4013_v55  ;;  %6345 = vrcp.f32 %v3707_v35  ;;  %v12856_v35 = vld [vmem:[#allocation12_spill] sm:$0xff] }
 0x652   :  { %4427 = vmatprep.mubr.bf16.mxu0 %v4176_v56  ;;  %4716 = vmatprep.mubr.bf16.mxu1 %v4178_v6 }
 0x653   :  { %4428 = vmatmul.mubr.bf16.gmra.mxu0 %v4175_v32  ;;  %4717 = vmatmul.mubr.bf16.gmra.mxu1 %v4177_v38 }
 0x655   :  { %v6340_v7 = vpop.eup %6339 }
 0x656   :  { %v4024_v13 = vmul.f32 %v6340_v7, %v10930_v42  ;;  %v4026_v49 = vmul.f32 %v6340_v7, %v10941_v45  ;;  %v4023_v41 = vmul.f32 %v6340_v7, %v10925_v8  ;;  %v4025_v22 = vmul.f32 %v6340_v7, %v12849_v33  ;;  %v6342_v29 = vpop.eup %6341  ;;  %v12851_v45 = vld [vmem:[#allocation11_spill] sm:$0xff]  ;;  %v12852_v8 = vld [vmem:[#allocation84_spill] sm:$0xff]  ;;  %v12858_v7 = vld [vmem:[#allocation21_spill] sm:$0xff] }
 0x657   :  { %v4028_v42 = vmul.f32 %v6342_v29, %v12850_v23  ;;  %v4030_v36 = vmul.f32 %v6342_v29, %v12851_v45  ;;  %v4027_v40 = vmul.f32 %v6342_v29, %v12852_v8  ;;  %v4029_v10 = vmul.f32 %v6342_v29, %v12853_v2 }
 0x658   :  { %v4180_v28 = vpack.c.bf16 %v4024_v13, %v4020_v25  ;;  %v4182_v19 = vpack.c.bf16 %v4026_v49, %v4022_v17  ;;  %v4179_v0 = vpack.c.bf16 %v4023_v41, %v4019_v43  ;;  %v4181_v47 = vpack.c.bf16 %v4025_v22, %v4021_v60 }
 0x659   :  { %v3712_v20 = vpop.xlane.xlu1 %3711 }
 0x65a   :  { %6347 = vrcp.f32 %v3712_v20  ;;  %4435 = vmatprep.mubr.bf16.mxu0 %v4180_v28  ;;  %4724 = vmatprep.mubr.bf16.mxu1 %v4182_v19 }
 0x65b   :  { %4436 = vmatmul.mubr.bf16.gmra.mxu0 %v4179_v0  ;;  %4725 = vmatmul.mubr.bf16.gmra.mxu1 %v4181_v47  ;;  %6349 = vrcp.f32 %v3717_v53 }
 0x65d   :  { %v6344_v51 = vpop.eup %6343 }
 0x65e   :  { %v4032_v5 = vmul.f32 %v6344_v51, %v12854_v18  ;;  %v4034_v54 = vmul.f32 %v6344_v51, %v10964_v61  ;;  %v4031_v27 = vmul.f32 %v6344_v51, %v12855_v44  ;;  %v4033_v4 = vmul.f32 %v6344_v51, %v10959_v15  ;;  %v6346_v56 = vpop.eup %6345  ;;  %v12857_v61 = vld [vmem:[#allocation118_spill] sm:$0xff] }
 0x65f   :  { %v4036_v38 = vmul.f32 %v6346_v56, %v12856_v35  ;;  %v4038_v26 = vmul.f32 %v6346_v56, %v12857_v61  ;;  %v4035_v25 = vmul.f32 %v6346_v56, %v12858_v7  ;;  %v12859_v15 = vld [vmem:[#allocation174_spill] sm:$0xff] }
 0x660   :  { %v4184_v50 = vpack.c.bf16 %v4032_v5, %v4028_v42  ;;  %v4186_v63 = vpack.c.bf16 %v4034_v54, %v4030_v36  ;;  %v4183_v31 = vpack.c.bf16 %v4031_v27, %v4027_v40  ;;  %v4185_v55 = vpack.c.bf16 %v4033_v4, %v4029_v10  ;;  %v3722_v6 = vpop.xlane.xlu1 %3721  ;;  %v12862_v42 = vld [vmem:[#allocation70_spill] sm:$0xff]  ;;  %v12863_v36 = vld [vmem:[#allocation65_spill] sm:$0xff]  ;;  %v12865_v5 = vld [vmem:[#allocation72_spill] sm:$0xff] }
 0x661   :  { %6351 = vrcp.f32 %v3722_v6  ;;  %v4037_v17 = vmul.f32 %v6346_v56, %v12859_v15  ;;  %v12864_v10 = vld [vmem:[#allocation138_spill] sm:$0xff] }
 0x662   :  { %4443 = vmatprep.mubr.bf16.mxu0 %v4184_v50  ;;  %4732 = vmatprep.mubr.bf16.mxu1 %v4186_v63  ;;  %v12866_v44 = vld [vmem:[#allocation182_spill] sm:$0xff] }
 0x663   :  { %4444 = vmatmul.mubr.bf16.gmra.mxu0 %v4183_v31  ;;  %4733 = vmatmul.mubr.bf16.gmra.mxu1 %v4185_v55 }
 0x667   :  { %v6348_v32 = vpop.eup %6347 }
 0x668   :  { %v4040_v43 = vmul.f32 %v6348_v32, %v10984_v1  ;;  %v4042_v60 = vmul.f32 %v6348_v32, %v10999_v21  ;;  %v4039_v13 = vmul.f32 %v6348_v32, %v10978_v9  ;;  %v4041_v49 = vmul.f32 %v6348_v32, %v10992_v48  ;;  %v6350_v28 = vpop.eup %6349  ;;  %v12860_v9 = vld [vmem:[#allocation58_spill] sm:$0xff]  ;;  %v12861_v48 = vld [vmem:[#allocation176_spill] sm:$0xff] }
 0x669   :  { %v4044_v51 = vmul.f32 %v6350_v28, %v12860_v9  ;;  %v4046_v23 = vmul.f32 %v6350_v28, %v12861_v48  ;;  %v4043_v45 = vmul.f32 %v6350_v28, %v12862_v42  ;;  %v4045_v8 = vmul.f32 %v6350_v28, %v12863_v36 }
 0x66a   :  { %v4188_v41 = vpack.c.bf16 %v4040_v43, %v4036_v38  ;;  %v4190_v33 = vpack.c.bf16 %v4042_v60, %v4038_v26  ;;  %v4187_v22 = vpack.c.bf16 %v4039_v13, %v4035_v25  ;;  %v4189_v20 = vpack.c.bf16 %v4041_v49, %v4037_v17  ;;  %v5721_v13 = vld [vmem:[%s11433_s2 + $0x38] sm:$0xff]  }
 0x66b   :  { %5611 = vmatprep.subr.bf16.mxu0 %v5721_v13  ;;  %5643 = vmatprep.subr.bf16.mxu1 %v5721_v13 }
 0x66c   :  { %4451 = vmatprep.mubr.bf16.mxu0 %v4188_v41  ;;  %4740 = vmatprep.mubr.bf16.mxu1 %v4190_v33  ;;  %v4333_v19 = vpop.f32.mrf.mxu0 }
 0x66d   :  { %4452 = vmatmul.mubr.bf16.gmra.mxu0 %v4187_v22  ;;  %4741 = vmatmul.mubr.bf16.gmra.mxu1 %v4189_v20  ;;  %v4622_v0 = vpop.f32.mrf.mxu1 }
 0x66e   :  { %v11198_v47 = vadd.f32 %v4622_v0, %v4333_v19  ;;  %v4335_v1 = vpop.f32.mrf.mxu0  ;;  %v6352_v21 = vpop.eup %6351  ;;  %5612 = vmatpush3.bf16.msra.mxu0 %v5721_v13  ;;  %5651 = vmatpush3.bf16.msra.mxu1 %v5721_v13 }
 0x66f   :  { %v4624_v29 = vpop.f32.mrf.mxu1  ;;  %v4048_v2 = vmul.f32 %v6352_v21, %v11012_v24  ;;  %v4050_v18 = vmul.f32 %v6352_v21, %v12864_v10  ;;  %v4047_v54 = vmul.f32 %v6352_v21, %v12865_v5  ;;  %v4049_v27 = vmul.f32 %v6352_v21, %v12866_v44 }
 0x670   :  { %v4336_v53 = vpop.f32.mrf.mxu0 }
 0x671   :  { %v4625_v40 = vpop.f32.mrf.mxu1  ;;  %v4192_v63 = vpack.c.bf16 %v4048_v2, %v4044_v51  ;;  %v4194_v31 = vpack.c.bf16 %v4050_v18, %v4046_v23  ;;  %v4191_v55 = vpack.c.bf16 %v4047_v54, %v4043_v45  ;;  %v4193_v6 = vpack.c.bf16 %v4049_v27, %v4045_v8  ;;  %v3727_v2 = vpop.xlane.xlu0 %3726 }
 0x672   :  { %v11208_v4 = vadd.f32 %v4625_v40, %v4336_v53  ;;  %v4338_v50 = vpop.f32.mrf.mxu0  ;;  %6353 = vrcp.f32 %v3727_v2 }
 0x673   :  { %v4627_v56 = vpop.f32.mrf.mxu1  ;;  %4459 = vmatprep.mubr.bf16.mxu0 %v4192_v63  ;;  %4748 = vmatprep.mubr.bf16.mxu1 %v4194_v31 }
 0x674   :  { %v4800_v32 = vpack.c.bf16 %v11208_v4, %v11198_v47 }
 0x675   :  { %4460 = vmatmul.mubr.bf16.gmra.mxu0 %v4191_v55  ;;  %4749 = vmatmul.mubr.bf16.gmra.mxu1 %v4193_v6  ;;  %v3737_v56 = vpop.xlane.xlu0 %3736 }
 0x677   :  { %v4341_v24 = vpop.f32.mrf.mxu0 }
 0x678   :  { %v4630_v35 = vpop.f32.mrf.mxu1 }
 0x679   :  { %v4343_v38 = vpop.f32.mrf.mxu0  ;;  %v4631_v25 = vadd.f32 %v4630_v35, %v4341_v24 }
 0x67a   :  { %v4632_v61 = vpop.f32.mrf.mxu1  ;;  %v5722_v38 = vld [vmem:[%s11433_s2 + $0x30] sm:$0xff]  }
 0x67b   :  { %v4344_v26 = vpop.f32.mrf.mxu0  ;;  %5613 = vmatprep.subr.bf16.mxu0 %v5722_v38  ;;  %5644 = vmatprep.subr.bf16.mxu1 %v5722_v38 }
 0x67c   :  { %v4633_v7 = vpop.f32.mrf.mxu1  ;;  %5614 = vmatpush3.bf16.msra.mxu0 %v5722_v38  ;;  %5652 = vmatpush3.bf16.msra.mxu1 %v5722_v38 }
 0x67d   :  { %v4634_v15 = vadd.f32 %v4633_v7, %v4344_v26  ;;  %v4346_v17 = vpop.f32.mrf.mxu0 }
 0x67e   :  { %v4635_v43 = vpop.f32.mrf.mxu1 }
 0x67f   :  { %v4801_v60 = vpack.c.bf16 %v4634_v15, %v4631_v25  ;;  %v4349_v49 = vpop.f32.mrf.mxu0 }
 0x680   :  { %v4638_v41 = vpop.f32.mrf.mxu1 }
 0x681   :  { %4837 = vrot.lane.b32.xlu1 %v4801_v60, %s6372_s7  ;;  %v4351_v33 = vpop.f32.mrf.mxu0  ;;  %v4639_v19 = vadd.f32 %v4638_v41, %v4349_v49  ;;  %v6354_v49 = vpop.eup %6353 }
 0x682   :  { %v4640_v22 = vpop.f32.mrf.mxu1  ;;  %v3747_v41 = vpop.xlane.xlu0 %3746 }
 0x683   :  { %v4352_v20 = vpop.f32.mrf.mxu0  ;;  %v12867_v22 = vld [vmem:[#allocation16_spill] sm:$0xff] }
 0x684   :  { %v4641_v28 = vpop.f32.mrf.mxu1 }
 0x685   :  { %v4642_v0 = vadd.f32 %v4641_v28, %v4352_v20  ;;  %4831 = vrot.lane.b32.xlu1 %v4798_v30, %s6372_s7  ;;  %v4354_v1 = vpop.f32.mrf.mxu0  ;;  %v4052_v20 = vmul.f32 %v6354_v49, %v12867_v22  ;;  %v12868_v28 = vld [vmem:[#allocation23_spill] sm:$0xff]  ;;  %v12880_v22 = vld [vmem:[#allocation68_spill] sm:$0xff] }
 0x686   :  { %v4643_v29 = vpop.f32.mrf.mxu1 }
 0x687   :  { %v4802_v21 = vpack.c.bf16 %v4642_v0, %v4639_v19  ;;  %v4054_v19 = vmul.f32 %v6354_v49, %v12868_v28  ;;  %v12869_v0 = vld [vmem:[#allocation19_spill] sm:$0xff]  ;;  %v12870_v29 = vld [vmem:[#allocation36_spill] sm:$0xff]  ;;  %v12882_v28 = vld [vmem:[#allocation74_spill] sm:$0xff] }
 0x688   :  { %v4357_v53 = vpop.f32.mrf.mxu0  ;;  %v4646_v9 = vpop.f32.mrf.mxu1  ;;  %v4051_v1 = vmul.f32 %v6354_v49, %v12869_v0  ;;  %v12883_v0 = vld [vmem:[#allocation177_spill] sm:$0xff] }
 0x689   :  { %v11220_v51 = vadd.f32 %v4646_v9, %v4357_v53  ;;  %4839 = vrot.lane.b32.xlu0 %v4802_v21, %s6372_s7  ;;  %v12871_v9 = vld [vmem:[#allocation81_spill] sm:$0xff] }
 0x68a   :  { %v4359_v48 = vpop.f32.mrf.mxu0  ;;  %v4648_v23 = vpop.f32.mrf.mxu1 }
 0x68b   :  { %v12872_v23 = vld [vmem:[#allocation175_spill] sm:$0xff] }
 0x68c   :  { %v4360_v42 = vpop.f32.mrf.mxu0  ;;  %v4649_v45 = vpop.f32.mrf.mxu1 }
 0x68d   :  { %v11223_v36 = vadd.f32 %v4649_v45, %v4360_v42 }
 0x68e   :  { %v4362_v8 = vpop.f32.mrf.mxu0  ;;  %v4651_v40 = vpop.f32.mrf.mxu1 }
 0x68f   :  { %v4803_v11 = vpack.c.bf16 %v11223_v36, %v11220_v51  ;;  %v12873_v8 = vld [vmem:[#allocation178_spill] sm:$0xff] }
 0x690   :  { %v4365_v59 = vpop.f32.mrf.mxu0  ;;  %v4053_v40 = vmul.f32 %v6354_v49, %v12873_v8 }
 0x691   :  { %v4654_v30 = vpop.f32.mrf.mxu1 }
 0x692   :  { %v11227_v10 = vadd.f32 %v4654_v30, %v4365_v59  ;;  %v4367_v18 = vpop.f32.mrf.mxu0 }
 0x693   :  { %v4656_v5 = vpop.f32.mrf.mxu1 }
 0x694   :  { %v4368_v54 = vpop.f32.mrf.mxu0  ;;  %v3732_v50 = vpop.xlane.xlu1 %3731 }
 0x695   :  { %v4657_v44 = vpop.f32.mrf.mxu1  ;;  %6355 = vrcp.f32 %v3732_v50 }
 0x696   :  { %v11229_v27 = vadd.f32 %v4657_v44, %v4368_v54  ;;  %v4370_v55 = vpop.f32.mrf.mxu0  ;;  %6357 = vrcp.f32 %v3737_v56  ;;  %v3757_v54 = vpop.xlane.xlu0 %3756  ;;  %v12874_v44 = vld [vmem:[#allocation4_spill] sm:$0xff]  ;;  %v12876_v56 = vld [vmem:[#allocation179_spill] sm:$0xff] }
 0x697   :  { %v4659_v63 = vpop.f32.mrf.mxu1 }
 0x698   :  { %v4804_v31 = vpack.c.bf16 %v11229_v27, %v11227_v10  ;;  %v4373_v24 = vpop.f32.mrf.mxu0  ;;  %v12875_v63 = vld [vmem:[#allocation50_spill] sm:$0xff] }
 0x699   :  { %v4662_v6 = vpop.f32.mrf.mxu1 }
 0x69a   :  { %v4375_v61 = vpop.f32.mrf.mxu0  ;;  %v4663_v25 = vadd.f32 %v4662_v6, %v4373_v24  ;;  %v12877_v24 = vld [vmem:[#allocation121_spill] sm:$0xff] }
 0x69b   :  { %v4664_v35 = vpop.f32.mrf.mxu1 }
 0x69c   :  { %v4376_v7 = vpop.f32.mrf.mxu0  ;;  %v3742_v15 = vpop.xlane.xlu1 %3741 }
 0x69d   :  { %v4665_v26 = vpop.f32.mrf.mxu1  ;;  %6359 = vrcp.f32 %v3742_v15 }
 0x69e   :  { %v4666_v17 = vadd.f32 %v4665_v26, %v4376_v7  ;;  %v4378_v60 = vpop.f32.mrf.mxu0  ;;  %6361 = vrcp.f32 %v3747_v41  ;;  %v12878_v7 = vld [vmem:[#allocation183_spill] sm:$0xff] }
 0x69f   :  { %v4667_v43 = vpop.f32.mrf.mxu1 }
 0x6a0   :  { %v4805_v13 = vpack.c.bf16 %v4666_v17, %v4663_v25 }
 0x6a2   :  { %4853 = vrot.lane.b32.xlu1 %v4805_v13, %s6370_s0  ;;  %v6356_v33 = vpop.eup %6355 }
 0x6a3   :  { %v4056_v21 = vmul.f32 %v6356_v33, %v12870_v29  ;;  %v4058_v53 = vmul.f32 %v6356_v33, %v11053_v3  ;;  %v4055_v48 = vmul.f32 %v6356_v33, %v12871_v9  ;;  %v4057_v42 = vmul.f32 %v6356_v33, %v12872_v23  ;;  %v6358_v18 = vpop.eup %6357  ;;  %v12879_v33 = vld [vmem:[#allocation116_spill] sm:$0xff] }
 0x6a4   :  { %v3752_v45 = vpop.xlane.xlu1 %3751  ;;  %v4060_v3 = vmul.f32 %v6358_v18, %v12874_v44  ;;  %v4062_v55 = vmul.f32 %v6358_v18, %v12875_v63  ;;  %v4059_v6 = vmul.f32 %v6358_v18, %v12876_v56  ;;  %v4061_v35 = vmul.f32 %v6358_v18, %v12877_v24  ;;  %v12885_v9 = vld [vmem:[#allocation108_spill] sm:$0xff]  ;;  %v12889_v44 = vld [vmem:[#allocation119_spill] sm:$0xff] }
 0x6a5   :  { %6363 = vrcp.f32 %v3752_v45  ;;  %v4196_v59 = vpack.c.bf16 %v4056_v21, %v4052_v20  ;;  %v4198_v30 = vpack.c.bf16 %v4058_v53, %v4054_v19  ;;  %v4195_v2 = vpack.c.bf16 %v4055_v48, %v4051_v1  ;;  %v12881_v20 = vld [vmem:[#allocation30_spill] sm:$0xff]  ;;  %v12887_v18 = vld [vmem:[#allocation80_spill] sm:$0xff] }
 0x6a6   :  { %v4197_v5 = vpack.c.bf16 %v4057_v42, %v4053_v40  ;;  %6365 = vrcp.f32 %v3757_v54  ;;  %v12884_v21 = vld [vmem:[#allocation98_spill] sm:$0xff]  ;;  %v12888_v54 = vld [vmem:[#allocation113_spill] sm:$0xff] }
 0x6a7   :  { %4467 = vmatprep.mubr.bf16.mxu0 %v4196_v59  ;;  %4756 = vmatprep.mubr.bf16.mxu1 %v4198_v30  ;;  %v12886_v30 = vld [vmem:[#allocation73_spill] sm:$0xff] }
 0x6a8   :  { %4468 = vmatmul.mubr.bf16.gmra.mxu0 %v4195_v2  ;;  %4757 = vmatmul.mubr.bf16.gmra.mxu1 %v4197_v5 }
 0x6aa   :  { %v6360_v50 = vpop.eup %6359 }
 0x6ab   :  { %v4064_v38 = vmul.f32 %v6360_v50, %v11066_v62  ;;  %v4066_v61 = vmul.f32 %v6360_v50, %v11077_v58  ;;  %v4063_v26 = vmul.f32 %v6360_v50, %v11061_v34  ;;  %v4065_v25 = vmul.f32 %v6360_v50, %v12878_v7  ;;  %v6362_v49 = vpop.eup %6361  ;;  %v5723_v50 = vld [vmem:[%s11433_s2 + $0x28] sm:$0xff]  }
 0x6ac   :  { %v4068_v62 = vmul.f32 %v6362_v49, %v12879_v33  ;;  %v4070_v58 = vmul.f32 %v6362_v49, %v12880_v22  ;;  %v4067_v34 = vmul.f32 %v6362_v49, %v12881_v20  ;;  %v4069_v19 = vmul.f32 %v6362_v49, %v12882_v28  ;;  %5615 = vmatprep.subr.bf16.mxu0 %v5723_v50 }
 0x6ad   :  { %v3762_v15 = vpop.xlane.xlu1 %3761  ;;  %v4200_v17 = vpack.c.bf16 %v4064_v38, %v4060_v3  ;;  %v4202_v43 = vpack.c.bf16 %v4066_v61, %v4062_v55  ;;  %v4199_v60 = vpack.c.bf16 %v4063_v26, %v4059_v6  ;;  %v4201_v13 = vpack.c.bf16 %v4065_v25, %v4061_v35  ;;  %5645 = vmatprep.subr.bf16.mxu1 %v5723_v50 }
 0x6ae   :  { %6367 = vrcp.f32 %v3762_v15  ;;  %5616 = vmatpush3.bf16.msra.mxu0 %v5723_v50  ;;  %5653 = vmatpush3.bf16.msra.mxu1 %v5723_v50 }
 0x6af   :  { %4475 = vmatprep.mubr.bf16.mxu0 %v4200_v17  ;;  %4764 = vmatprep.mubr.bf16.mxu1 %v4202_v43 }
 0x6b0   :  { %4476 = vmatmul.mubr.bf16.gmra.mxu0 %v4199_v60  ;;  %4765 = vmatmul.mubr.bf16.gmra.mxu1 %v4201_v13 }
 0x6b2   :  { %v6364_v41 = vpop.eup %6363 }
 0x6b3   :  { %v4072_v1 = vmul.f32 %v6364_v41, %v12883_v0  ;;  %v4074_v29 = vmul.f32 %v6364_v41, %v11095_v57  ;;  %v4071_v53 = vmul.f32 %v6364_v41, %v12884_v21  ;;  %v4073_v48 = vmul.f32 %v6364_v41, %v12885_v9  ;;  %v6366_v40 = vpop.eup %6365 }
 0x6b4   :  { %v4076_v2 = vmul.f32 %v6366_v40, %v12886_v30  ;;  %v4078_v5 = vmul.f32 %v6366_v40, %v12887_v18  ;;  %v4075_v57 = vmul.f32 %v6366_v40, %v12888_v54  ;;  %v4077_v3 = vmul.f32 %v6366_v40, %v12889_v44 }
 0x6b5   :  { %v4204_v23 = vpack.c.bf16 %v4072_v1, %v4068_v62  ;;  %v4206_v42 = vpack.c.bf16 %v4074_v29, %v4070_v58  ;;  %v4203_v45 = vpack.c.bf16 %v4071_v53, %v4067_v34  ;;  %v4205_v8 = vpack.c.bf16 %v4073_v48, %v4069_v19 }
 0x6b7   :  { %4483 = vmatprep.mubr.bf16.mxu0 %v4204_v23  ;;  %4772 = vmatprep.mubr.bf16.mxu1 %v4206_v42 }
 0x6b8   :  { %4484 = vmatmul.mubr.bf16.gmra.mxu0 %v4203_v45  ;;  %4773 = vmatmul.mubr.bf16.gmra.mxu1 %v4205_v8 }
 0x6bb   :  { %v6368_v59 = vpop.eup %6367 }
 0x6bc   :  { %v4080_v63 = vmul.f32 %v6368_v59, %v11117_v14  ;;  %v4082_v55 = vmul.f32 %v6368_v59, %v11134_v46  ;;  %v4079_v56 = vmul.f32 %v6368_v59, %v11113_v52  ;;  %v4081_v6 = vmul.f32 %v6368_v59, %v11123_v12  ;;  %v5724_v14 = vld [vmem:[%s11433_s2 + $0x20] sm:$0xff]  }
 0x6bd   :  { %5617 = vmatprep.subr.bf16.mxu0 %v5724_v14  ;;  %5646 = vmatprep.subr.bf16.mxu1 %v5724_v14 }
 0x6be   :  { %v4208_v24 = vpack.c.bf16 %v4080_v63, %v4076_v2  ;;  %v4210_v35 = vpack.c.bf16 %v4082_v55, %v4078_v5  ;;  %v4207_v38 = vpack.c.bf16 %v4079_v56, %v4075_v57  ;;  %v4209_v61 = vpack.c.bf16 %v4081_v6, %v4077_v3  ;;  %5618 = vmatpush3.bf16.msra.mxu0 %v5724_v14 }
 0x6bf   :  { %5654 = vmatpush3.bf16.msra.mxu1 %v5724_v14 }
 0x6c0   :  { %4491 = vmatprep.mubr.bf16.mxu0 %v4208_v24  ;;  %4780 = vmatprep.mubr.bf16.mxu1 %v4210_v35 }
 0x6c1   :  { %4492 = vmatmul.mubr.bf16.gmra.mxu0 %v4207_v38  ;;  %4781 = vmatmul.mubr.bf16.gmra.mxu1 %v4209_v61 }
 0x6cc   :  { %v4381_v52 = vpop.f32.mrf.mxu0 }
 0x6cd   :  { %v4670_v12 = vpop.f32.mrf.mxu1 }
 0x6ce   :  { %v4383_v46 = vpop.f32.mrf.mxu0  ;;  %v4671_v15 = vadd.f32 %v4670_v12, %v4381_v52 }
 0x6cf   :  { %v4672_v26 = vpop.f32.mrf.mxu1 }
 0x6d0   :  { %v4384_v7 = vpop.f32.mrf.mxu0  ;;  %v12890_v26 = vld [vmem:[#allocation94_spill] sm:$0xff] }
 0x6d1   :  { %v4673_v25 = vpop.f32.mrf.mxu1 }
 0x6d2   :  { %v4674_v17 = vadd.f32 %v4673_v25, %v4384_v7  ;;  %v4386_v43 = vpop.f32.mrf.mxu0  ;;  %v12891_v7 = vld [vmem:[#allocation97_spill] sm:$0xff] }
 0x6d3   :  { %v4675_v60 = vpop.f32.mrf.mxu1  ;;  %v12892_v25 = vpack.c.bf16 %v12890_v26, %v12891_v7 }
 0x6d4   :  { %v4806_v13 = vpack.c.bf16 %v4674_v17, %v4671_v15  ;;  %v4389_v49 = vpop.f32.mrf.mxu0 }
 0x6d5   :  { %v4678_v41 = vpop.f32.mrf.mxu1 }
 0x6d6   :  { %v11275_v33 = vadd.f32 %v4678_v41, %v4389_v49  ;;  %4855 = vrot.lane.b32.xlu1 %v4806_v13, %s6370_s0  ;;  %v4391_v62 = vpop.f32.mrf.mxu0 }
 0x6d7   :  { %v4680_v22 = vpop.f32.mrf.mxu1 }
 0x6d8   :  { %v4392_v58 = vpop.f32.mrf.mxu0 }
 0x6d9   :  { %v4681_v20 = vpop.f32.mrf.mxu1 }
 0x6da   :  { %v11278_v34 = vadd.f32 %v4681_v20, %v4392_v58  ;;  %v4394_v28 = vpop.f32.mrf.mxu0 }
 0x6db   :  { %v4683_v19 = vpop.f32.mrf.mxu1 }
 0x6dc   :  { %v4807_v0 = vpack.c.bf16 %v11278_v34, %v11275_v33 }
 0x6dd   :  { %v4397_v1 = vpop.f32.mrf.mxu0  ;;  %v4686_v29 = vpop.f32.mrf.mxu1 }
 0x6de   :  { %v11282_v21 = vadd.f32 %v4686_v29, %v4397_v1  ;;  %v5725_v1 = vld [vmem:[%s11433_s2 + $0x18] sm:$0xff]  }
 0x6df   :  { %v4399_v53 = vpop.f32.mrf.mxu0  ;;  %v4688_v9 = vpop.f32.mrf.mxu1  ;;  %5619 = vmatprep.subr.bf16.mxu0 %v5725_v1  ;;  %5647 = vmatprep.subr.bf16.mxu1 %v5725_v1 }
 0x6e0   :  { %5620 = vmatpush3.bf16.msra.mxu0 %v5725_v1  ;;  %5655 = vmatpush3.bf16.msra.mxu1 %v5725_v1 }
 0x6e1   :  { %v4400_v48 = vpop.f32.mrf.mxu0  ;;  %v4689_v23 = vpop.f32.mrf.mxu1 }
 0x6e2   :  { %v11284_v42 = vadd.f32 %v4689_v23, %v4400_v48  ;;  %v5726_v48 = vld [vmem:[%s11433_s2 + $0x10] sm:$0xff]  }
 0x6e3   :  { %v4402_v45 = vpop.f32.mrf.mxu0  ;;  %v4691_v8 = vpop.f32.mrf.mxu1  ;;  %5621 = vmatprep.subr.bf16.mxu0 %v5726_v48  ;;  %5648 = vmatprep.subr.bf16.mxu1 %v5726_v48 }
 0x6e4   :  { %v4808_v40 = vpack.c.bf16 %v11284_v42, %v11282_v21  ;;  %v5727_v8 = vld [vmem:[%s11433_s2 + $0x8] sm:$0xff]   ;;  %5622 = vmatpush3.bf16.msra.mxu0 %v5726_v48  ;;  %5656 = vmatpush3.bf16.msra.mxu1 %v5726_v48 }
 0x6e5   :  { %v4405_v59 = vpop.f32.mrf.mxu0  ;;  %v4694_v30 = vpop.f32.mrf.mxu1  ;;  %5623 = vmatprep.subr.bf16.mxu0 %v5727_v8  ;;  %5649 = vmatprep.subr.bf16.mxu1 %v5727_v8 }
 0x6e6   :  { %v4695_v57 = vadd.f32 %v4694_v30, %v4405_v59 }
 0x6e7   :  { %v4407_v2 = vpop.f32.mrf.mxu0  ;;  %v4696_v18 = vpop.f32.mrf.mxu1 }
 0x6e8   :  { %v5728_v18 = vld [vmem:[%s11433_s2] sm:$0xff]   ;;  %5624 = vmatpush3.bf16.msra.mxu0 %v5727_v8  ;;  %5657 = vmatpush3.bf16.msra.mxu1 %v5727_v8 }
 0x6e9   :  { %v4408_v5 = vpop.f32.mrf.mxu0  ;;  %v4697_v54 = vpop.f32.mrf.mxu1  ;;  %5625 = vmatprep.subr.bf16.mxu0 %v5728_v18  ;;  %5650 = vmatprep.subr.bf16.mxu1 %v5728_v18 }
 0x6ea   :  { %v4698_v44 = vadd.f32 %v4697_v54, %v4408_v5 }
 0x6eb   :  { %v4410_v3 = vpop.f32.mrf.mxu0  ;;  %v4699_v50 = vpop.f32.mrf.mxu1 }
 0x6ec   :  { %v4809_v63 = vpack.c.bf16 %v4698_v44, %v4695_v57  ;;  %5626 = vmatpush3.bf16.msra.mxu0 %v5728_v18  ;;  %5658 = vmatpush3.bf16.msra.mxu1 %v5728_v18 }
 0x6ed   :  { %v4413_v55 = vpop.f32.mrf.mxu0  ;;  %v4702_v56 = vpop.f32.mrf.mxu1 }
 0x6ee   :  { %4861 = vrot.lane.b32.xlu0 %v4809_v63, %s6370_s0  ;;  %v4703_v61 = vadd.f32 %v4702_v56, %v4413_v55 }
 0x6ef   :  { %v4415_v6 = vpop.f32.mrf.mxu0  ;;  %v4704_v24 = vpop.f32.mrf.mxu1 }
 0x6f1   :  { %v4416_v35 = vpop.f32.mrf.mxu0  ;;  %v4705_v38 = vpop.f32.mrf.mxu1 }
 0x6f2   :  { %v4706_v14 = vadd.f32 %v4705_v38, %v4416_v35 }
 0x6f3   :  { %v4838_v52 = vpop.permute.xlu1 %4837  ;;  %v4418_v12 = vpop.f32.mrf.mxu0 }
 0x6f4   :  { %v4707_v46 = vpop.f32.mrf.mxu1  ;;  %v11293_v15 = vsel %vm671_vm0, %v12892_v25, %v4838_v52  ;;  %v4810_v17 = vpack.c.bf16 %v4706_v14, %v4703_v61 }
 0x6f5   :  { %v4421_v43 = vpop.f32.mrf.mxu0 }
 0x6f6   :  { %v4710_v60 = vpop.f32.mrf.mxu1  ;;  %4863 = vrot.lane.b32.xlu0 %v4810_v17, %s6370_s0 }
 0x6f7   :  { %v11295_v13 = vadd.f32 %v4710_v60, %v4421_v43  ;;  %v4423_v49 = vpop.f32.mrf.mxu0 }
 0x6f8   :  { %v4712_v41 = vpop.f32.mrf.mxu1 }
 0x6f9   :  { %v4424_v62 = vpop.f32.mrf.mxu0 }
 0x6fa   :  { %v4713_v22 = vpop.f32.mrf.mxu1 }
 0x6fb   :  { %v11298_v58 = vadd.f32 %v4713_v22, %v4424_v62  ;;  %v4426_v20 = vpop.f32.mrf.mxu0 }
 0x6fc   :  { %v4715_v28 = vpop.f32.mrf.mxu1 }
 0x6fd   :  { %v4811_v19 = vpack.c.bf16 %v11298_v58, %v11295_v13  ;;  %v12893_v58 = vld [vmem:[#allocation120_spill] sm:$0xff] }
 0x713   :  { %v4429_v29 = vpop.f32.mrf.mxu0  ;;  %v4718_v53 = vpop.f32.mrf.mxu1 }
 0x714   :  { %v11305_v9 = vadd.f32 %v4718_v53, %v4429_v29 }
 0x715   :  { %v4431_v23 = vpop.f32.mrf.mxu0  ;;  %v4720_v45 = vpop.f32.mrf.mxu1 }
 0x717   :  { %v4432_v59 = vpop.f32.mrf.mxu0  ;;  %v4721_v30 = vpop.f32.mrf.mxu1 }
 0x718   :  { %v11313_v2 = vadd.f32 %v4721_v30, %v4432_v59 }
 0x719   :  { %v4434_v5 = vpop.f32.mrf.mxu0  ;;  %v4723_v54 = vpop.f32.mrf.mxu1 }
 0x71a   :  { %v4812_v57 = vpack.c.bf16 %v11313_v2, %v11305_v9 }
 0x71b   :  { %v4437_v44 = vpop.f32.mrf.mxu0  ;;  %v4726_v3 = vpop.f32.mrf.mxu1 }
 0x71c   :  { %v4727_v6 = vadd.f32 %v4726_v3, %v4437_v44 }
 0x71d   :  { %v4439_v50 = vpop.f32.mrf.mxu0  ;;  %v4728_v63 = vpop.f32.mrf.mxu1 }
 0x71f   :  { %v4440_v55 = vpop.f32.mrf.mxu0  ;;  %v4729_v56 = vpop.f32.mrf.mxu1 }
 0x720   :  { %v4730_v24 = vadd.f32 %v4729_v56, %v4440_v55 }
 0x721   :  { %v4442_v35 = vpop.f32.mrf.mxu0  ;;  %v4731_v38 = vpop.f32.mrf.mxu1 }
 0x722   :  { %v4813_v61 = vpack.c.bf16 %v4730_v24, %v4727_v6 }
 0x723   :  { %v4445_v14 = vpop.f32.mrf.mxu0  ;;  %v4734_v52 = vpop.f32.mrf.mxu1 }
 0x724   :  { %4877 = vrot.lane.b32.xlu1 %v4813_v61, %s6371_s6  ;;  %v4735_v25 = vadd.f32 %v4734_v52, %v4445_v14 }
 0x725   :  { %v4447_v12 = vpop.f32.mrf.mxu0  ;;  %v4736_v46 = vpop.f32.mrf.mxu1 }
 0x727   :  { %v4448_v26 = vpop.f32.mrf.mxu0  ;;  %v4737_v7 = vpop.f32.mrf.mxu1 }
 0x728   :  { %v4738_v17 = vadd.f32 %v4737_v7, %v4448_v26 }
 0x729   :  { %v4450_v43 = vpop.f32.mrf.mxu0  ;;  %v4739_v60 = vpop.f32.mrf.mxu1 }
 0x72a   :  { %v4814_v49 = vpack.c.bf16 %v4738_v17, %v4735_v25 }
 0x72c   :  { %4879 = vrot.lane.b32.xlu1 %v4814_v49, %s6371_s6 }
 0x72d   :  { %v4453_v41 = vpop.f32.mrf.mxu0  ;;  %v4742_v62 = vpop.f32.mrf.mxu1 }
 0x72e   :  { %v4743_v39 = vadd.f32 %v4742_v62, %v4453_v41 }
 0x72f   :  { %v4455_v22 = vpop.f32.mrf.mxu0  ;;  %v4744_v20 = vpop.f32.mrf.mxu1 }
 0x730   :  { %4833 = vrot.lane.b32.xlu1 %v4799_v37, %s6372_s7 }
 0x731   :  { %v4456_v28 = vpop.f32.mrf.mxu0  ;;  %v4745_v1 = vpop.f32.mrf.mxu1 }
 0x732   :  { %v4746_v59 = vadd.f32 %v4745_v1, %v4456_v28 }
 0x733   :  { %v4458_v29 = vpop.f32.mrf.mxu0  ;;  %v4747_v53 = vpop.f32.mrf.mxu1 }
 0x734   :  { %4835 = vrot.lane.b32.xlu1 %v4800_v32, %s6372_s7  ;;  %v4815_v47 = vpack.c.bf16 %v4746_v59, %v4743_v39  ;;  %v12897_v39 = vld [vmem:[#allocation161_spill] sm:$0xff] }
 0x735   :  { %v4461_v48 = vpop.f32.mrf.mxu0  ;;  %v4750_v23 = vpop.f32.mrf.mxu1 }
 0x736   :  { %v4751_v32 = vadd.f32 %v4750_v23, %v4461_v48 }
 0x737   :  { %v4463_v45 = vpop.f32.mrf.mxu0  ;;  %v4752_v8 = vpop.f32.mrf.mxu1 }
 0x738   :  { %4857 = vrot.lane.b32.xlu1 %v4807_v0, %s6370_s0  ;;  %v4830_v45 = vpop.permute.xlu0 %4829 }
 0x739   :  { %v4464_v30 = vpop.f32.mrf.mxu0  ;;  %v4753_v16 = vpop.f32.mrf.mxu1 }
 0x73a   :  { %v4754_v4 = vadd.f32 %v4753_v16, %v4464_v30  ;;  %v12896_v16 = vld [vmem:[#allocation63_spill] sm:$0xff] }
 0x73b   :  { %v4466_v37 = vpop.f32.mrf.mxu0  ;;  %v4755_v18 = vpop.f32.mrf.mxu1 }
 0x73c   :  { %4859 = vrot.lane.b32.xlu1 %v4808_v40, %s6370_s0  ;;  %v4816_v5 = vpack.c.bf16 %v4754_v4, %v4751_v32  ;;  %v12898_v37 = vpack.c.bf16 %v12896_v16, %v12897_v39 }
 0x740   :  { %4881 = vrot.lane.b32.xlu1 %v4815_v47, %s6371_s6 }
 0x744   :  { %4883 = vrot.lane.b32.xlu1 %v4816_v5, %s6371_s6 }
 0x768   :  { %v4469_v33 = vpop.f32.mrf.mxu0  ;;  %v4758_v34 = vpop.f32.mrf.mxu1 }
 0x769   :  { %v4759_v50 = vadd.f32 %v4758_v34, %v4469_v33 }
 0x76a   :  { %v4471_v0 = vpop.f32.mrf.mxu0  ;;  %v4760_v54 = vpop.f32.mrf.mxu1 }
 0x76b   :  { %v12899_v54 = vld [vmem:[#allocation101_spill] sm:$0xff] }
 0x76c   :  { %v4472_v44 = vpop.f32.mrf.mxu0  ;;  %v4761_v3 = vpop.f32.mrf.mxu1 }
 0x76d   :  { %v4762_v63 = vadd.f32 %v4761_v3, %v4472_v44  ;;  %v12900_v44 = vld [vmem:[#allocation46_spill] sm:$0xff] }
 0x76e   :  { %v4474_v55 = vpop.f32.mrf.mxu0  ;;  %v4763_v56 = vpop.f32.mrf.mxu1  ;;  %v12901_v3 = vpack.c.bf16 %v12899_v54, %v12900_v44 }
 0x76f   :  { %v4817_v21 = vpack.c.bf16 %v4762_v63, %v4759_v50 }
 0x770   :  { %v4477_v42 = vpop.f32.mrf.mxu0  ;;  %v4766_v40 = vpop.f32.mrf.mxu1 }
 0x771   :  { %4885 = vrot.lane.b32.xlu0 %v4817_v21, %s6371_s6  ;;  %v4767_v61 = vadd.f32 %v4766_v40, %v4477_v42  ;;  %v12902_v21 = vld [vmem:[#allocation126_spill] sm:$0xff] }
 0x772   :  { %v4479_v6 = vpop.f32.mrf.mxu0  ;;  %v4768_v24 = vpop.f32.mrf.mxu1  ;;  %v12903_v42 = vld [vmem:[#allocation10_spill] sm:$0xff] }
 0x773   :  { %v12904_v40 = vpack.c.bf16 %v12902_v21, %v12903_v42 }
 0x774   :  { %v4480_v35 = vpop.f32.mrf.mxu0  ;;  %v4769_v38 = vpop.f32.mrf.mxu1 }
 0x775   :  { %v4770_v14 = vadd.f32 %v4769_v38, %v4480_v35 }
 0x776   :  { %v4482_v52 = vpop.f32.mrf.mxu0  ;;  %v4771_v12 = vpop.f32.mrf.mxu1 }
 0x777   :  { %v4818_v46 = vpack.c.bf16 %v4770_v14, %v4767_v61  ;;  %v4840_v61 = vpop.permute.xlu0 %4839 }
 0x778   :  { %v4485_v26 = vpop.f32.mrf.mxu0  ;;  %v4774_v7 = vpop.f32.mrf.mxu1 }
 0x779   :  { %4887 = vrot.lane.b32.xlu0 %v4818_v46, %s6371_s6  ;;  %v4775_v48 = vadd.f32 %v4774_v7, %v4485_v26  ;;  %v12905_v7 = vld [vmem:[#allocation148_spill] sm:$0xff] }
 0x77a   :  { %v4487_v25 = vpop.f32.mrf.mxu0  ;;  %v4776_v17 = vpop.f32.mrf.mxu1 }
 0x77b   :  { %v4862_v14 = vpop.permute.xlu0 %4861  ;;  %v12906_v25 = vld [vmem:[#allocation141_spill] sm:$0xff] }
 0x77c   :  { %v4488_v43 = vpop.f32.mrf.mxu0  ;;  %v4777_v60 = vpop.f32.mrf.mxu1  ;;  %v4927_v12 = vsel %vm4917_vm2, %v11293_v15, %v4862_v14  ;;  %v12907_v17 = vpack.c.bf16 %v12905_v7, %v12906_v25  ;;  %v12908_v15 = vld [vmem:[#allocation147_spill] sm:$0xff] }
 0x77d   :  { %4841 = vrot.lane.b32.xlu0 %v4803_v11, %s6372_s7  ;;  %v4832_v11 = vpop.permute.xlu1 %4831  ;;  %v4778_v53 = vadd.f32 %v4777_v60, %v4488_v43 }
 0x77e   :  { %v4490_v49 = vpop.f32.mrf.mxu0  ;;  %v4779_v41 = vpop.f32.mrf.mxu1  ;;  %v4898_v18 = vsel %vm671_vm0, %v12898_v37, %v4832_v11  ;;  %v4910_v43 = vsel %vm671_vm0, %v12907_v17, %v4840_v61 }
 0x77f   :  { %v4819_v27 = vpack.c.bf16 %v4778_v53, %v4775_v48  ;;  %v4864_v52 = vpop.permute.xlu0 %4863  ;;  %v12911_v48 = vld [vmem:[#allocation75_spill] sm:$0xff] }
 0x780   :  { %v4929_v60 = vsel %vm4917_vm2, %v4910_v43, %v4864_v52 }
 0x781   :  { %v4493_v62 = vpop.f32.mrf.mxu0  ;;  %v4782_v22 = vpop.f32.mrf.mxu1  ;;  %4843 = vrot.lane.b32.xlu0 %v4804_v31, %s6372_s7 }
 0x782   :  { %v4854_v10 = vpop.permute.xlu1 %4853  ;;  %v4783_v23 = vadd.f32 %v4782_v22, %v4493_v62 }
 0x783   :  { %v4495_v20 = vpop.f32.mrf.mxu0  ;;  %v4784_v28 = vpop.f32.mrf.mxu1 }
 0x785   :  { %v4496_v1 = vpop.f32.mrf.mxu0  ;;  %v4785_v29 = vpop.f32.mrf.mxu1  ;;  %4865 = vrot.lane.b32.xlu0 %v4811_v19, %s6370_s0  ;;  %v12894_v19 = vld [vmem:[#allocation146_spill] sm:$0xff] }
 0x786   :  { %v4786_v31 = vadd.f32 %v4785_v29, %v4496_v1  ;;  %v4856_v8 = vpop.permute.xlu1 %4855  ;;  %v12895_v59 = vpack.c.bf16 %v12893_v58, %v12894_v19  ;;  %v12909_v1 = vld [vmem:[#allocation100_spill] sm:$0xff] }
 0x787   :  { %v4498_v51 = vpop.f32.mrf.mxu0  ;;  %v4787_v36 = vpop.f32.mrf.mxu1  ;;  %v4921_v47 = vsel %vm4917_vm2, %v4898_v18, %v4856_v8  ;;  %v12910_v29 = vpack.c.bf16 %v12908_v15, %v12909_v1 }
 0x788   :  { %v4820_v13 = vpack.c.bf16 %v4786_v31, %v4783_v23  ;;  %v4895_v30 = vsel %vm671_vm0, %v12895_v59, %v4830_v45 }
 0x789   :  { %4867 = vrot.lane.b32.xlu0 %v4812_v57, %s6370_s0  ;;  %v4919_v9 = vsel %vm4917_vm2, %v4895_v30, %v4854_v10  ;;  %v12912_v10 = vld [vmem:[#allocation171_spill] sm:$0xff] }
 0x78d   :  { %4889 = vrot.lane.b32.xlu0 %v4819_v27, %s6371_s6  ;;  %v12913_v27 = vpack.c.bf16 %v12911_v48, %v12912_v10 }
 0x791   :  { %4891 = vrot.lane.b32.xlu0 %v4820_v13, %s6371_s6 }
 0x796   :  { %v4878_v2 = vpop.permute.xlu1 %4877 }
 0x797   :  { %v4936_v57 = vsel %vm4934_vm3, %v4919_v9, %v4878_v2 }
 0x798   :  { %5627 = vmatprep.mubr.bf16.mxu0 %v4936_v57 }
 0x79e   :  { %v4880_v4 = vpop.permute.xlu1 %4879 }
 0x79f   :  { %v4939_v32 = vsel %vm4934_vm3, %v4921_v47, %v4880_v4 }
 0x7a0   :  { %5628 = vmatmul.mubr.bf16.vlgmr.msra.gmra.mxu0 %v4939_v32 }
 0x7a2   :  { %v4834_v5 = vpop.permute.xlu1 %4833 }
 0x7a3   :  { %v4901_v50 = vsel %vm671_vm0, %v12901_v3, %v4834_v5 }
 0x7a6   :  { %v4836_v33 = vpop.permute.xlu1 %4835 }
 0x7a7   :  { %v4904_v6 = vsel %vm671_vm0, %v12904_v40, %v4836_v33 }
 0x7aa   :  { %v4858_v34 = vpop.permute.xlu1 %4857 }
 0x7ab   :  { %v4923_v63 = vsel %vm4917_vm2, %v4901_v50, %v4858_v34 }
 0x7ae   :  { %v4860_v0 = vpop.permute.xlu1 %4859 }
 0x7af   :  { %v4925_v24 = vsel %vm4917_vm2, %v4904_v6, %v4860_v0 }
 0x7b2   :  { %v4882_v55 = vpop.permute.xlu1 %4881 }
 0x7b3   :  { %v4942_v56 = vsel %vm4934_vm3, %v4923_v63, %v4882_v55 }
 0x7b4   :  { %5631 = vmatprep.mubr.bf16.mxu0 %v4942_v56 }
 0x7b6   :  { %v4884_v35 = vpop.permute.xlu1 %4883 }
 0x7b7   :  { %v4945_v38 = vsel %vm4934_vm3, %v4925_v24, %v4884_v35 }
 0x7b8   :  { %5632 = vmatmul.mubr.bf16.gmra.mxu0 %v4945_v38 }
 0x7e3   :  { %v4886_v46 = vpop.permute.xlu0 %4885 }
 0x7e4   :  { %v4948_v26 = vsel %vm4934_vm3, %v4927_v12, %v4886_v46 }
 0x7e5   :  { %5635 = vmatprep.mubr.bf16.mxu1 %v4948_v26 }
 0x7eb   :  { %v4888_v49 = vpop.permute.xlu0 %4887 }
 0x7ec   :  { %v4951_v41 = vsel %vm4934_vm3, %v4929_v60, %v4888_v49 }
 0x7ed   :  { %5636 = vmatmul.mubr.bf16.vlgmr.msra.gmra.mxu1 %v4951_v41 }
 0x7ef   :  { %v4842_v62 = vpop.permute.xlu0 %4841 }
 0x7f0   :  { %v4913_v51 = vsel %vm671_vm0, %v12910_v29, %v4842_v62 }
 0x7f3   :  { %v4844_v22 = vpop.permute.xlu0 %4843 }
 0x7f4   :  { %v4916_v31 = vsel %vm671_vm0, %v12913_v27, %v4844_v22 }
 0x7f7   :  { %v4866_v20 = vpop.permute.xlu0 %4865 }
 0x7f8   :  { %v4931_v36 = vsel %vm4917_vm2, %v4913_v51, %v4866_v20 }
 0x7fb   :  { %v4868_v28 = vpop.permute.xlu0 %4867 }
 0x7fc   :  { %v4933_v23 = vsel %vm4917_vm2, %v4916_v31, %v4868_v28 }
 0x7ff   :  { %v4890_v11 = vpop.permute.xlu0 %4889 }
 0x800   :  { %v4954_v53 = vsel %vm4934_vm3, %v4931_v36, %v4890_v11 }
 0x801   :  { %5639 = vmatprep.mubr.bf16.mxu1 %v4954_v53 }
 0x803   :  { %v4892_v45 = vpop.permute.xlu0 %4891 }
 0x804   :  { %v4957_v8 = vsel %vm4934_vm3, %v4933_v23, %v4892_v45 }
 0x805   :  { %5640 = vmatmul.mubr.bf16.gmra.mxu1 %v4957_v8 }
 0x860   :  { %v5629_v13 = vpop.f32.mrf.mxu0 }
 0x862   :  { %v5057_v58 = vpop.f32.mrf.mxu0 }
 0x864   :  { %v5630_v19 = vpop.f32.mrf.mxu0 }
 0x865   :  { %v5348_v59 = vpack.c.bf16 %v5630_v19, %v5629_v13 }
 0x866   :  { %v5060_v30 = vpop.f32.mrf.mxu0 }
 0x867   :  { %5380 = vst [vmem:[%s11434_s5 + $0x8] sm:$0xff] %v5348_v59   ;;  %v5343_v9 = vpack.c.bf16 %v5060_v30, %v5057_v58 }
 0x869   :  { %5344 = vst [vmem:[%s11434_s5] sm:$0xff] %v5343_v9  }
 0x878   :  { %v5633_v2 = vpop.f32.mrf.mxu0 }
 0x87a   :  { %v5073_v57 = vpop.f32.mrf.mxu0 }
 0x87c   :  { %v5634_v16 = vpop.f32.mrf.mxu0 }
 0x87d   :  { %v5358_v39 = vpack.c.bf16 %v5634_v16, %v5633_v2 }
 0x87e   :  { %v5076_v37 = vpop.f32.mrf.mxu0 }
 0x87f   :  { %5382 = vst [vmem:[%s11434_s5 + $0x18] sm:$0xff] %v5358_v39   ;;  %v5353_v18 = vpack.c.bf16 %v5076_v37, %v5073_v57 }
 0x881   :  { %5381 = vst [vmem:[%s11434_s5 + $0x10] sm:$0xff] %v5353_v18  }
 0x8ad   :  { %v5637_v47 = vpop.f32.mrf.mxu1 }
 0x8af   :  { %v5089_v4 = vpop.f32.mrf.mxu1 }
 0x8b1   :  { %v5638_v32 = vpop.f32.mrf.mxu1 }
 0x8b2   :  { %v5368_v5 = vpack.c.bf16 %v5638_v32, %v5637_v47 }
 0x8b3   :  { %v5092_v33 = vpop.f32.mrf.mxu1 }
 0x8b4   :  { %5384 = vst [vmem:[%s11434_s5 + $0x28] sm:$0xff] %v5368_v5   ;;  %v5363_v34 = vpack.c.bf16 %v5092_v33, %v5089_v4 }
 0x8b6   :  { %5383 = vst [vmem:[%s11434_s5 + $0x20] sm:$0xff] %v5363_v34  }
 0x8c5   :  { %v5641_v0 = vpop.f32.mrf.mxu1 }
 0x8c7   :  { %v5105_v54 = vpop.f32.mrf.mxu1 }
 0x8c9   :  { %v5642_v44 = vpop.f32.mrf.mxu1 }
 0x8ca   :  { %v5378_v3 = vpack.c.bf16 %v5642_v44, %v5641_v0 }
 0x8cb   :  { %v5108_v50 = vpop.f32.mrf.mxu1 }
 0x8cc   :  { %5386 = vst [vmem:[%s11434_s5 + $0x38] sm:$0xff] %v5378_v3   ;;  %v5373_v63 = vpack.c.bf16 %v5108_v50, %v5105_v54 }
 0x8ce   :  { %5385 = vst [vmem:[%s11434_s5 + $0x30] sm:$0xff] %v5373_v63  }

</bundles_post_ra>
